<compile_context>
chip_gen: v6e
topology: v6e:2x2x1
jax: 0.10.0
libtpu: 0.0.40
codegen_flags: <defaults>
</compile_context>

<pallas_src>
import functools

import jax
import jax.numpy as jnp
from jax.experimental import pallas as pl
from jax.experimental.pallas import tpu as pltpu


_NORMALIZE_FLAGS = (False, True, True, True)   # dis_block(..., normalize=...)
_EPS = 1e-5
_SLOPE = 0.2


# --------------------------------------------------------------------------
# Hardware-aware knobs.
# --------------------------------------------------------------------------
@functools.lru_cache(maxsize=None)
def _vmem_limit_bytes():
    """Generation-aware VMEM budget (v7x: 64 MiB physical, v5e/v6e: 128 MiB)."""
    cap = 64 * 1024 * 1024          # conservative fallback (v7x-sized)
    try:
        info = pltpu.get_tpu_info()
        c = int(getattr(info, "vmem_capacity_bytes", 0) or 0)
        if c > 0:
            cap = c
    except Exception:
        pass
    return max(32 * 1024 * 1024, min((cap * 3) // 4, 100 * 1024 * 1024))


@functools.lru_cache(maxsize=None)
def _wide_mxu():
    """True on 256-wide-MXU chips (v6e / v7x); False keeps 128-wide C tiles."""
    try:
        kind = jax.devices()[0].device_kind.lower()
    except Exception:
        return False
    return not any(tag in kind for tag in ("v2", "v3", "v4", "v5"))


def _compiler_params(semantics):
    return pltpu.CompilerParams(dimension_semantics=semantics,
                                vmem_limit_bytes=_vmem_limit_bytes())


def _choose_ptile(P, bytes_per_row):
    """Largest multiple-of-8 divisor of P that keeps the LHS block <~2 MiB and
    (when possible) exposes >=2 spatial grid steps."""
    cap_rows = max(8, (2 * 1024 * 1024) // max(int(bytes_per_row), 1))
    tgt = max(8, min(2048, cap_rows, P // 2 if P >= 16 else P))
    for d in range(min(tgt, P), 7, -1):
        if P % d == 0 and d % 8 == 0:
            return d
    return P


def _choose_ctile(Cout, batch):
    """Lane-dim tile for C_out.  256 on v6e/v7x when it still leaves >=2
    parallel grid steps (dual-TC v7x at batch=1), else 128; Cout itself when
    it is already <= 128."""
    if Cout <= 128 or Cout % 128 != 0:
        return Cout
    if _wide_mxu() and Cout % 256 == 0 and batch * (Cout // 256) >= 2:
        return 256
    return 128


def _round_up(x, m):
    return ((x + m - 1) // m) * m


# --------------------------------------------------------------------------
# Kernel 1: plain im2col matmul + bias [+ LeakyReLU]  (layer 1 and final conv)
#   x_ref : (tP, K)  bf16   im2col rows
#   w_ref : (K, tC)  bf16
#   b_ref : (1, tC)  f32
#   o_ref : (tP, tC)
# --------------------------------------------------------------------------
def _mm_bias_act_kernel(x_ref, w_ref, b_ref, o_ref, *, leaky, slope):
    y = jnp.dot(x_ref[...], w_ref[...], preferred_element_type=jnp.float32)
    y = y + b_ref[...]
    if leaky:
        y = jnp.maximum(y, slope * y)
    o_ref[...] = y.astype(o_ref.dtype)


def _mm_bias_act(x, w, b, *, leaky, out_dtype):
    """x: (N, P, K) bf16; w: (K, Cout) bf16; b: (1, Cout) f32."""
    N, P, K = x.shape
    Cout = w.shape[1]
    tP = _choose_ptile(P, K * 2)
    tC = _choose_ctile(Cout, N)
    kernel = functools.partial(_mm_bias_act_kernel, leaky=leaky, slope=_SLOPE)
    return pl.pallas_call(
        kernel,
        out_shape=jax.ShapeDtypeStruct((N, P, Cout), out_dtype),
        grid=(N, P // tP, Cout // tC),
        in_specs=[
            pl.BlockSpec((None, tP, K), lambda n, p, c: (n, p, 0)),
            pl.BlockSpec((K, tC), lambda n, p, c: (0, c)),
            pl.BlockSpec((1, tC), lambda n, p, c: (0, c)),
        ],
        out_specs=pl.BlockSpec((None, tP, tC), lambda n, p, c: (n, p, c)),
        compiler_params=_compiler_params(("parallel", "parallel", "parallel")),
    )(x, w, b)


# --------------------------------------------------------------------------
# Kernel 2: fused 4x4 stride-2 conv + bias + InstanceNorm2d + LeakyReLU(0.2)
# for the deep layers.  The 16 taps are folded into 2 dots of K = 8*Cin:
#   t_ref : (T, R, 8*Cin) bf16  row-group slabs (lane = (rowphase*4+kx)*Cin+ci)
#   w_ref : (2, 8*Cin, tC) bf16
#   b_ref : (1, tC)        f32
#   o_ref : (P, tC)        bf16
# tap_map[t] = (slab index, row offset); offsets are 0 or Wo (16-aligned in
# the aligned path), so every load is a plain static, tile-aligned slice.
# The MXU accumulates K internally -> only 2 accumulator sweeps, and the bias
# is folded into the accumulator init.
# --------------------------------------------------------------------------
def _rowgroup_conv_kernel(t_ref, w_ref, b_ref, o_ref, *, tap_map, normalize,
                          leaky, eps, slope):
    P = o_ref.shape[0]
    s0, r0 = tap_map[0]
    acc = b_ref[...] + jnp.dot(t_ref[s0, r0:r0 + P, :], w_ref[0],
                               preferred_element_type=jnp.float32)
    for i, (s, r) in enumerate(tap_map[1:], start=1):
        acc = acc + jnp.dot(t_ref[s, r:r + P, :], w_ref[i],
                            preferred_element_type=jnp.float32)
    y = acc
    if normalize:
        # InstanceNorm2d (affine=False): per-channel stats over the FULL
        # spatial extent of this sample (only C_out is tiled -> exact stats).
        # Two-pass centered variance kept on purpose (no E[x^2]-mean^2
        # cancellation risk); normalize / LeakyReLU / cast fuse into one sweep.
        mean = jnp.mean(y, axis=0, keepdims=True)
        var = jnp.mean(jnp.square(y - mean), axis=0, keepdims=True)
        y = (y - mean) * jax.lax.rsqrt(var + eps)
    if leaky:
        y = jnp.maximum(y, slope * y)
    o_ref[...] = y.astype(o_ref.dtype)


def _rowgroup_conv(slabs, w_taps, bias, *, tap_map, P, normalize, leaky,
                   out_dtype):
    N, T, R, K2 = slabs.shape
    Cout = w_taps.shape[-1]
    tC = _choose_ctile(Cout, N)
    kernel = functools.partial(_rowgroup_conv_kernel, tap_map=tuple(tap_map),
                               normalize=normalize, leaky=leaky,
                               eps=_EPS, slope=_SLOPE)
    # Grid order (N, Ctiles): the large activation slab keeps the same block
    # index across consecutive C tiles, so Pallas does not re-DMA it.  Weights
    # are re-fetched per sample, which only matters for layer 4 at large batch.
    # TODO(synk): swap to (Ctiles, N) for the weight-heavy layers when batch>>2.
    # TODO(synk): batch=1 + Cout=128 (layer 2) exposes a single grid step; a
    # cross-tile partial-sum InstanceNorm would be needed to split P on v7x.
    return pl.pallas_call(
        kernel,
        out_shape=jax.ShapeDtypeStruct((N, P, Cout), out_dtype),
        grid=(N, Cout // tC),
        in_specs=[
            pl.BlockSpec((None, T, R, K2), lambda n, c: (n, 0, 0, 0)),
            pl.BlockSpec((2, K2, tC), lambda n, c: (0, 0, c)),
            pl.BlockSpec((1, tC), lambda n, c: (0, c)),
        ],
        out_specs=pl.BlockSpec((None, P, tC), lambda n, c: (n, 0, c)),
        compiler_params=_compiler_params(("parallel", "parallel")),
    )(slabs, w_taps, bias)


# --------------------------------------------------------------------------
# Glue: build the row-group slabs for the stride-2 deep layers (cheap XLA
# slicing/concat; ~2x the input bytes in the aligned case, never im2col-sized
# except on tiny late feature maps).
# --------------------------------------------------------------------------
def _build_rowgroup_slabs(xp, Ho, Wo):
    """Returns (slabs, tap_map) with slabs (N, T, R, 8*Cin) such that for
    output position p = i*Wo + j and dot index t in {0, 1}:
        slabs[n, slab, r0 + p, (rp*4 + kx)*Cin + c] == xp[n, 2i + 2t + rp, 2j + kx, c]
    where (slab, r0) = tap_map[t], rp in {0,1}, kx in {0..3}."""
    N, Hp, Wp, C = xp.shape
    P = Ho * Wo
    aligned = (Wo % 16 == 0)   # keeps the in-kernel +Wo row offset tile-aligned
    if aligned:
        # One slab of (Ho+1)*Wo rows; taps ky=2t+rp read it at row offset t*Wo.
        parts = []
        for rp in range(2):
            rows = xp[:, rp:rp + 2 * Ho + 1:2]                   # (N, Ho+1, Wp, C)
            for kx in range(4):
                parts.append(rows[:, :, kx:kx + 2 * Wo:2, :])    # (N, Ho+1, Wo, C)
        slab = jnp.concatenate(parts, axis=-1)                   # (N, Ho+1, Wo, 8C)
        slabs = slab.reshape(N, 1, (Ho + 1) * Wo, 8 * C)
        tap_map = ((0, 0), (0, Wo))
    else:
        # Tiny late layers: one exact (P, 8*Cin) slab per row-group.
        groups = []
        for t in range(2):
            parts = []
            for rp in range(2):
                ky = 2 * t + rp
                rows = xp[:, ky:ky + 2 * (Ho - 1) + 1:2]         # (N, Ho, Wp, C)
                for kx in range(4):
                    parts.append(rows[:, :, kx:kx + 2 * Wo:2, :])
            g = jnp.concatenate(parts, axis=-1)                  # (N, Ho, Wo, 8C)
            groups.append(g.reshape(N, 1, P, 8 * C))
        slabs = jnp.concatenate(groups, axis=1)
        tap_map = ((0, 0), (1, 0))
    return slabs, tap_map


def conv4x4_s2_in_lrelu(h, w_taps, bias, *, normalize, out_dtype=jnp.bfloat16):
    """Fused Conv2d(k=4, s=2, p=1) + InstanceNorm2d + LeakyReLU for deep layers.
    h: (N, H, W, Cin) bf16 NHWC; w_taps: (2, 8*Cin, Cout) bf16; bias: (1, Cout) f32."""
    N, H, W, _ = h.shape
    hp = jnp.pad(h, ((0, 0), (1, 1), (1, 1), (0, 0)))
    Ho, Wo = H // 2, W // 2
    slabs, tap_map = _build_rowgroup_slabs(hp, Ho, Wo)
    out = _rowgroup_conv(slabs, w_taps, bias, tap_map=tap_map, P=Ho * Wo,
                         normalize=normalize, leaky=True, out_dtype=out_dtype)
    return out.reshape(N, Ho, Wo, -1)


# --------------------------------------------------------------------------
# Glue: im2col for the C=3 first layer and the tiny stride-1 final conv.
# --------------------------------------------------------------------------
def _im2col(xp, Ho, Wo, stride, k_pad):
    """(N, Hp, Wp, C) -> (N, Ho*Wo, k_pad) with lane index = (ky*4+kx)*C + c."""
    N, _, _, C = xp.shape
    taps = []
    for ky in range(4):
        for kx in range(4):
            taps.append(xp[:, ky:ky + stride * (Ho - 1) + 1:stride,
                           kx:kx + stride * (Wo - 1) + 1:stride, :])
    cols = jnp.concatenate(taps, axis=-1).reshape(N, Ho * Wo, 16 * C)
    if k_pad > 16 * C:
        cols = jnp.pad(cols, ((0, 0), (0, 0), (0, k_pad - 16 * C)))
    return cols


def conv4x4_mm(h, w_mat, bias, *, stride, pad_h, pad_w, leaky, out_dtype):
    """im2col conv + bias [+ LeakyReLU].  h: (N,H,W,Cin) bf16 NHWC;
    w_mat: (Kp, Cout) bf16 (Kp = 16*Cin padded); bias: (1, Cout) f32."""
    N = h.shape[0]
    hp = jnp.pad(h, ((0, 0), pad_h, pad_w, (0, 0)))
    Hp, Wp = hp.shape[1], hp.shape[2]
    Ho = (Hp - 4) // stride + 1
    Wo = (Wp - 4) // stride + 1
    x = _im2col(hp, Ho, Wo, stride, w_mat.shape[0])
    out = _mm_bias_act(x, w_mat, bias, leaky=leaky, out_dtype=out_dtype)
    return out.reshape(N, Ho, Wo, -1)


# --------------------------------------------------------------------------
# Parameters: PyTorch-like init + one-time packing into MXU-friendly layouts.
# --------------------------------------------------------------------------
def init_params(input_shape, key):
    channels, _, _ = input_shape
    plan = [(channels, 64), (64, 128), (128, 256), (256, 512)]
    blocks = []
    for cin, cout in plan:
        key, kw, kb = jax.random.split(key, 3)
        bound = (cin * 16) ** -0.5
        w = jax.random.uniform(kw, (cout, cin, 4, 4), jnp.float32, -bound, bound)
        b = jax.random.uniform(kb, (cout,), jnp.float32, -bound, bound)
        blocks.append((w, b))
    key, kw, kb = jax.random.split(key, 3)
    bound = (512 * 16) ** -0.5
    w_final = jax.random.uniform(kw, (1, 512, 4, 4), jnp.float32, -bound, bound)
    b_final = jax.random.uniform(kb, (1,), jnp.float32, -bound, bound)
    return {"blocks": blocks, "final": (w_final, b_final)}


def _pack_im2col_weight(w, b, k_pad=None, c_pad=None):
    """(Cout, Cin, 4, 4) -> ((16*Cin padded to k_pad), Cout padded) bf16 + (1, Cout) f32."""
    cout, cin = w.shape[0], w.shape[1]
    if c_pad and c_pad > cout:
        w = jnp.pad(w, ((0, c_pad - cout), (0, 0), (0, 0), (0, 0)))
        b = jnp.pad(b, ((0, c_pad - cout),))
        cout = c_pad
    wm = jnp.transpose(w, (2, 3, 1, 0)).reshape(16 * cin, cout)   # rows: (ky,kx,ci)
    if k_pad and k_pad > 16 * cin:
        wm = jnp.pad(wm, ((0, k_pad - 16 * cin), (0, 0)))
    return wm.astype(jnp.bfloat16), b.reshape(1, cout).astype(jnp.float32)


def _pack_rowgroup_weight(w, b):
    """(Cout, Cin, 4, 4) -> (2, 8*Cin, Cout) bf16; dot t covers ky = 2t + rp,
    lane = (rp*4 + kx)*Cin + ci  (matches _build_rowgroup_slabs)."""
    cout, cin = w.shape[0], w.shape[1]
    wt = jnp.transpose(w, (2, 3, 1, 0))          # (ky, kx, Cin, Cout)
    wt = wt.reshape(2, 2, 4, cin, cout)          # (t, rp, kx, Cin, Cout)
    wt = wt.reshape(2, 8 * cin, cout)
    return wt.astype(jnp.bfloat16), b.reshape(1, cout).astype(jnp.float32)


def prepare_params(params):
    """One-time weight packing (hoisted out of the forward pass)."""
    blocks = params["blocks"]
    packed = {}
    w0, b0 = blocks[0]
    k_pad = _round_up(16 * w0.shape[1], 64)                      # 48 -> 64 for C=3
    packed["l1"] = _pack_im2col_weight(w0, b0, k_pad=k_pad)
    packed["deep"] = [_pack_rowgroup_weight(w, b) for (w, b) in blocks[1:]]
    wf, bf = params["final"]
    packed["final"] = _pack_im2col_weight(wf, bf, c_pad=128)     # lane-dense stores
    return packed


# --------------------------------------------------------------------------
# Full forward pass (matches the PyTorch Discriminator).
# --------------------------------------------------------------------------
def discriminator_forward(x, packed):
    """x: (N, C, H, W) float32 NCHW; returns (N, 1, H//16, W//16) float32."""
    h = jnp.transpose(x, (0, 2, 3, 1)).astype(jnp.bfloat16)      # NHWC, bf16
    # Block 1: Conv2d(C->64, k=4, s=2, p=1) + LeakyReLU(0.2)  (no InstanceNorm)
    w1, b1 = packed["l1"]
    h = conv4x4_mm(h, w1, b1, stride=2, pad_h=(1, 1), pad_w=(1, 1),
                   leaky=True, out_dtype=jnp.bfloat16)
    # Blocks 2-4: Conv2d(k=4, s=2, p=1) + InstanceNorm2d + LeakyReLU(0.2)
    for (w_t, b_t), norm in zip(packed["deep"], _NORMALIZE_FLAGS[1:]):
        h = conv4x4_s2_in_lrelu(h, w_t, b_t, normalize=norm,
                                out_dtype=jnp.bfloat16)
    # ZeroPad2d((1, 0, 1, 0)) + Conv2d(512, 1, 4, padding=1)
    #   -> total pad: top/left = 2, bottom/right = 1.
    # TODO(synk): fuse layers 3/4/final into one pallas_call for tiny feature
    # maps to save launch overhead; kept separate here for clarity.
    wf, bf = packed["final"]
    out = conv4x4_mm(h, wf, bf, stride=1, pad_h=(2, 1), pad_w=(2, 1),
                     leaky=False, out_dtype=jnp.float32)
    return jnp.transpose(out[..., :1], (0, 3, 1, 2))             # (N,1,H/16,W/16)


# --------------------------------------------------------------------------
# Pure-JAX (XLA) reference for a loose numerical check.
# --------------------------------------------------------------------------
def _reference_forward(x, params):
    def conv(h, w, b, stride, pad):
        out = jax.lax.conv_general_dilated(
            h, w, window_strides=(stride, stride), padding=pad,
            dimension_numbers=("NCHW", "OIHW", "NCHW"))
        return out + b.reshape(1, -1, 1, 1)

    def inorm(h):
        mean = jnp.mean(h, axis=(2, 3), keepdims=True)
        var = jnp.mean(jnp.square(h - mean), axis=(2, 3), keepdims=True)
        return (h - mean) * jax.lax.rsqrt(var + _EPS)

    h = x
    for (w, b), norm in zip(params["blocks"], _NORMALIZE_FLAGS):
        h = conv(h, w, b, 2, [(1, 1), (1, 1)])
        if norm:
            h = inorm(h)
        h = jnp.maximum(h, _SLOPE * h)
    w_f, b_f = params["final"]
    return conv(h, w_f, b_f, 1, [(2, 1), (2, 1)])


if __name__ == "__main__":
    key = jax.random.PRNGKey(0)
    k_x, k_p = jax.random.split(key)

    # Small shapes consistent with the module: input_shape = (C=3, H=32, W=32).
    input_shape = (3, 32, 32)
    batch = 2
    x = jax.random.normal(k_x, (batch, *input_shape), jnp.float32)

    params = init_params(input_shape, k_p)
    packed = prepare_params(params)          # weight packing done once
    fwd = jax.jit(discriminator_forward)
    y = jax.block_until_ready(fwd(x, packed))

    expected = (batch, 1, input_shape[1] // 16, input_shape[2] // 16)
    assert y.shape == expected, (y.shape, expected)
    assert bool(jnp.all(jnp.isfinite(y)))

    # Loose check vs an f32 XLA reference (bf16 activations drift ~1e-2 rel).
    y_ref = jax.block_until_ready(_reference_forward(x, params))
    max_err = float(jnp.max(jnp.abs(y - y_ref)))
    assert max_err < 0.25, max_err

    print("KERNEL_OK")
</pallas_src>

<mosaic_0001>
module attributes {stable_mosaic.version = 11 : i64} {
  func.func @_mm_bias_act_kernel(%arg0: i32, %arg1: i32, %arg2: i32, %arg3: memref<1x128x64xbf16, #tpu.memory_space<vmem>>, %arg4: memref<64x64xbf16, #tpu.memory_space<vmem>>, %arg5: memref<1x64xf32, #tpu.memory_space<vmem>>, %arg6: memref<1x128x64xbf16, #tpu.memory_space<vmem>>) attributes {dimension_semantics = [#tpu.dimension_semantics<parallel>, #tpu.dimension_semantics<parallel>, #tpu.dimension_semantics<parallel>], iteration_bounds = array<i64: 2, 2, 1>, scalar_prefetch = 0 : i64, scratch_operands = 0 : i64, tpu.core_type = #tpu.core_type<tc>, window_params = [{transform_indices = @transform_0, window_bounds = array<i64: 1, 128, 64>}, {transform_indices = @transform_1, window_bounds = array<i64: 64, 64>}, {transform_indices = @transform_2, window_bounds = array<i64: 1, 64>}, {transform_indices = @transform_3, window_bounds = array<i64: 1, 128, 64>}]} {
    %c0 = arith.constant 0 : index
    %c0_0 = arith.constant 0 : index
    %c0_1 = arith.constant 0 : index
    %0 = vector.load %arg3[%c0, %c0_0, %c0_1] : memref<1x128x64xbf16, #tpu.memory_space<vmem>>, vector<1x128x64xbf16>
    %1 = vector.shape_cast %0 : vector<1x128x64xbf16> to vector<128x64xbf16>
    %c0_2 = arith.constant 0 : index
    %c0_3 = arith.constant 0 : index
    %2 = vector.load %arg4[%c0_2, %c0_3] : memref<64x64xbf16, #tpu.memory_space<vmem>>, vector<64x64xbf16>
    %cst = arith.constant dense<0.000000e+00> : vector<128x64xf32>
    %3 = tpu.matmul %1, %2, %cst {dimension_numbers = #tpu.dot_dimension_numbers<[1], [0], [0], [1], [0, 0, 1, 1], [], []>} : vector<128x64xbf16>, vector<64x64xbf16>, vector<128x64xf32> -> vector<128x64xf32>
    %c0_4 = arith.constant 0 : index
    %c0_5 = arith.constant 0 : index
    %4 = vector.load %arg5[%c0_4, %c0_5] : memref<1x64xf32, #tpu.memory_space<vmem>>, vector<1x64xf32>
    %5 = vector.broadcast %4 : vector<1x64xf32> to vector<128x64xf32>
    %6 = arith.addf %3, %5 : vector<128x64xf32>
    %cst_6 = arith.constant 2.000000e-01 : f32
    %7 = vector.broadcast %cst_6 : f32 to vector<128x64xf32>
    %8 = arith.mulf %7, %6 : vector<128x64xf32>
    %9 = arith.maximumf %6, %8 : vector<128x64xf32>
    %10 = arith.truncf %9 : vector<128x64xf32> to vector<128x64xbf16>
    %c0_7 = arith.constant 0 : index
    %c0_8 = arith.constant 0 : index
    %c0_9 = arith.constant 0 : index
    %11 = vector.load %arg6[%c0_7, %c0_8, %c0_9] : memref<1x128x64xbf16, #tpu.memory_space<vmem>>, vector<1x128x64xbf16>
    %12 = vector.shape_cast %11 : vector<1x128x64xbf16> to vector<128x64xbf16>
    %13 = vector.shape_cast %10 : vector<128x64xbf16> to vector<1x128x64xbf16>
    tpu.vector_store %arg6[%c0_7, %c0_8, %c0_9], %13 {strides = array<i32>} : memref<1x128x64xbf16, #tpu.memory_space<vmem>>, vector<1x128x64xbf16>,
    return
  }
  func.func @transform_0(%arg0: i32, %arg1: i32, %arg2: i32) -> (i32, i32, i32) {
    %c0_i32 = arith.constant 0 : i32
    %c0_i32_0 = arith.constant 0 : i32
    return %arg0, %arg1, %c0_i32 : i32, i32, i32
  }
  func.func @transform_1(%arg0: i32, %arg1: i32, %arg2: i32) -> (i32, i32) {
    %c0_i32 = arith.constant 0 : i32
    %c0_i32_0 = arith.constant 0 : i32
    return %c0_i32, %arg2 : i32, i32
  }
  func.func @transform_2(%arg0: i32, %arg1: i32, %arg2: i32) -> (i32, i32) {
    %c0_i32 = arith.constant 0 : i32
    %c0_i32_0 = arith.constant 0 : i32
    return %c0_i32, %arg2 : i32, i32
  }
  func.func @transform_3(%arg0: i32, %arg1: i32, %arg2: i32) -> (i32, i32, i32) {
    %c0_i32 = arith.constant 0 : i32
    return %arg0, %arg1, %arg2 : i32, i32, i32
  }
}

module attributes {stable_mosaic.version = 11 : i64} {
  func.func @_rowgroup_conv_kernel(%arg0: i32, %arg1: i32, %arg2: memref<1x2x64x512xbf16, #tpu.memory_space<vmem>>, %arg3: memref<2x512x128xbf16, #tpu.memory_space<vmem>>, %arg4: memref<1x128xf32, #tpu.memory_space<vmem>>, %arg5: memref<1x64x128xbf16, #tpu.memory_space<vmem>>) attributes {dimension_semantics = [#tpu.dimension_semantics<parallel>, #tpu.dimension_semantics<parallel>], iteration_bounds = array<i64: 2, 1>, scalar_prefetch = 0 : i64, scratch_operands = 0 : i64, tpu.core_type = #tpu.core_type<tc>, window_params = [{transform_indices = @transform_0, window_bounds = array<i64: 1, 2, 64, 512>}, {transform_indices = @transform_1, window_bounds = array<i64: 2, 512, 128>}, {transform_indices = @transform_2, window_bounds = array<i64: 1, 128>}, {transform_indices = @transform_3, window_bounds = array<i64: 1, 64, 128>}]} {
    %c0 = arith.constant 0 : index
    %c0_0 = arith.constant 0 : index
    %0 = vector.load %arg4[%c0, %c0_0] : memref<1x128xf32, #tpu.memory_space<vmem>>, vector<1x128xf32>
    %c0_1 = arith.constant 0 : index
    %c0_2 = arith.constant 0 : index
    %c0_3 = arith.constant 0 : index
    %c0_4 = arith.constant 0 : index
    %1 = vector.load %arg2[%c0_1, %c0_2, %c0_3, %c0_4] : memref<1x2x64x512xbf16, #tpu.memory_space<vmem>>, vector<1x1x64x512xbf16>
    %2 = vector.shape_cast %1 : vector<1x1x64x512xbf16> to vector<64x512xbf16>
    %c0_5 = arith.constant 0 : index
    %c0_6 = arith.constant 0 : index
    %c0_7 = arith.constant 0 : index
    %3 = vector.load %arg3[%c0_5, %c0_6, %c0_7] : memref<2x512x128xbf16, #tpu.memory_space<vmem>>, vector<1x512x128xbf16>
    %4 = vector.shape_cast %3 : vector<1x512x128xbf16> to vector<512x128xbf16>
    %cst = arith.constant dense<0.000000e+00> : vector<64x128xf32>
    %5 = tpu.matmul %2, %4, %cst {dimension_numbers = #tpu.dot_dimension_numbers<[1], [0], [0], [1], [0, 0, 1, 1], [], []>} : vector<64x512xbf16>, vector<512x128xbf16>, vector<64x128xf32> -> vector<64x128xf32>
    %6 = vector.broadcast %0 : vector<1x128xf32> to vector<64x128xf32>
    %7 = arith.addf %6, %5 : vector<64x128xf32>
    %c0_8 = arith.constant 0 : index
    %c1 = arith.constant 1 : index
    %c0_9 = arith.constant 0 : index
    %c0_10 = arith.constant 0 : index
    %8 = vector.load %arg2[%c0_8, %c1, %c0_9, %c0_10] : memref<1x2x64x512xbf16, #tpu.memory_space<vmem>>, vector<1x1x64x512xbf16>
    %9 = vector.shape_cast %8 : vector<1x1x64x512xbf16> to vector<64x512xbf16>
    %c1_11 = arith.constant 1 : index
    %c0_12 = arith.constant 0 : index
    %c0_13 = arith.constant 0 : index
    %10 = vector.load %arg3[%c1_11, %c0_12, %c0_13] : memref<2x512x128xbf16, #tpu.memory_space<vmem>>, vector<1x512x128xbf16>
    %11 = vector.shape_cast %10 : vector<1x512x128xbf16> to vector<512x128xbf16>
    %cst_14 = arith.constant dense<0.000000e+00> : vector<64x128xf32>
    %12 = tpu.matmul %9, %11, %cst_14 {dimension_numbers = #tpu.dot_dimension_numbers<[1], [0], [0], [1], [0, 0, 1, 1], [], []>} : vector<64x512xbf16>, vector<512x128xbf16>, vector<64x128xf32> -> vector<64x128xf32>
    %13 = arith.addf %7, %12 : vector<64x128xf32>
    %cst_15 = arith.constant dense<0.000000e+00> : vector<128xf32>
    %14 = vector.multi_reduction <add>, %13, %cst_15 [0] : vector<64x128xf32> to vector<128xf32>
    %15 = vector.shape_cast %14 : vector<128xf32> to vector<1x128xf32>
    %cst_16 = arith.constant 6.400000e+01 : f32
    %16 = vector.broadcast %cst_16 : f32 to vector<1x128xf32>
    %17 = arith.divf %15, %16 : vector<1x128xf32>
    %18 = vector.broadcast %17 : vector<1x128xf32> to vector<64x128xf32>
    %19 = arith.subf %13, %18 : vector<64x128xf32>
    %20 = arith.mulf %19, %19 : vector<64x128xf32>
    %cst_17 = arith.constant dense<0.000000e+00> : vector<128xf32>
    %21 = vector.multi_reduction <add>, %20, %cst_17 [0] : vector<64x128xf32> to vector<128xf32>
    %22 = vector.shape_cast %21 : vector<128xf32> to vector<1x128xf32>
    %cst_18 = arith.constant 6.400000e+01 : f32
    %23 = vector.broadcast %cst_18 : f32 to vector<1x128xf32>
    %24 = arith.divf %22, %23 : vector<1x128xf32>
    %25 = vector.broadcast %17 : vector<1x128xf32> to vector<64x128xf32>
    %26 = arith.subf %13, %25 : vector<64x128xf32>
    %cst_19 = arith.constant 9.99999974E-6 : f32
    %27 = vector.broadcast %cst_19 : f32 to vector<1x128xf32>
    %28 = arith.addf %24, %27 : vector<1x128xf32>
    %29 = math.rsqrt %28 : vector<1x128xf32>
    %30 = vector.broadcast %29 : vector<1x128xf32> to vector<64x128xf32>
    %31 = arith.mulf %26, %30 : vector<64x128xf32>
    %cst_20 = arith.constant 2.000000e-01 : f32
    %32 = vector.broadcast %cst_20 : f32 to vector<64x128xf32>
    %33 = arith.mulf %32, %31 : vector<64x128xf32>
    %34 = arith.maximumf %31, %33 : vector<64x128xf32>
    %35 = arith.truncf %34 : vector<64x128xf32> to vector<64x128xbf16>
    %c0_21 = arith.constant 0 : index
    %c0_22 = arith.constant 0 : index
    %c0_23 = arith.constant 0 : index
    %36 = vector.load %arg5[%c0_21, %c0_22, %c0_23] : memref<1x64x128xbf16, #tpu.memory_space<vmem>>, vector<1x64x128xbf16>
    %37 = vector.shape_cast %36 : vector<1x64x128xbf16> to vector<64x128xbf16>
    %38 = vector.shape_cast %35 : vector<64x128xbf16> to vector<1x64x128xbf16>
    tpu.vector_store %arg5[%c0_21, %c0_22, %c0_23], %38 {strides = array<i32>} : memref<1x64x128xbf16, #tpu.memory_space<vmem>>, vector<1x64x128xbf16>,
    return
  }
  func.func @transform_0(%arg0: i32, %arg1: i32) -> (i32, i32, i32, i32) {
    %c0_i32 = arith.constant 0 : i32
    %c0_i32_0 = arith.constant 0 : i32
    %c0_i32_1 = arith.constant 0 : i32
    %c0_i32_2 = arith.constant 0 : i32
    return %arg0, %c0_i32, %c0_i32_0, %c0_i32_1 : i32, i32, i32, i32
  }
  func.func @transform_1(%arg0: i32, %arg1: i32) -> (i32, i32, i32) {
    %c0_i32 = arith.constant 0 : i32
    %c0_i32_0 = arith.constant 0 : i32
    %c0_i32_1 = arith.constant 0 : i32
    return %c0_i32, %c0_i32_0, %arg1 : i32, i32, i32
  }
  func.func @transform_2(%arg0: i32, %arg1: i32) -> (i32, i32) {
    %c0_i32 = arith.constant 0 : i32
    %c0_i32_0 = arith.constant 0 : i32
    return %c0_i32, %arg1 : i32, i32
  }
  func.func @transform_3(%arg0: i32, %arg1: i32) -> (i32, i32, i32) {
    %c0_i32 = arith.constant 0 : i32
    %c0_i32_0 = arith.constant 0 : i32
    return %arg0, %c0_i32, %arg1 : i32, i32, i32
  }
}

module attributes {stable_mosaic.version = 11 : i64} {
  func.func @_rowgroup_conv_kernel(%arg0: i32, %arg1: i32, %arg2: memref<1x2x16x1024xbf16, #tpu.memory_space<vmem>>, %arg3: memref<2x1024x256xbf16, #tpu.memory_space<vmem>>, %arg4: memref<1x256xf32, #tpu.memory_space<vmem>>, %arg5: memref<1x16x256xbf16, #tpu.memory_space<vmem>>) attributes {dimension_semantics = [#tpu.dimension_semantics<parallel>, #tpu.dimension_semantics<parallel>], iteration_bounds = array<i64: 2, 1>, scalar_prefetch = 0 : i64, scratch_operands = 0 : i64, tpu.core_type = #tpu.core_type<tc>, window_params = [{transform_indices = @transform_0, window_bounds = array<i64: 1, 2, 16, 1024>}, {transform_indices = @transform_1, window_bounds = array<i64: 2, 1024, 256>}, {transform_indices = @transform_2, window_bounds = array<i64: 1, 256>}, {transform_indices = @transform_3, window_bounds = array<i64: 1, 16, 256>}]} {
    %c0 = arith.constant 0 : index
    %c0_0 = arith.constant 0 : index
    %0 = vector.load %arg4[%c0, %c0_0] : memref<1x256xf32, #tpu.memory_space<vmem>>, vector<1x256xf32>
    %c0_1 = arith.constant 0 : index
    %c0_2 = arith.constant 0 : index
    %c0_3 = arith.constant 0 : index
    %c0_4 = arith.constant 0 : index
    %1 = vector.load %arg2[%c0_1, %c0_2, %c0_3, %c0_4] : memref<1x2x16x1024xbf16, #tpu.memory_space<vmem>>, vector<1x1x16x1024xbf16>
    %2 = vector.shape_cast %1 : vector<1x1x16x1024xbf16> to vector<16x1024xbf16>
    %c0_5 = arith.constant 0 : index
    %c0_6 = arith.constant 0 : index
    %c0_7 = arith.constant 0 : index
    %3 = vector.load %arg3[%c0_5, %c0_6, %c0_7] : memref<2x1024x256xbf16, #tpu.memory_space<vmem>>, vector<1x1024x256xbf16>
    %4 = vector.shape_cast %3 : vector<1x1024x256xbf16> to vector<1024x256xbf16>
    %cst = arith.constant dense<0.000000e+00> : vector<16x256xf32>
    %5 = tpu.matmul %2, %4, %cst {dimension_numbers = #tpu.dot_dimension_numbers<[1], [0], [0], [1], [0, 0, 1, 1], [], []>} : vector<16x1024xbf16>, vector<1024x256xbf16>, vector<16x256xf32> -> vector<16x256xf32>
    %6 = vector.broadcast %0 : vector<1x256xf32> to vector<16x256xf32>
    %7 = arith.addf %6, %5 : vector<16x256xf32>
    %c0_8 = arith.constant 0 : index
    %c1 = arith.constant 1 : index
    %c0_9 = arith.constant 0 : index
    %c0_10 = arith.constant 0 : index
    %8 = vector.load %arg2[%c0_8, %c1, %c0_9, %c0_10] : memref<1x2x16x1024xbf16, #tpu.memory_space<vmem>>, vector<1x1x16x1024xbf16>
    %9 = vector.shape_cast %8 : vector<1x1x16x1024xbf16> to vector<16x1024xbf16>
    %c1_11 = arith.constant 1 : index
    %c0_12 = arith.constant 0 : index
    %c0_13 = arith.constant 0 : index
    %10 = vector.load %arg3[%c1_11, %c0_12, %c0_13] : memref<2x1024x256xbf16, #tpu.memory_space<vmem>>, vector<1x1024x256xbf16>
    %11 = vector.shape_cast %10 : vector<1x1024x256xbf16> to vector<1024x256xbf16>
    %cst_14 = arith.constant dense<0.000000e+00> : vector<16x256xf32>
    %12 = tpu.matmul %9, %11, %cst_14 {dimension_numbers = #tpu.dot_dimension_numbers<[1], [0], [0], [1], [0, 0, 1, 1], [], []>} : vector<16x1024xbf16>, vector<1024x256xbf16>, vector<16x256xf32> -> vector<16x256xf32>
    %13 = arith.addf %7, %12 : vector<16x256xf32>
    %cst_15 = arith.constant dense<0.000000e+00> : vector<256xf32>
    %14 = vector.multi_reduction <add>, %13, %cst_15 [0] : vector<16x256xf32> to vector<256xf32>
    %15 = vector.shape_cast %14 : vector<256xf32> to vector<1x256xf32>
    %cst_16 = arith.constant 1.600000e+01 : f32
    %16 = vector.broadcast %cst_16 : f32 to vector<1x256xf32>
    %17 = arith.divf %15, %16 : vector<1x256xf32>
    %18 = vector.broadcast %17 : vector<1x256xf32> to vector<16x256xf32>
    %19 = arith.subf %13, %18 : vector<16x256xf32>
    %20 = arith.mulf %19, %19 : vector<16x256xf32>
    %cst_17 = arith.constant dense<0.000000e+00> : vector<256xf32>
    %21 = vector.multi_reduction <add>, %20, %cst_17 [0] : vector<16x256xf32> to vector<256xf32>
    %22 = vector.shape_cast %21 : vector<256xf32> to vector<1x256xf32>
    %cst_18 = arith.constant 1.600000e+01 : f32
    %23 = vector.broadcast %cst_18 : f32 to vector<1x256xf32>
    %24 = arith.divf %22, %23 : vector<1x256xf32>
    %25 = vector.broadcast %17 : vector<1x256xf32> to vector<16x256xf32>
    %26 = arith.subf %13, %25 : vector<16x256xf32>
    %cst_19 = arith.constant 9.99999974E-6 : f32
    %27 = vector.broadcast %cst_19 : f32 to vector<1x256xf32>
    %28 = arith.addf %24, %27 : vector<1x256xf32>
    %29 = math.rsqrt %28 : vector<1x256xf32>
    %30 = vector.broadcast %29 : vector<1x256xf32> to vector<16x256xf32>
    %31 = arith.mulf %26, %30 : vector<16x256xf32>
    %cst_20 = arith.constant 2.000000e-01 : f32
    %32 = vector.broadcast %cst_20 : f32 to vector<16x256xf32>
    %33 = arith.mulf %32, %31 : vector<16x256xf32>
    %34 = arith.maximumf %31, %33 : vector<16x256xf32>
    %35 = arith.truncf %34 : vector<16x256xf32> to vector<16x256xbf16>
    %c0_21 = arith.constant 0 : index
    %c0_22 = arith.constant 0 : index
    %c0_23 = arith.constant 0 : index
    %36 = vector.load %arg5[%c0_21, %c0_22, %c0_23] : memref<1x16x256xbf16, #tpu.memory_space<vmem>>, vector<1x16x256xbf16>
    %37 = vector.shape_cast %36 : vector<1x16x256xbf16> to vector<16x256xbf16>
    %38 = vector.shape_cast %35 : vector<16x256xbf16> to vector<1x16x256xbf16>
    tpu.vector_store %arg5[%c0_21, %c0_22, %c0_23], %38 {strides = array<i32>} : memref<1x16x256xbf16, #tpu.memory_space<vmem>>, vector<1x16x256xbf16>,
    return
  }
  func.func @transform_0(%arg0: i32, %arg1: i32) -> (i32, i32, i32, i32) {
    %c0_i32 = arith.constant 0 : i32
    %c0_i32_0 = arith.constant 0 : i32
    %c0_i32_1 = arith.constant 0 : i32
    %c0_i32_2 = arith.constant 0 : i32
    return %arg0, %c0_i32, %c0_i32_0, %c0_i32_1 : i32, i32, i32, i32
  }
  func.func @transform_1(%arg0: i32, %arg1: i32) -> (i32, i32, i32) {
    %c0_i32 = arith.constant 0 : i32
    %c0_i32_0 = arith.constant 0 : i32
    %c0_i32_1 = arith.constant 0 : i32
    return %c0_i32, %c0_i32_0, %arg1 : i32, i32, i32
  }
  func.func @transform_2(%arg0: i32, %arg1: i32) -> (i32, i32) {
    %c0_i32 = arith.constant 0 : i32
    %c0_i32_0 = arith.constant 0 : i32
    return %c0_i32, %arg1 : i32, i32
  }
  func.func @transform_3(%arg0: i32, %arg1: i32) -> (i32, i32, i32) {
    %c0_i32 = arith.constant 0 : i32
    %c0_i32_0 = arith.constant 0 : i32
    return %arg0, %c0_i32, %arg1 : i32, i32, i32
  }
}

module attributes {stable_mosaic.version = 11 : i64} {
  func.func @_rowgroup_conv_kernel(%arg0: i32, %arg1: i32, %arg2: memref<1x2x4x2048xbf16, #tpu.memory_space<vmem>>, %arg3: memref<2x2048x256xbf16, #tpu.memory_space<vmem>>, %arg4: memref<1x256xf32, #tpu.memory_space<vmem>>, %arg5: memref<1x4x256xbf16, #tpu.memory_space<vmem>>) attributes {dimension_semantics = [#tpu.dimension_semantics<parallel>, #tpu.dimension_semantics<parallel>], iteration_bounds = array<i64: 2, 2>, scalar_prefetch = 0 : i64, scratch_operands = 0 : i64, tpu.core_type = #tpu.core_type<tc>, window_params = [{transform_indices = @transform_0, window_bounds = array<i64: 1, 2, 4, 2048>}, {transform_indices = @transform_1, window_bounds = array<i64: 2, 2048, 256>}, {transform_indices = @transform_2, window_bounds = array<i64: 1, 256>}, {transform_indices = @transform_3, window_bounds = array<i64: 1, 4, 256>}]} {
    %c0 = arith.constant 0 : index
    %c0_0 = arith.constant 0 : index
    %0 = vector.load %arg4[%c0, %c0_0] : memref<1x256xf32, #tpu.memory_space<vmem>>, vector<1x256xf32>
    %c0_1 = arith.constant 0 : index
    %c0_2 = arith.constant 0 : index
    %c0_3 = arith.constant 0 : index
    %c0_4 = arith.constant 0 : index
    %1 = vector.load %arg2[%c0_1, %c0_2, %c0_3, %c0_4] : memref<1x2x4x2048xbf16, #tpu.memory_space<vmem>>, vector<1x1x4x2048xbf16>
    %2 = vector.shape_cast %1 : vector<1x1x4x2048xbf16> to vector<4x2048xbf16>
    %c0_5 = arith.constant 0 : index
    %c0_6 = arith.constant 0 : index
    %c0_7 = arith.constant 0 : index
    %3 = vector.load %arg3[%c0_5, %c0_6, %c0_7] : memref<2x2048x256xbf16, #tpu.memory_space<vmem>>, vector<1x2048x256xbf16>
    %4 = vector.shape_cast %3 : vector<1x2048x256xbf16> to vector<2048x256xbf16>
    %cst = arith.constant dense<0.000000e+00> : vector<4x256xf32>
    %5 = tpu.matmul %2, %4, %cst {dimension_numbers = #tpu.dot_dimension_numbers<[1], [0], [0], [1], [0, 0, 1, 1], [], []>} : vector<4x2048xbf16>, vector<2048x256xbf16>, vector<4x256xf32> -> vector<4x256xf32>
    %6 = vector.broadcast %0 : vector<1x256xf32> to vector<4x256xf32>
    %7 = arith.addf %6, %5 : vector<4x256xf32>
    %c0_8 = arith.constant 0 : index
    %c1 = arith.constant 1 : index
    %c0_9 = arith.constant 0 : index
    %c0_10 = arith.constant 0 : index
    %8 = vector.load %arg2[%c0_8, %c1, %c0_9, %c0_10] : memref<1x2x4x2048xbf16, #tpu.memory_space<vmem>>, vector<1x1x4x2048xbf16>
    %9 = vector.shape_cast %8 : vector<1x1x4x2048xbf16> to vector<4x2048xbf16>
    %c1_11 = arith.constant 1 : index
    %c0_12 = arith.constant 0 : index
    %c0_13 = arith.constant 0 : index
    %10 = vector.load %arg3[%c1_11, %c0_12, %c0_13] : memref<2x2048x256xbf16, #tpu.memory_space<vmem>>, vector<1x2048x256xbf16>
    %11 = vector.shape_cast %10 : vector<1x2048x256xbf16> to vector<2048x256xbf16>
    %cst_14 = arith.constant dense<0.000000e+00> : vector<4x256xf32>
    %12 = tpu.matmul %9, %11, %cst_14 {dimension_numbers = #tpu.dot_dimension_numbers<[1], [0], [0], [1], [0, 0, 1, 1], [], []>} : vector<4x2048xbf16>, vector<2048x256xbf16>, vector<4x256xf32> -> vector<4x256xf32>
    %13 = arith.addf %7, %12 : vector<4x256xf32>
    %cst_15 = arith.constant dense<0.000000e+00> : vector<256xf32>
    %14 = vector.multi_reduction <add>, %13, %cst_15 [0] : vector<4x256xf32> to vector<256xf32>
    %15 = vector.shape_cast %14 : vector<256xf32> to vector<1x256xf32>
    %cst_16 = arith.constant 4.000000e+00 : f32
    %16 = vector.broadcast %cst_16 : f32 to vector<1x256xf32>
    %17 = arith.divf %15, %16 : vector<1x256xf32>
    %18 = vector.broadcast %17 : vector<1x256xf32> to vector<4x256xf32>
    %19 = arith.subf %13, %18 : vector<4x256xf32>
    %20 = arith.mulf %19, %19 : vector<4x256xf32>
    %cst_17 = arith.constant dense<0.000000e+00> : vector<256xf32>
    %21 = vector.multi_reduction <add>, %20, %cst_17 [0] : vector<4x256xf32> to vector<256xf32>
    %22 = vector.shape_cast %21 : vector<256xf32> to vector<1x256xf32>
    %cst_18 = arith.constant 4.000000e+00 : f32
    %23 = vector.broadcast %cst_18 : f32 to vector<1x256xf32>
    %24 = arith.divf %22, %23 : vector<1x256xf32>
    %25 = vector.broadcast %17 : vector<1x256xf32> to vector<4x256xf32>
    %26 = arith.subf %13, %25 : vector<4x256xf32>
    %cst_19 = arith.constant 9.99999974E-6 : f32
    %27 = vector.broadcast %cst_19 : f32 to vector<1x256xf32>
    %28 = arith.addf %24, %27 : vector<1x256xf32>
    %29 = math.rsqrt %28 : vector<1x256xf32>
    %30 = vector.broadcast %29 : vector<1x256xf32> to vector<4x256xf32>
    %31 = arith.mulf %26, %30 : vector<4x256xf32>
    %cst_20 = arith.constant 2.000000e-01 : f32
    %32 = vector.broadcast %cst_20 : f32 to vector<4x256xf32>
    %33 = arith.mulf %32, %31 : vector<4x256xf32>
    %34 = arith.maximumf %31, %33 : vector<4x256xf32>
    %35 = arith.truncf %34 : vector<4x256xf32> to vector<4x256xbf16>
    %c0_21 = arith.constant 0 : index
    %c0_22 = arith.constant 0 : index
    %c0_23 = arith.constant 0 : index
    %36 = vector.load %arg5[%c0_21, %c0_22, %c0_23] : memref<1x4x256xbf16, #tpu.memory_space<vmem>>, vector<1x4x256xbf16>
    %37 = vector.shape_cast %36 : vector<1x4x256xbf16> to vector<4x256xbf16>
    %38 = vector.shape_cast %35 : vector<4x256xbf16> to vector<1x4x256xbf16>
    tpu.vector_store %arg5[%c0_21, %c0_22, %c0_23], %38 {strides = array<i32>} : memref<1x4x256xbf16, #tpu.memory_space<vmem>>, vector<1x4x256xbf16>,
    return
  }
  func.func @transform_0(%arg0: i32, %arg1: i32) -> (i32, i32, i32, i32) {
    %c0_i32 = arith.constant 0 : i32
    %c0_i32_0 = arith.constant 0 : i32
    %c0_i32_1 = arith.constant 0 : i32
    %c0_i32_2 = arith.constant 0 : i32
    return %arg0, %c0_i32, %c0_i32_0, %c0_i32_1 : i32, i32, i32, i32
  }
  func.func @transform_1(%arg0: i32, %arg1: i32) -> (i32, i32, i32) {
    %c0_i32 = arith.constant 0 : i32
    %c0_i32_0 = arith.constant 0 : i32
    %c0_i32_1 = arith.constant 0 : i32
    return %c0_i32, %c0_i32_0, %arg1 : i32, i32, i32
  }
  func.func @transform_2(%arg0: i32, %arg1: i32) -> (i32, i32) {
    %c0_i32 = arith.constant 0 : i32
    %c0_i32_0 = arith.constant 0 : i32
    return %c0_i32, %arg1 : i32, i32
  }
  func.func @transform_3(%arg0: i32, %arg1: i32) -> (i32, i32, i32) {
    %c0_i32 = arith.constant 0 : i32
    %c0_i32_0 = arith.constant 0 : i32
    return %arg0, %c0_i32, %arg1 : i32, i32, i32
  }
}

module attributes {stable_mosaic.version = 11 : i64} {
  func.func @_mm_bias_act_kernel(%arg0: i32, %arg1: i32, %arg2: i32, %arg3: memref<1x4x8192xbf16, #tpu.memory_space<vmem>>, %arg4: memref<8192x128xbf16, #tpu.memory_space<vmem>>, %arg5: memref<1x128xf32, #tpu.memory_space<vmem>>, %arg6: memref<1x4x128xf32, #tpu.memory_space<vmem>>) attributes {dimension_semantics = [#tpu.dimension_semantics<parallel>, #tpu.dimension_semantics<parallel>, #tpu.dimension_semantics<parallel>], iteration_bounds = array<i64: 2, 1, 1>, scalar_prefetch = 0 : i64, scratch_operands = 0 : i64, tpu.core_type = #tpu.core_type<tc>, window_params = [{transform_indices = @transform_0, window_bounds = array<i64: 1, 4, 8192>}, {transform_indices = @transform_1, window_bounds = array<i64: 8192, 128>}, {transform_indices = @transform_2, window_bounds = array<i64: 1, 128>}, {transform_indices = @transform_3, window_bounds = array<i64: 1, 4, 128>}]} {
    %c0 = arith.constant 0 : index
    %c0_0 = arith.constant 0 : index
    %c0_1 = arith.constant 0 : index
    %0 = vector.load %arg3[%c0, %c0_0, %c0_1] : memref<1x4x8192xbf16, #tpu.memory_space<vmem>>, vector<1x4x8192xbf16>
    %1 = vector.shape_cast %0 : vector<1x4x8192xbf16> to vector<4x8192xbf16>
    %c0_2 = arith.constant 0 : index
    %c0_3 = arith.constant 0 : index
    %2 = vector.load %arg4[%c0_2, %c0_3] : memref<8192x128xbf16, #tpu.memory_space<vmem>>, vector<8192x128xbf16>
    %cst = arith.constant dense<0.000000e+00> : vector<4x128xf32>
    %3 = tpu.matmul %1, %2, %cst {dimension_numbers = #tpu.dot_dimension_numbers<[1], [0], [0], [1], [0, 0, 1, 1], [], []>} : vector<4x8192xbf16>, vector<8192x128xbf16>, vector<4x128xf32> -> vector<4x128xf32>
    %c0_4 = arith.constant 0 : index
    %c0_5 = arith.constant 0 : index
    %4 = vector.load %arg5[%c0_4, %c0_5] : memref<1x128xf32, #tpu.memory_space<vmem>>, vector<1x128xf32>
    %5 = vector.broadcast %4 : vector<1x128xf32> to vector<4x128xf32>
    %6 = arith.addf %3, %5 : vector<4x128xf32>
    %c0_6 = arith.constant 0 : index
    %c0_7 = arith.constant 0 : index
    %c0_8 = arith.constant 0 : index
    %7 = vector.load %arg6[%c0_6, %c0_7, %c0_8] : memref<1x4x128xf32, #tpu.memory_space<vmem>>, vector<1x4x128xf32>
    %8 = vector.shape_cast %7 : vector<1x4x128xf32> to vector<4x128xf32>
    %9 = vector.shape_cast %6 : vector<4x128xf32> to vector<1x4x128xf32>
    tpu.vector_store %arg6[%c0_6, %c0_7, %c0_8], %9 {strides = array<i32>} : memref<1x4x128xf32, #tpu.memory_space<vmem>>, vector<1x4x128xf32>,
    return
  }
  func.func @transform_0(%arg0: i32, %arg1: i32, %arg2: i32) -> (i32, i32, i32) {
    %c0_i32 = arith.constant 0 : i32
    %c0_i32_0 = arith.constant 0 : i32
    return %arg0, %arg1, %c0_i32 : i32, i32, i32
  }
  func.func @transform_1(%arg0: i32, %arg1: i32, %arg2: i32) -> (i32, i32) {
    %c0_i32 = arith.constant 0 : i32
    %c0_i32_0 = arith.constant 0 : i32
    return %c0_i32, %arg2 : i32, i32
  }
  func.func @transform_2(%arg0: i32, %arg1: i32, %arg2: i32) -> (i32, i32) {
    %c0_i32 = arith.constant 0 : i32
    %c0_i32_0 = arith.constant 0 : i32
    return %c0_i32, %arg2 : i32, i32
  }
  func.func @transform_3(%arg0: i32, %arg1: i32, %arg2: i32) -> (i32, i32, i32) {
    %c0_i32 = arith.constant 0 : i32
    return %arg0, %arg1, %arg2 : i32, i32, i32
  }
}

</mosaic_0001>

<bundles_post_ra>
// kernel: discriminator_forward.5
= control target key start
LH: loop header
LB: loop body
LE: loop exit
PB: predicated region body
PF: predicated region fallthrough
CT: control target
= control target key end

     0   :  { %s941_s12 = smov 0   ;;  %s943_s13 = smov 0   ;;  %s1077_s0 = inlined_call_operand.vmem [shape: bf16[2,256,64], index: 0, kind: input, shape index: {}]   ;;  %s1078_s1 = inlined_call_operand.vmem [shape: bf16[64,64], index: 1, kind: input, shape index: {}]   ;;  %s1079_s2 = inlined_call_operand.vmem [shape: f32[1,64], index: 2, kind: input, shape index: {}]   ;;  %s1080_s3 = inlined_call_operand.vmem [shape: bf16[2,256,64], index: 3, kind: output, shape index: {}]  }
   0x1   :  { %s945_s14 = smov 0   ;;  %s947_s15 = smov 0  }
   0x2   :  { %s949_s16 = smov 0  }
   0x3 LB: > { %s28_s17 = sadd.s32 1, %s911_s14  ;;  %s32_s18 = sadd.s32 1, %s915_s15  ;;  %s919_s16 = sphi %s949_s16, %s13_s16   ;;  %s915_s15 = sphi %s947_s15, %s1084_s15   ;;  %s911_s14 = sphi %s945_s14, %s1083_s14   ;;  %s907_s13 = sphi %s943_s13, %s1082_s13   ;;  %s903_s12 = sphi %s941_s12, %s1081_s12  }
   0x4   : > { %p30_p0 = scmp.ge.s32.totalorder %s28_s17, 2  ;;  %p723_p1 = scmp.ge.s32.totalorder %s919_s16, 1 }
   0x5   : > { %p184_p2 = scmp.lt.s32.totalorder %s919_s16, 5 }
   0x6   : > { %s1086_s17 = smov (%p30_p0, %s28_s17), 0  ;;  %s1088_s18 = smov (!%p30_p0, %s32_s18), %s915_s15 }
   0x7   : > { %p185_p3 = pnand %p723_p1, %p184_p2  ;;  %p34_p4 = scmp.ge.s32.totalorder %s1088_s18, 2 }
   0x8   : > { %s724_s21 = sshll.u32 (!%p185_p3), %s903_s12, 4  ;;  %p227_p5 = scmp.lt.s32.totalorder (!%p185_p3), %s907_s13, 1 }
   0x9   : > { %s1090_s18 = smov (%p34_p4, %s1088_s18), 0  ;;  %188 = sbr.rel (%p185_p3) target bundleno = 249 (0xf9), region = 32 }
   0xa   : > { %p229_p6 = scmp.lt.s32.totalorder (!%p185_p3), %s724_s21, 31 }
   0xe   : > { %v869_v0 = vld [vmem:[%s1078_s1 + $0x18] sm:$0xff]   ;;  %v870_v1 = vld [vmem:[%s1078_s1 + $0x10] sm:$0xff]   ;;  %s1092_s13 = smov (!%p227_p5, %s907_s13), 1  ;;  %v871_v2 = vld [vmem:[%s1078_s1 + $0x8] sm:$0xff]   ;;  %s1094_s21 = smov (!%p229_p6, %s724_s21), 31  ;;  %vm352_vm0 = vcmask 523264  }
   0xf   : > { %797 = vmatprep.subr.bf16.mxu0 %v869_v0  ;;  %821 = vmatprep.subr.bf16.mxu1 %v869_v0  ;;  %s725_s26 = sshll.u32 %s1092_s13, 5  ;;  %v872_v3 = vld [vmem:[%s1078_s1] sm:$0xff]   ;;  %vm570_vm1 = vcmask 519168  }
  0x10   : > { %798 = vmatpush3.bf16.msra.mxu0 %v869_v0  ;;  %825 = vmatpush3.bf16.msra.mxu1 %v869_v0  ;;  %s983_s27 = sadd.s32 %s725_s26, %s1094_s21  ;;  %v1005_v12 = vld [vmem:[%s1079_s2] ss:$0 sm:$0xff] }
  0x11   : > { %799 = vmatprep.subr.bf16.mxu0 %v870_v1  ;;  %822 = vmatprep.subr.bf16.mxu1 %v870_v1  ;;  %s726_s28 = sshll.u32 %s983_s27, 2 }
  0x12   : > { %s234_s6 = scalar_lea.vmem %s1077_s0, %s726_s28  ;;  %s1016_s11 = scalar_lea.vmem %s1080_s3, %s726_s28 }
  0x13   : > { %v873_v4 = vld [vmem:[%s234_s6] sm:$0xff]   ;;  %v875_v6 = vld [vmem:[%s234_s6 + $0x8] sm:$0xff]   ;;  %v877_v8 = vld [vmem:[%s234_s6 + $0x10] sm:$0xff]  }
  0x14   : > { %800 = vmatpush3.bf16.msra.mxu0 %v870_v1  ;;  %826 = vmatpush3.bf16.msra.mxu1 %v870_v1  ;;  %v874_v5 = vld [vmem:[%s234_s6 + $0x20] sm:$0xff]   ;;  %v876_v7 = vld [vmem:[%s234_s6 + $0x28] sm:$0xff]   ;;  %v878_v9 = vld [vmem:[%s234_s6 + $0x30] sm:$0xff]  }
  0x15   : > { %801 = vmatprep.subr.bf16.mxu0 %v871_v2  ;;  %823 = vmatprep.subr.bf16.mxu1 %v871_v2  ;;  %v879_v10 = vld [vmem:[%s234_s6 + $0x18] sm:$0xff]  }
  0x16   : > { %805 = vmatprep.mubr.msk.bf16.mxu0 %vm352_vm0, %v873_v4  ;;  %813 = vmatprep.mubr.msk.bf16.mxu1 %vm352_vm0, %v874_v5  ;;  %v880_v11 = vld [vmem:[%s234_s6 + $0x38] sm:$0xff]  }
  0x18   : > { %802 = vmatpush3.bf16.msra.mxu0 %v871_v2  ;;  %827 = vmatpush3.bf16.msra.mxu1 %v871_v2 }
  0x19   : > { %803 = vmatprep.subr.bf16.mxu0 %v872_v3  ;;  %824 = vmatprep.subr.bf16.mxu1 %v872_v3 }
  0x1c   : > { %804 = vmatpush3.bf16.msra.mxu0 %v872_v3  ;;  %828 = vmatpush3.bf16.msra.mxu1 %v872_v3 }
  0x1f   : > { %806 = vmatmul.mubr.msk.bf16.vlgmr.msra.gmra.mxu0 %vm352_vm0, %v875_v6  ;;  %814 = vmatmul.mubr.msk.bf16.vlgmr.msra.gmra.mxu1 %vm352_vm0, %v876_v7 }
  0x20   : > { %809 = vmatprep.mubr.msk.bf16.mxu0 %vm352_vm0, %v877_v8  ;;  %817 = vmatprep.mubr.msk.bf16.mxu1 %vm352_vm0, %v878_v9 }
  0x27   : > { %810 = vmatmul.mubr.msk.bf16.gmra.mxu0 %vm352_vm0, %v879_v10  ;;  %818 = vmatmul.mubr.msk.bf16.gmra.mxu1 %vm352_vm0, %v880_v11 }
  0xdf   : > { %v807_v13 = vpop.f32.mrf.mxu0  ;;  %v815_v14 = vpop.f32.mrf.mxu1 }
  0xe0   : > { %v420_v15 = vadd.f32 %v807_v13, %v1005_v12  ;;  %v452_v16 = vadd.f32 %v815_v14, %v1005_v12 }
  0xe1   : > { %v411_v17 = vpop.f32.mrf.mxu0  ;;  %v443_v18 = vpop.f32.mrf.mxu1 }
  0xe2   : > { %v476_v19 = vmul.f32 0.2, %v420_v15  ;;  %v484_v20 = vmul.f32 0.2, %v452_v16  ;;  %v412_v21 = vadd.f32 %v1005_v12, %v411_v17  ;;  %v444_v22 = vadd.f32 %v1005_v12, %v443_v18 }
  0xe3   : > { %v808_v23 = vpop.f32.mrf.mxu0  ;;  %v816_v24 = vpop.f32.mrf.mxu1 }
  0xe4   : > { %v492_v25 = vmax.f32 %v420_v15, %v476_v19  ;;  %v500_v26 = vmax.f32 %v452_v16, %v484_v20  ;;  %v474_v27 = vmul.f32 0.2, %v412_v21  ;;  %v482_v28 = vmul.f32 0.2, %v444_v22 }
  0xe5   : > { %v423_v29 = vadd.f32 %v808_v23, %v1005_v12  ;;  %v455_v30 = vadd.f32 %v816_v24, %v1005_v12  ;;  %v414_v31 = vpop.f32.mrf.mxu0  ;;  %v446_v32 = vpop.f32.mrf.mxu1 }
  0xe6   : > { %v771_v33 = vpack.c.bf16 %v492_v25, %v492_v25  ;;  %v779_v34 = vpack.c.bf16 %v500_v26, %v500_v26  ;;  %v490_v35 = vmax.f32 %v412_v21, %v474_v27  ;;  %v498_v36 = vmax.f32 %v444_v22, %v482_v28 }
  0xe7   : > { %v477_v37 = vmul.f32 0.2, %v423_v29  ;;  %v485_v38 = vmul.f32 0.2, %v455_v30  ;;  %v415_v39 = vadd.f32 %v1005_v12, %v414_v31  ;;  %v447_v40 = vadd.f32 %v1005_v12, %v446_v32  ;;  %v811_v41 = vpop.f32.mrf.mxu0  ;;  %v819_v42 = vpop.f32.mrf.mxu1 }
  0xe8   : > { %573 = vst.msk [vmem:[%s1016_s11 + $0x8] sm:$0xf] %vm570_vm1, %v771_v33  ;;  %581 = vst.msk [vmem:[%s1016_s11 + $0x28] sm:$0xf] %vm570_vm1, %v779_v34  ;;  %v769_v43 = vpack.c.bf16 %v490_v35, %v490_v35  ;;  %v777_v44 = vpack.c.bf16 %v498_v36, %v498_v36  ;;  %v436_v45 = vadd.f32 %v811_v41, %v1005_v12 }
  0xe9   : > { %v468_v46 = vadd.f32 %v819_v42, %v1005_v12  ;;  %v493_v47 = vmax.f32 %v423_v29, %v477_v37  ;;  %v501_v48 = vmax.f32 %v455_v30, %v485_v38  ;;  %v475_v49 = vmul.f32 0.2, %v415_v39  ;;  %v427_v51 = vpop.f32.mrf.mxu0  ;;  %v459_v52 = vpop.f32.mrf.mxu1 }
  0xea   : > { %v483_v50 = vmul.f32 0.2, %v447_v40  ;;  %571 = vst.msk [vmem:[%s1016_s11] sm:$0xf] %vm570_vm1, %v769_v43  ;;  %579 = vst.msk [vmem:[%s1016_s11 + $0x20] sm:$0xf] %vm570_vm1, %v777_v44  ;;  %v428_v55 = vadd.f32 %v1005_v12, %v427_v51  ;;  %v460_v56 = vadd.f32 %v1005_v12, %v459_v52 }
  0xeb   : > { %v480_v53 = vmul.f32 0.2, %v436_v45  ;;  %v488_v54 = vmul.f32 0.2, %v468_v46  ;;  %v772_v57 = vpack.c.bf16 %v493_v47, %v493_v47  ;;  %v780_v58 = vpack.c.bf16 %v501_v48, %v501_v48  ;;  %v812_v61 = vpop.f32.mrf.mxu0  ;;  %v820_v62 = vpop.f32.mrf.mxu1 }
  0xec   : > { %v491_v59 = vmax.f32 %v415_v39, %v475_v49  ;;  %v499_v60 = vmax.f32 %v447_v40, %v483_v50  ;;  %v478_v1 = vmul.f32 0.2, %v428_v55  ;;  %v486_v2 = vmul.f32 0.2, %v460_v56 }
  0xed   : > { %v496_v63 = vmax.f32 %v436_v45, %v480_v53  ;;  %v504_v0 = vmax.f32 %v468_v46, %v488_v54  ;;  %574 = vst.msk [vmem:[%s1016_s11 + $0xc] sm:$0xf] %vm570_vm1, %v772_v57  ;;  %582 = vst.msk [vmem:[%s1016_s11 + $0x2c] sm:$0xf] %vm570_vm1, %v780_v58  ;;  %v439_v5 = vadd.f32 %v812_v61, %v1005_v12  ;;  %v430_v7 = vpop.f32.mrf.mxu0  ;;  %v462_v8 = vpop.f32.mrf.mxu1 }
  0xee   : > { %v770_v3 = vpack.c.bf16 %v491_v59, %v491_v59  ;;  %v778_v4 = vpack.c.bf16 %v499_v60, %v499_v60  ;;  %v471_v6 = vadd.f32 %v820_v62, %v1005_v12  ;;  %v494_v11 = vmax.f32 %v428_v55, %v478_v1 }
  0xef   : > { %v775_v9 = vpack.c.bf16 %v496_v63, %v496_v63  ;;  %v783_v10 = vpack.c.bf16 %v504_v0, %v504_v0  ;;  %v502_v13 = vmax.f32 %v460_v56, %v486_v2  ;;  %v481_v14 = vmul.f32 0.2, %v439_v5 }
  0xf0   : > { %572 = vst.msk [vmem:[%s1016_s11 + $0x4] sm:$0xf] %vm570_vm1, %v770_v3  ;;  %580 = vst.msk [vmem:[%s1016_s11 + $0x24] sm:$0xf] %vm570_vm1, %v778_v4  ;;  %v489_v15 = vmul.f32 0.2, %v471_v6  ;;  %v431_v16 = vadd.f32 %v1005_v12, %v430_v7  ;;  %v463_v17 = vadd.f32 %v1005_v12, %v462_v8  ;;  %v773_v18 = vpack.c.bf16 %v494_v11, %v494_v11 }
  0xf1   : > { %577 = vst.msk [vmem:[%s1016_s11 + $0x18] sm:$0xf] %vm570_vm1, %v775_v9  ;;  %585 = vst.msk [vmem:[%s1016_s11 + $0x38] sm:$0xf] %vm570_vm1, %v783_v10  ;;  %v781_v19 = vpack.c.bf16 %v502_v13, %v502_v13  ;;  %v497_v20 = vmax.f32 %v439_v5, %v481_v14 }
  0xf2   : > { %v505_v21 = vmax.f32 %v471_v6, %v489_v15  ;;  %v479_v22 = vmul.f32 0.2, %v431_v16  ;;  %v487_v23 = vmul.f32 0.2, %v463_v17  ;;  %575 = vst.msk [vmem:[%s1016_s11 + $0x10] sm:$0xf] %vm570_vm1, %v773_v18 }
  0xf3   : > { %583 = vst.msk [vmem:[%s1016_s11 + $0x30] sm:$0xf] %vm570_vm1, %v781_v19  ;;  %v776_v24 = vpack.c.bf16 %v497_v20, %v497_v20 }
  0xf4   : > { %v784_v25 = vpack.c.bf16 %v505_v21, %v505_v21  ;;  %v495_v12 = vmax.f32 %v431_v16, %v479_v22  ;;  %v503_v26 = vmax.f32 %v463_v17, %v487_v23 }
  0xf5   : > { %578 = vst.msk [vmem:[%s1016_s11 + $0x1c] sm:$0xf] %vm570_vm1, %v776_v24 }
  0xf6   : > { %586 = vst.msk [vmem:[%s1016_s11 + $0x3c] sm:$0xf] %vm570_vm1, %v784_v25  ;;  %v774_v27 = vpack.c.bf16 %v495_v12, %v495_v12  ;;  %v782_v28 = vpack.c.bf16 %v503_v26, %v503_v26 }
  0xf8   : > { %576 = vst.msk [vmem:[%s1016_s11 + $0x14] sm:$0xf] %vm570_vm1, %v774_v27  ;;  %584 = vst.msk [vmem:[%s1016_s11 + $0x34] sm:$0xf] %vm570_vm1, %v782_v28 }
  0xf9 PF: > { %s13_s16 = sadd.s32 1, %s919_s16   ;;  %s1081_s12 = smov %s911_s14 }
  0xfa   : > { %p10_p7 = scmp.ge.s32.totalorder %s13_s16, 6   ;;  %s1082_s13 = smov %s915_s15 }
  0xfb   : > { %s1083_s14 = smov %s1086_s17  ;;  %s1084_s15 = smov %s1090_s18 }
  0xfc   :  { %12 = sbr.rel (!%p10_p7) target bundleno = 3 (0x3), region = 68 }

// kernel: discriminator_forward.6
= control target key start
LH: loop header
LB: loop body
LE: loop exit
PB: predicated region body
PF: predicated region fallthrough
CT: control target
= control target key end

     0   :  { %s2001_s12 = smov 0   ;;  %s2003_s13 = smov 0   ;;  %s2283_s0 = inlined_call_operand.vmem [shape: bf16[2,2,64,512], index: 0, kind: input, shape index: {}]   ;;  %s2284_s1 = inlined_call_operand.vmem [shape: bf16[2,512,128], index: 1, kind: input, shape index: {}]   ;;  %s2285_s2 = inlined_call_operand.vmem [shape: f32[1,128], index: 2, kind: input, shape index: {}]   ;;  %s2286_s3 = inlined_call_operand.vmem [shape: bf16[2,64,128], index: 3, kind: output, shape index: {}]  }
   0x1   :  { %s2005_s14 = smov 0  }
   0x2 LB: > { %s25_s15 = sadd.s32 1, %s1975_s13  ;;  %p1434_p0 = scmp.ge.s32.totalorder %s1979_s14, 1  ;;  %s1979_s14 = sphi %s2005_s14, %s13_s14   ;;  %s1975_s13 = sphi %s2003_s13, %s2288_s13   ;;  %s1971_s12 = sphi %s2001_s12, %s2287_s12  }
   0x3   : > { %p27_p1 = scmp.ge.s32.totalorder %s25_s15, 2  ;;  %p168_p2 = scmp.lt.s32.totalorder %s1979_s14, 3 }
   0x5   : > { %s2290_s15 = smov (%p27_p1, %s25_s15), 0  ;;  %p169_p3 = pnand %p1434_p0, %p168_p2 }
   0x6   : > { %p202_p4 = scmp.lt.s32.totalorder (!%p169_p3), %s1971_s12, 1 }
   0x7   : > { %172 = sbr.rel (%p169_p3) target bundleno = 383 (0x17f), region = 32 }
   0xc   : > { %v1843_v0 = vld [vmem:[%s2284_s1 + $0x78] sm:$0xff]   ;;  %v1847_v4 = vld [vmem:[%s2284_s1 + $0x70] sm:$0xff]   ;;  %v1851_v8 = vld [vmem:[%s2284_s1 + $0x68] sm:$0xff]   ;;  %s2292_s12 = smov (!%p202_p4, %s1971_s12), 1 }
   0xd   : > { %v1844_v1 = vld [vmem:[%s2284_s1 + $0xf8] sm:$0xff]   ;;  %1659 = vmatprep.subr.bf16.mxu0 %v1843_v0  ;;  %v1848_v5 = vld [vmem:[%s2284_s1 + $0xf0] sm:$0xff]   ;;  %v1852_v9 = vld [vmem:[%s2284_s1 + $0xe8] sm:$0xff]   ;;  %s1626_s24 = sshll.u32 %s2292_s12, 8  ;;  %s1627_s10 = sshll.u32 %s2292_s12, 5 }
   0xe   : > { %v1845_v2 = vld [vmem:[%s2284_s1 + $0x38] sm:$0xff]   ;;  %1699 = vmatprep.subr.bf16.mxu1 %v1844_v1  ;;  %v1849_v6 = vld [vmem:[%s2284_s1 + $0x30] sm:$0xff]   ;;  %v1853_v10 = vld [vmem:[%s2284_s1 + $0x28] sm:$0xff]   ;;  %s2119_s6 = scalar_lea.vmem %s2283_s0, %s1626_s24  ;;  %s221_s17 = scalar_lea.vmem %s2286_s3, %s1627_s10 }
   0xf   : > { %v1846_v3 = vld [vmem:[%s2284_s1 + $0xb8] sm:$0xff]   ;;  %1660 = vmatpush3.bf16.msra.mxu0 %v1845_v2  ;;  %v1850_v7 = vld [vmem:[%s2284_s1 + $0xb0] sm:$0xff]   ;;  %v1854_v11 = vld [vmem:[%s2284_s1 + $0xa8] sm:$0xff]  }
  0x10   : > { %1700 = vmatpush3.bf16.msra.mxu1 %v1846_v3  ;;  %1661 = vmatprep.subr.bf16.mxu0 %v1847_v4  ;;  %v1855_v12 = vld [vmem:[%s2284_s1 + $0x60] sm:$0xff]   ;;  %v1859_v16 = vld [vmem:[%s2284_s1 + $0x58] sm:$0xff]   ;;  %v1863_v20 = vld [vmem:[%s2284_s1 + $0x50] sm:$0xff]  }
  0x11   : > { %1701 = vmatprep.subr.bf16.mxu1 %v1848_v5  ;;  %v1856_v13 = vld [vmem:[%s2284_s1 + $0xe0] sm:$0xff]   ;;  %v1860_v17 = vld [vmem:[%s2284_s1 + $0xd8] sm:$0xff]   ;;  %v1864_v21 = vld [vmem:[%s2284_s1 + $0xd0] sm:$0xff]  }
  0x12   : > { %v1857_v14 = vld [vmem:[%s2284_s1 + $0x20] sm:$0xff]   ;;  %v1861_v18 = vld [vmem:[%s2284_s1 + $0x18] sm:$0xff]   ;;  %v1865_v22 = vld [vmem:[%s2284_s1 + $0x10] sm:$0xff]  }
  0x13   : > { %1662 = vmatpush3.bf16.msra.mxu0 %v1849_v6  ;;  %v1858_v15 = vld [vmem:[%s2284_s1 + $0xa0] sm:$0xff]   ;;  %v1862_v19 = vld [vmem:[%s2284_s1 + $0x98] sm:$0xff]   ;;  %v1866_v23 = vld [vmem:[%s2284_s1 + $0x90] sm:$0xff]  }
  0x14   : > { %1702 = vmatpush3.bf16.msra.mxu1 %v1850_v7  ;;  %1663 = vmatprep.subr.bf16.mxu0 %v1851_v8  ;;  %v1867_v24 = vld [vmem:[%s2284_s1 + $0x48] sm:$0xff]   ;;  %v1871_v28 = vld [vmem:[%s2284_s1 + $0x40] sm:$0xff]   ;;  %v1881_v36 = vld [vmem:[%s2284_s1 + $0x178] sm:$0xff]  }
  0x15   : > { %1703 = vmatprep.subr.bf16.mxu1 %v1852_v9  ;;  %v1868_v25 = vld [vmem:[%s2284_s1 + $0xc8] sm:$0xff]   ;;  %v1872_v29 = vld [vmem:[%s2284_s1 + $0xc0] sm:$0xff]   ;;  %v1882_v37 = vld [vmem:[%s2284_s1 + $0x1f8] sm:$0xff]  }
  0x16   : > { %v1869_v26 = vld [vmem:[%s2284_s1 + $0x8] sm:$0xff]   ;;  %v1873_v30 = vld [vmem:[%s2284_s1] sm:$0xff]   ;;  %v1883_v38 = vld [vmem:[%s2284_s1 + $0x138] sm:$0xff]  }
  0x17   : > { %1664 = vmatpush3.bf16.msra.mxu0 %v1853_v10  ;;  %v1870_v27 = vld [vmem:[%s2284_s1 + $0x88] sm:$0xff]   ;;  %v1874_v31 = vld [vmem:[%s2284_s1 + $0x80] sm:$0xff]   ;;  %v1884_v39 = vld [vmem:[%s2284_s1 + $0x1b8] sm:$0xff]  }
  0x18   : > { %1704 = vmatpush3.bf16.msra.mxu1 %v1854_v11  ;;  %1665 = vmatprep.subr.bf16.mxu0 %v1855_v12  ;;  %v1875_v32 = vld [vmem:[%s2119_s6] ss:$16 sps:$4 sm:$0xff]   ;;  %v1877_v33 = vld [vmem:[%s2119_s6 + $0x4] ss:$16 sps:$4 sm:$0xff]   ;;  %v1878_v34 = vld [vmem:[%s2119_s6 + $0x8] ss:$16 sps:$4 sm:$0xff]  }
  0x19   : > { %1705 = vmatprep.subr.bf16.mxu1 %v1856_v13  ;;  %v1880_v35 = vld [vmem:[%s2119_s6 + $0xc] ss:$16 sps:$4 sm:$0xff]   ;;  %608 = vmatprep.mubr.bf16.mxu0 %v1877_v33  ;;  %v1885_v40 = vld [vmem:[%s2284_s1 + $0x170] sm:$0xff]   ;;  %v1894_v47 = vld [vmem:[%s2119_s6 + $0x28] ss:$16 sps:$4 sm:$0xff]  }
  0x1a   : > { %673 = vmatprep.mubr.bf16.mxu1 %v1880_v35  ;;  %v1886_v41 = vld [vmem:[%s2284_s1 + $0x1f0] sm:$0xff]   ;;  %v1891_v45 = vld [vmem:[%s2119_s6 + $0x2c] ss:$16 sps:$4 sm:$0xff]   ;;  %v1899_v52 = vld [vmem:[%s2284_s1 + $0x160] sm:$0xff]  }
  0x1b   : > { %1666 = vmatpush3.bf16.msra.mxu0 %v1857_v14  ;;  %v1887_v42 = vld [vmem:[%s2284_s1 + $0x130] sm:$0xff]   ;;  %v1895_v48 = vld [vmem:[%s2284_s1 + $0x168] sm:$0xff]   ;;  %v1900_v53 = vld [vmem:[%s2284_s1 + $0x1e0] sm:$0xff]  }
  0x1c   : > { %1706 = vmatpush3.bf16.msra.mxu1 %v1858_v15  ;;  %1667 = vmatprep.subr.bf16.mxu0 %v1859_v16  ;;  %v1888_v43 = vld [vmem:[%s2284_s1 + $0x1b0] sm:$0xff]   ;;  %v1896_v49 = vld [vmem:[%s2284_s1 + $0x1e8] sm:$0xff]   ;;  %v1901_v54 = vld [vmem:[%s2284_s1 + $0x120] sm:$0xff]  }
  0x1d   : > { %1707 = vmatprep.subr.bf16.mxu1 %v1860_v17  ;;  %v1889_v44 = vld [vmem:[%s2119_s6 + $0x24] ss:$16 sps:$4 sm:$0xff]   ;;  %v1893_v46 = vld [vmem:[%s2119_s6 + $0x20] ss:$16 sps:$4 sm:$0xff]   ;;  %v1897_v50 = vld [vmem:[%s2284_s1 + $0x128] sm:$0xff]  }
  0x1e   : > { %v1898_v51 = vld [vmem:[%s2284_s1 + $0x1a8] sm:$0xff]   ;;  %v1902_v55 = vld [vmem:[%s2284_s1 + $0x1a0] sm:$0xff]   ;;  %v1909_v60 = vld [vmem:[%s2284_s1 + $0x158] sm:$0xff]  }
  0x1f   : > { %1668 = vmatpush3.bf16.msra.mxu0 %v1861_v18  ;;  %v1903_v56 = vld [vmem:[%s2119_s6 + $0x44] ss:$16 sps:$4 sm:$0xff]   ;;  %v1905_v57 = vld [vmem:[%s2119_s6 + $0x4c] ss:$16 sps:$4 sm:$0xff]   ;;  %v1907_v58 = vld [vmem:[%s2119_s6 + $0x40] ss:$16 sps:$4 sm:$0xff]  }
  0x20   : > { %1708 = vmatpush3.bf16.msra.mxu1 %v1862_v19  ;;  %1669 = vmatprep.subr.bf16.mxu0 %v1863_v20  ;;  %v1908_v59 = vld [vmem:[%s2119_s6 + $0x48] ss:$16 sps:$4 sm:$0xff]   ;;  %v1913_v0 = vld [vmem:[%s2284_s1 + $0x150] sm:$0xff]   ;;  %v1919_v5 = vld [vmem:[%s2119_s6 + $0x6c] ss:$16 sps:$4 sm:$0xff]  }
  0x21   : > { %1709 = vmatprep.subr.bf16.mxu1 %v1864_v21  ;;  %v1910_v61 = vld [vmem:[%s2284_s1 + $0x1d8] sm:$0xff]   ;;  %v1914_v1 = vld [vmem:[%s2284_s1 + $0x1d0] sm:$0xff]   ;;  %v1923_v8 = vld [vmem:[%s2284_s1 + $0x148] sm:$0xff]  }
  0x22   : > { %v1911_v62 = vld [vmem:[%s2284_s1 + $0x118] sm:$0xff]   ;;  %v1915_v2 = vld [vmem:[%s2284_s1 + $0x110] sm:$0xff]   ;;  %v1924_v9 = vld [vmem:[%s2284_s1 + $0x1c8] sm:$0xff]  }
  0x23   : > { %1670 = vmatpush3.bf16.msra.mxu0 %v1865_v22  ;;  %v1912_v63 = vld [vmem:[%s2284_s1 + $0x198] sm:$0xff]   ;;  %v1916_v3 = vld [vmem:[%s2284_s1 + $0x190] sm:$0xff]   ;;  %v1925_v10 = vld [vmem:[%s2284_s1 + $0x108] sm:$0xff]  }
  0x24   : > { %1710 = vmatpush3.bf16.msra.mxu1 %v1866_v23  ;;  %1671 = vmatprep.subr.bf16.mxu0 %v1867_v24  ;;  %v1917_v4 = vld [vmem:[%s2119_s6 + $0x64] ss:$16 sps:$4 sm:$0xff]   ;;  %v1921_v6 = vld [vmem:[%s2119_s6 + $0x60] ss:$16 sps:$4 sm:$0xff]   ;;  %v1922_v7 = vld [vmem:[%s2119_s6 + $0x68] ss:$16 sps:$4 sm:$0xff]  }
  0x25   : > { %1711 = vmatprep.subr.bf16.mxu1 %v1868_v25  ;;  %v1926_v11 = vld [vmem:[%s2284_s1 + $0x188] sm:$0xff]   ;;  %v1927_v12 = vld [vmem:[%s2284_s1 + $0x140] sm:$0xff]  }
  0x26   : > { %v1928_v13 = vld [vmem:[%s2284_s1 + $0x1c0] sm:$0xff]   ;;  %v1934_v18 = vld [vmem:[%s2119_s6 + $0x88] ss:$16 sps:$4 sm:$0xff]   ;;  %v1936_v19 = vld [vmem:[%s2119_s6 + $0x8c] ss:$16 sps:$4 sm:$0xff]  }
  0x27   : > { %1672 = vmatpush3.bf16.msra.mxu0 %v1869_v26  ;;  %v1929_v14 = vld [vmem:[%s2284_s1 + $0x100] sm:$0xff]   ;;  %v1939_v21 = vld [vmem:[%s2119_s6 + $0xac] ss:$16 sps:$4 sm:$0xff]   ;;  %v1942_v24 = vld [vmem:[%s2119_s6 + $0xa8] ss:$16 sps:$4 sm:$0xff]  }
  0x28   : > { %1712 = vmatpush3.bf16.msra.mxu1 %v1870_v27  ;;  %1673 = vmatprep.subr.bf16.mxu0 %v1871_v28  ;;  %v1930_v15 = vld [vmem:[%s2284_s1 + $0x180] sm:$0xff]   ;;  %v1945_v25 = vld [vmem:[%s2119_s6 + $0xcc] ss:$16 sps:$4 sm:$0xff]   ;;  %v1948_v28 = vld [vmem:[%s2119_s6 + $0xc8] ss:$16 sps:$4 sm:$0xff]  }
  0x29   : > { %1713 = vmatprep.subr.bf16.mxu1 %v1872_v29  ;;  %v1931_v16 = vld [vmem:[%s2119_s6 + $0x80] ss:$16 sps:$4 sm:$0xff]   ;;  %v1933_v17 = vld [vmem:[%s2119_s6 + $0x84] ss:$16 sps:$4 sm:$0xff]   ;;  %v1951_v29 = vld [vmem:[%s2119_s6 + $0xec] ss:$16 sps:$4 sm:$0xff]  }
  0x2a   : > { %v1937_v20 = vld [vmem:[%s2119_s6 + $0xa4] ss:$16 sps:$4 sm:$0xff]   ;;  %v1941_v22 = vld [vmem:[%s2119_s6 + $0xa0] ss:$16 sps:$4 sm:$0xff]  }
  0x2b   : > { %1674 = vmatpush3.bf16.msra.mxu0 %v1873_v30  ;;  %v1943_v23 = vld [vmem:[%s2119_s6 + $0xc4] ss:$16 sps:$4 sm:$0xff]   ;;  %v1947_v26 = vld [vmem:[%s2119_s6 + $0xc0] ss:$16 sps:$4 sm:$0xff]  }
  0x2c   : > { %1714 = vmatpush3.bf16.msra.mxu1 %v1874_v31  ;;  %1739 = vmatprep.subr.bf16.mxu0 %v1881_v36  ;;  %v1949_v27 = vld [vmem:[%s2119_s6 + $0xe4] ss:$16 sps:$4 sm:$0xff]   ;;  %v1953_v30 = vld [vmem:[%s2119_s6 + $0xe0] ss:$16 sps:$4 sm:$0xff]   ;;  %v1954_v31 = vld [vmem:[%s2119_s6 + $0xe8] ss:$16 sps:$4 sm:$0xff]  }
  0x2d   : > { %1779 = vmatprep.subr.bf16.mxu1 %v1882_v37 }
  0x2e   : > { %609 = vmatmul.mubr.bf16.vlgmr.msra.gmra.mxu0 %v1875_v32 }
  0x2f   : > { %674 = vmatmul.mubr.bf16.vlgmr.msra.gmra.mxu1 %v1878_v34  ;;  %1740 = vmatpush3.bf16.msra.mxu0 %v1883_v38 }
  0x30   : > { %1780 = vmatpush3.bf16.msra.mxu1 %v1884_v39  ;;  %1741 = vmatprep.subr.bf16.mxu0 %v1885_v40 }
  0x31   : > { %1781 = vmatprep.subr.bf16.mxu1 %v1886_v41  ;;  %616 = vmatprep.mubr.bf16.mxu0 %v1889_v44 }
  0x32   : > { %681 = vmatprep.mubr.bf16.mxu1 %v1891_v45 }
  0x33   : > { %1742 = vmatpush3.bf16.msra.mxu0 %v1887_v42 }
  0x34   : > { %1782 = vmatpush3.bf16.msra.mxu1 %v1888_v43  ;;  %1743 = vmatprep.subr.bf16.mxu0 %v1895_v48 }
  0x35   : > { %1783 = vmatprep.subr.bf16.mxu1 %v1896_v49 }
  0x36   : > { %617 = vmatmul.mubr.bf16.gmra.mxu0 %v1893_v46 }
  0x37   : > { %682 = vmatmul.mubr.bf16.gmra.mxu1 %v1894_v47  ;;  %1744 = vmatpush3.bf16.msra.mxu0 %v1897_v50 }
  0x38   : > { %1784 = vmatpush3.bf16.msra.mxu1 %v1898_v51  ;;  %1745 = vmatprep.subr.bf16.mxu0 %v1899_v52 }
  0x39   : > { %1785 = vmatprep.subr.bf16.mxu1 %v1900_v53  ;;  %624 = vmatprep.mubr.bf16.mxu0 %v1903_v56 }
  0x3a   : > { %689 = vmatprep.mubr.bf16.mxu1 %v1905_v57 }
  0x3b   : > { %1746 = vmatpush3.bf16.msra.mxu0 %v1901_v54 }
  0x3c   : > { %1786 = vmatpush3.bf16.msra.mxu1 %v1902_v55  ;;  %1747 = vmatprep.subr.bf16.mxu0 %v1909_v60 }
  0x3d   : > { %1787 = vmatprep.subr.bf16.mxu1 %v1910_v61 }
  0x3e   : > { %625 = vmatmul.mubr.bf16.gmra.mxu0 %v1907_v58 }
  0x3f   : > { %690 = vmatmul.mubr.bf16.gmra.mxu1 %v1908_v59  ;;  %1748 = vmatpush3.bf16.msra.mxu0 %v1911_v62 }
  0x40   : > { %1788 = vmatpush3.bf16.msra.mxu1 %v1912_v63  ;;  %1749 = vmatprep.subr.bf16.mxu0 %v1913_v0 }
  0x41   : > { %1789 = vmatprep.subr.bf16.mxu1 %v1914_v1  ;;  %632 = vmatprep.mubr.bf16.mxu0 %v1917_v4 }
  0x42   : > { %697 = vmatprep.mubr.bf16.mxu1 %v1919_v5 }
  0x43   : > { %1750 = vmatpush3.bf16.msra.mxu0 %v1915_v2 }
  0x44   : > { %1790 = vmatpush3.bf16.msra.mxu1 %v1916_v3  ;;  %1751 = vmatprep.subr.bf16.mxu0 %v1923_v8 }
  0x45   : > { %1791 = vmatprep.subr.bf16.mxu1 %v1924_v9 }
  0x46   : > { %633 = vmatmul.mubr.bf16.gmra.mxu0 %v1921_v6 }
  0x47   : > { %698 = vmatmul.mubr.bf16.gmra.mxu1 %v1922_v7  ;;  %1752 = vmatpush3.bf16.msra.mxu0 %v1925_v10 }
  0x48   : > { %1792 = vmatpush3.bf16.msra.mxu1 %v1926_v11  ;;  %1753 = vmatprep.subr.bf16.mxu0 %v1927_v12 }
  0x49   : > { %1793 = vmatprep.subr.bf16.mxu1 %v1928_v13  ;;  %1106 = vmatprep.mubr.bf16.mxu0 %v1933_v17 }
  0x4a   : > { %1171 = vmatprep.mubr.bf16.mxu1 %v1936_v19 }
  0x4b   : > { %1754 = vmatpush3.bf16.msra.mxu0 %v1929_v14 }
  0x4c   : > { %1794 = vmatpush3.bf16.msra.mxu1 %v1930_v15 }
  0x4e   : > { %1107 = vmatmul.mubr.bf16.vlgmr.msra.gmra.mxu0 %v1931_v16 }
  0x4f   : > { %1172 = vmatmul.mubr.bf16.vlgmr.msra.gmra.mxu1 %v1934_v18  ;;  %1114 = vmatprep.mubr.bf16.mxu0 %v1937_v20 }
  0x50   : > { %1179 = vmatprep.mubr.bf16.mxu1 %v1939_v21 }
  0x56   : > { %1115 = vmatmul.mubr.bf16.gmra.mxu0 %v1941_v22 }
  0x57   : > { %1122 = vmatprep.mubr.bf16.mxu0 %v1943_v23  ;;  %1180 = vmatmul.mubr.bf16.gmra.mxu1 %v1942_v24 }
  0x58   : > { %1187 = vmatprep.mubr.bf16.mxu1 %v1945_v25 }
  0x5e   : > { %1123 = vmatmul.mubr.bf16.gmra.mxu0 %v1947_v26 }
  0x5f   : > { %1130 = vmatprep.mubr.bf16.mxu0 %v1949_v27  ;;  %1188 = vmatmul.mubr.bf16.gmra.mxu1 %v1948_v28 }
  0x60   : > { %1195 = vmatprep.mubr.bf16.mxu1 %v1951_v29 }
  0x66   : > { %1131 = vmatmul.mubr.bf16.gmra.mxu0 %v1953_v30 }
  0x67   : > { %1196 = vmatmul.mubr.bf16.gmra.mxu1 %v1954_v31 }
  0xee   : > { %v1675_v32 = vpop.f32.mrf.mxu0 }
  0xef   : > { %v1715_v33 = vpop.f32.mrf.mxu1 }
  0xf0   : > { %v1676_v34 = vpop.f32.mrf.mxu0 }
  0xf1   : > { %v1716_v35 = vpop.f32.mrf.mxu1  ;;  %v1677_v15 = vadd.f32 %v1676_v34, %v1675_v32  ;;  %v1487_v34 = vld [vmem:[%s2285_s2] ss:$0 sm:$0xff] }
  0xf2   : > { %v1678_v36 = vpop.f32.mrf.mxu0  ;;  %v1717_v16 = vadd.f32 %v1716_v35, %v1715_v33 }
  0xf3   : > { %v1718_v37 = vpop.f32.mrf.mxu1 }
  0xf4   : > { %v1679_v38 = vpop.f32.mrf.mxu0 }
  0xf5   : > { %v1719_v39 = vpop.f32.mrf.mxu1  ;;  %v1680_v11 = vadd.f32 %v1679_v38, %v1678_v36  ;;  %v676_v36 = vadd.f32 %v1717_v16, %v1677_v15 }
  0xf6   : > { %v1681_v40 = vpop.f32.mrf.mxu0  ;;  %v1720_v12 = vadd.f32 %v1719_v39, %v1718_v37 }
  0xf7   : > { %v1721_v41 = vpop.f32.mrf.mxu1 }
  0xf8   : > { %v1682_v42 = vpop.f32.mrf.mxu0  ;;  %v679_v23 = vadd.f32 %v1720_v12, %v1680_v11 }
  0xf9   : > { %v1722_v43 = vpop.f32.mrf.mxu1  ;;  %v1683_v19 = vadd.f32 %v1682_v42, %v1681_v40 }
  0xfa   : > { %v1684_v44 = vpop.f32.mrf.mxu0  ;;  %v1723_v20 = vadd.f32 %v1722_v43, %v1721_v41  ;;  %v713_v42 = vadd.f32 %v1487_v34, %v679_v23 }
  0xfb   : > { %v1724_v45 = vpop.f32.mrf.mxu1 }
  0xfc   : > { %v1685_v46 = vpop.f32.mrf.mxu0  ;;  %v684_v35 = vadd.f32 %v1723_v20, %v1683_v19 }
  0xfd   : > { %v1725_v47 = vpop.f32.mrf.mxu1  ;;  %v1686_v24 = vadd.f32 %v1685_v46, %v1684_v44 }
  0xfe   : > { %v1687_v48 = vpop.f32.mrf.mxu0  ;;  %v1726_v25 = vadd.f32 %v1725_v47, %v1724_v45 }
  0xff   : > { %v1727_v49 = vpop.f32.mrf.mxu1 }
 0x100   : > { %v1688_v50 = vpop.f32.mrf.mxu0  ;;  %v687_v43 = vadd.f32 %v1726_v25, %v1686_v24 }
 0x101   : > { %v1728_v51 = vpop.f32.mrf.mxu1  ;;  %v1689_v37 = vadd.f32 %v1688_v50, %v1687_v48  ;;  %v712_v50 = vadd.f32 %v1487_v34, %v676_v36 }
 0x102   : > { %v1690_v52 = vpop.f32.mrf.mxu0  ;;  %v1729_v38 = vadd.f32 %v1728_v51, %v1727_v49 }
 0x103   : > { %v1730_v53 = vpop.f32.mrf.mxu1 }
 0x104   : > { %v1691_v54 = vpop.f32.mrf.mxu0  ;;  %v692_v51 = vadd.f32 %v1729_v38, %v1689_v37 }
 0x105   : > { %v1731_v55 = vpop.f32.mrf.mxu1  ;;  %v1692_v44 = vadd.f32 %v1691_v54, %v1690_v52 }
 0x106   : > { %v1693_v56 = vpop.f32.mrf.mxu0  ;;  %v1732_v45 = vadd.f32 %v1731_v55, %v1730_v53 }
 0x107   : > { %v1733_v57 = vpop.f32.mrf.mxu1 }
 0x108   : > { %v1694_v58 = vpop.f32.mrf.mxu0  ;;  %v695_v11 = vadd.f32 %v1732_v45, %v1692_v44 }
 0x109   : > { %v1734_v59 = vpop.f32.mrf.mxu1 }
 0x10a   : > { %v2255_v60 = vpop.f32.mrf.mxu0 }
 0x10b   : > { %v2257_v61 = vpop.f32.mrf.mxu1 }
 0x10c   : > { %v2259_v62 = vpop.f32.mrf.mxu0 }
 0x10d   : > { %v2261_v63 = vpop.f32.mrf.mxu1 }
 0x10e   : > { %v1755_v0 = vpop.f32.mrf.mxu0 }
 0x10f   : > { %v1795_v1 = vpop.f32.mrf.mxu1 }
 0x110   : > { %v1756_v2 = vpop.f32.mrf.mxu0 }
 0x111   : > { %v1796_v3 = vpop.f32.mrf.mxu1  ;;  %v1757_v28 = vadd.f32 %v1756_v2, %v1755_v0  ;;  %v1695_v2 = vadd.f32 %v1694_v58, %v1693_v56  ;;  %v1698_v56 = vadd.f32 %v2259_v62, %v2255_v60 }
 0x112   : > { %v1758_v4 = vpop.f32.mrf.mxu0  ;;  %v1797_v29 = vadd.f32 %v1796_v3, %v1795_v1  ;;  %v1735_v3 = vadd.f32 %v1734_v59, %v1733_v57  ;;  %v1738_v57 = vadd.f32 %v2261_v63, %v2257_v61 }
 0x113   : > { %v1798_v5 = vpop.f32.mrf.mxu1 }
 0x114   : > { %v1759_v6 = vpop.f32.mrf.mxu0  ;;  %v1174_v0 = vadd.f32 %v1797_v29, %v1757_v28  ;;  %v700_v15 = vadd.f32 %v1735_v3, %v1695_v2 }
 0x115   : > { %v1799_v7 = vpop.f32.mrf.mxu1  ;;  %v1760_v21 = vadd.f32 %v1759_v6, %v1758_v4  ;;  %v714_v6 = vadd.f32 %v1487_v34, %v684_v35 }
 0x116   : > { %v1761_v8 = vpop.f32.mrf.mxu0  ;;  %v1800_v22 = vadd.f32 %v1799_v7, %v1798_v5  ;;  %v1204_v54 = vadd.f32 %v1174_v0, %v712_v50 }
 0x117   : > { %v1801_v9 = vpop.f32.mrf.mxu1 }
 0x118   : > { %v1762_v10 = vpop.f32.mrf.mxu0  ;;  %v1177_v39 = vadd.f32 %v1800_v22, %v1760_v21  ;;  %v717_v22 = vadd.f32 %v1487_v34, %v695_v11 }
 0x119   : > { %v1802_v13 = vpop.f32.mrf.mxu1  ;;  %v1763_v30 = vadd.f32 %v1762_v10, %v1761_v8  ;;  %v715_v10 = vadd.f32 %v1487_v34, %v687_v43 }
 0x11a   : > { %v1764_v14 = vpop.f32.mrf.mxu0  ;;  %v1803_v31 = vadd.f32 %v1802_v13, %v1801_v9  ;;  %v1205_v7 = vadd.f32 %v1177_v39, %v713_v42 }
 0x11b   : > { %v1804_v17 = vpop.f32.mrf.mxu1 }
 0x11c   : > { %v1765_v18 = vpop.f32.mrf.mxu0  ;;  %v1182_v1 = vadd.f32 %v1803_v31, %v1763_v30  ;;  %v1212_v16 = vadd.f32 %v1205_v7, %v1204_v54 }
 0x11d   : > { %v1805_v26 = vpop.f32.mrf.mxu1  ;;  %v1766_v40 = vadd.f32 %v1765_v18, %v1764_v14  ;;  %v716_v14 = vadd.f32 %v1487_v34, %v692_v51 }
 0x11e   : > { %v1767_v27 = vpop.f32.mrf.mxu0  ;;  %v1806_v41 = vadd.f32 %v1805_v26, %v1804_v17  ;;  %v1206_v55 = vadd.f32 %v1182_v1, %v714_v6  ;;  %v718_v26 = vadd.f32 %v1487_v34, %v700_v15 }
 0x11f   : > { %v1807_v32 = vpop.f32.mrf.mxu1 }
 0x120   : > { %v1768_v33 = vpop.f32.mrf.mxu0  ;;  %v1185_v8 = vadd.f32 %v1806_v41, %v1766_v40  ;;  %v1213_v23 = vadd.f32 %v1212_v16, %v1206_v55 }
 0x121   : > { %v1808_v46 = vpop.f32.mrf.mxu1  ;;  %v1769_v48 = vadd.f32 %v1768_v33, %v1767_v27  ;;  %v703_v27 = vadd.f32 %v1738_v57, %v1698_v56 }
 0x122   : > { %v1770_v47 = vpop.f32.mrf.mxu0  ;;  %v1809_v49 = vadd.f32 %v1808_v46, %v1807_v32  ;;  %v1207_v17 = vadd.f32 %v1185_v8, %v715_v10 }
 0x123   : > { %v1810_v4 = vpop.f32.mrf.mxu1  ;;  %v719_v38 = vadd.f32 %v1487_v34, %v703_v27 }
 0x124   : > { %v1771_v5 = vpop.f32.mrf.mxu0  ;;  %v1190_v12 = vadd.f32 %v1809_v49, %v1769_v48  ;;  %v1214_v60 = vadd.f32 %v1213_v23, %v1207_v17 }
 0x125   : > { %v1772_v9 = vadd.f32 %v1771_v5, %v1770_v47  ;;  %v1811_v52 = vpop.f32.mrf.mxu1 }
 0x126   : > { %v1773_v53 = vpop.f32.mrf.mxu0  ;;  %v1812_v13 = vadd.f32 %v1811_v52, %v1810_v4  ;;  %v1208_v24 = vadd.f32 %v1190_v12, %v716_v14 }
 0x127   : > { %v1813_v58 = vpop.f32.mrf.mxu1 }
 0x128   : > { %v1774_v59 = vpop.f32.mrf.mxu0  ;;  %v1193_v18 = vadd.f32 %v1812_v13, %v1772_v9  ;;  %v1215_v31 = vadd.f32 %v1214_v60, %v1208_v24 }
 0x129   : > { %v1775_v19 = vadd.f32 %v1774_v59, %v1773_v53  ;;  %v1814_v20 = vpop.f32.mrf.mxu1 }
 0x12a   : > { %v1776_v21 = vpop.f32.mrf.mxu0  ;;  %v1815_v25 = vadd.f32 %v1814_v20, %v1813_v58  ;;  %v1209_v62 = vadd.f32 %v1193_v18, %v717_v22 }
 0x12b   : > { %v1816_v28 = vpop.f32.mrf.mxu1 }
 0x12c   : > { %v1777_v29 = vpop.f32.mrf.mxu0  ;;  %v1198_v30 = vadd.f32 %v1815_v25, %v1775_v19  ;;  %v1216_v32 = vadd.f32 %v1215_v31, %v1209_v62 }
 0x12d   : > { %v1778_v61 = vadd.f32 %v1777_v29, %v1776_v21  ;;  %v1817_v63 = vpop.f32.mrf.mxu1 }
 0x12e   : > { %v1210_v36 = vadd.f32 %v1198_v30, %v718_v26  ;;  %v1818_v37 = vadd.f32 %v1817_v63, %v1816_v28 }
 0x130   : > { %v1201_v33 = vadd.f32 %v1818_v37, %v1778_v61  ;;  %v1217_v35 = vadd.f32 %v1216_v32, %v1210_v36 }
 0x132   : > { %v1211_v39 = vadd.f32 %v1201_v33, %v719_v38 }
 0x134   : > { %v1218_v40 = vadd.f32 %v1217_v35, %v1211_v39 }
 0x136   : > { %v1219_v41 = vrot.slane %v1218_v40, 4 }
 0x138   : > { %v1220_v42 = vadd.f32 %v1219_v41, %v1218_v40 }
 0x13a   : > { %v1221_v43 = vrot.slane %v1220_v42, 2 }
 0x13c   : > { %v1222_v44 = vadd.f32 %v1221_v43, %v1220_v42 }
 0x13e   : > { %v1223_v45 = vrot.slane %v1222_v44, 1 }
 0x140   : > { %v1224_v46 = vadd.f32 %v1223_v45, %v1222_v44 }
 0x142   : > { %v1226_v47 = vmul.f32 0.015625, %v1224_v46 }
 0x144   : > { %v1227_v0 = vsub.f32 %v1204_v54, %v1226_v47  ;;  %v1228_v1 = vsub.f32 %v1205_v7, %v1226_v47  ;;  %v1229_v48 = vsub.f32 %v1206_v55, %v1226_v47  ;;  %v1230_v49 = vsub.f32 %v1207_v17, %v1226_v47 }
 0x145   : > { %v1231_v2 = vsub.f32 %v1208_v24, %v1226_v47  ;;  %v1232_v4 = vsub.f32 %v1209_v62, %v1226_v47  ;;  %v1233_v8 = vsub.f32 %v1210_v36, %v1226_v47  ;;  %v1234_v11 = vsub.f32 %v1211_v39, %v1226_v47 }
 0x146   : > { %v1235_v50 = vmul.f32 %v1227_v0, %v1227_v0  ;;  %v1236_v51 = vmul.f32 %v1228_v1, %v1228_v1  ;;  %v1237_v34 = vmul.f32 %v1229_v48, %v1229_v48  ;;  %v1238_v5 = vmul.f32 %v1230_v49, %v1230_v49 }
 0x147   : > { %v1239_v9 = vmul.f32 %v1231_v2, %v1231_v2  ;;  %v1240_v52 = vmul.f32 %v1232_v4, %v1232_v4  ;;  %v1241_v12 = vmul.f32 %v1233_v8, %v1233_v8  ;;  %v1242_v54 = vmul.f32 %v1234_v11, %v1234_v11 }
 0x148   : > { %v1243_v3 = vadd.f32 %v1236_v51, %v1235_v50 }
 0x14a   : > { %v1244_v6 = vadd.f32 %v1243_v3, %v1237_v34 }
 0x14c   : > { %v1245_v10 = vadd.f32 %v1244_v6, %v1238_v5 }
 0x14e   : > { %v1246_v53 = vadd.f32 %v1245_v10, %v1239_v9 }
 0x150   : > { %v1247_v13 = vadd.f32 %v1246_v53, %v1240_v52 }
 0x152   : > { %v1248_v7 = vadd.f32 %v1247_v13, %v1241_v12 }
 0x154   : > { %v1249_v55 = vadd.f32 %v1248_v7, %v1242_v54 }
 0x156   : > { %v1250_v14 = vrot.slane %v1249_v55, 4 }
 0x158   : > { %v1251_v15 = vadd.f32 %v1250_v14, %v1249_v55 }
 0x15a   : > { %v1252_v56 = vrot.slane %v1251_v15, 2 }
 0x15c   : > { %v1253_v57 = vadd.f32 %v1252_v56, %v1251_v15 }
 0x15e   : > { %v1254_v58 = vrot.slane %v1253_v57, 1 }
 0x160   : > { %v1255_v59 = vadd.f32 %v1254_v58, %v1253_v57 }
 0x162   : > { %v1256_v16 = vmul.f32 0.015625, %v1255_v59 }
 0x164   : > { %v1257_v17 = vadd.f32 1e-05, %v1256_v16 }
 0x166   : > { %1955 = vrsqrt.f32 %v1257_v17 }
 0x173   : > { %v1956_v18 = vpop.eup %1955 }
 0x174   : > { %v1259_v19 = vmul.f32 %v1956_v18, %v1227_v0  ;;  %v1260_v20 = vmul.f32 %v1956_v18, %v1228_v1  ;;  %v1261_v21 = vmul.f32 %v1956_v18, %v1229_v48  ;;  %v1262_v22 = vmul.f32 %v1956_v18, %v1230_v49 }
 0x175   : > { %v1263_v23 = vmul.f32 %v1956_v18, %v1231_v2  ;;  %v1264_v24 = vmul.f32 %v1956_v18, %v1232_v4  ;;  %v1265_v25 = vmul.f32 %v1956_v18, %v1233_v8  ;;  %v1266_v26 = vmul.f32 %v1956_v18, %v1234_v11 }
 0x176   : > { %v1267_v27 = vmul.f32 0.2, %v1259_v19  ;;  %v1268_v28 = vmul.f32 0.2, %v1260_v20  ;;  %v1269_v29 = vmul.f32 0.2, %v1261_v21 }
 0x177   : > { %v1270_v60 = vmul.f32 0.2, %v1262_v22  ;;  %v1271_v62 = vmul.f32 0.2, %v1263_v23  ;;  %v1272_v30 = vmul.f32 0.2, %v1264_v24 }
 0x178   : > { %v1273_v61 = vmul.f32 0.2, %v1265_v25  ;;  %v1274_v63 = vmul.f32 0.2, %v1266_v26  ;;  %v1275_v31 = vmax.f32 %v1259_v19, %v1267_v27  ;;  %v1276_v36 = vmax.f32 %v1260_v20, %v1268_v28 }
 0x179   : > { %v1277_v37 = vmax.f32 %v1261_v21, %v1269_v29  ;;  %v1278_v38 = vmax.f32 %v1262_v22, %v1270_v60  ;;  %v1279_v32 = vmax.f32 %v1263_v23, %v1271_v62  ;;  %v1280_v33 = vmax.f32 %v1264_v24, %v1272_v30 }
 0x17a   : > { %v1281_v35 = vmax.f32 %v1265_v25, %v1273_v61  ;;  %v1282_v39 = vmax.f32 %v1266_v26, %v1274_v63  ;;  %v1639_v40 = vpack.c.bf16 %v1276_v36, %v1275_v31 }
 0x17b   : > { %v1644_v41 = vpack.c.bf16 %v1278_v38, %v1277_v37  ;;  %v1649_v42 = vpack.c.bf16 %v1280_v33, %v1279_v32 }
 0x17c   : > { %1640 = vst [vmem:[%s221_s17] sm:$0xff] %v1639_v40   ;;  %v1654_v43 = vpack.c.bf16 %v1282_v39, %v1281_v35 }
 0x17d   : > { %1656 = vst [vmem:[%s221_s17 + $0x8] sm:$0xff] %v1644_v41   ;;  %1657 = vst [vmem:[%s221_s17 + $0x10] sm:$0xff] %v1649_v42  }
 0x17e   : > { %1658 = vst [vmem:[%s221_s17 + $0x18] sm:$0xff] %v1654_v43  }
 0x17f PF: > { %s13_s14 = sadd.s32 1, %s1979_s14   ;;  %s2287_s12 = smov %s1975_s13 }
 0x180   : > { %p10_p5 = scmp.ge.s32.totalorder %s13_s14, 4   ;;  %s2288_s13 = smov %s2290_s15 }
 0x182   :  { %12 = sbr.rel (!%p10_p5) target bundleno = 2 (0x2), region = 70 }

// kernel: discriminator_forward.7
= control target key start
LH: loop header
LB: loop body
LE: loop exit
PB: predicated region body
PF: predicated region fallthrough
CT: control target
= control target key end

     0   :  { %s3295_s12 = smov 0   ;;  %s3297_s13 = smov 0   ;;  %s4173_s0 = inlined_call_operand.vmem [shape: bf16[2,2,16,1024], index: 0, kind: input, shape index: {}]   ;;  %s4174_s1 = inlined_call_operand.vmem [shape: bf16[2,1024,256], index: 1, kind: input, shape index: {}]   ;;  %s4175_s2 = inlined_call_operand.vmem [shape: f32[1,256], index: 2, kind: input, shape index: {}]   ;;  %s4176_s3 = inlined_call_operand.vmem [shape: bf16[2,16,256], index: 3, kind: output, shape index: {}]  }
   0x1   :  { %s3299_s14 = smov 0  }
   0x2 LB: > { %s25_s15 = sadd.s32 1, %s3269_s13  ;;  %p2418_p0 = scmp.ge.s32.totalorder %s3273_s14, 1  ;;  %s3273_s14 = sphi %s3299_s14, %s13_s14   ;;  %s3269_s13 = sphi %s3297_s13, %s4178_s13   ;;  %s3265_s12 = sphi %s3295_s12, %s4177_s12  }
   0x3   : > { %p27_p1 = scmp.ge.s32.totalorder %s25_s15, 2  ;;  %p172_p2 = scmp.lt.s32.totalorder %s3273_s14, 3 }
   0x5   : > { %s4180_s15 = smov (%p27_p1, %s25_s15), 0  ;;  %p173_p3 = pnand %p2418_p0, %p172_p2 }
   0x6   : > { %p209_p4 = scmp.lt.s32.totalorder (!%p173_p3), %s3265_s12, 1 }
   0x7   : > { %176 = sbr.rel (%p173_p3) target bundleno = 535 (0x217), region = 32 }
   0xc   : > { %v2863_v0 = vld [vmem:[%s4174_s1 + $0x74] ss:$8 sps:$4 sm:$0xff]   ;;  %v2867_v2 = vld [vmem:[%s4174_s1 + $0x70] ss:$8 sps:$4 sm:$0xff]   ;;  %v2869_v4 = vld [vmem:[%s4174_s1 + $0x64] ss:$8 sps:$4 sm:$0xff]  }
   0xd   : > { %v2865_v1 = vld [vmem:[%s4174_s1 + $0x174] ss:$8 sps:$4 sm:$0xff]   ;;  %1052 = vmatprep.subr.bf16.mxu0 %v2863_v0  ;;  %v2868_v3 = vld [vmem:[%s4174_s1 + $0x170] ss:$8 sps:$4 sm:$0xff]   ;;  %v2871_v5 = vld [vmem:[%s4174_s1 + $0x164] ss:$8 sps:$4 sm:$0xff]  }
   0xe   : > { %1095 = vmatprep.subr.bf16.mxu1 %v2865_v1  ;;  %1053 = vmatpush1.bf16.msra.mxu0 %v2867_v2  ;;  %v2873_v6 = vld [vmem:[%s4174_s1 + $0x60] ss:$8 sps:$4 sm:$0xff]   ;;  %v2875_v8 = vld [vmem:[%s4174_s1 + $0x54] ss:$8 sps:$4 sm:$0xff]   ;;  %v2879_v10 = vld [vmem:[%s4174_s1 + $0x50] ss:$8 sps:$4 sm:$0xff]  }
   0xf   : > { %1096 = vmatpush1.bf16.msra.mxu1 %v2868_v3  ;;  %1054 = vmatprep.subr.bf16.mxu0 %v2869_v4  ;;  %v2874_v7 = vld [vmem:[%s4174_s1 + $0x160] ss:$8 sps:$4 sm:$0xff]   ;;  %v2877_v9 = vld [vmem:[%s4174_s1 + $0x154] ss:$8 sps:$4 sm:$0xff]   ;;  %v2880_v11 = vld [vmem:[%s4174_s1 + $0x150] ss:$8 sps:$4 sm:$0xff]  }
  0x10   : > { %1097 = vmatprep.subr.bf16.mxu1 %v2871_v5  ;;  %v2881_v12 = vld [vmem:[%s4174_s1 + $0x44] ss:$8 sps:$4 sm:$0xff]   ;;  %v2885_v14 = vld [vmem:[%s4174_s1 + $0x40] ss:$8 sps:$4 sm:$0xff]   ;;  %v2887_v16 = vld [vmem:[%s4174_s1 + $0x34] ss:$8 sps:$4 sm:$0xff]  }
  0x11   : > { %v2883_v13 = vld [vmem:[%s4174_s1 + $0x144] ss:$8 sps:$4 sm:$0xff]   ;;  %v2886_v15 = vld [vmem:[%s4174_s1 + $0x140] ss:$8 sps:$4 sm:$0xff]   ;;  %v2889_v17 = vld [vmem:[%s4174_s1 + $0x134] ss:$8 sps:$4 sm:$0xff]  }
  0x12   : > { %1055 = vmatpush1.bf16.msra.mxu0 %v2873_v6  ;;  %v2891_v18 = vld [vmem:[%s4174_s1 + $0x30] ss:$8 sps:$4 sm:$0xff]   ;;  %v2893_v20 = vld [vmem:[%s4174_s1 + $0x24] ss:$8 sps:$4 sm:$0xff]   ;;  %v2897_v22 = vld [vmem:[%s4174_s1 + $0x20] ss:$8 sps:$4 sm:$0xff]  }
  0x13   : > { %1098 = vmatpush1.bf16.msra.mxu1 %v2874_v7  ;;  %1056 = vmatprep.subr.bf16.mxu0 %v2875_v8  ;;  %v2892_v19 = vld [vmem:[%s4174_s1 + $0x130] ss:$8 sps:$4 sm:$0xff]   ;;  %v2895_v21 = vld [vmem:[%s4174_s1 + $0x124] ss:$8 sps:$4 sm:$0xff]   ;;  %v2898_v23 = vld [vmem:[%s4174_s1 + $0x120] ss:$8 sps:$4 sm:$0xff]  }
  0x14   : > { %1099 = vmatprep.subr.bf16.mxu1 %v2877_v9  ;;  %v2899_v24 = vld [vmem:[%s4174_s1 + $0x14] ss:$8 sps:$4 sm:$0xff]   ;;  %v2903_v26 = vld [vmem:[%s4174_s1 + $0x10] ss:$8 sps:$4 sm:$0xff]   ;;  %v2905_v28 = vld [vmem:[%s4174_s1 + $0x4] ss:$8 sps:$4 sm:$0xff]  }
  0x15   : > { %v2901_v25 = vld [vmem:[%s4174_s1 + $0x114] ss:$8 sps:$4 sm:$0xff]   ;;  %v2904_v27 = vld [vmem:[%s4174_s1 + $0x110] ss:$8 sps:$4 sm:$0xff]   ;;  %v2907_v29 = vld [vmem:[%s4174_s1 + $0x104] ss:$8 sps:$4 sm:$0xff]  }
  0x16   : > { %1057 = vmatpush1.bf16.msra.mxu0 %v2879_v10  ;;  %v2909_v30 = vld [vmem:[%s4174_s1] ss:$8 sps:$4 sm:$0xff]   ;;  %v2911_v32 = vld [vmem:[%s4174_s1 + $0xf4] ss:$8 sps:$4 sm:$0xff]   ;;  %v2915_v34 = vld [vmem:[%s4174_s1 + $0xf0] ss:$8 sps:$4 sm:$0xff]  }
  0x17   : > { %1100 = vmatpush1.bf16.msra.mxu1 %v2880_v11  ;;  %1058 = vmatprep.subr.bf16.mxu0 %v2881_v12  ;;  %v2910_v31 = vld [vmem:[%s4174_s1 + $0x100] ss:$8 sps:$4 sm:$0xff]   ;;  %v2913_v33 = vld [vmem:[%s4174_s1 + $0x1f4] ss:$8 sps:$4 sm:$0xff]   ;;  %v2916_v35 = vld [vmem:[%s4174_s1 + $0x1f0] ss:$8 sps:$4 sm:$0xff]  }
  0x18   : > { %1101 = vmatprep.subr.bf16.mxu1 %v2883_v13  ;;  %v2917_v36 = vld [vmem:[%s4174_s1 + $0xe4] ss:$8 sps:$4 sm:$0xff]   ;;  %s4182_s12 = smov (!%p209_p4, %s3265_s12), 1  ;;  %v2921_v38 = vld [vmem:[%s4174_s1 + $0xe0] ss:$8 sps:$4 sm:$0xff]  }
  0x19   : > { %v2919_v37 = vld [vmem:[%s4174_s1 + $0x1e4] ss:$8 sps:$4 sm:$0xff]   ;;  %v2922_v39 = vld [vmem:[%s4174_s1 + $0x1e0] ss:$8 sps:$4 sm:$0xff]   ;;  %v2923_v40 = vld [vmem:[%s4174_s1 + $0xd4] ss:$8 sps:$4 sm:$0xff]  }
  0x1a   : > { %1059 = vmatpush1.bf16.msra.mxu0 %v2885_v14  ;;  %s2835_s29 = sshll.u32 %s4182_s12, 7  ;;  %v2925_v41 = vld [vmem:[%s4174_s1 + $0x1d4] ss:$8 sps:$4 sm:$0xff]   ;;  %v2927_v42 = vld [vmem:[%s4174_s1 + $0xd0] ss:$8 sps:$4 sm:$0xff]   ;;  %s2836_s18 = sshll.u32 %s4182_s12, 4 }
  0x1b   : > { %1102 = vmatpush1.bf16.msra.mxu1 %v2886_v15  ;;  %1060 = vmatprep.subr.bf16.mxu0 %v2887_v16  ;;  %v2928_v43 = vld [vmem:[%s4174_s1 + $0x1d0] ss:$8 sps:$4 sm:$0xff]   ;;  %s3455_s11 = scalar_lea.vmem %s4173_s0, %s2835_s29  ;;  %v2929_v44 = vld [vmem:[%s4174_s1 + $0xc4] ss:$8 sps:$4 sm:$0xff]   ;;  %v2933_v46 = vld [vmem:[%s4174_s1 + $0xc0] ss:$8 sps:$4 sm:$0xff]   ;;  %s233_s21 = scalar_lea.vmem %s4176_s3, %s2836_s18 }
  0x1c   : > { %1103 = vmatprep.subr.bf16.mxu1 %v2889_v17  ;;  %v2931_v45 = vld [vmem:[%s4174_s1 + $0x1c4] ss:$8 sps:$4 sm:$0xff]   ;;  %v2934_v47 = vld [vmem:[%s4174_s1 + $0x1c0] ss:$8 sps:$4 sm:$0xff]   ;;  %v2935_v52 = vld [vmem:[%s4174_s1 + $0xb4] ss:$8 sps:$4 sm:$0xff]  }
  0x1d   : > { %v236_v48 = vld [vmem:[%s3455_s11] sm:$0xff]  ;;  %v237_v50 = vld [vmem:[%s3455_s11 + $0x8] sm:$0xff]  ;;  %v2937_v54 = vld [vmem:[%s4174_s1 + $0x1b4] ss:$8 sps:$4 sm:$0xff]  }
  0x1e   : > { %1061 = vmatpush1.bf16.msra.mxu0 %v2891_v18  ;;  %v240_v49 = vld [vmem:[%s3455_s11 + $0x20] sm:$0xff]  ;;  %v241_v51 = vld [vmem:[%s3455_s11 + $0x28] sm:$0xff]  ;;  %v2939_v56 = vld [vmem:[%s4174_s1 + $0xb0] ss:$8 sps:$4 sm:$0xff]  }
  0x1f   : > { %1104 = vmatpush1.bf16.msra.mxu1 %v2892_v19  ;;  %1062 = vmatprep.subr.bf16.mxu0 %v2893_v20  ;;  %v2424_v53 = vcombine.high %v236_v48, %v240_v49  ;;  %v2426_v55 = vcombine.high %v237_v50, %v241_v51  ;;  %v2940_v57 = vld [vmem:[%s4174_s1 + $0x1b0] ss:$8 sps:$4 sm:$0xff]   ;;  %v2941_v58 = vld [vmem:[%s4174_s1 + $0xa4] ss:$8 sps:$4 sm:$0xff]   ;;  %v2945_v60 = vld [vmem:[%s4174_s1 + $0xa0] ss:$8 sps:$4 sm:$0xff]   ;;  %v2423_v8 = vcombine.low %v236_v48, %v240_v49 }
  0x20   : > { %1105 = vmatprep.subr.bf16.mxu1 %v2895_v21  ;;  %v2943_v59 = vld [vmem:[%s4174_s1 + $0x1a4] ss:$8 sps:$4 sm:$0xff]   ;;  %v2946_v61 = vld [vmem:[%s4174_s1 + $0x1a0] ss:$8 sps:$4 sm:$0xff]   ;;  %v2947_v62 = vld [vmem:[%s4174_s1 + $0x94] ss:$8 sps:$4 sm:$0xff]   ;;  %v2425_v9 = vcombine.low %v237_v50, %v241_v51 }
  0x21   : > { %1084 = vmatprep.mubr.bf16.mxu0 %v2424_v53  ;;  %1127 = vmatprep.mubr.bf16.mxu1 %v2426_v55  ;;  %v2949_v63 = vld [vmem:[%s4174_s1 + $0x194] ss:$8 sps:$4 sm:$0xff]   ;;  %v2951_v0 = vld [vmem:[%s4174_s1 + $0x90] ss:$8 sps:$4 sm:$0xff]   ;;  %v2953_v2 = vld [vmem:[%s4174_s1 + $0x84] ss:$8 sps:$4 sm:$0xff]  }
  0x22   : > { %1063 = vmatpush1.bf16.msra.mxu0 %v2897_v22  ;;  %v2952_v1 = vld [vmem:[%s4174_s1 + $0x190] ss:$8 sps:$4 sm:$0xff]   ;;  %v2955_v3 = vld [vmem:[%s4174_s1 + $0x184] ss:$8 sps:$4 sm:$0xff]   ;;  %v2957_v4 = vld [vmem:[%s4174_s1 + $0x80] ss:$8 sps:$4 sm:$0xff]  }
  0x23   : > { %1106 = vmatpush1.bf16.msra.mxu1 %v2898_v23  ;;  %1064 = vmatprep.subr.bf16.mxu0 %v2899_v24  ;;  %v2958_v5 = vld [vmem:[%s4174_s1 + $0x180] ss:$8 sps:$4 sm:$0xff]   ;;  %v2961_v6 = vld [vmem:[%s4174_s1 + $0x274] ss:$8 sps:$4 sm:$0xff]   ;;  %v2959_v10 = vld [vmem:[%s4174_s1 + $0x270] ss:$8 sps:$4 sm:$0xff]  }
  0x24   : > { %1107 = vmatprep.subr.bf16.mxu1 %v2901_v25  ;;  %v2964_v7 = vld [vmem:[%s4174_s1 + $0x374] ss:$8 sps:$4 sm:$0xff]   ;;  %v2962_v11 = vld [vmem:[%s4174_s1 + $0x370] ss:$8 sps:$4 sm:$0xff]   ;;  %v2967_v12 = vld [vmem:[%s4174_s1 + $0x264] ss:$8 sps:$4 sm:$0xff]  }
  0x25   : > { %v2970_v13 = vld [vmem:[%s4174_s1 + $0x364] ss:$8 sps:$4 sm:$0xff]   ;;  %v2965_v14 = vld [vmem:[%s4174_s1 + $0x260] ss:$8 sps:$4 sm:$0xff]   ;;  %v2973_v16 = vld [vmem:[%s4174_s1 + $0x254] ss:$8 sps:$4 sm:$0xff]  }
  0x26   : > { %1065 = vmatpush1.bf16.msra.mxu0 %v2903_v26  ;;  %v2968_v15 = vld [vmem:[%s4174_s1 + $0x360] ss:$8 sps:$4 sm:$0xff]   ;;  %v2976_v17 = vld [vmem:[%s4174_s1 + $0x354] ss:$8 sps:$4 sm:$0xff]   ;;  %v2971_v18 = vld [vmem:[%s4174_s1 + $0x250] ss:$8 sps:$4 sm:$0xff]  }
  0x27   : > { %1108 = vmatpush1.bf16.msra.mxu1 %v2904_v27  ;;  %1066 = vmatprep.subr.bf16.mxu0 %v2905_v28  ;;  %v2974_v19 = vld [vmem:[%s4174_s1 + $0x350] ss:$8 sps:$4 sm:$0xff]   ;;  %v2979_v20 = vld [vmem:[%s4174_s1 + $0x244] ss:$8 sps:$4 sm:$0xff]   ;;  %v2977_v22 = vld [vmem:[%s4174_s1 + $0x240] ss:$8 sps:$4 sm:$0xff]  }
  0x28   : > { %1109 = vmatprep.subr.bf16.mxu1 %v2907_v29  ;;  %v2982_v21 = vld [vmem:[%s4174_s1 + $0x344] ss:$8 sps:$4 sm:$0xff]   ;;  %v2980_v23 = vld [vmem:[%s4174_s1 + $0x340] ss:$8 sps:$4 sm:$0xff]   ;;  %v2985_v24 = vld [vmem:[%s4174_s1 + $0x234] ss:$8 sps:$4 sm:$0xff]  }
  0x29   : > { %v2988_v25 = vld [vmem:[%s4174_s1 + $0x334] ss:$8 sps:$4 sm:$0xff]   ;;  %v2983_v26 = vld [vmem:[%s4174_s1 + $0x230] ss:$8 sps:$4 sm:$0xff]   ;;  %v2991_v28 = vld [vmem:[%s4174_s1 + $0x224] ss:$8 sps:$4 sm:$0xff]  }
  0x2a   : > { %1067 = vmatpush1.bf16.msra.mxu0 %v2909_v30  ;;  %v2986_v27 = vld [vmem:[%s4174_s1 + $0x330] ss:$8 sps:$4 sm:$0xff]   ;;  %v2994_v29 = vld [vmem:[%s4174_s1 + $0x324] ss:$8 sps:$4 sm:$0xff]   ;;  %v2989_v30 = vld [vmem:[%s4174_s1 + $0x220] ss:$8 sps:$4 sm:$0xff]  }
  0x2b   : > { %1110 = vmatpush1.bf16.msra.mxu1 %v2910_v31  ;;  %1068 = vmatprep.subr.bf16.mxu0 %v2911_v32  ;;  %v2992_v31 = vld [vmem:[%s4174_s1 + $0x320] ss:$8 sps:$4 sm:$0xff]   ;;  %v2997_v32 = vld [vmem:[%s4174_s1 + $0x214] ss:$8 sps:$4 sm:$0xff]   ;;  %v3007_v48 = vld [vmem:[%s4174_s1 + $0x2f0] ss:$8 sps:$4 sm:$0xff]  }
  0x2c   : > { %1111 = vmatprep.subr.bf16.mxu1 %v2913_v33  ;;  %v3000_v33 = vld [vmem:[%s4174_s1 + $0x314] ss:$8 sps:$4 sm:$0xff]   ;;  %v3010_v49 = vld [vmem:[%s4174_s1 + $0x3f0] ss:$8 sps:$4 sm:$0xff]   ;;  %v3015_v50 = vld [vmem:[%s4174_s1 + $0x2e4] ss:$8 sps:$4 sm:$0xff]  }
  0x2d   : > { %v3018_v51 = vld [vmem:[%s4174_s1 + $0x3e4] ss:$8 sps:$4 sm:$0xff]   ;;  %v3016_v53 = vld [vmem:[%s4174_s1 + $0x3e0] ss:$8 sps:$4 sm:$0xff]   ;;  %v3024_v55 = vld [vmem:[%s4174_s1 + $0x3d4] ss:$8 sps:$4 sm:$0xff]  }
  0x2e   : > { %1069 = vmatpush2.bf16.msra.mxu0 %v2915_v34  ;;  %v2995_v34 = vld [vmem:[%s4174_s1 + $0x210] ss:$8 sps:$4 sm:$0xff]  }
  0x2f   : > { %1112 = vmatpush2.bf16.msra.mxu1 %v2916_v35  ;;  %1070 = vmatprep.subr.bf16.mxu0 %v2917_v36  ;;  %v2998_v35 = vld [vmem:[%s4174_s1 + $0x310] ss:$8 sps:$4 sm:$0xff]  }
  0x30   : > { %1113 = vmatprep.subr.bf16.mxu1 %v2919_v37  ;;  %v3606_v36 = vld [vmem:[%s3455_s11 + $0x10] sm:$0xff] }
  0x31   : > { %v3609_v37 = vld [vmem:[%s3455_s11 + $0x30] sm:$0xff] }
  0x32   : > { %1071 = vmatpush2.bf16.msra.mxu0 %v2921_v38  ;;  %v3612_v38 = vld [vmem:[%s3455_s11 + $0x18] sm:$0xff] }
  0x33   : > { %1114 = vmatpush2.bf16.msra.mxu1 %v2922_v39  ;;  %1072 = vmatprep.subr.bf16.mxu0 %v2923_v40  ;;  %v3615_v39 = vld [vmem:[%s3455_s11 + $0x38] sm:$0xff]  ;;  %v3003_v40 = vld [vmem:[%s4174_s1 + $0x204] ss:$8 sps:$4 sm:$0xff]  }
  0x34   : > { %1115 = vmatprep.subr.bf16.mxu1 %v2925_v41  ;;  %v2428_v41 = vcombine.high %v3606_v36, %v3609_v37 }
  0x36   : > { %1073 = vmatpush2.bf16.msra.mxu0 %v2927_v42  ;;  %v3006_v42 = vld [vmem:[%s4174_s1 + $0x304] ss:$8 sps:$4 sm:$0xff]  }
  0x37   : > { %1116 = vmatpush2.bf16.msra.mxu1 %v2928_v43  ;;  %1074 = vmatprep.subr.bf16.mxu0 %v2929_v44  ;;  %v2430_v43 = vcombine.high %v3612_v38, %v3615_v39  ;;  %v3001_v44 = vld [vmem:[%s4174_s1 + $0x200] ss:$8 sps:$4 sm:$0xff]  }
  0x38   : > { %1117 = vmatprep.subr.bf16.mxu1 %v2931_v45  ;;  %v3004_v45 = vld [vmem:[%s4174_s1 + $0x300] ss:$8 sps:$4 sm:$0xff]  }
  0x3a   : > { %1075 = vmatpush2.bf16.msra.mxu0 %v2933_v46  ;;  %v3009_v46 = vld [vmem:[%s4174_s1 + $0x2f4] ss:$8 sps:$4 sm:$0xff]  }
  0x3b   : > { %1118 = vmatpush2.bf16.msra.mxu1 %v2934_v47  ;;  %1076 = vmatprep.subr.bf16.mxu0 %v2935_v52  ;;  %v3012_v47 = vld [vmem:[%s4174_s1 + $0x3f4] ss:$8 sps:$4 sm:$0xff]   ;;  %v3013_v52 = vld [vmem:[%s4174_s1 + $0x2e0] ss:$8 sps:$4 sm:$0xff]  }
  0x3c   : > { %1119 = vmatprep.subr.bf16.mxu1 %v2937_v54  ;;  %v3021_v54 = vld [vmem:[%s4174_s1 + $0x2d4] ss:$8 sps:$4 sm:$0xff]  }
  0x3e   : > { %1077 = vmatpush2.bf16.msra.mxu0 %v2939_v56  ;;  %v3019_v56 = vld [vmem:[%s4174_s1 + $0x2d0] ss:$8 sps:$4 sm:$0xff]  }
  0x3f   : > { %1120 = vmatpush2.bf16.msra.mxu1 %v2940_v57  ;;  %1078 = vmatprep.subr.bf16.mxu0 %v2941_v58  ;;  %v3022_v57 = vld [vmem:[%s4174_s1 + $0x3d0] ss:$8 sps:$4 sm:$0xff]   ;;  %v3027_v58 = vld [vmem:[%s4174_s1 + $0x2c4] ss:$8 sps:$4 sm:$0xff]  }
  0x40   : > { %1121 = vmatprep.subr.bf16.mxu1 %v2943_v59  ;;  %v3030_v59 = vld [vmem:[%s4174_s1 + $0x3c4] ss:$8 sps:$4 sm:$0xff]  }
  0x42   : > { %1079 = vmatpush2.bf16.msra.mxu0 %v2945_v60  ;;  %v3025_v60 = vld [vmem:[%s4174_s1 + $0x2c0] ss:$8 sps:$4 sm:$0xff]  }
  0x43   : > { %1122 = vmatpush2.bf16.msra.mxu1 %v2946_v61  ;;  %1080 = vmatprep.subr.bf16.mxu0 %v2947_v62  ;;  %v3028_v61 = vld [vmem:[%s4174_s1 + $0x3c0] ss:$8 sps:$4 sm:$0xff]   ;;  %v3033_v62 = vld [vmem:[%s4174_s1 + $0x2b4] ss:$8 sps:$4 sm:$0xff]  }
  0x44   : > { %1123 = vmatprep.subr.bf16.mxu1 %v2949_v63  ;;  %v3036_v63 = vld [vmem:[%s4174_s1 + $0x3b4] ss:$8 sps:$4 sm:$0xff]  }
  0x46   : > { %1081 = vmatpush2.bf16.msra.mxu0 %v2951_v0  ;;  %v3031_v0 = vld [vmem:[%s4174_s1 + $0x2b0] ss:$8 sps:$4 sm:$0xff]  }
  0x47   : > { %1124 = vmatpush2.bf16.msra.mxu1 %v2952_v1  ;;  %1082 = vmatprep.subr.bf16.mxu0 %v2953_v2  ;;  %v3034_v1 = vld [vmem:[%s4174_s1 + $0x3b0] ss:$8 sps:$4 sm:$0xff]   ;;  %v3039_v2 = vld [vmem:[%s4174_s1 + $0x2a4] ss:$8 sps:$4 sm:$0xff]  }
  0x48   : > { %1125 = vmatprep.subr.bf16.mxu1 %v2955_v3  ;;  %v3042_v3 = vld [vmem:[%s4174_s1 + $0x3a4] ss:$8 sps:$4 sm:$0xff]  }
  0x4a   : > { %1083 = vmatpush2.bf16.msra.mxu0 %v2957_v4  ;;  %v3037_v4 = vld [vmem:[%s4174_s1 + $0x2a0] ss:$8 sps:$4 sm:$0xff]  }
  0x4b   : > { %1126 = vmatpush2.bf16.msra.mxu1 %v2958_v5  ;;  %1138 = vmatprep.subr.bf16.mxu0 %v2961_v6  ;;  %v3040_v5 = vld [vmem:[%s4174_s1 + $0x3a0] ss:$8 sps:$4 sm:$0xff]   ;;  %v3045_v6 = vld [vmem:[%s4174_s1 + $0x294] ss:$8 sps:$4 sm:$0xff]  }
  0x4c   : > { %1181 = vmatprep.subr.bf16.mxu1 %v2964_v7  ;;  %v3048_v7 = vld [vmem:[%s4174_s1 + $0x394] ss:$8 sps:$4 sm:$0xff]  }
  0x4d   : > { %1085 = vmatmul.mubr.bf16.vlgmr.msra.gmra.mxu0 %v2423_v8  ;;  %v3043_v8 = vld [vmem:[%s4174_s1 + $0x290] ss:$8 sps:$4 sm:$0xff]  }
  0x4e   : > { %1128 = vmatmul.mubr.bf16.vlgmr.msra.gmra.mxu1 %v2425_v9  ;;  %1139 = vmatpush1.bf16.msra.mxu0 %v2959_v10  ;;  %v3046_v9 = vld [vmem:[%s4174_s1 + $0x390] ss:$8 sps:$4 sm:$0xff]   ;;  %v3051_v10 = vld [vmem:[%s4174_s1 + $0x284] ss:$8 sps:$4 sm:$0xff]  }
  0x4f   : > { %1182 = vmatpush1.bf16.msra.mxu1 %v2962_v11  ;;  %1140 = vmatprep.subr.bf16.mxu0 %v2967_v12  ;;  %v3054_v11 = vld [vmem:[%s4174_s1 + $0x384] ss:$8 sps:$4 sm:$0xff]   ;;  %v3049_v12 = vld [vmem:[%s4174_s1 + $0x280] ss:$8 sps:$4 sm:$0xff]  }
  0x50   : > { %1183 = vmatprep.subr.bf16.mxu1 %v2970_v13  ;;  %1170 = vmatprep.mubr.bf16.mxu0 %v2428_v41  ;;  %v3052_v13 = vld [vmem:[%s4174_s1 + $0x380] ss:$8 sps:$4 sm:$0xff]   ;;  %v3082_v41 = vld [vmem:[%s4174_s1 + $0x530] ss:$8 sps:$4 sm:$0xff]  }
  0x51   : > { %1213 = vmatprep.mubr.bf16.mxu1 %v2430_v43  ;;  %v3090_v43 = vld [vmem:[%s4174_s1 + $0x524] ss:$8 sps:$4 sm:$0xff]  }
  0x52   : > { %1141 = vmatpush1.bf16.msra.mxu0 %v2965_v14  ;;  %v3057_v14 = vld [vmem:[%s4174_s1 + $0x474] ss:$8 sps:$4 sm:$0xff]  }
  0x53   : > { %1184 = vmatpush1.bf16.msra.mxu1 %v2968_v15  ;;  %1142 = vmatprep.subr.bf16.mxu0 %v2973_v16  ;;  %v3060_v15 = vld [vmem:[%s4174_s1 + $0x574] ss:$8 sps:$4 sm:$0xff]   ;;  %v2427_v16 = vcombine.low %v3606_v36, %v3609_v37  ;;  %v3073_v36 = vld [vmem:[%s4174_s1 + $0x440] ss:$8 sps:$4 sm:$0xff]  }
  0x54   : > { %1185 = vmatprep.subr.bf16.mxu1 %v2976_v17  ;;  %v2429_v17 = vcombine.low %v3612_v38, %v3615_v39  ;;  %v3076_v37 = vld [vmem:[%s4174_s1 + $0x540] ss:$8 sps:$4 sm:$0xff]   ;;  %v3081_v38 = vld [vmem:[%s4174_s1 + $0x434] ss:$8 sps:$4 sm:$0xff]  }
  0x55   : > { %v3084_v39 = vld [vmem:[%s4174_s1 + $0x534] ss:$8 sps:$4 sm:$0xff]  }
  0x56   : > { %1143 = vmatpush1.bf16.msra.mxu0 %v2971_v18  ;;  %v3055_v18 = vld [vmem:[%s4174_s1 + $0x470] ss:$8 sps:$4 sm:$0xff]  }
  0x57   : > { %1186 = vmatpush1.bf16.msra.mxu1 %v2974_v19  ;;  %1144 = vmatprep.subr.bf16.mxu0 %v2979_v20  ;;  %v3058_v19 = vld [vmem:[%s4174_s1 + $0x570] ss:$8 sps:$4 sm:$0xff]   ;;  %v3063_v20 = vld [vmem:[%s4174_s1 + $0x464] ss:$8 sps:$4 sm:$0xff]  }
  0x58   : > { %1187 = vmatprep.subr.bf16.mxu1 %v2982_v21  ;;  %v3066_v21 = vld [vmem:[%s4174_s1 + $0x564] ss:$8 sps:$4 sm:$0xff]  }
  0x5a   : > { %1145 = vmatpush1.bf16.msra.mxu0 %v2977_v22  ;;  %v3061_v22 = vld [vmem:[%s4174_s1 + $0x460] ss:$8 sps:$4 sm:$0xff]  }
  0x5b   : > { %1188 = vmatpush1.bf16.msra.mxu1 %v2980_v23  ;;  %1146 = vmatprep.subr.bf16.mxu0 %v2985_v24  ;;  %v3064_v23 = vld [vmem:[%s4174_s1 + $0x560] ss:$8 sps:$4 sm:$0xff]  }
  0x5c   : > { %1189 = vmatprep.subr.bf16.mxu1 %v2988_v25  ;;  %v3758_v24 = vld [vmem:[%s3455_s11 + $0x40] sm:$0xff] }
  0x5d   : > { %v3761_v25 = vld [vmem:[%s3455_s11 + $0x60] sm:$0xff] }
  0x5e   : > { %1147 = vmatpush1.bf16.msra.mxu0 %v2983_v26  ;;  %v3764_v26 = vld [vmem:[%s3455_s11 + $0x48] sm:$0xff] }
  0x5f   : > { %1190 = vmatpush1.bf16.msra.mxu1 %v2986_v27  ;;  %1148 = vmatprep.subr.bf16.mxu0 %v2991_v28  ;;  %v3767_v27 = vld [vmem:[%s3455_s11 + $0x68] sm:$0xff]  ;;  %v3069_v28 = vld [vmem:[%s4174_s1 + $0x454] ss:$8 sps:$4 sm:$0xff]  }
  0x60   : > { %1191 = vmatprep.subr.bf16.mxu1 %v2994_v29  ;;  %v2696_v29 = vcombine.high %v3758_v24, %v3761_v25 }
  0x62   : > { %1149 = vmatpush1.bf16.msra.mxu0 %v2989_v30  ;;  %v3072_v30 = vld [vmem:[%s4174_s1 + $0x554] ss:$8 sps:$4 sm:$0xff]  }
  0x63   : > { %1192 = vmatpush1.bf16.msra.mxu1 %v2992_v31  ;;  %1150 = vmatprep.subr.bf16.mxu0 %v2997_v32  ;;  %v2698_v31 = vcombine.high %v3764_v26, %v3767_v27  ;;  %v3067_v32 = vld [vmem:[%s4174_s1 + $0x450] ss:$8 sps:$4 sm:$0xff]  }
  0x64   : > { %1193 = vmatprep.subr.bf16.mxu1 %v3000_v33  ;;  %v3070_v33 = vld [vmem:[%s4174_s1 + $0x550] ss:$8 sps:$4 sm:$0xff]  }
  0x66   : > { %1151 = vmatpush1.bf16.msra.mxu0 %v2995_v34  ;;  %v3075_v34 = vld [vmem:[%s4174_s1 + $0x444] ss:$8 sps:$4 sm:$0xff]  }
  0x67   : > { %1194 = vmatpush1.bf16.msra.mxu1 %v2998_v35  ;;  %1152 = vmatprep.subr.bf16.mxu0 %v3003_v40  ;;  %v3078_v35 = vld [vmem:[%s4174_s1 + $0x544] ss:$8 sps:$4 sm:$0xff]   ;;  %v3079_v40 = vld [vmem:[%s4174_s1 + $0x430] ss:$8 sps:$4 sm:$0xff]  }
  0x68   : > { %1195 = vmatprep.subr.bf16.mxu1 %v3006_v42  ;;  %v3087_v42 = vld [vmem:[%s4174_s1 + $0x424] ss:$8 sps:$4 sm:$0xff]  }
  0x6a   : > { %1153 = vmatpush1.bf16.msra.mxu0 %v3001_v44  ;;  %v3085_v44 = vld [vmem:[%s4174_s1 + $0x420] ss:$8 sps:$4 sm:$0xff]  }
  0x6b   : > { %1196 = vmatpush1.bf16.msra.mxu1 %v3004_v45  ;;  %1154 = vmatprep.subr.bf16.mxu0 %v3009_v46  ;;  %v3088_v45 = vld [vmem:[%s4174_s1 + $0x520] ss:$8 sps:$4 sm:$0xff]   ;;  %v3093_v46 = vld [vmem:[%s4174_s1 + $0x414] ss:$8 sps:$4 sm:$0xff]  }
  0x6c   : > { %1197 = vmatprep.subr.bf16.mxu1 %v3012_v47  ;;  %v3096_v47 = vld [vmem:[%s4174_s1 + $0x514] ss:$8 sps:$4 sm:$0xff]  }
  0x6e   : > { %1155 = vmatpush2.bf16.msra.mxu0 %v3007_v48  ;;  %v3091_v48 = vld [vmem:[%s4174_s1 + $0x410] ss:$8 sps:$4 sm:$0xff]  }
  0x6f   : > { %1198 = vmatpush2.bf16.msra.mxu1 %v3010_v49  ;;  %1156 = vmatprep.subr.bf16.mxu0 %v3015_v50  ;;  %v3094_v49 = vld [vmem:[%s4174_s1 + $0x510] ss:$8 sps:$4 sm:$0xff]   ;;  %v3099_v50 = vld [vmem:[%s4174_s1 + $0x404] ss:$8 sps:$4 sm:$0xff]  }
  0x70   : > { %1199 = vmatprep.subr.bf16.mxu1 %v3018_v51  ;;  %v3102_v51 = vld [vmem:[%s4174_s1 + $0x504] ss:$8 sps:$4 sm:$0xff]  }
  0x72   : > { %1157 = vmatpush2.bf16.msra.mxu0 %v3013_v52  ;;  %v3097_v52 = vld [vmem:[%s4174_s1 + $0x400] ss:$8 sps:$4 sm:$0xff]  }
  0x73   : > { %1200 = vmatpush2.bf16.msra.mxu1 %v3016_v53  ;;  %1158 = vmatprep.subr.bf16.mxu0 %v3021_v54  ;;  %v3100_v53 = vld [vmem:[%s4174_s1 + $0x500] ss:$8 sps:$4 sm:$0xff]   ;;  %v3105_v54 = vld [vmem:[%s4174_s1 + $0x4f4] ss:$8 sps:$4 sm:$0xff]  }
  0x74   : > { %1201 = vmatprep.subr.bf16.mxu1 %v3024_v55  ;;  %v3108_v55 = vld [vmem:[%s4174_s1 + $0x5f4] ss:$8 sps:$4 sm:$0xff]  }
  0x76   : > { %1159 = vmatpush2.bf16.msra.mxu0 %v3019_v56  ;;  %v3103_v56 = vld [vmem:[%s4174_s1 + $0x4f0] ss:$8 sps:$4 sm:$0xff]  }
  0x77   : > { %1202 = vmatpush2.bf16.msra.mxu1 %v3022_v57  ;;  %1160 = vmatprep.subr.bf16.mxu0 %v3027_v58  ;;  %v3106_v57 = vld [vmem:[%s4174_s1 + $0x5f0] ss:$8 sps:$4 sm:$0xff]   ;;  %v3111_v58 = vld [vmem:[%s4174_s1 + $0x4e4] ss:$8 sps:$4 sm:$0xff]  }
  0x78   : > { %1203 = vmatprep.subr.bf16.mxu1 %v3030_v59  ;;  %v3114_v59 = vld [vmem:[%s4174_s1 + $0x5e4] ss:$8 sps:$4 sm:$0xff]  }
  0x7a   : > { %1161 = vmatpush2.bf16.msra.mxu0 %v3025_v60  ;;  %v3109_v60 = vld [vmem:[%s4174_s1 + $0x4e0] ss:$8 sps:$4 sm:$0xff]  }
  0x7b   : > { %1204 = vmatpush2.bf16.msra.mxu1 %v3028_v61  ;;  %1162 = vmatprep.subr.bf16.mxu0 %v3033_v62  ;;  %v3112_v61 = vld [vmem:[%s4174_s1 + $0x5e0] ss:$8 sps:$4 sm:$0xff]   ;;  %v3117_v62 = vld [vmem:[%s4174_s1 + $0x4d4] ss:$8 sps:$4 sm:$0xff]  }
  0x7c   : > { %1205 = vmatprep.subr.bf16.mxu1 %v3036_v63  ;;  %v3120_v63 = vld [vmem:[%s4174_s1 + $0x5d4] ss:$8 sps:$4 sm:$0xff]  }
  0x7e   : > { %1163 = vmatpush2.bf16.msra.mxu0 %v3031_v0  ;;  %v3115_v0 = vld [vmem:[%s4174_s1 + $0x4d0] ss:$8 sps:$4 sm:$0xff]  }
  0x7f   : > { %1206 = vmatpush2.bf16.msra.mxu1 %v3034_v1  ;;  %1164 = vmatprep.subr.bf16.mxu0 %v3039_v2  ;;  %v3118_v1 = vld [vmem:[%s4174_s1 + $0x5d0] ss:$8 sps:$4 sm:$0xff]   ;;  %v3123_v2 = vld [vmem:[%s4174_s1 + $0x4c4] ss:$8 sps:$4 sm:$0xff]  }
  0x80   : > { %1207 = vmatprep.subr.bf16.mxu1 %v3042_v3  ;;  %v3126_v3 = vld [vmem:[%s4174_s1 + $0x5c4] ss:$8 sps:$4 sm:$0xff]  }
  0x82   : > { %1165 = vmatpush2.bf16.msra.mxu0 %v3037_v4  ;;  %v3121_v4 = vld [vmem:[%s4174_s1 + $0x4c0] ss:$8 sps:$4 sm:$0xff]  }
  0x83   : > { %1208 = vmatpush2.bf16.msra.mxu1 %v3040_v5  ;;  %1166 = vmatprep.subr.bf16.mxu0 %v3045_v6  ;;  %v3124_v5 = vld [vmem:[%s4174_s1 + $0x5c0] ss:$8 sps:$4 sm:$0xff]   ;;  %v3129_v6 = vld [vmem:[%s4174_s1 + $0x4b4] ss:$8 sps:$4 sm:$0xff]  }
  0x84   : > { %1209 = vmatprep.subr.bf16.mxu1 %v3048_v7  ;;  %v3132_v7 = vld [vmem:[%s4174_s1 + $0x5b4] ss:$8 sps:$4 sm:$0xff]  }
  0x86   : > { %1167 = vmatpush2.bf16.msra.mxu0 %v3043_v8  ;;  %v3127_v8 = vld [vmem:[%s4174_s1 + $0x4b0] ss:$8 sps:$4 sm:$0xff]  }
  0x87   : > { %1210 = vmatpush2.bf16.msra.mxu1 %v3046_v9  ;;  %1168 = vmatprep.subr.bf16.mxu0 %v3051_v10  ;;  %v3130_v9 = vld [vmem:[%s4174_s1 + $0x5b0] ss:$8 sps:$4 sm:$0xff]   ;;  %v3135_v10 = vld [vmem:[%s4174_s1 + $0x4a4] ss:$8 sps:$4 sm:$0xff]  }
  0x88   : > { %1211 = vmatprep.subr.bf16.mxu1 %v3054_v11  ;;  %v3138_v11 = vld [vmem:[%s4174_s1 + $0x5a4] ss:$8 sps:$4 sm:$0xff]  }
  0x8a   : > { %1169 = vmatpush2.bf16.msra.mxu0 %v3049_v12  ;;  %v3133_v12 = vld [vmem:[%s4174_s1 + $0x4a0] ss:$8 sps:$4 sm:$0xff]  }
  0x8b   : > { %1212 = vmatpush2.bf16.msra.mxu1 %v3052_v13  ;;  %2057 = vmatprep.subr.bf16.mxu0 %v3057_v14  ;;  %v3136_v13 = vld [vmem:[%s4174_s1 + $0x5a0] ss:$8 sps:$4 sm:$0xff]   ;;  %v3141_v14 = vld [vmem:[%s4174_s1 + $0x494] ss:$8 sps:$4 sm:$0xff]  }
  0x8c   : > { %2100 = vmatprep.subr.bf16.mxu1 %v3060_v15  ;;  %v3144_v15 = vld [vmem:[%s4174_s1 + $0x594] ss:$8 sps:$4 sm:$0xff]  }
  0x8d   : > { %1171 = vmatmul.mubr.bf16.vlgmr.msra.gmra.mxu0 %v2427_v16  ;;  %v3139_v16 = vld [vmem:[%s4174_s1 + $0x490] ss:$8 sps:$4 sm:$0xff]  }
  0x8e   : > { %1214 = vmatmul.mubr.bf16.vlgmr.msra.gmra.mxu1 %v2429_v17  ;;  %2058 = vmatpush1.bf16.msra.mxu0 %v3055_v18  ;;  %v3142_v17 = vld [vmem:[%s4174_s1 + $0x590] ss:$8 sps:$4 sm:$0xff]   ;;  %v3147_v18 = vld [vmem:[%s4174_s1 + $0x484] ss:$8 sps:$4 sm:$0xff]  }
  0x8f   : > { %2101 = vmatpush1.bf16.msra.mxu1 %v3058_v19  ;;  %2059 = vmatprep.subr.bf16.mxu0 %v3063_v20  ;;  %v3150_v19 = vld [vmem:[%s4174_s1 + $0x584] ss:$8 sps:$4 sm:$0xff]   ;;  %v3145_v20 = vld [vmem:[%s4174_s1 + $0x480] ss:$8 sps:$4 sm:$0xff]  }
  0x90   : > { %2102 = vmatprep.subr.bf16.mxu1 %v3066_v21  ;;  %2089 = vmatprep.mubr.bf16.mxu0 %v2696_v29  ;;  %v3148_v21 = vld [vmem:[%s4174_s1 + $0x580] ss:$8 sps:$4 sm:$0xff]   ;;  %v2695_v29 = vcombine.low %v3758_v24, %v3761_v25  ;;  %v3159_v24 = vld [vmem:[%s4174_s1 + $0x664] ss:$8 sps:$4 sm:$0xff]  }
  0x91   : > { %2132 = vmatprep.mubr.bf16.mxu1 %v2698_v31  ;;  %v3955_v31 = vld [vmem:[%s3455_s11 + $0x70] sm:$0xff]  ;;  %v3162_v25 = vld [vmem:[%s4174_s1 + $0x764] ss:$8 sps:$4 sm:$0xff]  }
  0x92   : > { %2060 = vmatpush1.bf16.msra.mxu0 %v3061_v22  ;;  %v3153_v22 = vld [vmem:[%s4174_s1 + $0x674] ss:$8 sps:$4 sm:$0xff]  }
  0x93   : > { %2103 = vmatpush1.bf16.msra.mxu1 %v3064_v23  ;;  %2061 = vmatprep.subr.bf16.mxu0 %v3069_v28  ;;  %v3156_v23 = vld [vmem:[%s4174_s1 + $0x774] ss:$8 sps:$4 sm:$0xff]  }
  0x94   : > { %2104 = vmatprep.subr.bf16.mxu1 %v3072_v30  ;;  %v3948_v28 = vld [vmem:[%s3455_s11 + $0x50] sm:$0xff]  ;;  %v2697_v30 = vcombine.low %v3764_v26, %v3767_v27 }
  0x95   : > { %v2700_v26 = vcombine.high %v3948_v28, %v3955_v31 }
  0x96   : > { %2062 = vmatpush1.bf16.msra.mxu0 %v3067_v32  ;;  %v3958_v32 = vld [vmem:[%s3455_s11 + $0x58] sm:$0xff] }
  0x97   : > { %2105 = vmatpush1.bf16.msra.mxu1 %v3070_v33  ;;  %2063 = vmatprep.subr.bf16.mxu0 %v3075_v34  ;;  %v3961_v33 = vld [vmem:[%s3455_s11 + $0x78] sm:$0xff] }
  0x98   : > { %2106 = vmatprep.subr.bf16.mxu1 %v3078_v35  ;;  %v3151_v34 = vld [vmem:[%s4174_s1 + $0x670] ss:$8 sps:$4 sm:$0xff]   ;;  %v2702_v27 = vcombine.high %v3958_v32, %v3961_v33 }
  0x99   : > { %v3154_v35 = vld [vmem:[%s4174_s1 + $0x770] ss:$8 sps:$4 sm:$0xff]  }
  0x9a   : > { %2064 = vmatpush1.bf16.msra.mxu0 %v3073_v36  ;;  %v3157_v36 = vld [vmem:[%s4174_s1 + $0x660] ss:$8 sps:$4 sm:$0xff]  }
  0x9b   : > { %2107 = vmatpush1.bf16.msra.mxu1 %v3076_v37  ;;  %2065 = vmatprep.subr.bf16.mxu0 %v3081_v38  ;;  %v3160_v37 = vld [vmem:[%s4174_s1 + $0x760] ss:$8 sps:$4 sm:$0xff]   ;;  %v3165_v38 = vld [vmem:[%s4174_s1 + $0x654] ss:$8 sps:$4 sm:$0xff]  }
  0x9c   : > { %2108 = vmatprep.subr.bf16.mxu1 %v3084_v39  ;;  %v3168_v39 = vld [vmem:[%s4174_s1 + $0x754] ss:$8 sps:$4 sm:$0xff]  }
  0x9e   : > { %2066 = vmatpush1.bf16.msra.mxu0 %v3079_v40  ;;  %v3163_v40 = vld [vmem:[%s4174_s1 + $0x650] ss:$8 sps:$4 sm:$0xff]  }
  0x9f   : > { %2109 = vmatpush1.bf16.msra.mxu1 %v3082_v41  ;;  %2067 = vmatprep.subr.bf16.mxu0 %v3087_v42  ;;  %v3166_v41 = vld [vmem:[%s4174_s1 + $0x750] ss:$8 sps:$4 sm:$0xff]   ;;  %v3171_v42 = vld [vmem:[%s4174_s1 + $0x644] ss:$8 sps:$4 sm:$0xff]  }
  0xa0   : > { %2110 = vmatprep.subr.bf16.mxu1 %v3090_v43  ;;  %v3174_v43 = vld [vmem:[%s4174_s1 + $0x744] ss:$8 sps:$4 sm:$0xff]  }
  0xa2   : > { %2068 = vmatpush1.bf16.msra.mxu0 %v3085_v44  ;;  %v3169_v44 = vld [vmem:[%s4174_s1 + $0x640] ss:$8 sps:$4 sm:$0xff]  }
  0xa3   : > { %2111 = vmatpush1.bf16.msra.mxu1 %v3088_v45  ;;  %2069 = vmatprep.subr.bf16.mxu0 %v3093_v46  ;;  %v3172_v45 = vld [vmem:[%s4174_s1 + $0x740] ss:$8 sps:$4 sm:$0xff]   ;;  %v3177_v46 = vld [vmem:[%s4174_s1 + $0x634] ss:$8 sps:$4 sm:$0xff]  }
  0xa4   : > { %2112 = vmatprep.subr.bf16.mxu1 %v3096_v47  ;;  %v3180_v47 = vld [vmem:[%s4174_s1 + $0x734] ss:$8 sps:$4 sm:$0xff]  }
  0xa6   : > { %2070 = vmatpush1.bf16.msra.mxu0 %v3091_v48  ;;  %v3175_v48 = vld [vmem:[%s4174_s1 + $0x630] ss:$8 sps:$4 sm:$0xff]  }
  0xa7   : > { %2113 = vmatpush1.bf16.msra.mxu1 %v3094_v49  ;;  %2071 = vmatprep.subr.bf16.mxu0 %v3099_v50  ;;  %v3178_v49 = vld [vmem:[%s4174_s1 + $0x730] ss:$8 sps:$4 sm:$0xff]   ;;  %v3183_v50 = vld [vmem:[%s4174_s1 + $0x624] ss:$8 sps:$4 sm:$0xff]  }
  0xa8   : > { %2114 = vmatprep.subr.bf16.mxu1 %v3102_v51  ;;  %v3186_v51 = vld [vmem:[%s4174_s1 + $0x724] ss:$8 sps:$4 sm:$0xff]  }
  0xaa   : > { %2072 = vmatpush1.bf16.msra.mxu0 %v3097_v52  ;;  %v3181_v52 = vld [vmem:[%s4174_s1 + $0x620] ss:$8 sps:$4 sm:$0xff]  }
  0xab   : > { %2115 = vmatpush1.bf16.msra.mxu1 %v3100_v53  ;;  %2073 = vmatprep.subr.bf16.mxu0 %v3105_v54  ;;  %v3184_v53 = vld [vmem:[%s4174_s1 + $0x720] ss:$8 sps:$4 sm:$0xff]   ;;  %v3189_v54 = vld [vmem:[%s4174_s1 + $0x614] ss:$8 sps:$4 sm:$0xff]  }
  0xac   : > { %2116 = vmatprep.subr.bf16.mxu1 %v3108_v55  ;;  %v3192_v55 = vld [vmem:[%s4174_s1 + $0x714] ss:$8 sps:$4 sm:$0xff]  }
  0xae   : > { %2074 = vmatpush2.bf16.msra.mxu0 %v3103_v56  ;;  %v3187_v56 = vld [vmem:[%s4174_s1 + $0x610] ss:$8 sps:$4 sm:$0xff]  }
  0xaf   : > { %2117 = vmatpush2.bf16.msra.mxu1 %v3106_v57  ;;  %2075 = vmatprep.subr.bf16.mxu0 %v3111_v58  ;;  %v3190_v57 = vld [vmem:[%s4174_s1 + $0x710] ss:$8 sps:$4 sm:$0xff]   ;;  %v3195_v58 = vld [vmem:[%s4174_s1 + $0x604] ss:$8 sps:$4 sm:$0xff]  }
  0xb0   : > { %2118 = vmatprep.subr.bf16.mxu1 %v3114_v59  ;;  %v3198_v59 = vld [vmem:[%s4174_s1 + $0x704] ss:$8 sps:$4 sm:$0xff]  }
  0xb2   : > { %2076 = vmatpush2.bf16.msra.mxu0 %v3109_v60  ;;  %v3193_v60 = vld [vmem:[%s4174_s1 + $0x600] ss:$8 sps:$4 sm:$0xff]  }
  0xb3   : > { %2119 = vmatpush2.bf16.msra.mxu1 %v3112_v61  ;;  %2077 = vmatprep.subr.bf16.mxu0 %v3117_v62  ;;  %v3196_v61 = vld [vmem:[%s4174_s1 + $0x700] ss:$8 sps:$4 sm:$0xff]   ;;  %v3201_v62 = vld [vmem:[%s4174_s1 + $0x6f4] ss:$8 sps:$4 sm:$0xff]  }
  0xb4   : > { %2120 = vmatprep.subr.bf16.mxu1 %v3120_v63  ;;  %v3204_v63 = vld [vmem:[%s4174_s1 + $0x7f4] ss:$8 sps:$4 sm:$0xff]  }
  0xb6   : > { %2078 = vmatpush2.bf16.msra.mxu0 %v3115_v0  ;;  %v3199_v0 = vld [vmem:[%s4174_s1 + $0x6f0] ss:$8 sps:$4 sm:$0xff]  }
  0xb7   : > { %2121 = vmatpush2.bf16.msra.mxu1 %v3118_v1  ;;  %2079 = vmatprep.subr.bf16.mxu0 %v3123_v2  ;;  %v3202_v1 = vld [vmem:[%s4174_s1 + $0x7f0] ss:$8 sps:$4 sm:$0xff]   ;;  %v3207_v2 = vld [vmem:[%s4174_s1 + $0x6e4] ss:$8 sps:$4 sm:$0xff]  }
  0xb8   : > { %2122 = vmatprep.subr.bf16.mxu1 %v3126_v3  ;;  %v3210_v3 = vld [vmem:[%s4174_s1 + $0x7e4] ss:$8 sps:$4 sm:$0xff]  }
  0xba   : > { %2080 = vmatpush2.bf16.msra.mxu0 %v3121_v4  ;;  %v3205_v4 = vld [vmem:[%s4174_s1 + $0x6e0] ss:$8 sps:$4 sm:$0xff]  }
  0xbb   : > { %2123 = vmatpush2.bf16.msra.mxu1 %v3124_v5  ;;  %2081 = vmatprep.subr.bf16.mxu0 %v3129_v6  ;;  %v3208_v5 = vld [vmem:[%s4174_s1 + $0x7e0] ss:$8 sps:$4 sm:$0xff]   ;;  %v3213_v6 = vld [vmem:[%s4174_s1 + $0x6d4] ss:$8 sps:$4 sm:$0xff]  }
  0xbc   : > { %2124 = vmatprep.subr.bf16.mxu1 %v3132_v7  ;;  %v3216_v7 = vld [vmem:[%s4174_s1 + $0x7d4] ss:$8 sps:$4 sm:$0xff]  }
  0xbe   : > { %2082 = vmatpush2.bf16.msra.mxu0 %v3127_v8  ;;  %v3211_v8 = vld [vmem:[%s4174_s1 + $0x6d0] ss:$8 sps:$4 sm:$0xff]  }
  0xbf   : > { %2125 = vmatpush2.bf16.msra.mxu1 %v3130_v9  ;;  %2083 = vmatprep.subr.bf16.mxu0 %v3135_v10  ;;  %v3214_v9 = vld [vmem:[%s4174_s1 + $0x7d0] ss:$8 sps:$4 sm:$0xff]   ;;  %v3219_v10 = vld [vmem:[%s4174_s1 + $0x6c4] ss:$8 sps:$4 sm:$0xff]  }
  0xc0   : > { %2126 = vmatprep.subr.bf16.mxu1 %v3138_v11  ;;  %v3222_v11 = vld [vmem:[%s4174_s1 + $0x7c4] ss:$8 sps:$4 sm:$0xff]  }
  0xc2   : > { %2084 = vmatpush2.bf16.msra.mxu0 %v3133_v12  ;;  %v3217_v12 = vld [vmem:[%s4174_s1 + $0x6c0] ss:$8 sps:$4 sm:$0xff]  }
  0xc3   : > { %2127 = vmatpush2.bf16.msra.mxu1 %v3136_v13  ;;  %2085 = vmatprep.subr.bf16.mxu0 %v3141_v14  ;;  %v3220_v13 = vld [vmem:[%s4174_s1 + $0x7c0] ss:$8 sps:$4 sm:$0xff]   ;;  %v3225_v14 = vld [vmem:[%s4174_s1 + $0x6b4] ss:$8 sps:$4 sm:$0xff]  }
  0xc4   : > { %2128 = vmatprep.subr.bf16.mxu1 %v3144_v15  ;;  %v3228_v15 = vld [vmem:[%s4174_s1 + $0x7b4] ss:$8 sps:$4 sm:$0xff]  }
  0xc6   : > { %2086 = vmatpush2.bf16.msra.mxu0 %v3139_v16  ;;  %v3223_v16 = vld [vmem:[%s4174_s1 + $0x6b0] ss:$8 sps:$4 sm:$0xff]  }
  0xc7   : > { %2129 = vmatpush2.bf16.msra.mxu1 %v3142_v17  ;;  %2087 = vmatprep.subr.bf16.mxu0 %v3147_v18  ;;  %v3226_v17 = vld [vmem:[%s4174_s1 + $0x7b0] ss:$8 sps:$4 sm:$0xff]   ;;  %v3231_v18 = vld [vmem:[%s4174_s1 + $0x6a4] ss:$8 sps:$4 sm:$0xff]  }
  0xc8   : > { %2130 = vmatprep.subr.bf16.mxu1 %v3150_v19  ;;  %v3234_v19 = vld [vmem:[%s4174_s1 + $0x7a4] ss:$8 sps:$4 sm:$0xff]  }
  0xca   : > { %2088 = vmatpush2.bf16.msra.mxu0 %v3145_v20  ;;  %v3229_v20 = vld [vmem:[%s4174_s1 + $0x6a0] ss:$8 sps:$4 sm:$0xff]  }
  0xcb   : > { %2131 = vmatpush2.bf16.msra.mxu1 %v3148_v21  ;;  %2143 = vmatprep.subr.bf16.mxu0 %v3153_v22  ;;  %v3232_v21 = vld [vmem:[%s4174_s1 + $0x7a0] ss:$8 sps:$4 sm:$0xff]   ;;  %v3237_v22 = vld [vmem:[%s4174_s1 + $0x694] ss:$8 sps:$4 sm:$0xff]  }
  0xcc   : > { %2186 = vmatprep.subr.bf16.mxu1 %v3156_v23  ;;  %v3240_v23 = vld [vmem:[%s4174_s1 + $0x794] ss:$8 sps:$4 sm:$0xff]  }
  0xcd   : > { %2090 = vmatmul.mubr.bf16.vlgmr.msra.gmra.mxu0 %v2695_v29  ;;  %v3235_v29 = vld [vmem:[%s4174_s1 + $0x690] ss:$8 sps:$4 sm:$0xff]  }
  0xce   : > { %2133 = vmatmul.mubr.bf16.vlgmr.msra.gmra.mxu1 %v2697_v30  ;;  %2144 = vmatpush1.bf16.msra.mxu0 %v3151_v34  ;;  %v3238_v30 = vld [vmem:[%s4174_s1 + $0x790] ss:$8 sps:$4 sm:$0xff]   ;;  %v3243_v34 = vld [vmem:[%s4174_s1 + $0x684] ss:$8 sps:$4 sm:$0xff]  }
  0xcf   : > { %2187 = vmatpush1.bf16.msra.mxu1 %v3154_v35  ;;  %2145 = vmatprep.subr.bf16.mxu0 %v3159_v24  ;;  %v3246_v35 = vld [vmem:[%s4174_s1 + $0x784] ss:$8 sps:$4 sm:$0xff]   ;;  %v3241_v24 = vld [vmem:[%s4174_s1 + $0x680] ss:$8 sps:$4 sm:$0xff]  }
  0xd0   : > { %2188 = vmatprep.subr.bf16.mxu1 %v3162_v25  ;;  %2175 = vmatprep.mubr.bf16.mxu0 %v2700_v26  ;;  %v3244_v25 = vld [vmem:[%s4174_s1 + $0x780] ss:$8 sps:$4 sm:$0xff]   ;;  %v2699_v26 = vcombine.low %v3948_v28, %v3955_v31 }
  0xd1   : > { %2218 = vmatprep.mubr.bf16.mxu1 %v2702_v27  ;;  %v2701_v27 = vcombine.low %v3958_v32, %v3961_v33 }
  0xd2   : > { %2146 = vmatpush1.bf16.msra.mxu0 %v3157_v36 }
  0xd3   : > { %2189 = vmatpush1.bf16.msra.mxu1 %v3160_v37  ;;  %2147 = vmatprep.subr.bf16.mxu0 %v3165_v38 }
  0xd4   : > { %2190 = vmatprep.subr.bf16.mxu1 %v3168_v39 }
  0xd6   : > { %2148 = vmatpush1.bf16.msra.mxu0 %v3163_v40 }
  0xd7   : > { %2191 = vmatpush1.bf16.msra.mxu1 %v3166_v41  ;;  %2149 = vmatprep.subr.bf16.mxu0 %v3171_v42 }
  0xd8   : > { %2192 = vmatprep.subr.bf16.mxu1 %v3174_v43 }
  0xda   : > { %2150 = vmatpush1.bf16.msra.mxu0 %v3169_v44 }
  0xdb   : > { %2193 = vmatpush1.bf16.msra.mxu1 %v3172_v45  ;;  %2151 = vmatprep.subr.bf16.mxu0 %v3177_v46 }
  0xdc   : > { %2194 = vmatprep.subr.bf16.mxu1 %v3180_v47 }
  0xde   : > { %2152 = vmatpush1.bf16.msra.mxu0 %v3175_v48 }
  0xdf   : > { %2195 = vmatpush1.bf16.msra.mxu1 %v3178_v49  ;;  %2153 = vmatprep.subr.bf16.mxu0 %v3183_v50  ;;  %v1225_v50 = vlaneseq }
  0xe0   : > { %2196 = vmatprep.subr.bf16.mxu1 %v3186_v51 }
  0xe2   : > { %2154 = vmatpush1.bf16.msra.mxu0 %v3181_v52 }
  0xe3   : > { %2197 = vmatpush1.bf16.msra.mxu1 %v3184_v53  ;;  %2155 = vmatprep.subr.bf16.mxu0 %v3189_v54  ;;  %v1226_v53 = vshrl.u32 %v1225_v50, 7 }
  0xe4   : > { %2198 = vmatprep.subr.bf16.mxu1 %v3192_v55 }
  0xe6   : > { %2156 = vmatpush1.bf16.msra.mxu0 %v3187_v56 }
  0xe7   : > { %2199 = vmatpush1.bf16.msra.mxu1 %v3190_v57  ;;  %2157 = vmatprep.subr.bf16.mxu0 %v3195_v58 }
  0xe8   : > { %2200 = vmatprep.subr.bf16.mxu1 %v3198_v59 }
  0xea   : > { %2158 = vmatpush1.bf16.msra.mxu0 %v3193_v60  ;;  %v1227_v60 = vsub.s32 0, %v1226_v53 }
  0xeb   : > { %2201 = vmatpush1.bf16.msra.mxu1 %v3196_v61  ;;  %2159 = vmatprep.subr.bf16.mxu0 %v3201_v62 }
  0xec   : > { %2202 = vmatprep.subr.bf16.mxu1 %v3204_v63 }
  0xee   : > { %2160 = vmatpush2.bf16.msra.mxu0 %v3199_v0  ;;  %v235_v0 = vld [vmem:[%s4175_s2] sm:$0x3] }
  0xef   : > { %2203 = vmatpush2.bf16.msra.mxu1 %v3202_v1  ;;  %2161 = vmatprep.subr.bf16.mxu0 %v3207_v2 }
  0xf0   : > { %2204 = vmatprep.subr.bf16.mxu1 %v3210_v3 }
  0xf2   : > { %2162 = vmatpush2.bf16.msra.mxu0 %v3205_v4  ;;  %v1231_v4 = vsub.s32 1, %v1226_v53 }
  0xf3   : > { %2205 = vmatpush2.bf16.msra.mxu1 %v3208_v5  ;;  %2163 = vmatprep.subr.bf16.mxu0 %v3213_v6 }
  0xf4   : > { %2206 = vmatprep.subr.bf16.mxu1 %v3216_v7 }
  0xf6   : > { %2164 = vmatpush2.bf16.msra.mxu0 %v3211_v8 }
  0xf7   : > { %2207 = vmatpush2.bf16.msra.mxu1 %v3214_v9  ;;  %2165 = vmatprep.subr.bf16.mxu0 %v3219_v10 }
  0xf8   : > { %2208 = vmatprep.subr.bf16.mxu1 %v3222_v11  ;;  %v1228_v11 = vrot.slane %v235_v0, %v1227_v60 }
  0xfa   : > { %2166 = vmatpush2.bf16.msra.mxu0 %v3217_v12 }
  0xfb   : > { %2209 = vmatpush2.bf16.msra.mxu1 %v3220_v13  ;;  %2167 = vmatprep.subr.bf16.mxu0 %v3225_v14 }
  0xfc   : > { %2210 = vmatprep.subr.bf16.mxu1 %v3228_v15 }
  0xfe   : > { %2168 = vmatpush2.bf16.msra.mxu0 %v3223_v16 }
  0xff   : > { %2211 = vmatpush2.bf16.msra.mxu1 %v3226_v17  ;;  %2169 = vmatprep.subr.bf16.mxu0 %v3231_v18  ;;  %v1232_v18 = vrot.slane %v235_v0, %v1231_v4 }
 0x100   : > { %2212 = vmatprep.subr.bf16.mxu1 %v3234_v19 }
 0x102   : > { %2170 = vmatpush2.bf16.msra.mxu0 %v3229_v20 }
 0x103   : > { %2213 = vmatpush2.bf16.msra.mxu1 %v3232_v21  ;;  %2171 = vmatprep.subr.bf16.mxu0 %v3237_v22 }
 0x104   : > { %2214 = vmatprep.subr.bf16.mxu1 %v3240_v23 }
 0x106   : > { %2172 = vmatpush2.bf16.msra.mxu0 %v3235_v29 }
 0x107   : > { %2215 = vmatpush2.bf16.msra.mxu1 %v3238_v30  ;;  %2173 = vmatprep.subr.bf16.mxu0 %v3243_v34 }
 0x108   : > { %2216 = vmatprep.subr.bf16.mxu1 %v3246_v35 }
 0x10a   : > { %2174 = vmatpush2.bf16.msra.mxu0 %v3241_v24 }
 0x10b   : > { %2217 = vmatpush2.bf16.msra.mxu1 %v3244_v25 }
 0x10d   : > { %2176 = vmatmul.mubr.bf16.vlgmr.msra.gmra.mxu0 %v2699_v26  ;;  %v1086_v36 = vpop.f32.mrf.mxu0 }
 0x10e   : > { %2219 = vmatmul.mubr.bf16.vlgmr.msra.gmra.mxu1 %v2701_v27  ;;  %v1129_v37 = vpop.f32.mrf.mxu1 }
 0x10f   : > { %v1088_v38 = vpop.f32.mrf.mxu0  ;;  %v1130_v56 = vadd.f32 %v1129_v37, %v1086_v36 }
 0x110   : > { %v1131_v39 = vpop.f32.mrf.mxu1 }
 0x111   : > { %v1090_v40 = vpop.f32.mrf.mxu0  ;;  %v1132_v58 = vadd.f32 %v1131_v39, %v1088_v38 }
 0x112   : > { %v1133_v41 = vpop.f32.mrf.mxu1 }
 0x113   : > { %v1092_v42 = vpop.f32.mrf.mxu0  ;;  %v1134_v57 = vadd.f32 %v1133_v41, %v1090_v40 }
 0x114   : > { %v1135_v43 = vpop.f32.mrf.mxu1 }
 0x115   : > { %v1136_v63 = vadd.f32 %v1135_v43, %v1092_v42 }
 0x14d   : > { %v1172_v44 = vpop.f32.mrf.mxu0 }
 0x14e   : > { %v1215_v45 = vpop.f32.mrf.mxu1  ;;  %v1173_v59 = vadd.f32 %v1172_v44, %v1130_v56 }
 0x14f   : > { %v1174_v46 = vpop.f32.mrf.mxu0 }
 0x150   : > { %v1217_v47 = vpop.f32.mrf.mxu1  ;;  %v1175_v3 = vadd.f32 %v1174_v46, %v1132_v58  ;;  %v1216_v10 = vadd.f32 %v1215_v45, %v1173_v59 }
 0x151   : > { %v1176_v28 = vpop.f32.mrf.mxu0 }
 0x152   : > { %v1219_v31 = vpop.f32.mrf.mxu1  ;;  %v1177_v1 = vadd.f32 %v1176_v28, %v1134_v57  ;;  %v1218_v17 = vadd.f32 %v1217_v47, %v1175_v3  ;;  %v1235_v30 = vadd.f32 %v1228_v11, %v1216_v10 }
 0x153   : > { %v1178_v48 = vpop.f32.mrf.mxu0 }
 0x154   : > { %v1221_v32 = vpop.f32.mrf.mxu1  ;;  %v1179_v7 = vadd.f32 %v1178_v48, %v1136_v63  ;;  %v1220_v14 = vadd.f32 %v1219_v31, %v1177_v1  ;;  %v1236_v27 = vadd.f32 %v1232_v18, %v1218_v17 }
 0x156   : > { %v1222_v21 = vadd.f32 %v1221_v32, %v1179_v7  ;;  %v1237_v35 = vadd.f32 %v1228_v11, %v1220_v14 }
 0x158   : > { %v1238_v37 = vadd.f32 %v1232_v18, %v1222_v21 }
 0x18d   : > { %v2091_v33 = vpop.f32.mrf.mxu0 }
 0x18e   : > { %v2134_v49 = vpop.f32.mrf.mxu1 }
 0x18f   : > { %v2093_v51 = vpop.f32.mrf.mxu0  ;;  %v2135_v2 = vadd.f32 %v2134_v49, %v2091_v33 }
 0x190   : > { %v2136_v52 = vpop.f32.mrf.mxu1 }
 0x191   : > { %v2095_v54 = vpop.f32.mrf.mxu0  ;;  %v2137_v8 = vadd.f32 %v2136_v52, %v2093_v51 }
 0x192   : > { %v2138_v55 = vpop.f32.mrf.mxu1 }
 0x193   : > { %v2097_v61 = vpop.f32.mrf.mxu0  ;;  %v2139_v15 = vadd.f32 %v2138_v55, %v2095_v54 }
 0x194   : > { %v2140_v62 = vpop.f32.mrf.mxu1 }
 0x195   : > { %v2141_v22 = vadd.f32 %v2140_v62, %v2097_v61 }
 0x1cd   : > { %v2177_v5 = vpop.f32.mrf.mxu0 }
 0x1ce   : > { %v2220_v6 = vpop.f32.mrf.mxu1  ;;  %v2178_v9 = vadd.f32 %v2177_v5, %v2135_v2 }
 0x1cf   : > { %v2179_v12 = vpop.f32.mrf.mxu0 }
 0x1d0   : > { %v2222_v13 = vpop.f32.mrf.mxu1  ;;  %v2180_v16 = vadd.f32 %v2179_v12, %v2137_v8  ;;  %v2221_v23 = vadd.f32 %v2220_v6, %v2178_v9 }
 0x1d1   : > { %v2181_v19 = vpop.f32.mrf.mxu0 }
 0x1d2   : > { %v2224_v20 = vpop.f32.mrf.mxu1  ;;  %v2182_v29 = vadd.f32 %v2181_v19, %v2139_v15  ;;  %v2223_v24 = vadd.f32 %v2222_v13, %v2180_v16  ;;  %v2229_v38 = vadd.f32 %v2221_v23, %v1235_v30 }
 0x1d3   : > { %v2183_v34 = vpop.f32.mrf.mxu0 }
 0x1d4   : > { %v2225_v25 = vadd.f32 %v2224_v20, %v2182_v29  ;;  %v2184_v26 = vadd.f32 %v2183_v34, %v2141_v22  ;;  %v2226_v36 = vpop.f32.mrf.mxu1  ;;  %v2230_v41 = vadd.f32 %v2223_v24, %v1236_v27 }
 0x1d6   : > { %v2231_v39 = vadd.f32 %v2225_v25, %v1237_v35  ;;  %v2227_v40 = vadd.f32 %v2226_v36, %v2184_v26 }
 0x1d8   : > { %v2233_v42 = vadd.f32 %v2231_v39, %v2229_v38  ;;  %v2232_v43 = vadd.f32 %v2227_v40, %v1238_v37 }
 0x1da   : > { %v2234_v44 = vrot.slane %v2233_v42, 4  ;;  %v2240_v45 = vadd.f32 %v2232_v43, %v2230_v41 }
 0x1dc   : > { %v2235_v46 = vadd.f32 %v2234_v44, %v2233_v42  ;;  %v2241_v47 = vrot.slane %v2240_v45, 4 }
 0x1de   : > { %v2236_v28 = vrot.slane %v2235_v46, 2  ;;  %v2242_v31 = vadd.f32 %v2241_v47, %v2240_v45 }
 0x1e0   : > { %v2237_v48 = vadd.f32 %v2236_v28, %v2235_v46  ;;  %v2243_v32 = vrot.slane %v2242_v31, 2 }
 0x1e2   : > { %v2238_v33 = vrot.slane %v2237_v48, 1  ;;  %v2244_v49 = vadd.f32 %v2243_v32, %v2242_v31 }
 0x1e4   : > { %v2239_v50 = vadd.f32 %v2238_v33, %v2237_v48  ;;  %v2245_v51 = vrot.slane %v2244_v49, 1 }
 0x1e6   : > { %v2248_v52 = vmul.f32 0.0625, %v2239_v50  ;;  %v2246_v53 = vadd.f32 %v2245_v51, %v2244_v49 }
 0x1e8   : > { %v2250_v54 = vsub.f32 %v2229_v38, %v2248_v52  ;;  %v2252_v55 = vsub.f32 %v2231_v39, %v2248_v52  ;;  %v2249_v56 = vmul.f32 0.0625, %v2246_v53 }
 0x1ea   : > { %v2254_v57 = vmul.f32 %v2250_v54, %v2250_v54  ;;  %v2256_v58 = vmul.f32 %v2252_v55, %v2252_v55  ;;  %v2251_v59 = vsub.f32 %v2230_v41, %v2249_v56  ;;  %v2253_v60 = vsub.f32 %v2232_v43, %v2249_v56 }
 0x1ec   : > { %v2258_v61 = vadd.f32 %v2256_v58, %v2254_v57  ;;  %v2255_v62 = vmul.f32 %v2251_v59, %v2251_v59  ;;  %v2257_v63 = vmul.f32 %v2253_v60, %v2253_v60 }
 0x1ee   : > { %v2259_v0 = vrot.slane %v2258_v61, 4  ;;  %v2265_v1 = vadd.f32 %v2257_v63, %v2255_v62 }
 0x1f0   : > { %v2260_v2 = vadd.f32 %v2259_v0, %v2258_v61  ;;  %v2266_v3 = vrot.slane %v2265_v1, 4 }
 0x1f2   : > { %v2261_v4 = vrot.slane %v2260_v2, 2  ;;  %v2267_v5 = vadd.f32 %v2266_v3, %v2265_v1 }
 0x1f4   : > { %v2262_v6 = vadd.f32 %v2261_v4, %v2260_v2  ;;  %v2268_v7 = vrot.slane %v2267_v5, 2 }
 0x1f6   : > { %v2263_v8 = vrot.slane %v2262_v6, 1  ;;  %v2269_v9 = vadd.f32 %v2268_v7, %v2267_v5 }
 0x1f8   : > { %v2264_v10 = vadd.f32 %v2263_v8, %v2262_v6  ;;  %v2270_v11 = vrot.slane %v2269_v9, 1 }
 0x1fa   : > { %v2272_v12 = vmul.f32 0.0625, %v2264_v10  ;;  %v2271_v13 = vadd.f32 %v2270_v11, %v2269_v9 }
 0x1fc   : > { %v2274_v14 = vadd.f32 1e-05, %v2272_v12  ;;  %v2273_v15 = vmul.f32 0.0625, %v2271_v13 }
 0x1fe   : > { %3247 = vrsqrt.f32 %v2274_v14  ;;  %v2275_v16 = vadd.f32 1e-05, %v2273_v15 }
 0x200   : > { %3249 = vrsqrt.f32 %v2275_v16 }
 0x20b   : > { %v3248_v17 = vpop.eup %3247 }
 0x20c   : > { %v2278_v18 = vmul.f32 %v3248_v17, %v2250_v54  ;;  %v2280_v19 = vmul.f32 %v3248_v17, %v2252_v55 }
 0x20d   : > { %v3250_v20 = vpop.eup %3249 }
 0x20e   : > { %v2282_v21 = vmul.f32 0.2, %v2278_v18  ;;  %v2284_v22 = vmul.f32 0.2, %v2280_v19  ;;  %v2279_v23 = vmul.f32 %v3250_v20, %v2251_v59  ;;  %v2281_v29 = vmul.f32 %v3250_v20, %v2253_v60 }
 0x210   : > { %v2283_v30 = vmul.f32 0.2, %v2279_v23  ;;  %v2285_v34 = vmul.f32 0.2, %v2281_v29  ;;  %v2286_v35 = vmax.f32 %v2278_v18, %v2282_v21  ;;  %v2288_v24 = vmax.f32 %v2280_v19, %v2284_v22 }
 0x212   : > { %v2287_v25 = vmax.f32 %v2279_v23, %v2283_v30  ;;  %v2289_v26 = vmax.f32 %v2281_v29, %v2285_v34 }
 0x214   : > { %v2837_v27 = vpack.c.bf16 %v2287_v25, %v2286_v35  ;;  %v2838_v36 = vpack.c.bf16 %v2289_v26, %v2288_v24 }
 0x216   : > { %2302 = vst [vmem:[%s233_s21] sm:$0xff] %v2837_v27  ;;  %2303 = vst [vmem:[%s233_s21 + $0x8] sm:$0xff] %v2838_v36 }
 0x217 PF: > { %s13_s14 = sadd.s32 1, %s3273_s14   ;;  %s4177_s12 = smov %s3269_s13 }
 0x218   : > { %p10_p5 = scmp.ge.s32.totalorder %s13_s14, 4   ;;  %s4178_s13 = smov %s4180_s15 }
 0x21a   :  { %12 = sbr.rel (!%p10_p5) target bundleno = 2 (0x2), region = 70 }

// kernel: discriminator_forward.8
= control target key start
LH: loop header
LB: loop body
LE: loop exit
PB: predicated region body
PF: predicated region fallthrough
CT: control target
= control target key end

     0   :  { %s10221_s12 = smov 0   ;;  %s10223_s13 = smov 0   ;;  %s11995_s0 = inlined_call_operand.vmem [shape: bf16[2,2,4,2048], index: 0, kind: input, shape index: {}]   ;;  %s11996_s1 = inlined_call_operand.vmem [shape: bf16[2,2048,512], index: 1, kind: input, shape index: {}]   ;;  %s11997_s2 = inlined_call_operand.vmem [shape: f32[1,512], index: 2, kind: input, shape index: {}]   ;;  %s11998_s3 = inlined_call_operand.vmem [shape: bf16[2,4,512], index: 3, kind: output, shape index: {}]  }
   0x1   :  { %s10225_s14 = smov 0   ;;  %s10227_s15 = smov 0  }
   0x2   :  { %s10229_s16 = smov 0   ;;  %s10231_s17 = smov 0  }
   0x3   :  { %s10233_s18 = smov 0  }
   0x4 LB: > { %s22_s19 = sadd.s32 1, %s10190_s16  ;;  %s25_s20 = sadd.s32 1, %s10194_s17  ;;  %s10198_s18 = sphi %s10233_s18, %s13_s18   ;;  %s10194_s17 = sphi %s10231_s17, %s12004_s17   ;;  %s10190_s16 = sphi %s10229_s16, %s12003_s16   ;;  %s10186_s15 = sphi %s10227_s15, %s12002_s15   ;;  %s10182_s14 = sphi %s10225_s14, %s12001_s14   ;;  %s10178_s13 = sphi %s10223_s13, %s12000_s13   ;;  %s10174_s12 = sphi %s10221_s12, %s11999_s12  }
   0x5   : > { %p23_p0 = scmp.ge.s32.totalorder %s22_s19, 2  ;;  %s58_s21 = sadd.s32 1, %s10178_s13 }
   0x6   : > { %p65_p1 = scmp.ne.s32.totalorder %s10178_s13, %s10174_s12  ;;  %p66_p2 = scmp.eq.s32.totalorder %s10198_s18, 0 }
   0x7   : > { %s12006_s19 = smov (%p23_p0, %s22_s19), 0  ;;  %s12008_s20 = smov (!%p23_p0, %s25_s20), %s10194_s17 }
   0x8   : > { %s55_s22 = ssub.s32 %s10190_s16, %s12006_s19  ;;  %p67_p3 = por %p66_p2, %p65_p1 }
   0x9   : > { %p27_p4 = scmp.ge.s32.totalorder %s12008_s20, 2  ;;  %p56_p5 = scmp.eq.s32.totalorder %s55_s22, 0 }
   0xa   : > { %p8517_p6 = scmp.ge.s32.totalorder %s10198_s18, 4 }
   0xb   : > { %s12010_s20 = smov (%p27_p4, %s12008_s20), 0 }
   0xc   : > { %s10270_s23 = scalar_select %p56_p5, %s10178_s13, %s58_s21  }
   0xd   : > { %145 = sbr.rel (%p8517_p6) target bundleno = 278 (0x116), region = 16 }
  0x12   : > { %156 = sbr.rel (!%p67_p3) target bundleno = 278 (0x116), region = 24  ;;  %s158_s24 = sand.u32 (%p67_p3), 1, %s10178_s13  }
  0x13   : > { %s9305_s25 = sshll.u32 (%p67_p3), %s10190_s16, 3  ;;  %s8518_s26 = sshll.u32 (%p67_p3), %s158_s24, 12 }
  0x14   : > { %s10278_s29 = scalar_lea.vmem (%p67_p3), %s11996_s1, %s9305_s25  ;;  %s10283_s30 = scalar_lea.vmem (%p67_p3), [#allocation2], %s8518_s26 }
  0x15   : > { %v1217_v0 = vld [vmem:[%s10278_s29] sm:$0xff] (%p67_p3)  ;;  %v1219_v1 = vld [vmem:[%s10278_s29 + $0x10] sm:$0xff] (%p67_p3) }
  0x16   : > { %v1221_v2 = vld [vmem:[%s10278_s29 + $0x20] sm:$0xff] (%p67_p3)  ;;  %1218 = vst [vmem:[%s10283_s30] sm:$0xff] (%p67_p3), %v1217_v0  ;;  %1220 = vst [vmem:[%s10283_s30 + $0x8] sm:$0xff] (%p67_p3), %v1219_v1  ;;  %v1223_v3 = vld [vmem:[%s10278_s29 + $0x30] sm:$0xff] (%p67_p3) }
  0x17   : > { %1222 = vst [vmem:[%s10283_s30 + $0x10] sm:$0xff] %v1221_v2  ;;  %v1225_v4 = vld [vmem:[%s10278_s29 + $0x40] sm:$0xff]  ;;  %v1227_v5 = vld [vmem:[%s10278_s29 + $0x50] sm:$0xff]  ;;  %1224 = vst [vmem:[%s10283_s30 + $0x18] sm:$0xff] %v1223_v3 }
  0x18   : > { %1226 = vst [vmem:[%s10283_s30 + $0x20] sm:$0xff] %v1225_v4  ;;  %1228 = vst [vmem:[%s10283_s30 + $0x28] sm:$0xff] %v1227_v5  ;;  %v1229_v6 = vld [vmem:[%s10278_s29 + $0x60] sm:$0xff]  ;;  %v1231_v7 = vld [vmem:[%s10278_s29 + $0x70] sm:$0xff] }
  0x19   : > { %v1233_v8 = vld [vmem:[%s10278_s29 + $0x80] sm:$0xff]  ;;  %1230 = vst [vmem:[%s10283_s30 + $0x30] sm:$0xff] %v1229_v6  ;;  %1232 = vst [vmem:[%s10283_s30 + $0x38] sm:$0xff] %v1231_v7  ;;  %v1235_v9 = vld [vmem:[%s10278_s29 + $0x90] sm:$0xff] }
  0x1a   : > { %1234 = vst [vmem:[%s10283_s30 + $0x40] sm:$0xff] %v1233_v8  ;;  %v1237_v10 = vld [vmem:[%s10278_s29 + $0xa0] sm:$0xff]  ;;  %v1239_v11 = vld [vmem:[%s10278_s29 + $0xb0] sm:$0xff]  ;;  %1236 = vst [vmem:[%s10283_s30 + $0x48] sm:$0xff] %v1235_v9 }
  0x1b   : > { %1238 = vst [vmem:[%s10283_s30 + $0x50] sm:$0xff] %v1237_v10  ;;  %1240 = vst [vmem:[%s10283_s30 + $0x58] sm:$0xff] %v1239_v11  ;;  %v1241_v12 = vld [vmem:[%s10278_s29 + $0xc0] sm:$0xff]  ;;  %v1243_v13 = vld [vmem:[%s10278_s29 + $0xd0] sm:$0xff] }
  0x1c   : > { %v1245_v14 = vld [vmem:[%s10278_s29 + $0xe0] sm:$0xff]  ;;  %1242 = vst [vmem:[%s10283_s30 + $0x60] sm:$0xff] %v1241_v12  ;;  %1244 = vst [vmem:[%s10283_s30 + $0x68] sm:$0xff] %v1243_v13  ;;  %v1247_v15 = vld [vmem:[%s10278_s29 + $0xf0] sm:$0xff] }
  0x1d   : > { %1246 = vst [vmem:[%s10283_s30 + $0x70] sm:$0xff] %v1245_v14  ;;  %v1249_v16 = vld [vmem:[%s10278_s29 + $0x100] sm:$0xff]  ;;  %v1251_v17 = vld [vmem:[%s10278_s29 + $0x110] sm:$0xff]  ;;  %1248 = vst [vmem:[%s10283_s30 + $0x78] sm:$0xff] %v1247_v15 }
  0x1e   : > { %1250 = vst [vmem:[%s10283_s30 + $0x80] sm:$0xff] %v1249_v16  ;;  %1252 = vst [vmem:[%s10283_s30 + $0x88] sm:$0xff] %v1251_v17  ;;  %v1253_v18 = vld [vmem:[%s10278_s29 + $0x120] sm:$0xff]  ;;  %v1255_v19 = vld [vmem:[%s10278_s29 + $0x130] sm:$0xff] }
  0x1f   : > { %v1257_v20 = vld [vmem:[%s10278_s29 + $0x140] sm:$0xff]  ;;  %1254 = vst [vmem:[%s10283_s30 + $0x90] sm:$0xff] %v1253_v18  ;;  %1256 = vst [vmem:[%s10283_s30 + $0x98] sm:$0xff] %v1255_v19  ;;  %v1259_v21 = vld [vmem:[%s10278_s29 + $0x150] sm:$0xff] }
  0x20   : > { %1258 = vst [vmem:[%s10283_s30 + $0xa0] sm:$0xff] %v1257_v20  ;;  %v1261_v22 = vld [vmem:[%s10278_s29 + $0x160] sm:$0xff]  ;;  %v1263_v23 = vld [vmem:[%s10278_s29 + $0x170] sm:$0xff]  ;;  %1260 = vst [vmem:[%s10283_s30 + $0xa8] sm:$0xff] %v1259_v21 }
  0x21   : > { %1262 = vst [vmem:[%s10283_s30 + $0xb0] sm:$0xff] %v1261_v22  ;;  %1264 = vst [vmem:[%s10283_s30 + $0xb8] sm:$0xff] %v1263_v23  ;;  %v1265_v24 = vld [vmem:[%s10278_s29 + $0x180] sm:$0xff]  ;;  %v1267_v25 = vld [vmem:[%s10278_s29 + $0x190] sm:$0xff] }
  0x22   : > { %v1269_v26 = vld [vmem:[%s10278_s29 + $0x1a0] sm:$0xff]  ;;  %1266 = vst [vmem:[%s10283_s30 + $0xc0] sm:$0xff] %v1265_v24  ;;  %1268 = vst [vmem:[%s10283_s30 + $0xc8] sm:$0xff] %v1267_v25  ;;  %v1271_v27 = vld [vmem:[%s10278_s29 + $0x1b0] sm:$0xff] }
  0x23   : > { %1270 = vst [vmem:[%s10283_s30 + $0xd0] sm:$0xff] %v1269_v26  ;;  %v1273_v28 = vld [vmem:[%s10278_s29 + $0x1c0] sm:$0xff]  ;;  %v1275_v29 = vld [vmem:[%s10278_s29 + $0x1d0] sm:$0xff]  ;;  %1272 = vst [vmem:[%s10283_s30 + $0xd8] sm:$0xff] %v1271_v27 }
  0x24   : > { %1274 = vst [vmem:[%s10283_s30 + $0xe0] sm:$0xff] %v1273_v28  ;;  %1276 = vst [vmem:[%s10283_s30 + $0xe8] sm:$0xff] %v1275_v29  ;;  %v1277_v30 = vld [vmem:[%s10278_s29 + $0x1e0] sm:$0xff]  ;;  %v1279_v31 = vld [vmem:[%s10278_s29 + $0x1f0] sm:$0xff] }
  0x25   : > { %v1281_v32 = vld [vmem:[%s10278_s29 + $0x200] sm:$0xff]  ;;  %1278 = vst [vmem:[%s10283_s30 + $0xf0] sm:$0xff] %v1277_v30  ;;  %1280 = vst [vmem:[%s10283_s30 + $0xf8] sm:$0xff] %v1279_v31  ;;  %v1283_v33 = vld [vmem:[%s10278_s29 + $0x210] sm:$0xff] }
  0x26   : > { %1282 = vst [vmem:[%s10283_s30 + $0x100] sm:$0xff] %v1281_v32  ;;  %v1285_v34 = vld [vmem:[%s10278_s29 + $0x220] sm:$0xff]  ;;  %v1287_v35 = vld [vmem:[%s10278_s29 + $0x230] sm:$0xff]  ;;  %1284 = vst [vmem:[%s10283_s30 + $0x108] sm:$0xff] %v1283_v33 }
  0x27   : > { %1286 = vst [vmem:[%s10283_s30 + $0x110] sm:$0xff] %v1285_v34  ;;  %1288 = vst [vmem:[%s10283_s30 + $0x118] sm:$0xff] %v1287_v35  ;;  %v1289_v36 = vld [vmem:[%s10278_s29 + $0x240] sm:$0xff]  ;;  %v1291_v37 = vld [vmem:[%s10278_s29 + $0x250] sm:$0xff] }
  0x28   : > { %v1293_v38 = vld [vmem:[%s10278_s29 + $0x260] sm:$0xff]  ;;  %1290 = vst [vmem:[%s10283_s30 + $0x120] sm:$0xff] %v1289_v36  ;;  %1292 = vst [vmem:[%s10283_s30 + $0x128] sm:$0xff] %v1291_v37  ;;  %v1295_v39 = vld [vmem:[%s10278_s29 + $0x270] sm:$0xff] }
  0x29   : > { %1294 = vst [vmem:[%s10283_s30 + $0x130] sm:$0xff] %v1293_v38  ;;  %v1297_v40 = vld [vmem:[%s10278_s29 + $0x280] sm:$0xff]  ;;  %v1299_v41 = vld [vmem:[%s10278_s29 + $0x290] sm:$0xff]  ;;  %1296 = vst [vmem:[%s10283_s30 + $0x138] sm:$0xff] %v1295_v39 }
  0x2a   : > { %1298 = vst [vmem:[%s10283_s30 + $0x140] sm:$0xff] %v1297_v40  ;;  %1300 = vst [vmem:[%s10283_s30 + $0x148] sm:$0xff] %v1299_v41  ;;  %v1301_v42 = vld [vmem:[%s10278_s29 + $0x2a0] sm:$0xff]  ;;  %v1303_v43 = vld [vmem:[%s10278_s29 + $0x2b0] sm:$0xff] }
  0x2b   : > { %v1305_v44 = vld [vmem:[%s10278_s29 + $0x2c0] sm:$0xff]  ;;  %1302 = vst [vmem:[%s10283_s30 + $0x150] sm:$0xff] %v1301_v42  ;;  %1304 = vst [vmem:[%s10283_s30 + $0x158] sm:$0xff] %v1303_v43  ;;  %v1307_v45 = vld [vmem:[%s10278_s29 + $0x2d0] sm:$0xff] }
  0x2c   : > { %1306 = vst [vmem:[%s10283_s30 + $0x160] sm:$0xff] %v1305_v44  ;;  %v1309_v46 = vld [vmem:[%s10278_s29 + $0x2e0] sm:$0xff]  ;;  %v1311_v47 = vld [vmem:[%s10278_s29 + $0x2f0] sm:$0xff]  ;;  %1308 = vst [vmem:[%s10283_s30 + $0x168] sm:$0xff] %v1307_v45 }
  0x2d   : > { %1310 = vst [vmem:[%s10283_s30 + $0x170] sm:$0xff] %v1309_v46  ;;  %1312 = vst [vmem:[%s10283_s30 + $0x178] sm:$0xff] %v1311_v47  ;;  %v1313_v48 = vld [vmem:[%s10278_s29 + $0x300] sm:$0xff]  ;;  %v1315_v49 = vld [vmem:[%s10278_s29 + $0x310] sm:$0xff] }
  0x2e   : > { %v1317_v50 = vld [vmem:[%s10278_s29 + $0x320] sm:$0xff]  ;;  %1314 = vst [vmem:[%s10283_s30 + $0x180] sm:$0xff] %v1313_v48  ;;  %1316 = vst [vmem:[%s10283_s30 + $0x188] sm:$0xff] %v1315_v49  ;;  %v1319_v51 = vld [vmem:[%s10278_s29 + $0x330] sm:$0xff] }
  0x2f   : > { %1318 = vst [vmem:[%s10283_s30 + $0x190] sm:$0xff] %v1317_v50  ;;  %v1321_v52 = vld [vmem:[%s10278_s29 + $0x340] sm:$0xff]  ;;  %v1323_v53 = vld [vmem:[%s10278_s29 + $0x350] sm:$0xff]  ;;  %1320 = vst [vmem:[%s10283_s30 + $0x198] sm:$0xff] %v1319_v51 }
  0x30   : > { %1322 = vst [vmem:[%s10283_s30 + $0x1a0] sm:$0xff] %v1321_v52  ;;  %1324 = vst [vmem:[%s10283_s30 + $0x1a8] sm:$0xff] %v1323_v53  ;;  %v1325_v54 = vld [vmem:[%s10278_s29 + $0x360] sm:$0xff]  ;;  %v1327_v55 = vld [vmem:[%s10278_s29 + $0x370] sm:$0xff] }
  0x31   : > { %v1329_v56 = vld [vmem:[%s10278_s29 + $0x380] sm:$0xff]  ;;  %1326 = vst [vmem:[%s10283_s30 + $0x1b0] sm:$0xff] %v1325_v54  ;;  %1328 = vst [vmem:[%s10283_s30 + $0x1b8] sm:$0xff] %v1327_v55  ;;  %v1331_v57 = vld [vmem:[%s10278_s29 + $0x390] sm:$0xff] }
  0x32   : > { %1330 = vst [vmem:[%s10283_s30 + $0x1c0] sm:$0xff] %v1329_v56  ;;  %v1333_v58 = vld [vmem:[%s10278_s29 + $0x3a0] sm:$0xff]  ;;  %v1335_v59 = vld [vmem:[%s10278_s29 + $0x3b0] sm:$0xff]  ;;  %1332 = vst [vmem:[%s10283_s30 + $0x1c8] sm:$0xff] %v1331_v57 }
  0x33   : > { %1334 = vst [vmem:[%s10283_s30 + $0x1d0] sm:$0xff] %v1333_v58  ;;  %1336 = vst [vmem:[%s10283_s30 + $0x1d8] sm:$0xff] %v1335_v59  ;;  %v1337_v60 = vld [vmem:[%s10278_s29 + $0x3c0] sm:$0xff]  ;;  %v1339_v61 = vld [vmem:[%s10278_s29 + $0x3d0] sm:$0xff] }
  0x34   : > { %v1341_v62 = vld [vmem:[%s10278_s29 + $0x3e0] sm:$0xff]  ;;  %1338 = vst [vmem:[%s10283_s30 + $0x1e0] sm:$0xff] %v1337_v60  ;;  %1340 = vst [vmem:[%s10283_s30 + $0x1e8] sm:$0xff] %v1339_v61  ;;  %v1343_v63 = vld [vmem:[%s10278_s29 + $0x3f0] sm:$0xff] }
  0x35   : > { %1342 = vst [vmem:[%s10283_s30 + $0x1f0] sm:$0xff] %v1341_v62  ;;  %v1345_v0 = vld [vmem:[%s10278_s29 + $0x400] sm:$0xff]  ;;  %v1347_v1 = vld [vmem:[%s10278_s29 + $0x410] sm:$0xff]  ;;  %1344 = vst [vmem:[%s10283_s30 + $0x1f8] sm:$0xff] %v1343_v63 }
  0x36   : > { %1346 = vst [vmem:[%s10283_s30 + $0x200] sm:$0xff] %v1345_v0  ;;  %1348 = vst [vmem:[%s10283_s30 + $0x208] sm:$0xff] %v1347_v1  ;;  %v1349_v2 = vld [vmem:[%s10278_s29 + $0x420] sm:$0xff]  ;;  %v1351_v3 = vld [vmem:[%s10278_s29 + $0x430] sm:$0xff] }
  0x37   : > { %v1353_v4 = vld [vmem:[%s10278_s29 + $0x440] sm:$0xff]  ;;  %1350 = vst [vmem:[%s10283_s30 + $0x210] sm:$0xff] %v1349_v2  ;;  %1352 = vst [vmem:[%s10283_s30 + $0x218] sm:$0xff] %v1351_v3  ;;  %v1355_v5 = vld [vmem:[%s10278_s29 + $0x450] sm:$0xff] }
  0x38   : > { %1354 = vst [vmem:[%s10283_s30 + $0x220] sm:$0xff] %v1353_v4  ;;  %v1357_v6 = vld [vmem:[%s10278_s29 + $0x460] sm:$0xff]  ;;  %v1359_v7 = vld [vmem:[%s10278_s29 + $0x470] sm:$0xff]  ;;  %1356 = vst [vmem:[%s10283_s30 + $0x228] sm:$0xff] %v1355_v5 }
  0x39   : > { %1358 = vst [vmem:[%s10283_s30 + $0x230] sm:$0xff] %v1357_v6  ;;  %1360 = vst [vmem:[%s10283_s30 + $0x238] sm:$0xff] %v1359_v7  ;;  %v1361_v8 = vld [vmem:[%s10278_s29 + $0x480] sm:$0xff]  ;;  %v1363_v9 = vld [vmem:[%s10278_s29 + $0x490] sm:$0xff] }
  0x3a   : > { %v1365_v10 = vld [vmem:[%s10278_s29 + $0x4a0] sm:$0xff]  ;;  %1362 = vst [vmem:[%s10283_s30 + $0x240] sm:$0xff] %v1361_v8  ;;  %1364 = vst [vmem:[%s10283_s30 + $0x248] sm:$0xff] %v1363_v9  ;;  %v1367_v11 = vld [vmem:[%s10278_s29 + $0x4b0] sm:$0xff] }
  0x3b   : > { %1366 = vst [vmem:[%s10283_s30 + $0x250] sm:$0xff] %v1365_v10  ;;  %v1369_v12 = vld [vmem:[%s10278_s29 + $0x4c0] sm:$0xff]  ;;  %v1371_v13 = vld [vmem:[%s10278_s29 + $0x4d0] sm:$0xff]  ;;  %1368 = vst [vmem:[%s10283_s30 + $0x258] sm:$0xff] %v1367_v11 }
  0x3c   : > { %1370 = vst [vmem:[%s10283_s30 + $0x260] sm:$0xff] %v1369_v12  ;;  %1372 = vst [vmem:[%s10283_s30 + $0x268] sm:$0xff] %v1371_v13  ;;  %v1373_v14 = vld [vmem:[%s10278_s29 + $0x4e0] sm:$0xff]  ;;  %v1375_v15 = vld [vmem:[%s10278_s29 + $0x4f0] sm:$0xff] }
  0x3d   : > { %v1377_v16 = vld [vmem:[%s10278_s29 + $0x500] sm:$0xff]  ;;  %1374 = vst [vmem:[%s10283_s30 + $0x270] sm:$0xff] %v1373_v14  ;;  %1376 = vst [vmem:[%s10283_s30 + $0x278] sm:$0xff] %v1375_v15  ;;  %v1379_v17 = vld [vmem:[%s10278_s29 + $0x510] sm:$0xff] }
  0x3e   : > { %1378 = vst [vmem:[%s10283_s30 + $0x280] sm:$0xff] %v1377_v16  ;;  %v1381_v18 = vld [vmem:[%s10278_s29 + $0x520] sm:$0xff]  ;;  %v1383_v19 = vld [vmem:[%s10278_s29 + $0x530] sm:$0xff]  ;;  %1380 = vst [vmem:[%s10283_s30 + $0x288] sm:$0xff] %v1379_v17 }
  0x3f   : > { %1382 = vst [vmem:[%s10283_s30 + $0x290] sm:$0xff] %v1381_v18  ;;  %1384 = vst [vmem:[%s10283_s30 + $0x298] sm:$0xff] %v1383_v19  ;;  %v1385_v20 = vld [vmem:[%s10278_s29 + $0x540] sm:$0xff]  ;;  %v1387_v21 = vld [vmem:[%s10278_s29 + $0x550] sm:$0xff] }
  0x40   : > { %v1389_v22 = vld [vmem:[%s10278_s29 + $0x560] sm:$0xff]  ;;  %1386 = vst [vmem:[%s10283_s30 + $0x2a0] sm:$0xff] %v1385_v20  ;;  %1388 = vst [vmem:[%s10283_s30 + $0x2a8] sm:$0xff] %v1387_v21  ;;  %v1391_v23 = vld [vmem:[%s10278_s29 + $0x570] sm:$0xff] }
  0x41   : > { %1390 = vst [vmem:[%s10283_s30 + $0x2b0] sm:$0xff] %v1389_v22  ;;  %v1393_v24 = vld [vmem:[%s10278_s29 + $0x580] sm:$0xff]  ;;  %v1395_v25 = vld [vmem:[%s10278_s29 + $0x590] sm:$0xff]  ;;  %1392 = vst [vmem:[%s10283_s30 + $0x2b8] sm:$0xff] %v1391_v23 }
  0x42   : > { %1394 = vst [vmem:[%s10283_s30 + $0x2c0] sm:$0xff] %v1393_v24  ;;  %1396 = vst [vmem:[%s10283_s30 + $0x2c8] sm:$0xff] %v1395_v25  ;;  %v1397_v26 = vld [vmem:[%s10278_s29 + $0x5a0] sm:$0xff]  ;;  %v1399_v27 = vld [vmem:[%s10278_s29 + $0x5b0] sm:$0xff] }
  0x43   : > { %v1401_v28 = vld [vmem:[%s10278_s29 + $0x5c0] sm:$0xff]  ;;  %1398 = vst [vmem:[%s10283_s30 + $0x2d0] sm:$0xff] %v1397_v26  ;;  %1400 = vst [vmem:[%s10283_s30 + $0x2d8] sm:$0xff] %v1399_v27  ;;  %v1403_v29 = vld [vmem:[%s10278_s29 + $0x5d0] sm:$0xff] }
  0x44   : > { %1402 = vst [vmem:[%s10283_s30 + $0x2e0] sm:$0xff] %v1401_v28  ;;  %v1405_v30 = vld [vmem:[%s10278_s29 + $0x5e0] sm:$0xff]  ;;  %v1407_v31 = vld [vmem:[%s10278_s29 + $0x5f0] sm:$0xff]  ;;  %1404 = vst [vmem:[%s10283_s30 + $0x2e8] sm:$0xff] %v1403_v29 }
  0x45   : > { %1406 = vst [vmem:[%s10283_s30 + $0x2f0] sm:$0xff] %v1405_v30  ;;  %1408 = vst [vmem:[%s10283_s30 + $0x2f8] sm:$0xff] %v1407_v31  ;;  %v1409_v32 = vld [vmem:[%s10278_s29 + $0x600] sm:$0xff]  ;;  %v1411_v33 = vld [vmem:[%s10278_s29 + $0x610] sm:$0xff] }
  0x46   : > { %v1413_v34 = vld [vmem:[%s10278_s29 + $0x620] sm:$0xff]  ;;  %1410 = vst [vmem:[%s10283_s30 + $0x300] sm:$0xff] %v1409_v32  ;;  %1412 = vst [vmem:[%s10283_s30 + $0x308] sm:$0xff] %v1411_v33  ;;  %v1415_v35 = vld [vmem:[%s10278_s29 + $0x630] sm:$0xff] }
  0x47   : > { %1414 = vst [vmem:[%s10283_s30 + $0x310] sm:$0xff] %v1413_v34  ;;  %v1417_v36 = vld [vmem:[%s10278_s29 + $0x640] sm:$0xff]  ;;  %v1419_v37 = vld [vmem:[%s10278_s29 + $0x650] sm:$0xff]  ;;  %1416 = vst [vmem:[%s10283_s30 + $0x318] sm:$0xff] %v1415_v35 }
  0x48   : > { %1418 = vst [vmem:[%s10283_s30 + $0x320] sm:$0xff] %v1417_v36  ;;  %1420 = vst [vmem:[%s10283_s30 + $0x328] sm:$0xff] %v1419_v37  ;;  %v1421_v38 = vld [vmem:[%s10278_s29 + $0x660] sm:$0xff]  ;;  %v1423_v39 = vld [vmem:[%s10278_s29 + $0x670] sm:$0xff] }
  0x49   : > { %v1425_v40 = vld [vmem:[%s10278_s29 + $0x680] sm:$0xff]  ;;  %1422 = vst [vmem:[%s10283_s30 + $0x330] sm:$0xff] %v1421_v38  ;;  %1424 = vst [vmem:[%s10283_s30 + $0x338] sm:$0xff] %v1423_v39  ;;  %v1427_v41 = vld [vmem:[%s10278_s29 + $0x690] sm:$0xff] }
  0x4a   : > { %1426 = vst [vmem:[%s10283_s30 + $0x340] sm:$0xff] %v1425_v40  ;;  %v1429_v42 = vld [vmem:[%s10278_s29 + $0x6a0] sm:$0xff]  ;;  %v1431_v43 = vld [vmem:[%s10278_s29 + $0x6b0] sm:$0xff]  ;;  %1428 = vst [vmem:[%s10283_s30 + $0x348] sm:$0xff] %v1427_v41 }
  0x4b   : > { %1430 = vst [vmem:[%s10283_s30 + $0x350] sm:$0xff] %v1429_v42  ;;  %1432 = vst [vmem:[%s10283_s30 + $0x358] sm:$0xff] %v1431_v43  ;;  %v1433_v44 = vld [vmem:[%s10278_s29 + $0x6c0] sm:$0xff]  ;;  %v1435_v45 = vld [vmem:[%s10278_s29 + $0x6d0] sm:$0xff] }
  0x4c   : > { %v1437_v46 = vld [vmem:[%s10278_s29 + $0x6e0] sm:$0xff]  ;;  %1434 = vst [vmem:[%s10283_s30 + $0x360] sm:$0xff] %v1433_v44  ;;  %1436 = vst [vmem:[%s10283_s30 + $0x368] sm:$0xff] %v1435_v45  ;;  %v1439_v47 = vld [vmem:[%s10278_s29 + $0x6f0] sm:$0xff] }
  0x4d   : > { %1438 = vst [vmem:[%s10283_s30 + $0x370] sm:$0xff] %v1437_v46  ;;  %v1441_v48 = vld [vmem:[%s10278_s29 + $0x700] sm:$0xff]  ;;  %v1443_v49 = vld [vmem:[%s10278_s29 + $0x710] sm:$0xff]  ;;  %1440 = vst [vmem:[%s10283_s30 + $0x378] sm:$0xff] %v1439_v47 }
  0x4e   : > { %1442 = vst [vmem:[%s10283_s30 + $0x380] sm:$0xff] %v1441_v48  ;;  %1444 = vst [vmem:[%s10283_s30 + $0x388] sm:$0xff] %v1443_v49  ;;  %v1445_v50 = vld [vmem:[%s10278_s29 + $0x720] sm:$0xff]  ;;  %v1447_v51 = vld [vmem:[%s10278_s29 + $0x730] sm:$0xff] }
  0x4f   : > { %v1449_v52 = vld [vmem:[%s10278_s29 + $0x740] sm:$0xff]  ;;  %1446 = vst [vmem:[%s10283_s30 + $0x390] sm:$0xff] %v1445_v50  ;;  %1448 = vst [vmem:[%s10283_s30 + $0x398] sm:$0xff] %v1447_v51  ;;  %v1451_v53 = vld [vmem:[%s10278_s29 + $0x750] sm:$0xff] }
  0x50   : > { %1450 = vst [vmem:[%s10283_s30 + $0x3a0] sm:$0xff] %v1449_v52  ;;  %v1453_v54 = vld [vmem:[%s10278_s29 + $0x760] sm:$0xff]  ;;  %v1455_v55 = vld [vmem:[%s10278_s29 + $0x770] sm:$0xff]  ;;  %1452 = vst [vmem:[%s10283_s30 + $0x3a8] sm:$0xff] %v1451_v53 }
  0x51   : > { %1454 = vst [vmem:[%s10283_s30 + $0x3b0] sm:$0xff] %v1453_v54  ;;  %1456 = vst [vmem:[%s10283_s30 + $0x3b8] sm:$0xff] %v1455_v55  ;;  %v1457_v56 = vld [vmem:[%s10278_s29 + $0x780] sm:$0xff]  ;;  %v1459_v57 = vld [vmem:[%s10278_s29 + $0x790] sm:$0xff] }
  0x52   : > { %v1461_v58 = vld [vmem:[%s10278_s29 + $0x7a0] sm:$0xff]  ;;  %1458 = vst [vmem:[%s10283_s30 + $0x3c0] sm:$0xff] %v1457_v56  ;;  %1460 = vst [vmem:[%s10283_s30 + $0x3c8] sm:$0xff] %v1459_v57  ;;  %v1463_v59 = vld [vmem:[%s10278_s29 + $0x7b0] sm:$0xff] }
  0x53   : > { %1462 = vst [vmem:[%s10283_s30 + $0x3d0] sm:$0xff] %v1461_v58  ;;  %v1465_v60 = vld [vmem:[%s10278_s29 + $0x7c0] sm:$0xff]  ;;  %v1467_v61 = vld [vmem:[%s10278_s29 + $0x7d0] sm:$0xff]  ;;  %1464 = vst [vmem:[%s10283_s30 + $0x3d8] sm:$0xff] %v1463_v59 }
  0x54   : > { %1466 = vst [vmem:[%s10283_s30 + $0x3e0] sm:$0xff] %v1465_v60  ;;  %1468 = vst [vmem:[%s10283_s30 + $0x3e8] sm:$0xff] %v1467_v61  ;;  %v1469_v62 = vld [vmem:[%s10278_s29 + $0x7e0] sm:$0xff]  ;;  %v1471_v63 = vld [vmem:[%s10278_s29 + $0x7f0] sm:$0xff] }
  0x55   : > { %v1473_v0 = vld [vmem:[%s10278_s29 + $0x800] sm:$0xff]  ;;  %1470 = vst [vmem:[%s10283_s30 + $0x3f0] sm:$0xff] %v1469_v62  ;;  %1472 = vst [vmem:[%s10283_s30 + $0x3f8] sm:$0xff] %v1471_v63  ;;  %v1475_v1 = vld [vmem:[%s10278_s29 + $0x810] sm:$0xff] }
  0x56   : > { %1474 = vst [vmem:[%s10283_s30 + $0x400] sm:$0xff] %v1473_v0  ;;  %v1477_v2 = vld [vmem:[%s10278_s29 + $0x820] sm:$0xff]  ;;  %v1479_v3 = vld [vmem:[%s10278_s29 + $0x830] sm:$0xff]  ;;  %1476 = vst [vmem:[%s10283_s30 + $0x408] sm:$0xff] %v1475_v1 }
  0x57   : > { %1478 = vst [vmem:[%s10283_s30 + $0x410] sm:$0xff] %v1477_v2  ;;  %1480 = vst [vmem:[%s10283_s30 + $0x418] sm:$0xff] %v1479_v3  ;;  %v1481_v4 = vld [vmem:[%s10278_s29 + $0x840] sm:$0xff]  ;;  %v1483_v5 = vld [vmem:[%s10278_s29 + $0x850] sm:$0xff] }
  0x58   : > { %v1485_v6 = vld [vmem:[%s10278_s29 + $0x860] sm:$0xff]  ;;  %1482 = vst [vmem:[%s10283_s30 + $0x420] sm:$0xff] %v1481_v4  ;;  %1484 = vst [vmem:[%s10283_s30 + $0x428] sm:$0xff] %v1483_v5  ;;  %v1487_v7 = vld [vmem:[%s10278_s29 + $0x870] sm:$0xff] }
  0x59   : > { %1486 = vst [vmem:[%s10283_s30 + $0x430] sm:$0xff] %v1485_v6  ;;  %v1489_v8 = vld [vmem:[%s10278_s29 + $0x880] sm:$0xff]  ;;  %v1491_v9 = vld [vmem:[%s10278_s29 + $0x890] sm:$0xff]  ;;  %1488 = vst [vmem:[%s10283_s30 + $0x438] sm:$0xff] %v1487_v7 }
  0x5a   : > { %1490 = vst [vmem:[%s10283_s30 + $0x440] sm:$0xff] %v1489_v8  ;;  %1492 = vst [vmem:[%s10283_s30 + $0x448] sm:$0xff] %v1491_v9  ;;  %v1493_v10 = vld [vmem:[%s10278_s29 + $0x8a0] sm:$0xff]  ;;  %v1495_v11 = vld [vmem:[%s10278_s29 + $0x8b0] sm:$0xff] }
  0x5b   : > { %v1497_v12 = vld [vmem:[%s10278_s29 + $0x8c0] sm:$0xff]  ;;  %1494 = vst [vmem:[%s10283_s30 + $0x450] sm:$0xff] %v1493_v10  ;;  %1496 = vst [vmem:[%s10283_s30 + $0x458] sm:$0xff] %v1495_v11  ;;  %v1499_v13 = vld [vmem:[%s10278_s29 + $0x8d0] sm:$0xff] }
  0x5c   : > { %1498 = vst [vmem:[%s10283_s30 + $0x460] sm:$0xff] %v1497_v12  ;;  %v1501_v14 = vld [vmem:[%s10278_s29 + $0x8e0] sm:$0xff]  ;;  %v1503_v15 = vld [vmem:[%s10278_s29 + $0x8f0] sm:$0xff]  ;;  %1500 = vst [vmem:[%s10283_s30 + $0x468] sm:$0xff] %v1499_v13 }
  0x5d   : > { %1502 = vst [vmem:[%s10283_s30 + $0x470] sm:$0xff] %v1501_v14  ;;  %1504 = vst [vmem:[%s10283_s30 + $0x478] sm:$0xff] %v1503_v15  ;;  %v1505_v16 = vld [vmem:[%s10278_s29 + $0x900] sm:$0xff]  ;;  %v1507_v17 = vld [vmem:[%s10278_s29 + $0x910] sm:$0xff] }
  0x5e   : > { %v1509_v18 = vld [vmem:[%s10278_s29 + $0x920] sm:$0xff]  ;;  %1506 = vst [vmem:[%s10283_s30 + $0x480] sm:$0xff] %v1505_v16  ;;  %1508 = vst [vmem:[%s10283_s30 + $0x488] sm:$0xff] %v1507_v17  ;;  %v1511_v19 = vld [vmem:[%s10278_s29 + $0x930] sm:$0xff] }
  0x5f   : > { %1510 = vst [vmem:[%s10283_s30 + $0x490] sm:$0xff] %v1509_v18  ;;  %v1513_v20 = vld [vmem:[%s10278_s29 + $0x940] sm:$0xff]  ;;  %v1515_v21 = vld [vmem:[%s10278_s29 + $0x950] sm:$0xff]  ;;  %1512 = vst [vmem:[%s10283_s30 + $0x498] sm:$0xff] %v1511_v19 }
  0x60   : > { %1514 = vst [vmem:[%s10283_s30 + $0x4a0] sm:$0xff] %v1513_v20  ;;  %1516 = vst [vmem:[%s10283_s30 + $0x4a8] sm:$0xff] %v1515_v21  ;;  %v1517_v22 = vld [vmem:[%s10278_s29 + $0x960] sm:$0xff]  ;;  %v1519_v23 = vld [vmem:[%s10278_s29 + $0x970] sm:$0xff] }
  0x61   : > { %v1521_v24 = vld [vmem:[%s10278_s29 + $0x980] sm:$0xff]  ;;  %1518 = vst [vmem:[%s10283_s30 + $0x4b0] sm:$0xff] %v1517_v22  ;;  %1520 = vst [vmem:[%s10283_s30 + $0x4b8] sm:$0xff] %v1519_v23  ;;  %v1523_v25 = vld [vmem:[%s10278_s29 + $0x990] sm:$0xff] }
  0x62   : > { %1522 = vst [vmem:[%s10283_s30 + $0x4c0] sm:$0xff] %v1521_v24  ;;  %v1525_v26 = vld [vmem:[%s10278_s29 + $0x9a0] sm:$0xff]  ;;  %v1527_v27 = vld [vmem:[%s10278_s29 + $0x9b0] sm:$0xff]  ;;  %1524 = vst [vmem:[%s10283_s30 + $0x4c8] sm:$0xff] %v1523_v25 }
  0x63   : > { %1526 = vst [vmem:[%s10283_s30 + $0x4d0] sm:$0xff] %v1525_v26  ;;  %1528 = vst [vmem:[%s10283_s30 + $0x4d8] sm:$0xff] %v1527_v27  ;;  %v1529_v28 = vld [vmem:[%s10278_s29 + $0x9c0] sm:$0xff]  ;;  %v1531_v29 = vld [vmem:[%s10278_s29 + $0x9d0] sm:$0xff] }
  0x64   : > { %v1533_v30 = vld [vmem:[%s10278_s29 + $0x9e0] sm:$0xff]  ;;  %1530 = vst [vmem:[%s10283_s30 + $0x4e0] sm:$0xff] %v1529_v28  ;;  %1532 = vst [vmem:[%s10283_s30 + $0x4e8] sm:$0xff] %v1531_v29  ;;  %v1535_v31 = vld [vmem:[%s10278_s29 + $0x9f0] sm:$0xff] }
  0x65   : > { %1534 = vst [vmem:[%s10283_s30 + $0x4f0] sm:$0xff] %v1533_v30  ;;  %v1537_v32 = vld [vmem:[%s10278_s29 + $0xa00] sm:$0xff]  ;;  %v1539_v33 = vld [vmem:[%s10278_s29 + $0xa10] sm:$0xff]  ;;  %1536 = vst [vmem:[%s10283_s30 + $0x4f8] sm:$0xff] %v1535_v31 }
  0x66   : > { %1538 = vst [vmem:[%s10283_s30 + $0x500] sm:$0xff] %v1537_v32  ;;  %1540 = vst [vmem:[%s10283_s30 + $0x508] sm:$0xff] %v1539_v33  ;;  %v1541_v34 = vld [vmem:[%s10278_s29 + $0xa20] sm:$0xff]  ;;  %v1543_v35 = vld [vmem:[%s10278_s29 + $0xa30] sm:$0xff] }
  0x67   : > { %v1545_v36 = vld [vmem:[%s10278_s29 + $0xa40] sm:$0xff]  ;;  %1542 = vst [vmem:[%s10283_s30 + $0x510] sm:$0xff] %v1541_v34  ;;  %1544 = vst [vmem:[%s10283_s30 + $0x518] sm:$0xff] %v1543_v35  ;;  %v1547_v37 = vld [vmem:[%s10278_s29 + $0xa50] sm:$0xff] }
  0x68   : > { %1546 = vst [vmem:[%s10283_s30 + $0x520] sm:$0xff] %v1545_v36  ;;  %v1549_v38 = vld [vmem:[%s10278_s29 + $0xa60] sm:$0xff]  ;;  %v1551_v39 = vld [vmem:[%s10278_s29 + $0xa70] sm:$0xff]  ;;  %1548 = vst [vmem:[%s10283_s30 + $0x528] sm:$0xff] %v1547_v37 }
  0x69   : > { %1550 = vst [vmem:[%s10283_s30 + $0x530] sm:$0xff] %v1549_v38  ;;  %1552 = vst [vmem:[%s10283_s30 + $0x538] sm:$0xff] %v1551_v39  ;;  %v1553_v40 = vld [vmem:[%s10278_s29 + $0xa80] sm:$0xff]  ;;  %v1555_v41 = vld [vmem:[%s10278_s29 + $0xa90] sm:$0xff] }
  0x6a   : > { %v1557_v42 = vld [vmem:[%s10278_s29 + $0xaa0] sm:$0xff]  ;;  %1554 = vst [vmem:[%s10283_s30 + $0x540] sm:$0xff] %v1553_v40  ;;  %1556 = vst [vmem:[%s10283_s30 + $0x548] sm:$0xff] %v1555_v41  ;;  %v1559_v43 = vld [vmem:[%s10278_s29 + $0xab0] sm:$0xff] }
  0x6b   : > { %1558 = vst [vmem:[%s10283_s30 + $0x550] sm:$0xff] %v1557_v42  ;;  %v1561_v44 = vld [vmem:[%s10278_s29 + $0xac0] sm:$0xff]  ;;  %v1563_v45 = vld [vmem:[%s10278_s29 + $0xad0] sm:$0xff]  ;;  %1560 = vst [vmem:[%s10283_s30 + $0x558] sm:$0xff] %v1559_v43 }
  0x6c   : > { %1562 = vst [vmem:[%s10283_s30 + $0x560] sm:$0xff] %v1561_v44  ;;  %1564 = vst [vmem:[%s10283_s30 + $0x568] sm:$0xff] %v1563_v45  ;;  %v1565_v46 = vld [vmem:[%s10278_s29 + $0xae0] sm:$0xff]  ;;  %v1567_v47 = vld [vmem:[%s10278_s29 + $0xaf0] sm:$0xff] }
  0x6d   : > { %v1569_v48 = vld [vmem:[%s10278_s29 + $0xb00] sm:$0xff]  ;;  %1566 = vst [vmem:[%s10283_s30 + $0x570] sm:$0xff] %v1565_v46  ;;  %1568 = vst [vmem:[%s10283_s30 + $0x578] sm:$0xff] %v1567_v47  ;;  %v1571_v49 = vld [vmem:[%s10278_s29 + $0xb10] sm:$0xff] }
  0x6e   : > { %1570 = vst [vmem:[%s10283_s30 + $0x580] sm:$0xff] %v1569_v48  ;;  %v1573_v50 = vld [vmem:[%s10278_s29 + $0xb20] sm:$0xff]  ;;  %v1575_v51 = vld [vmem:[%s10278_s29 + $0xb30] sm:$0xff]  ;;  %1572 = vst [vmem:[%s10283_s30 + $0x588] sm:$0xff] %v1571_v49 }
  0x6f   : > { %1574 = vst [vmem:[%s10283_s30 + $0x590] sm:$0xff] %v1573_v50  ;;  %1576 = vst [vmem:[%s10283_s30 + $0x598] sm:$0xff] %v1575_v51  ;;  %v1577_v52 = vld [vmem:[%s10278_s29 + $0xb40] sm:$0xff]  ;;  %v1579_v53 = vld [vmem:[%s10278_s29 + $0xb50] sm:$0xff] }
  0x70   : > { %v1581_v54 = vld [vmem:[%s10278_s29 + $0xb60] sm:$0xff]  ;;  %1578 = vst [vmem:[%s10283_s30 + $0x5a0] sm:$0xff] %v1577_v52  ;;  %1580 = vst [vmem:[%s10283_s30 + $0x5a8] sm:$0xff] %v1579_v53  ;;  %v1583_v55 = vld [vmem:[%s10278_s29 + $0xb70] sm:$0xff] }
  0x71   : > { %1582 = vst [vmem:[%s10283_s30 + $0x5b0] sm:$0xff] %v1581_v54  ;;  %v1585_v56 = vld [vmem:[%s10278_s29 + $0xb80] sm:$0xff]  ;;  %v1587_v57 = vld [vmem:[%s10278_s29 + $0xb90] sm:$0xff]  ;;  %1584 = vst [vmem:[%s10283_s30 + $0x5b8] sm:$0xff] %v1583_v55 }
  0x72   : > { %1586 = vst [vmem:[%s10283_s30 + $0x5c0] sm:$0xff] %v1585_v56  ;;  %1588 = vst [vmem:[%s10283_s30 + $0x5c8] sm:$0xff] %v1587_v57  ;;  %v1589_v58 = vld [vmem:[%s10278_s29 + $0xba0] sm:$0xff]  ;;  %v1591_v59 = vld [vmem:[%s10278_s29 + $0xbb0] sm:$0xff] }
  0x73   : > { %v1593_v60 = vld [vmem:[%s10278_s29 + $0xbc0] sm:$0xff]  ;;  %1590 = vst [vmem:[%s10283_s30 + $0x5d0] sm:$0xff] %v1589_v58  ;;  %1592 = vst [vmem:[%s10283_s30 + $0x5d8] sm:$0xff] %v1591_v59  ;;  %v1595_v61 = vld [vmem:[%s10278_s29 + $0xbd0] sm:$0xff] }
  0x74   : > { %1594 = vst [vmem:[%s10283_s30 + $0x5e0] sm:$0xff] %v1593_v60  ;;  %v1597_v62 = vld [vmem:[%s10278_s29 + $0xbe0] sm:$0xff]  ;;  %v1599_v63 = vld [vmem:[%s10278_s29 + $0xbf0] sm:$0xff]  ;;  %1596 = vst [vmem:[%s10283_s30 + $0x5e8] sm:$0xff] %v1595_v61 }
  0x75   : > { %1598 = vst [vmem:[%s10283_s30 + $0x5f0] sm:$0xff] %v1597_v62  ;;  %1600 = vst [vmem:[%s10283_s30 + $0x5f8] sm:$0xff] %v1599_v63  ;;  %v1601_v0 = vld [vmem:[%s10278_s29 + $0xc00] sm:$0xff]  ;;  %v1603_v1 = vld [vmem:[%s10278_s29 + $0xc10] sm:$0xff] }
  0x76   : > { %v1605_v2 = vld [vmem:[%s10278_s29 + $0xc20] sm:$0xff]  ;;  %1602 = vst [vmem:[%s10283_s30 + $0x600] sm:$0xff] %v1601_v0  ;;  %1604 = vst [vmem:[%s10283_s30 + $0x608] sm:$0xff] %v1603_v1  ;;  %v1607_v3 = vld [vmem:[%s10278_s29 + $0xc30] sm:$0xff] }
  0x77   : > { %1606 = vst [vmem:[%s10283_s30 + $0x610] sm:$0xff] %v1605_v2  ;;  %v1609_v4 = vld [vmem:[%s10278_s29 + $0xc40] sm:$0xff]  ;;  %v1611_v5 = vld [vmem:[%s10278_s29 + $0xc50] sm:$0xff]  ;;  %1608 = vst [vmem:[%s10283_s30 + $0x618] sm:$0xff] %v1607_v3 }
  0x78   : > { %1610 = vst [vmem:[%s10283_s30 + $0x620] sm:$0xff] %v1609_v4  ;;  %1612 = vst [vmem:[%s10283_s30 + $0x628] sm:$0xff] %v1611_v5  ;;  %v1613_v6 = vld [vmem:[%s10278_s29 + $0xc60] sm:$0xff]  ;;  %v1615_v7 = vld [vmem:[%s10278_s29 + $0xc70] sm:$0xff] }
  0x79   : > { %v1617_v8 = vld [vmem:[%s10278_s29 + $0xc80] sm:$0xff]  ;;  %1614 = vst [vmem:[%s10283_s30 + $0x630] sm:$0xff] %v1613_v6  ;;  %1616 = vst [vmem:[%s10283_s30 + $0x638] sm:$0xff] %v1615_v7  ;;  %v1619_v9 = vld [vmem:[%s10278_s29 + $0xc90] sm:$0xff] }
  0x7a   : > { %1618 = vst [vmem:[%s10283_s30 + $0x640] sm:$0xff] %v1617_v8  ;;  %v1621_v10 = vld [vmem:[%s10278_s29 + $0xca0] sm:$0xff]  ;;  %v1623_v11 = vld [vmem:[%s10278_s29 + $0xcb0] sm:$0xff]  ;;  %1620 = vst [vmem:[%s10283_s30 + $0x648] sm:$0xff] %v1619_v9 }
  0x7b   : > { %1622 = vst [vmem:[%s10283_s30 + $0x650] sm:$0xff] %v1621_v10  ;;  %1624 = vst [vmem:[%s10283_s30 + $0x658] sm:$0xff] %v1623_v11  ;;  %v1625_v12 = vld [vmem:[%s10278_s29 + $0xcc0] sm:$0xff]  ;;  %v1627_v13 = vld [vmem:[%s10278_s29 + $0xcd0] sm:$0xff] }
  0x7c   : > { %v1629_v14 = vld [vmem:[%s10278_s29 + $0xce0] sm:$0xff]  ;;  %1626 = vst [vmem:[%s10283_s30 + $0x660] sm:$0xff] %v1625_v12  ;;  %1628 = vst [vmem:[%s10283_s30 + $0x668] sm:$0xff] %v1627_v13  ;;  %v1631_v15 = vld [vmem:[%s10278_s29 + $0xcf0] sm:$0xff] }
  0x7d   : > { %1630 = vst [vmem:[%s10283_s30 + $0x670] sm:$0xff] %v1629_v14  ;;  %v1633_v16 = vld [vmem:[%s10278_s29 + $0xd00] sm:$0xff]  ;;  %v1635_v17 = vld [vmem:[%s10278_s29 + $0xd10] sm:$0xff]  ;;  %1632 = vst [vmem:[%s10283_s30 + $0x678] sm:$0xff] %v1631_v15 }
  0x7e   : > { %1634 = vst [vmem:[%s10283_s30 + $0x680] sm:$0xff] %v1633_v16  ;;  %1636 = vst [vmem:[%s10283_s30 + $0x688] sm:$0xff] %v1635_v17  ;;  %v1637_v18 = vld [vmem:[%s10278_s29 + $0xd20] sm:$0xff]  ;;  %v1639_v19 = vld [vmem:[%s10278_s29 + $0xd30] sm:$0xff] }
  0x7f   : > { %v1641_v20 = vld [vmem:[%s10278_s29 + $0xd40] sm:$0xff]  ;;  %1638 = vst [vmem:[%s10283_s30 + $0x690] sm:$0xff] %v1637_v18  ;;  %1640 = vst [vmem:[%s10283_s30 + $0x698] sm:$0xff] %v1639_v19  ;;  %v1643_v21 = vld [vmem:[%s10278_s29 + $0xd50] sm:$0xff] }
  0x80   : > { %1642 = vst [vmem:[%s10283_s30 + $0x6a0] sm:$0xff] %v1641_v20  ;;  %v1645_v22 = vld [vmem:[%s10278_s29 + $0xd60] sm:$0xff]  ;;  %v1647_v23 = vld [vmem:[%s10278_s29 + $0xd70] sm:$0xff]  ;;  %1644 = vst [vmem:[%s10283_s30 + $0x6a8] sm:$0xff] %v1643_v21 }
  0x81   : > { %1646 = vst [vmem:[%s10283_s30 + $0x6b0] sm:$0xff] %v1645_v22  ;;  %1648 = vst [vmem:[%s10283_s30 + $0x6b8] sm:$0xff] %v1647_v23  ;;  %v1649_v24 = vld [vmem:[%s10278_s29 + $0xd80] sm:$0xff]  ;;  %v1651_v25 = vld [vmem:[%s10278_s29 + $0xd90] sm:$0xff] }
  0x82   : > { %v1653_v26 = vld [vmem:[%s10278_s29 + $0xda0] sm:$0xff]  ;;  %1650 = vst [vmem:[%s10283_s30 + $0x6c0] sm:$0xff] %v1649_v24  ;;  %1652 = vst [vmem:[%s10283_s30 + $0x6c8] sm:$0xff] %v1651_v25  ;;  %v1655_v27 = vld [vmem:[%s10278_s29 + $0xdb0] sm:$0xff] }
  0x83   : > { %1654 = vst [vmem:[%s10283_s30 + $0x6d0] sm:$0xff] %v1653_v26  ;;  %v1657_v28 = vld [vmem:[%s10278_s29 + $0xdc0] sm:$0xff]  ;;  %v1659_v29 = vld [vmem:[%s10278_s29 + $0xdd0] sm:$0xff]  ;;  %1656 = vst [vmem:[%s10283_s30 + $0x6d8] sm:$0xff] %v1655_v27 }
  0x84   : > { %1658 = vst [vmem:[%s10283_s30 + $0x6e0] sm:$0xff] %v1657_v28  ;;  %1660 = vst [vmem:[%s10283_s30 + $0x6e8] sm:$0xff] %v1659_v29  ;;  %v1661_v30 = vld [vmem:[%s10278_s29 + $0xde0] sm:$0xff]  ;;  %v1663_v31 = vld [vmem:[%s10278_s29 + $0xdf0] sm:$0xff] }
  0x85   : > { %v1665_v32 = vld [vmem:[%s10278_s29 + $0xe00] sm:$0xff]  ;;  %1662 = vst [vmem:[%s10283_s30 + $0x6f0] sm:$0xff] %v1661_v30  ;;  %1664 = vst [vmem:[%s10283_s30 + $0x6f8] sm:$0xff] %v1663_v31  ;;  %v1667_v33 = vld [vmem:[%s10278_s29 + $0xe10] sm:$0xff] }
  0x86   : > { %1666 = vst [vmem:[%s10283_s30 + $0x700] sm:$0xff] %v1665_v32  ;;  %v1669_v34 = vld [vmem:[%s10278_s29 + $0xe20] sm:$0xff]  ;;  %v1671_v35 = vld [vmem:[%s10278_s29 + $0xe30] sm:$0xff]  ;;  %1668 = vst [vmem:[%s10283_s30 + $0x708] sm:$0xff] %v1667_v33 }
  0x87   : > { %1670 = vst [vmem:[%s10283_s30 + $0x710] sm:$0xff] %v1669_v34  ;;  %1672 = vst [vmem:[%s10283_s30 + $0x718] sm:$0xff] %v1671_v35  ;;  %v1673_v36 = vld [vmem:[%s10278_s29 + $0xe40] sm:$0xff]  ;;  %v1675_v37 = vld [vmem:[%s10278_s29 + $0xe50] sm:$0xff] }
  0x88   : > { %v1677_v38 = vld [vmem:[%s10278_s29 + $0xe60] sm:$0xff]  ;;  %1674 = vst [vmem:[%s10283_s30 + $0x720] sm:$0xff] %v1673_v36  ;;  %1676 = vst [vmem:[%s10283_s30 + $0x728] sm:$0xff] %v1675_v37  ;;  %v1679_v39 = vld [vmem:[%s10278_s29 + $0xe70] sm:$0xff] }
  0x89   : > { %1678 = vst [vmem:[%s10283_s30 + $0x730] sm:$0xff] %v1677_v38  ;;  %v1681_v40 = vld [vmem:[%s10278_s29 + $0xe80] sm:$0xff]  ;;  %v1683_v41 = vld [vmem:[%s10278_s29 + $0xe90] sm:$0xff]  ;;  %1680 = vst [vmem:[%s10283_s30 + $0x738] sm:$0xff] %v1679_v39 }
  0x8a   : > { %1682 = vst [vmem:[%s10283_s30 + $0x740] sm:$0xff] %v1681_v40  ;;  %1684 = vst [vmem:[%s10283_s30 + $0x748] sm:$0xff] %v1683_v41  ;;  %v1685_v42 = vld [vmem:[%s10278_s29 + $0xea0] sm:$0xff]  ;;  %v1687_v43 = vld [vmem:[%s10278_s29 + $0xeb0] sm:$0xff] }
  0x8b   : > { %v1689_v44 = vld [vmem:[%s10278_s29 + $0xec0] sm:$0xff]  ;;  %1686 = vst [vmem:[%s10283_s30 + $0x750] sm:$0xff] %v1685_v42  ;;  %1688 = vst [vmem:[%s10283_s30 + $0x758] sm:$0xff] %v1687_v43  ;;  %v1691_v45 = vld [vmem:[%s10278_s29 + $0xed0] sm:$0xff] }
  0x8c   : > { %1690 = vst [vmem:[%s10283_s30 + $0x760] sm:$0xff] %v1689_v44  ;;  %v1693_v46 = vld [vmem:[%s10278_s29 + $0xee0] sm:$0xff]  ;;  %v1695_v47 = vld [vmem:[%s10278_s29 + $0xef0] sm:$0xff]  ;;  %1692 = vst [vmem:[%s10283_s30 + $0x768] sm:$0xff] %v1691_v45 }
  0x8d   : > { %1694 = vst [vmem:[%s10283_s30 + $0x770] sm:$0xff] %v1693_v46  ;;  %1696 = vst [vmem:[%s10283_s30 + $0x778] sm:$0xff] %v1695_v47  ;;  %v1697_v48 = vld [vmem:[%s10278_s29 + $0xf00] sm:$0xff]  ;;  %v1699_v49 = vld [vmem:[%s10278_s29 + $0xf10] sm:$0xff] }
  0x8e   : > { %v1701_v50 = vld [vmem:[%s10278_s29 + $0xf20] sm:$0xff]  ;;  %1698 = vst [vmem:[%s10283_s30 + $0x780] sm:$0xff] %v1697_v48  ;;  %1700 = vst [vmem:[%s10283_s30 + $0x788] sm:$0xff] %v1699_v49  ;;  %v1703_v51 = vld [vmem:[%s10278_s29 + $0xf30] sm:$0xff] }
  0x8f   : > { %1702 = vst [vmem:[%s10283_s30 + $0x790] sm:$0xff] %v1701_v50  ;;  %v1705_v52 = vld [vmem:[%s10278_s29 + $0xf40] sm:$0xff]  ;;  %v1707_v53 = vld [vmem:[%s10278_s29 + $0xf50] sm:$0xff]  ;;  %1704 = vst [vmem:[%s10283_s30 + $0x798] sm:$0xff] %v1703_v51 }
  0x90   : > { %1706 = vst [vmem:[%s10283_s30 + $0x7a0] sm:$0xff] %v1705_v52  ;;  %1708 = vst [vmem:[%s10283_s30 + $0x7a8] sm:$0xff] %v1707_v53  ;;  %v1709_v54 = vld [vmem:[%s10278_s29 + $0xf60] sm:$0xff]  ;;  %v1711_v55 = vld [vmem:[%s10278_s29 + $0xf70] sm:$0xff] }
  0x91   : > { %v1713_v56 = vld [vmem:[%s10278_s29 + $0xf80] sm:$0xff]  ;;  %1710 = vst [vmem:[%s10283_s30 + $0x7b0] sm:$0xff] %v1709_v54  ;;  %1712 = vst [vmem:[%s10283_s30 + $0x7b8] sm:$0xff] %v1711_v55  ;;  %v1715_v57 = vld [vmem:[%s10278_s29 + $0xf90] sm:$0xff] }
  0x92   : > { %1714 = vst [vmem:[%s10283_s30 + $0x7c0] sm:$0xff] %v1713_v56  ;;  %v1717_v58 = vld [vmem:[%s10278_s29 + $0xfa0] sm:$0xff]  ;;  %v1719_v59 = vld [vmem:[%s10278_s29 + $0xfb0] sm:$0xff]  ;;  %1716 = vst [vmem:[%s10283_s30 + $0x7c8] sm:$0xff] %v1715_v57 }
  0x93   : > { %1718 = vst [vmem:[%s10283_s30 + $0x7d0] sm:$0xff] %v1717_v58  ;;  %1720 = vst [vmem:[%s10283_s30 + $0x7d8] sm:$0xff] %v1719_v59  ;;  %v1721_v60 = vld [vmem:[%s10278_s29 + $0xfc0] sm:$0xff]  ;;  %v1723_v61 = vld [vmem:[%s10278_s29 + $0xfd0] sm:$0xff] }
  0x94   : > { %v1725_v62 = vld [vmem:[%s10278_s29 + $0xfe0] sm:$0xff]  ;;  %1722 = vst [vmem:[%s10283_s30 + $0x7e0] sm:$0xff] %v1721_v60  ;;  %1724 = vst [vmem:[%s10283_s30 + $0x7e8] sm:$0xff] %v1723_v61  ;;  %v1727_v63 = vld [vmem:[%s10278_s29 + $0xff0] sm:$0xff] }
  0x95   : > { %1726 = vst [vmem:[%s10283_s30 + $0x7f0] sm:$0xff] %v1725_v62  ;;  %v1729_v0 = vld [vmem:[%s10278_s29 + $0x1000] sm:$0xff]  ;;  %v1731_v1 = vld [vmem:[%s10278_s29 + $0x1010] sm:$0xff]  ;;  %1728 = vst [vmem:[%s10283_s30 + $0x7f8] sm:$0xff] %v1727_v63 }
  0x96   : > { %1730 = vst [vmem:[%s10283_s30 + $0x800] sm:$0xff] %v1729_v0  ;;  %1732 = vst [vmem:[%s10283_s30 + $0x808] sm:$0xff] %v1731_v1  ;;  %v1733_v2 = vld [vmem:[%s10278_s29 + $0x1020] sm:$0xff]  ;;  %v1735_v3 = vld [vmem:[%s10278_s29 + $0x1030] sm:$0xff] }
  0x97   : > { %v1737_v4 = vld [vmem:[%s10278_s29 + $0x1040] sm:$0xff]  ;;  %1734 = vst [vmem:[%s10283_s30 + $0x810] sm:$0xff] %v1733_v2  ;;  %1736 = vst [vmem:[%s10283_s30 + $0x818] sm:$0xff] %v1735_v3  ;;  %v1739_v5 = vld [vmem:[%s10278_s29 + $0x1050] sm:$0xff] }
  0x98   : > { %1738 = vst [vmem:[%s10283_s30 + $0x820] sm:$0xff] %v1737_v4  ;;  %v1741_v6 = vld [vmem:[%s10278_s29 + $0x1060] sm:$0xff]  ;;  %v1743_v7 = vld [vmem:[%s10278_s29 + $0x1070] sm:$0xff]  ;;  %1740 = vst [vmem:[%s10283_s30 + $0x828] sm:$0xff] %v1739_v5 }
  0x99   : > { %1742 = vst [vmem:[%s10283_s30 + $0x830] sm:$0xff] %v1741_v6  ;;  %1744 = vst [vmem:[%s10283_s30 + $0x838] sm:$0xff] %v1743_v7  ;;  %v1745_v8 = vld [vmem:[%s10278_s29 + $0x1080] sm:$0xff]  ;;  %v1747_v9 = vld [vmem:[%s10278_s29 + $0x1090] sm:$0xff] }
  0x9a   : > { %v1749_v10 = vld [vmem:[%s10278_s29 + $0x10a0] sm:$0xff]  ;;  %1746 = vst [vmem:[%s10283_s30 + $0x840] sm:$0xff] %v1745_v8  ;;  %1748 = vst [vmem:[%s10283_s30 + $0x848] sm:$0xff] %v1747_v9  ;;  %v1751_v11 = vld [vmem:[%s10278_s29 + $0x10b0] sm:$0xff] }
  0x9b   : > { %1750 = vst [vmem:[%s10283_s30 + $0x850] sm:$0xff] %v1749_v10  ;;  %v1753_v12 = vld [vmem:[%s10278_s29 + $0x10c0] sm:$0xff]  ;;  %v1755_v13 = vld [vmem:[%s10278_s29 + $0x10d0] sm:$0xff]  ;;  %1752 = vst [vmem:[%s10283_s30 + $0x858] sm:$0xff] %v1751_v11 }
  0x9c   : > { %1754 = vst [vmem:[%s10283_s30 + $0x860] sm:$0xff] %v1753_v12  ;;  %1756 = vst [vmem:[%s10283_s30 + $0x868] sm:$0xff] %v1755_v13  ;;  %v1757_v14 = vld [vmem:[%s10278_s29 + $0x10e0] sm:$0xff]  ;;  %v1759_v15 = vld [vmem:[%s10278_s29 + $0x10f0] sm:$0xff] }
  0x9d   : > { %v1761_v16 = vld [vmem:[%s10278_s29 + $0x1100] sm:$0xff]  ;;  %1758 = vst [vmem:[%s10283_s30 + $0x870] sm:$0xff] %v1757_v14  ;;  %1760 = vst [vmem:[%s10283_s30 + $0x878] sm:$0xff] %v1759_v15  ;;  %v1763_v17 = vld [vmem:[%s10278_s29 + $0x1110] sm:$0xff] }
  0x9e   : > { %1762 = vst [vmem:[%s10283_s30 + $0x880] sm:$0xff] %v1761_v16  ;;  %v1765_v18 = vld [vmem:[%s10278_s29 + $0x1120] sm:$0xff]  ;;  %v1767_v19 = vld [vmem:[%s10278_s29 + $0x1130] sm:$0xff]  ;;  %1764 = vst [vmem:[%s10283_s30 + $0x888] sm:$0xff] %v1763_v17 }
  0x9f   : > { %1766 = vst [vmem:[%s10283_s30 + $0x890] sm:$0xff] %v1765_v18  ;;  %1768 = vst [vmem:[%s10283_s30 + $0x898] sm:$0xff] %v1767_v19  ;;  %v1769_v20 = vld [vmem:[%s10278_s29 + $0x1140] sm:$0xff]  ;;  %v1771_v21 = vld [vmem:[%s10278_s29 + $0x1150] sm:$0xff] }
  0xa0   : > { %v1773_v22 = vld [vmem:[%s10278_s29 + $0x1160] sm:$0xff]  ;;  %1770 = vst [vmem:[%s10283_s30 + $0x8a0] sm:$0xff] %v1769_v20  ;;  %1772 = vst [vmem:[%s10283_s30 + $0x8a8] sm:$0xff] %v1771_v21  ;;  %v1775_v23 = vld [vmem:[%s10278_s29 + $0x1170] sm:$0xff] }
  0xa1   : > { %1774 = vst [vmem:[%s10283_s30 + $0x8b0] sm:$0xff] %v1773_v22  ;;  %v1777_v24 = vld [vmem:[%s10278_s29 + $0x1180] sm:$0xff]  ;;  %v1779_v25 = vld [vmem:[%s10278_s29 + $0x1190] sm:$0xff]  ;;  %1776 = vst [vmem:[%s10283_s30 + $0x8b8] sm:$0xff] %v1775_v23 }
  0xa2   : > { %1778 = vst [vmem:[%s10283_s30 + $0x8c0] sm:$0xff] %v1777_v24  ;;  %1780 = vst [vmem:[%s10283_s30 + $0x8c8] sm:$0xff] %v1779_v25  ;;  %v1781_v26 = vld [vmem:[%s10278_s29 + $0x11a0] sm:$0xff]  ;;  %v1783_v27 = vld [vmem:[%s10278_s29 + $0x11b0] sm:$0xff] }
  0xa3   : > { %v1785_v28 = vld [vmem:[%s10278_s29 + $0x11c0] sm:$0xff]  ;;  %1782 = vst [vmem:[%s10283_s30 + $0x8d0] sm:$0xff] %v1781_v26  ;;  %1784 = vst [vmem:[%s10283_s30 + $0x8d8] sm:$0xff] %v1783_v27  ;;  %v1787_v29 = vld [vmem:[%s10278_s29 + $0x11d0] sm:$0xff] }
  0xa4   : > { %1786 = vst [vmem:[%s10283_s30 + $0x8e0] sm:$0xff] %v1785_v28  ;;  %v1789_v30 = vld [vmem:[%s10278_s29 + $0x11e0] sm:$0xff]  ;;  %v1791_v31 = vld [vmem:[%s10278_s29 + $0x11f0] sm:$0xff]  ;;  %1788 = vst [vmem:[%s10283_s30 + $0x8e8] sm:$0xff] %v1787_v29 }
  0xa5   : > { %1790 = vst [vmem:[%s10283_s30 + $0x8f0] sm:$0xff] %v1789_v30  ;;  %1792 = vst [vmem:[%s10283_s30 + $0x8f8] sm:$0xff] %v1791_v31  ;;  %v1793_v32 = vld [vmem:[%s10278_s29 + $0x1200] sm:$0xff]  ;;  %v1795_v33 = vld [vmem:[%s10278_s29 + $0x1210] sm:$0xff] }
  0xa6   : > { %v1797_v34 = vld [vmem:[%s10278_s29 + $0x1220] sm:$0xff]  ;;  %1794 = vst [vmem:[%s10283_s30 + $0x900] sm:$0xff] %v1793_v32  ;;  %1796 = vst [vmem:[%s10283_s30 + $0x908] sm:$0xff] %v1795_v33  ;;  %v1799_v35 = vld [vmem:[%s10278_s29 + $0x1230] sm:$0xff] }
  0xa7   : > { %1798 = vst [vmem:[%s10283_s30 + $0x910] sm:$0xff] %v1797_v34  ;;  %v1801_v36 = vld [vmem:[%s10278_s29 + $0x1240] sm:$0xff]  ;;  %v1803_v37 = vld [vmem:[%s10278_s29 + $0x1250] sm:$0xff]  ;;  %1800 = vst [vmem:[%s10283_s30 + $0x918] sm:$0xff] %v1799_v35 }
  0xa8   : > { %1802 = vst [vmem:[%s10283_s30 + $0x920] sm:$0xff] %v1801_v36  ;;  %1804 = vst [vmem:[%s10283_s30 + $0x928] sm:$0xff] %v1803_v37  ;;  %v1805_v38 = vld [vmem:[%s10278_s29 + $0x1260] sm:$0xff]  ;;  %v1807_v39 = vld [vmem:[%s10278_s29 + $0x1270] sm:$0xff] }
  0xa9   : > { %v1809_v40 = vld [vmem:[%s10278_s29 + $0x1280] sm:$0xff]  ;;  %1806 = vst [vmem:[%s10283_s30 + $0x930] sm:$0xff] %v1805_v38  ;;  %1808 = vst [vmem:[%s10283_s30 + $0x938] sm:$0xff] %v1807_v39  ;;  %v1811_v41 = vld [vmem:[%s10278_s29 + $0x1290] sm:$0xff] }
  0xaa   : > { %1810 = vst [vmem:[%s10283_s30 + $0x940] sm:$0xff] %v1809_v40  ;;  %v1813_v42 = vld [vmem:[%s10278_s29 + $0x12a0] sm:$0xff]  ;;  %v1815_v43 = vld [vmem:[%s10278_s29 + $0x12b0] sm:$0xff]  ;;  %1812 = vst [vmem:[%s10283_s30 + $0x948] sm:$0xff] %v1811_v41 }
  0xab   : > { %1814 = vst [vmem:[%s10283_s30 + $0x950] sm:$0xff] %v1813_v42  ;;  %1816 = vst [vmem:[%s10283_s30 + $0x958] sm:$0xff] %v1815_v43  ;;  %v1817_v44 = vld [vmem:[%s10278_s29 + $0x12c0] sm:$0xff]  ;;  %v1819_v45 = vld [vmem:[%s10278_s29 + $0x12d0] sm:$0xff] }
  0xac   : > { %v1821_v46 = vld [vmem:[%s10278_s29 + $0x12e0] sm:$0xff]  ;;  %1818 = vst [vmem:[%s10283_s30 + $0x960] sm:$0xff] %v1817_v44  ;;  %1820 = vst [vmem:[%s10283_s30 + $0x968] sm:$0xff] %v1819_v45  ;;  %v1823_v47 = vld [vmem:[%s10278_s29 + $0x12f0] sm:$0xff] }
  0xad   : > { %1822 = vst [vmem:[%s10283_s30 + $0x970] sm:$0xff] %v1821_v46  ;;  %v1825_v48 = vld [vmem:[%s10278_s29 + $0x1300] sm:$0xff]  ;;  %v1827_v49 = vld [vmem:[%s10278_s29 + $0x1310] sm:$0xff]  ;;  %1824 = vst [vmem:[%s10283_s30 + $0x978] sm:$0xff] %v1823_v47 }
  0xae   : > { %1826 = vst [vmem:[%s10283_s30 + $0x980] sm:$0xff] %v1825_v48  ;;  %1828 = vst [vmem:[%s10283_s30 + $0x988] sm:$0xff] %v1827_v49  ;;  %v1829_v50 = vld [vmem:[%s10278_s29 + $0x1320] sm:$0xff]  ;;  %v1831_v51 = vld [vmem:[%s10278_s29 + $0x1330] sm:$0xff] }
  0xaf   : > { %v1833_v52 = vld [vmem:[%s10278_s29 + $0x1340] sm:$0xff]  ;;  %1830 = vst [vmem:[%s10283_s30 + $0x990] sm:$0xff] %v1829_v50  ;;  %1832 = vst [vmem:[%s10283_s30 + $0x998] sm:$0xff] %v1831_v51  ;;  %v1835_v53 = vld [vmem:[%s10278_s29 + $0x1350] sm:$0xff] }
  0xb0   : > { %1834 = vst [vmem:[%s10283_s30 + $0x9a0] sm:$0xff] %v1833_v52  ;;  %v1837_v54 = vld [vmem:[%s10278_s29 + $0x1360] sm:$0xff]  ;;  %v1839_v55 = vld [vmem:[%s10278_s29 + $0x1370] sm:$0xff]  ;;  %1836 = vst [vmem:[%s10283_s30 + $0x9a8] sm:$0xff] %v1835_v53 }
  0xb1   : > { %1838 = vst [vmem:[%s10283_s30 + $0x9b0] sm:$0xff] %v1837_v54  ;;  %1840 = vst [vmem:[%s10283_s30 + $0x9b8] sm:$0xff] %v1839_v55  ;;  %v1841_v56 = vld [vmem:[%s10278_s29 + $0x1380] sm:$0xff]  ;;  %v1843_v57 = vld [vmem:[%s10278_s29 + $0x1390] sm:$0xff] }
  0xb2   : > { %v1845_v58 = vld [vmem:[%s10278_s29 + $0x13a0] sm:$0xff]  ;;  %1842 = vst [vmem:[%s10283_s30 + $0x9c0] sm:$0xff] %v1841_v56  ;;  %1844 = vst [vmem:[%s10283_s30 + $0x9c8] sm:$0xff] %v1843_v57  ;;  %v1847_v59 = vld [vmem:[%s10278_s29 + $0x13b0] sm:$0xff] }
  0xb3   : > { %1846 = vst [vmem:[%s10283_s30 + $0x9d0] sm:$0xff] %v1845_v58  ;;  %v1849_v60 = vld [vmem:[%s10278_s29 + $0x13c0] sm:$0xff]  ;;  %v1851_v61 = vld [vmem:[%s10278_s29 + $0x13d0] sm:$0xff]  ;;  %1848 = vst [vmem:[%s10283_s30 + $0x9d8] sm:$0xff] %v1847_v59 }
  0xb4   : > { %1850 = vst [vmem:[%s10283_s30 + $0x9e0] sm:$0xff] %v1849_v60  ;;  %1852 = vst [vmem:[%s10283_s30 + $0x9e8] sm:$0xff] %v1851_v61  ;;  %v1853_v62 = vld [vmem:[%s10278_s29 + $0x13e0] sm:$0xff]  ;;  %v1855_v63 = vld [vmem:[%s10278_s29 + $0x13f0] sm:$0xff] }
  0xb5   : > { %v1857_v0 = vld [vmem:[%s10278_s29 + $0x1400] sm:$0xff]  ;;  %1854 = vst [vmem:[%s10283_s30 + $0x9f0] sm:$0xff] %v1853_v62  ;;  %1856 = vst [vmem:[%s10283_s30 + $0x9f8] sm:$0xff] %v1855_v63  ;;  %v1859_v1 = vld [vmem:[%s10278_s29 + $0x1410] sm:$0xff] }
  0xb6   : > { %1858 = vst [vmem:[%s10283_s30 + $0xa00] sm:$0xff] %v1857_v0  ;;  %v1861_v2 = vld [vmem:[%s10278_s29 + $0x1420] sm:$0xff]  ;;  %v1863_v3 = vld [vmem:[%s10278_s29 + $0x1430] sm:$0xff]  ;;  %1860 = vst [vmem:[%s10283_s30 + $0xa08] sm:$0xff] %v1859_v1 }
  0xb7   : > { %1862 = vst [vmem:[%s10283_s30 + $0xa10] sm:$0xff] %v1861_v2  ;;  %1864 = vst [vmem:[%s10283_s30 + $0xa18] sm:$0xff] %v1863_v3  ;;  %v1865_v4 = vld [vmem:[%s10278_s29 + $0x1440] sm:$0xff]  ;;  %v1867_v5 = vld [vmem:[%s10278_s29 + $0x1450] sm:$0xff] }
  0xb8   : > { %v1869_v6 = vld [vmem:[%s10278_s29 + $0x1460] sm:$0xff]  ;;  %1866 = vst [vmem:[%s10283_s30 + $0xa20] sm:$0xff] %v1865_v4  ;;  %1868 = vst [vmem:[%s10283_s30 + $0xa28] sm:$0xff] %v1867_v5  ;;  %v1871_v7 = vld [vmem:[%s10278_s29 + $0x1470] sm:$0xff] }
  0xb9   : > { %1870 = vst [vmem:[%s10283_s30 + $0xa30] sm:$0xff] %v1869_v6  ;;  %v1873_v8 = vld [vmem:[%s10278_s29 + $0x1480] sm:$0xff]  ;;  %v1875_v9 = vld [vmem:[%s10278_s29 + $0x1490] sm:$0xff]  ;;  %1872 = vst [vmem:[%s10283_s30 + $0xa38] sm:$0xff] %v1871_v7 }
  0xba   : > { %1874 = vst [vmem:[%s10283_s30 + $0xa40] sm:$0xff] %v1873_v8  ;;  %1876 = vst [vmem:[%s10283_s30 + $0xa48] sm:$0xff] %v1875_v9  ;;  %v1877_v10 = vld [vmem:[%s10278_s29 + $0x14a0] sm:$0xff]  ;;  %v1879_v11 = vld [vmem:[%s10278_s29 + $0x14b0] sm:$0xff] }
  0xbb   : > { %v1881_v12 = vld [vmem:[%s10278_s29 + $0x14c0] sm:$0xff]  ;;  %1878 = vst [vmem:[%s10283_s30 + $0xa50] sm:$0xff] %v1877_v10  ;;  %1880 = vst [vmem:[%s10283_s30 + $0xa58] sm:$0xff] %v1879_v11  ;;  %v1883_v13 = vld [vmem:[%s10278_s29 + $0x14d0] sm:$0xff] }
  0xbc   : > { %1882 = vst [vmem:[%s10283_s30 + $0xa60] sm:$0xff] %v1881_v12  ;;  %v1885_v14 = vld [vmem:[%s10278_s29 + $0x14e0] sm:$0xff]  ;;  %v1887_v15 = vld [vmem:[%s10278_s29 + $0x14f0] sm:$0xff]  ;;  %1884 = vst [vmem:[%s10283_s30 + $0xa68] sm:$0xff] %v1883_v13 }
  0xbd   : > { %1886 = vst [vmem:[%s10283_s30 + $0xa70] sm:$0xff] %v1885_v14  ;;  %1888 = vst [vmem:[%s10283_s30 + $0xa78] sm:$0xff] %v1887_v15  ;;  %v1889_v16 = vld [vmem:[%s10278_s29 + $0x1500] sm:$0xff]  ;;  %v1891_v17 = vld [vmem:[%s10278_s29 + $0x1510] sm:$0xff] }
  0xbe   : > { %v1893_v18 = vld [vmem:[%s10278_s29 + $0x1520] sm:$0xff]  ;;  %1890 = vst [vmem:[%s10283_s30 + $0xa80] sm:$0xff] %v1889_v16  ;;  %1892 = vst [vmem:[%s10283_s30 + $0xa88] sm:$0xff] %v1891_v17  ;;  %v1895_v19 = vld [vmem:[%s10278_s29 + $0x1530] sm:$0xff] }
  0xbf   : > { %1894 = vst [vmem:[%s10283_s30 + $0xa90] sm:$0xff] %v1893_v18  ;;  %v1897_v20 = vld [vmem:[%s10278_s29 + $0x1540] sm:$0xff]  ;;  %v1899_v21 = vld [vmem:[%s10278_s29 + $0x1550] sm:$0xff]  ;;  %1896 = vst [vmem:[%s10283_s30 + $0xa98] sm:$0xff] %v1895_v19 }
  0xc0   : > { %1898 = vst [vmem:[%s10283_s30 + $0xaa0] sm:$0xff] %v1897_v20  ;;  %1900 = vst [vmem:[%s10283_s30 + $0xaa8] sm:$0xff] %v1899_v21  ;;  %v1901_v22 = vld [vmem:[%s10278_s29 + $0x1560] sm:$0xff]  ;;  %v1903_v23 = vld [vmem:[%s10278_s29 + $0x1570] sm:$0xff] }
  0xc1   : > { %v1905_v24 = vld [vmem:[%s10278_s29 + $0x1580] sm:$0xff]  ;;  %1902 = vst [vmem:[%s10283_s30 + $0xab0] sm:$0xff] %v1901_v22  ;;  %1904 = vst [vmem:[%s10283_s30 + $0xab8] sm:$0xff] %v1903_v23  ;;  %v1907_v25 = vld [vmem:[%s10278_s29 + $0x1590] sm:$0xff] }
  0xc2   : > { %1906 = vst [vmem:[%s10283_s30 + $0xac0] sm:$0xff] %v1905_v24  ;;  %v1909_v26 = vld [vmem:[%s10278_s29 + $0x15a0] sm:$0xff]  ;;  %v1911_v27 = vld [vmem:[%s10278_s29 + $0x15b0] sm:$0xff]  ;;  %1908 = vst [vmem:[%s10283_s30 + $0xac8] sm:$0xff] %v1907_v25 }
  0xc3   : > { %1910 = vst [vmem:[%s10283_s30 + $0xad0] sm:$0xff] %v1909_v26  ;;  %1912 = vst [vmem:[%s10283_s30 + $0xad8] sm:$0xff] %v1911_v27  ;;  %v1913_v28 = vld [vmem:[%s10278_s29 + $0x15c0] sm:$0xff]  ;;  %v1915_v29 = vld [vmem:[%s10278_s29 + $0x15d0] sm:$0xff] }
  0xc4   : > { %v1917_v30 = vld [vmem:[%s10278_s29 + $0x15e0] sm:$0xff]  ;;  %1914 = vst [vmem:[%s10283_s30 + $0xae0] sm:$0xff] %v1913_v28  ;;  %1916 = vst [vmem:[%s10283_s30 + $0xae8] sm:$0xff] %v1915_v29  ;;  %v1919_v31 = vld [vmem:[%s10278_s29 + $0x15f0] sm:$0xff] }
  0xc5   : > { %1918 = vst [vmem:[%s10283_s30 + $0xaf0] sm:$0xff] %v1917_v30  ;;  %v1921_v32 = vld [vmem:[%s10278_s29 + $0x1600] sm:$0xff]  ;;  %v1923_v33 = vld [vmem:[%s10278_s29 + $0x1610] sm:$0xff]  ;;  %1920 = vst [vmem:[%s10283_s30 + $0xaf8] sm:$0xff] %v1919_v31 }
  0xc6   : > { %1922 = vst [vmem:[%s10283_s30 + $0xb00] sm:$0xff] %v1921_v32  ;;  %1924 = vst [vmem:[%s10283_s30 + $0xb08] sm:$0xff] %v1923_v33  ;;  %v1925_v34 = vld [vmem:[%s10278_s29 + $0x1620] sm:$0xff]  ;;  %v1927_v35 = vld [vmem:[%s10278_s29 + $0x1630] sm:$0xff] }
  0xc7   : > { %v1929_v36 = vld [vmem:[%s10278_s29 + $0x1640] sm:$0xff]  ;;  %1926 = vst [vmem:[%s10283_s30 + $0xb10] sm:$0xff] %v1925_v34  ;;  %1928 = vst [vmem:[%s10283_s30 + $0xb18] sm:$0xff] %v1927_v35  ;;  %v1931_v37 = vld [vmem:[%s10278_s29 + $0x1650] sm:$0xff] }
  0xc8   : > { %1930 = vst [vmem:[%s10283_s30 + $0xb20] sm:$0xff] %v1929_v36  ;;  %v1933_v38 = vld [vmem:[%s10278_s29 + $0x1660] sm:$0xff]  ;;  %v1935_v39 = vld [vmem:[%s10278_s29 + $0x1670] sm:$0xff]  ;;  %1932 = vst [vmem:[%s10283_s30 + $0xb28] sm:$0xff] %v1931_v37 }
  0xc9   : > { %1934 = vst [vmem:[%s10283_s30 + $0xb30] sm:$0xff] %v1933_v38  ;;  %1936 = vst [vmem:[%s10283_s30 + $0xb38] sm:$0xff] %v1935_v39  ;;  %v1937_v40 = vld [vmem:[%s10278_s29 + $0x1680] sm:$0xff]  ;;  %v1939_v41 = vld [vmem:[%s10278_s29 + $0x1690] sm:$0xff] }
  0xca   : > { %v1941_v42 = vld [vmem:[%s10278_s29 + $0x16a0] sm:$0xff]  ;;  %1938 = vst [vmem:[%s10283_s30 + $0xb40] sm:$0xff] %v1937_v40  ;;  %1940 = vst [vmem:[%s10283_s30 + $0xb48] sm:$0xff] %v1939_v41  ;;  %v1943_v43 = vld [vmem:[%s10278_s29 + $0x16b0] sm:$0xff] }
  0xcb   : > { %1942 = vst [vmem:[%s10283_s30 + $0xb50] sm:$0xff] %v1941_v42  ;;  %v1945_v44 = vld [vmem:[%s10278_s29 + $0x16c0] sm:$0xff]  ;;  %v1947_v45 = vld [vmem:[%s10278_s29 + $0x16d0] sm:$0xff]  ;;  %1944 = vst [vmem:[%s10283_s30 + $0xb58] sm:$0xff] %v1943_v43 }
  0xcc   : > { %1946 = vst [vmem:[%s10283_s30 + $0xb60] sm:$0xff] %v1945_v44  ;;  %1948 = vst [vmem:[%s10283_s30 + $0xb68] sm:$0xff] %v1947_v45  ;;  %v1949_v46 = vld [vmem:[%s10278_s29 + $0x16e0] sm:$0xff]  ;;  %v1951_v47 = vld [vmem:[%s10278_s29 + $0x16f0] sm:$0xff] }
  0xcd   : > { %v1953_v48 = vld [vmem:[%s10278_s29 + $0x1700] sm:$0xff]  ;;  %1950 = vst [vmem:[%s10283_s30 + $0xb70] sm:$0xff] %v1949_v46  ;;  %1952 = vst [vmem:[%s10283_s30 + $0xb78] sm:$0xff] %v1951_v47  ;;  %v1955_v49 = vld [vmem:[%s10278_s29 + $0x1710] sm:$0xff] }
  0xce   : > { %1954 = vst [vmem:[%s10283_s30 + $0xb80] sm:$0xff] %v1953_v48  ;;  %v1957_v50 = vld [vmem:[%s10278_s29 + $0x1720] sm:$0xff]  ;;  %v1959_v51 = vld [vmem:[%s10278_s29 + $0x1730] sm:$0xff]  ;;  %1956 = vst [vmem:[%s10283_s30 + $0xb88] sm:$0xff] %v1955_v49 }
  0xcf   : > { %1958 = vst [vmem:[%s10283_s30 + $0xb90] sm:$0xff] %v1957_v50  ;;  %1960 = vst [vmem:[%s10283_s30 + $0xb98] sm:$0xff] %v1959_v51  ;;  %v1961_v52 = vld [vmem:[%s10278_s29 + $0x1740] sm:$0xff]  ;;  %v1963_v53 = vld [vmem:[%s10278_s29 + $0x1750] sm:$0xff] }
  0xd0   : > { %v1965_v54 = vld [vmem:[%s10278_s29 + $0x1760] sm:$0xff]  ;;  %1962 = vst [vmem:[%s10283_s30 + $0xba0] sm:$0xff] %v1961_v52  ;;  %1964 = vst [vmem:[%s10283_s30 + $0xba8] sm:$0xff] %v1963_v53  ;;  %v1967_v55 = vld [vmem:[%s10278_s29 + $0x1770] sm:$0xff] }
  0xd1   : > { %1966 = vst [vmem:[%s10283_s30 + $0xbb0] sm:$0xff] %v1965_v54  ;;  %v1969_v56 = vld [vmem:[%s10278_s29 + $0x1780] sm:$0xff]  ;;  %v1971_v57 = vld [vmem:[%s10278_s29 + $0x1790] sm:$0xff]  ;;  %1968 = vst [vmem:[%s10283_s30 + $0xbb8] sm:$0xff] %v1967_v55 }
  0xd2   : > { %1970 = vst [vmem:[%s10283_s30 + $0xbc0] sm:$0xff] %v1969_v56  ;;  %1972 = vst [vmem:[%s10283_s30 + $0xbc8] sm:$0xff] %v1971_v57  ;;  %v1973_v58 = vld [vmem:[%s10278_s29 + $0x17a0] sm:$0xff]  ;;  %v1975_v59 = vld [vmem:[%s10278_s29 + $0x17b0] sm:$0xff] }
  0xd3   : > { %v1977_v60 = vld [vmem:[%s10278_s29 + $0x17c0] sm:$0xff]  ;;  %1974 = vst [vmem:[%s10283_s30 + $0xbd0] sm:$0xff] %v1973_v58  ;;  %1976 = vst [vmem:[%s10283_s30 + $0xbd8] sm:$0xff] %v1975_v59  ;;  %v1979_v61 = vld [vmem:[%s10278_s29 + $0x17d0] sm:$0xff] }
  0xd4   : > { %1978 = vst [vmem:[%s10283_s30 + $0xbe0] sm:$0xff] %v1977_v60  ;;  %v1981_v62 = vld [vmem:[%s10278_s29 + $0x17e0] sm:$0xff]  ;;  %v1983_v63 = vld [vmem:[%s10278_s29 + $0x17f0] sm:$0xff]  ;;  %1980 = vst [vmem:[%s10283_s30 + $0xbe8] sm:$0xff] %v1979_v61 }
  0xd5   : > { %1982 = vst [vmem:[%s10283_s30 + $0xbf0] sm:$0xff] %v1981_v62  ;;  %1984 = vst [vmem:[%s10283_s30 + $0xbf8] sm:$0xff] %v1983_v63  ;;  %v1985_v0 = vld [vmem:[%s10278_s29 + $0x1800] sm:$0xff]  ;;  %v1987_v1 = vld [vmem:[%s10278_s29 + $0x1810] sm:$0xff] }
  0xd6   : > { %v1989_v2 = vld [vmem:[%s10278_s29 + $0x1820] sm:$0xff]  ;;  %1986 = vst [vmem:[%s10283_s30 + $0xc00] sm:$0xff] %v1985_v0  ;;  %1988 = vst [vmem:[%s10283_s30 + $0xc08] sm:$0xff] %v1987_v1  ;;  %v1991_v3 = vld [vmem:[%s10278_s29 + $0x1830] sm:$0xff] }
  0xd7   : > { %1990 = vst [vmem:[%s10283_s30 + $0xc10] sm:$0xff] %v1989_v2  ;;  %v1993_v4 = vld [vmem:[%s10278_s29 + $0x1840] sm:$0xff]  ;;  %v1995_v5 = vld [vmem:[%s10278_s29 + $0x1850] sm:$0xff]  ;;  %1992 = vst [vmem:[%s10283_s30 + $0xc18] sm:$0xff] %v1991_v3 }
  0xd8   : > { %1994 = vst [vmem:[%s10283_s30 + $0xc20] sm:$0xff] %v1993_v4  ;;  %1996 = vst [vmem:[%s10283_s30 + $0xc28] sm:$0xff] %v1995_v5  ;;  %v1997_v6 = vld [vmem:[%s10278_s29 + $0x1860] sm:$0xff]  ;;  %v1999_v7 = vld [vmem:[%s10278_s29 + $0x1870] sm:$0xff] }
  0xd9   : > { %v2001_v8 = vld [vmem:[%s10278_s29 + $0x1880] sm:$0xff]  ;;  %1998 = vst [vmem:[%s10283_s30 + $0xc30] sm:$0xff] %v1997_v6  ;;  %2000 = vst [vmem:[%s10283_s30 + $0xc38] sm:$0xff] %v1999_v7  ;;  %v2003_v9 = vld [vmem:[%s10278_s29 + $0x1890] sm:$0xff] }
  0xda   : > { %2002 = vst [vmem:[%s10283_s30 + $0xc40] sm:$0xff] %v2001_v8  ;;  %v2005_v10 = vld [vmem:[%s10278_s29 + $0x18a0] sm:$0xff]  ;;  %v2007_v11 = vld [vmem:[%s10278_s29 + $0x18b0] sm:$0xff]  ;;  %2004 = vst [vmem:[%s10283_s30 + $0xc48] sm:$0xff] %v2003_v9 }
  0xdb   : > { %2006 = vst [vmem:[%s10283_s30 + $0xc50] sm:$0xff] %v2005_v10  ;;  %2008 = vst [vmem:[%s10283_s30 + $0xc58] sm:$0xff] %v2007_v11  ;;  %v2009_v12 = vld [vmem:[%s10278_s29 + $0x18c0] sm:$0xff]  ;;  %v2011_v13 = vld [vmem:[%s10278_s29 + $0x18d0] sm:$0xff] }
  0xdc   : > { %v2013_v14 = vld [vmem:[%s10278_s29 + $0x18e0] sm:$0xff]  ;;  %2010 = vst [vmem:[%s10283_s30 + $0xc60] sm:$0xff] %v2009_v12  ;;  %2012 = vst [vmem:[%s10283_s30 + $0xc68] sm:$0xff] %v2011_v13  ;;  %v2015_v15 = vld [vmem:[%s10278_s29 + $0x18f0] sm:$0xff] }
  0xdd   : > { %2014 = vst [vmem:[%s10283_s30 + $0xc70] sm:$0xff] %v2013_v14  ;;  %v2017_v16 = vld [vmem:[%s10278_s29 + $0x1900] sm:$0xff]  ;;  %v2019_v17 = vld [vmem:[%s10278_s29 + $0x1910] sm:$0xff]  ;;  %2016 = vst [vmem:[%s10283_s30 + $0xc78] sm:$0xff] %v2015_v15 }
  0xde   : > { %2018 = vst [vmem:[%s10283_s30 + $0xc80] sm:$0xff] %v2017_v16  ;;  %2020 = vst [vmem:[%s10283_s30 + $0xc88] sm:$0xff] %v2019_v17  ;;  %v2021_v18 = vld [vmem:[%s10278_s29 + $0x1920] sm:$0xff]  ;;  %v2023_v19 = vld [vmem:[%s10278_s29 + $0x1930] sm:$0xff] }
  0xdf   : > { %v2025_v20 = vld [vmem:[%s10278_s29 + $0x1940] sm:$0xff]  ;;  %2022 = vst [vmem:[%s10283_s30 + $0xc90] sm:$0xff] %v2021_v18  ;;  %2024 = vst [vmem:[%s10283_s30 + $0xc98] sm:$0xff] %v2023_v19  ;;  %v2027_v21 = vld [vmem:[%s10278_s29 + $0x1950] sm:$0xff] }
  0xe0   : > { %2026 = vst [vmem:[%s10283_s30 + $0xca0] sm:$0xff] %v2025_v20  ;;  %v2029_v22 = vld [vmem:[%s10278_s29 + $0x1960] sm:$0xff]  ;;  %v2031_v23 = vld [vmem:[%s10278_s29 + $0x1970] sm:$0xff]  ;;  %2028 = vst [vmem:[%s10283_s30 + $0xca8] sm:$0xff] %v2027_v21 }
  0xe1   : > { %2030 = vst [vmem:[%s10283_s30 + $0xcb0] sm:$0xff] %v2029_v22  ;;  %2032 = vst [vmem:[%s10283_s30 + $0xcb8] sm:$0xff] %v2031_v23  ;;  %v2033_v24 = vld [vmem:[%s10278_s29 + $0x1980] sm:$0xff]  ;;  %v2035_v25 = vld [vmem:[%s10278_s29 + $0x1990] sm:$0xff] }
  0xe2   : > { %v2037_v26 = vld [vmem:[%s10278_s29 + $0x19a0] sm:$0xff]  ;;  %2034 = vst [vmem:[%s10283_s30 + $0xcc0] sm:$0xff] %v2033_v24  ;;  %2036 = vst [vmem:[%s10283_s30 + $0xcc8] sm:$0xff] %v2035_v25  ;;  %v2039_v27 = vld [vmem:[%s10278_s29 + $0x19b0] sm:$0xff] }
  0xe3   : > { %2038 = vst [vmem:[%s10283_s30 + $0xcd0] sm:$0xff] %v2037_v26  ;;  %v2041_v28 = vld [vmem:[%s10278_s29 + $0x19c0] sm:$0xff]  ;;  %v2043_v29 = vld [vmem:[%s10278_s29 + $0x19d0] sm:$0xff]  ;;  %2040 = vst [vmem:[%s10283_s30 + $0xcd8] sm:$0xff] %v2039_v27 }
  0xe4   : > { %2042 = vst [vmem:[%s10283_s30 + $0xce0] sm:$0xff] %v2041_v28  ;;  %2044 = vst [vmem:[%s10283_s30 + $0xce8] sm:$0xff] %v2043_v29  ;;  %v2045_v30 = vld [vmem:[%s10278_s29 + $0x19e0] sm:$0xff]  ;;  %v2047_v31 = vld [vmem:[%s10278_s29 + $0x19f0] sm:$0xff] }
  0xe5   : > { %v2049_v32 = vld [vmem:[%s10278_s29 + $0x1a00] sm:$0xff]  ;;  %2046 = vst [vmem:[%s10283_s30 + $0xcf0] sm:$0xff] %v2045_v30  ;;  %2048 = vst [vmem:[%s10283_s30 + $0xcf8] sm:$0xff] %v2047_v31  ;;  %v2051_v33 = vld [vmem:[%s10278_s29 + $0x1a10] sm:$0xff] }
  0xe6   : > { %2050 = vst [vmem:[%s10283_s30 + $0xd00] sm:$0xff] %v2049_v32  ;;  %v2053_v34 = vld [vmem:[%s10278_s29 + $0x1a20] sm:$0xff]  ;;  %v2055_v35 = vld [vmem:[%s10278_s29 + $0x1a30] sm:$0xff]  ;;  %2052 = vst [vmem:[%s10283_s30 + $0xd08] sm:$0xff] %v2051_v33 }
  0xe7   : > { %2054 = vst [vmem:[%s10283_s30 + $0xd10] sm:$0xff] %v2053_v34  ;;  %2056 = vst [vmem:[%s10283_s30 + $0xd18] sm:$0xff] %v2055_v35  ;;  %v2057_v36 = vld [vmem:[%s10278_s29 + $0x1a40] sm:$0xff]  ;;  %v2059_v37 = vld [vmem:[%s10278_s29 + $0x1a50] sm:$0xff] }
  0xe8   : > { %v2061_v38 = vld [vmem:[%s10278_s29 + $0x1a60] sm:$0xff]  ;;  %2058 = vst [vmem:[%s10283_s30 + $0xd20] sm:$0xff] %v2057_v36  ;;  %2060 = vst [vmem:[%s10283_s30 + $0xd28] sm:$0xff] %v2059_v37  ;;  %v2063_v39 = vld [vmem:[%s10278_s29 + $0x1a70] sm:$0xff] }
  0xe9   : > { %2062 = vst [vmem:[%s10283_s30 + $0xd30] sm:$0xff] %v2061_v38  ;;  %v2065_v40 = vld [vmem:[%s10278_s29 + $0x1a80] sm:$0xff]  ;;  %v2067_v41 = vld [vmem:[%s10278_s29 + $0x1a90] sm:$0xff]  ;;  %2064 = vst [vmem:[%s10283_s30 + $0xd38] sm:$0xff] %v2063_v39 }
  0xea   : > { %2066 = vst [vmem:[%s10283_s30 + $0xd40] sm:$0xff] %v2065_v40  ;;  %2068 = vst [vmem:[%s10283_s30 + $0xd48] sm:$0xff] %v2067_v41  ;;  %v2069_v42 = vld [vmem:[%s10278_s29 + $0x1aa0] sm:$0xff]  ;;  %v2071_v43 = vld [vmem:[%s10278_s29 + $0x1ab0] sm:$0xff] }
  0xeb   : > { %v2073_v44 = vld [vmem:[%s10278_s29 + $0x1ac0] sm:$0xff]  ;;  %2070 = vst [vmem:[%s10283_s30 + $0xd50] sm:$0xff] %v2069_v42  ;;  %2072 = vst [vmem:[%s10283_s30 + $0xd58] sm:$0xff] %v2071_v43  ;;  %v2075_v45 = vld [vmem:[%s10278_s29 + $0x1ad0] sm:$0xff] }
  0xec   : > { %2074 = vst [vmem:[%s10283_s30 + $0xd60] sm:$0xff] %v2073_v44  ;;  %v2077_v46 = vld [vmem:[%s10278_s29 + $0x1ae0] sm:$0xff]  ;;  %v2079_v47 = vld [vmem:[%s10278_s29 + $0x1af0] sm:$0xff]  ;;  %2076 = vst [vmem:[%s10283_s30 + $0xd68] sm:$0xff] %v2075_v45 }
  0xed   : > { %2078 = vst [vmem:[%s10283_s30 + $0xd70] sm:$0xff] %v2077_v46  ;;  %2080 = vst [vmem:[%s10283_s30 + $0xd78] sm:$0xff] %v2079_v47  ;;  %v2081_v48 = vld [vmem:[%s10278_s29 + $0x1b00] sm:$0xff]  ;;  %v2083_v49 = vld [vmem:[%s10278_s29 + $0x1b10] sm:$0xff] }
  0xee   : > { %v2085_v50 = vld [vmem:[%s10278_s29 + $0x1b20] sm:$0xff]  ;;  %2082 = vst [vmem:[%s10283_s30 + $0xd80] sm:$0xff] %v2081_v48  ;;  %2084 = vst [vmem:[%s10283_s30 + $0xd88] sm:$0xff] %v2083_v49  ;;  %v2087_v51 = vld [vmem:[%s10278_s29 + $0x1b30] sm:$0xff] }
  0xef   : > { %2086 = vst [vmem:[%s10283_s30 + $0xd90] sm:$0xff] %v2085_v50  ;;  %v2089_v52 = vld [vmem:[%s10278_s29 + $0x1b40] sm:$0xff]  ;;  %v2091_v53 = vld [vmem:[%s10278_s29 + $0x1b50] sm:$0xff]  ;;  %2088 = vst [vmem:[%s10283_s30 + $0xd98] sm:$0xff] %v2087_v51 }
  0xf0   : > { %2090 = vst [vmem:[%s10283_s30 + $0xda0] sm:$0xff] %v2089_v52  ;;  %2092 = vst [vmem:[%s10283_s30 + $0xda8] sm:$0xff] %v2091_v53  ;;  %v2093_v54 = vld [vmem:[%s10278_s29 + $0x1b60] sm:$0xff]  ;;  %v2095_v55 = vld [vmem:[%s10278_s29 + $0x1b70] sm:$0xff] }
  0xf1   : > { %v2097_v56 = vld [vmem:[%s10278_s29 + $0x1b80] sm:$0xff]  ;;  %2094 = vst [vmem:[%s10283_s30 + $0xdb0] sm:$0xff] %v2093_v54  ;;  %2096 = vst [vmem:[%s10283_s30 + $0xdb8] sm:$0xff] %v2095_v55  ;;  %v2099_v57 = vld [vmem:[%s10278_s29 + $0x1b90] sm:$0xff] }
  0xf2   : > { %2098 = vst [vmem:[%s10283_s30 + $0xdc0] sm:$0xff] %v2097_v56  ;;  %v2101_v58 = vld [vmem:[%s10278_s29 + $0x1ba0] sm:$0xff]  ;;  %v2103_v59 = vld [vmem:[%s10278_s29 + $0x1bb0] sm:$0xff]  ;;  %2100 = vst [vmem:[%s10283_s30 + $0xdc8] sm:$0xff] %v2099_v57 }
  0xf3   : > { %2102 = vst [vmem:[%s10283_s30 + $0xdd0] sm:$0xff] %v2101_v58  ;;  %2104 = vst [vmem:[%s10283_s30 + $0xdd8] sm:$0xff] %v2103_v59  ;;  %v2105_v60 = vld [vmem:[%s10278_s29 + $0x1bc0] sm:$0xff]  ;;  %v2107_v61 = vld [vmem:[%s10278_s29 + $0x1bd0] sm:$0xff] }
  0xf4   : > { %v2109_v62 = vld [vmem:[%s10278_s29 + $0x1be0] sm:$0xff]  ;;  %2106 = vst [vmem:[%s10283_s30 + $0xde0] sm:$0xff] %v2105_v60  ;;  %2108 = vst [vmem:[%s10283_s30 + $0xde8] sm:$0xff] %v2107_v61  ;;  %v2111_v63 = vld [vmem:[%s10278_s29 + $0x1bf0] sm:$0xff] }
  0xf5   : > { %2110 = vst [vmem:[%s10283_s30 + $0xdf0] sm:$0xff] %v2109_v62  ;;  %v2113_v0 = vld [vmem:[%s10278_s29 + $0x1c00] sm:$0xff]  ;;  %v2115_v1 = vld [vmem:[%s10278_s29 + $0x1c10] sm:$0xff]  ;;  %2112 = vst [vmem:[%s10283_s30 + $0xdf8] sm:$0xff] %v2111_v63 }
  0xf6   : > { %2114 = vst [vmem:[%s10283_s30 + $0xe00] sm:$0xff] %v2113_v0  ;;  %2116 = vst [vmem:[%s10283_s30 + $0xe08] sm:$0xff] %v2115_v1  ;;  %v2117_v2 = vld [vmem:[%s10278_s29 + $0x1c20] sm:$0xff]  ;;  %v2119_v3 = vld [vmem:[%s10278_s29 + $0x1c30] sm:$0xff] }
  0xf7   : > { %v2121_v4 = vld [vmem:[%s10278_s29 + $0x1c40] sm:$0xff]  ;;  %2118 = vst [vmem:[%s10283_s30 + $0xe10] sm:$0xff] %v2117_v2  ;;  %2120 = vst [vmem:[%s10283_s30 + $0xe18] sm:$0xff] %v2119_v3  ;;  %v2123_v5 = vld [vmem:[%s10278_s29 + $0x1c50] sm:$0xff] }
  0xf8   : > { %2122 = vst [vmem:[%s10283_s30 + $0xe20] sm:$0xff] %v2121_v4  ;;  %v2125_v6 = vld [vmem:[%s10278_s29 + $0x1c60] sm:$0xff]  ;;  %v2127_v7 = vld [vmem:[%s10278_s29 + $0x1c70] sm:$0xff]  ;;  %2124 = vst [vmem:[%s10283_s30 + $0xe28] sm:$0xff] %v2123_v5 }
  0xf9   : > { %2126 = vst [vmem:[%s10283_s30 + $0xe30] sm:$0xff] %v2125_v6  ;;  %2128 = vst [vmem:[%s10283_s30 + $0xe38] sm:$0xff] %v2127_v7  ;;  %v2129_v8 = vld [vmem:[%s10278_s29 + $0x1c80] sm:$0xff]  ;;  %v2131_v9 = vld [vmem:[%s10278_s29 + $0x1c90] sm:$0xff] }
  0xfa   : > { %v2133_v10 = vld [vmem:[%s10278_s29 + $0x1ca0] sm:$0xff]  ;;  %2130 = vst [vmem:[%s10283_s30 + $0xe40] sm:$0xff] %v2129_v8  ;;  %2132 = vst [vmem:[%s10283_s30 + $0xe48] sm:$0xff] %v2131_v9  ;;  %v2135_v11 = vld [vmem:[%s10278_s29 + $0x1cb0] sm:$0xff] }
  0xfb   : > { %2134 = vst [vmem:[%s10283_s30 + $0xe50] sm:$0xff] %v2133_v10  ;;  %v2137_v12 = vld [vmem:[%s10278_s29 + $0x1cc0] sm:$0xff]  ;;  %v2139_v13 = vld [vmem:[%s10278_s29 + $0x1cd0] sm:$0xff]  ;;  %2136 = vst [vmem:[%s10283_s30 + $0xe58] sm:$0xff] %v2135_v11 }
  0xfc   : > { %2138 = vst [vmem:[%s10283_s30 + $0xe60] sm:$0xff] %v2137_v12  ;;  %2140 = vst [vmem:[%s10283_s30 + $0xe68] sm:$0xff] %v2139_v13  ;;  %v2141_v14 = vld [vmem:[%s10278_s29 + $0x1ce0] sm:$0xff]  ;;  %v2143_v15 = vld [vmem:[%s10278_s29 + $0x1cf0] sm:$0xff] }
  0xfd   : > { %v2145_v16 = vld [vmem:[%s10278_s29 + $0x1d00] sm:$0xff]  ;;  %2142 = vst [vmem:[%s10283_s30 + $0xe70] sm:$0xff] %v2141_v14  ;;  %2144 = vst [vmem:[%s10283_s30 + $0xe78] sm:$0xff] %v2143_v15  ;;  %v2147_v17 = vld [vmem:[%s10278_s29 + $0x1d10] sm:$0xff] }
  0xfe   : > { %2146 = vst [vmem:[%s10283_s30 + $0xe80] sm:$0xff] %v2145_v16  ;;  %v2149_v18 = vld [vmem:[%s10278_s29 + $0x1d20] sm:$0xff]  ;;  %v2151_v19 = vld [vmem:[%s10278_s29 + $0x1d30] sm:$0xff]  ;;  %2148 = vst [vmem:[%s10283_s30 + $0xe88] sm:$0xff] %v2147_v17 }
  0xff   : > { %2150 = vst [vmem:[%s10283_s30 + $0xe90] sm:$0xff] %v2149_v18  ;;  %2152 = vst [vmem:[%s10283_s30 + $0xe98] sm:$0xff] %v2151_v19  ;;  %v2153_v20 = vld [vmem:[%s10278_s29 + $0x1d40] sm:$0xff]  ;;  %v2155_v21 = vld [vmem:[%s10278_s29 + $0x1d50] sm:$0xff] }
 0x100   : > { %v2157_v22 = vld [vmem:[%s10278_s29 + $0x1d60] sm:$0xff]  ;;  %2154 = vst [vmem:[%s10283_s30 + $0xea0] sm:$0xff] %v2153_v20  ;;  %2156 = vst [vmem:[%s10283_s30 + $0xea8] sm:$0xff] %v2155_v21  ;;  %v2159_v23 = vld [vmem:[%s10278_s29 + $0x1d70] sm:$0xff] }
 0x101   : > { %2158 = vst [vmem:[%s10283_s30 + $0xeb0] sm:$0xff] %v2157_v22  ;;  %v2161_v24 = vld [vmem:[%s10278_s29 + $0x1d80] sm:$0xff]  ;;  %v2163_v25 = vld [vmem:[%s10278_s29 + $0x1d90] sm:$0xff]  ;;  %2160 = vst [vmem:[%s10283_s30 + $0xeb8] sm:$0xff] %v2159_v23 }
 0x102   : > { %2162 = vst [vmem:[%s10283_s30 + $0xec0] sm:$0xff] %v2161_v24  ;;  %2164 = vst [vmem:[%s10283_s30 + $0xec8] sm:$0xff] %v2163_v25  ;;  %v2165_v26 = vld [vmem:[%s10278_s29 + $0x1da0] sm:$0xff]  ;;  %v2167_v27 = vld [vmem:[%s10278_s29 + $0x1db0] sm:$0xff] }
 0x103   : > { %v2169_v28 = vld [vmem:[%s10278_s29 + $0x1dc0] sm:$0xff]  ;;  %2166 = vst [vmem:[%s10283_s30 + $0xed0] sm:$0xff] %v2165_v26  ;;  %2168 = vst [vmem:[%s10283_s30 + $0xed8] sm:$0xff] %v2167_v27  ;;  %v2171_v29 = vld [vmem:[%s10278_s29 + $0x1dd0] sm:$0xff] }
 0x104   : > { %2170 = vst [vmem:[%s10283_s30 + $0xee0] sm:$0xff] %v2169_v28  ;;  %v2173_v30 = vld [vmem:[%s10278_s29 + $0x1de0] sm:$0xff]  ;;  %v2175_v31 = vld [vmem:[%s10278_s29 + $0x1df0] sm:$0xff]  ;;  %2172 = vst [vmem:[%s10283_s30 + $0xee8] sm:$0xff] %v2171_v29 }
 0x105   : > { %2174 = vst [vmem:[%s10283_s30 + $0xef0] sm:$0xff] %v2173_v30  ;;  %2176 = vst [vmem:[%s10283_s30 + $0xef8] sm:$0xff] %v2175_v31  ;;  %v2177_v32 = vld [vmem:[%s10278_s29 + $0x1e00] sm:$0xff]  ;;  %v2179_v33 = vld [vmem:[%s10278_s29 + $0x1e10] sm:$0xff] }
 0x106   : > { %v2181_v34 = vld [vmem:[%s10278_s29 + $0x1e20] sm:$0xff]  ;;  %2178 = vst [vmem:[%s10283_s30 + $0xf00] sm:$0xff] %v2177_v32  ;;  %2180 = vst [vmem:[%s10283_s30 + $0xf08] sm:$0xff] %v2179_v33  ;;  %v2183_v35 = vld [vmem:[%s10278_s29 + $0x1e30] sm:$0xff] }
 0x107   : > { %2182 = vst [vmem:[%s10283_s30 + $0xf10] sm:$0xff] %v2181_v34  ;;  %v2185_v36 = vld [vmem:[%s10278_s29 + $0x1e40] sm:$0xff]  ;;  %v2187_v37 = vld [vmem:[%s10278_s29 + $0x1e50] sm:$0xff]  ;;  %2184 = vst [vmem:[%s10283_s30 + $0xf18] sm:$0xff] %v2183_v35 }
 0x108   : > { %2186 = vst [vmem:[%s10283_s30 + $0xf20] sm:$0xff] %v2185_v36  ;;  %2188 = vst [vmem:[%s10283_s30 + $0xf28] sm:$0xff] %v2187_v37  ;;  %v2189_v38 = vld [vmem:[%s10278_s29 + $0x1e60] sm:$0xff]  ;;  %v2191_v39 = vld [vmem:[%s10278_s29 + $0x1e70] sm:$0xff] }
 0x109   : > { %v2193_v40 = vld [vmem:[%s10278_s29 + $0x1e80] sm:$0xff]  ;;  %2190 = vst [vmem:[%s10283_s30 + $0xf30] sm:$0xff] %v2189_v38  ;;  %2192 = vst [vmem:[%s10283_s30 + $0xf38] sm:$0xff] %v2191_v39  ;;  %v2195_v41 = vld [vmem:[%s10278_s29 + $0x1e90] sm:$0xff] }
 0x10a   : > { %2194 = vst [vmem:[%s10283_s30 + $0xf40] sm:$0xff] %v2193_v40  ;;  %v2197_v42 = vld [vmem:[%s10278_s29 + $0x1ea0] sm:$0xff]  ;;  %v2199_v43 = vld [vmem:[%s10278_s29 + $0x1eb0] sm:$0xff]  ;;  %2196 = vst [vmem:[%s10283_s30 + $0xf48] sm:$0xff] %v2195_v41 }
 0x10b   : > { %2198 = vst [vmem:[%s10283_s30 + $0xf50] sm:$0xff] %v2197_v42  ;;  %2200 = vst [vmem:[%s10283_s30 + $0xf58] sm:$0xff] %v2199_v43  ;;  %v2201_v44 = vld [vmem:[%s10278_s29 + $0x1ec0] sm:$0xff]  ;;  %v2203_v45 = vld [vmem:[%s10278_s29 + $0x1ed0] sm:$0xff] }
 0x10c   : > { %v2205_v46 = vld [vmem:[%s10278_s29 + $0x1ee0] sm:$0xff]  ;;  %2202 = vst [vmem:[%s10283_s30 + $0xf60] sm:$0xff] %v2201_v44  ;;  %2204 = vst [vmem:[%s10283_s30 + $0xf68] sm:$0xff] %v2203_v45  ;;  %v2207_v47 = vld [vmem:[%s10278_s29 + $0x1ef0] sm:$0xff] }
 0x10d   : > { %2206 = vst [vmem:[%s10283_s30 + $0xf70] sm:$0xff] %v2205_v46  ;;  %v2209_v48 = vld [vmem:[%s10278_s29 + $0x1f00] sm:$0xff]  ;;  %v2211_v49 = vld [vmem:[%s10278_s29 + $0x1f10] sm:$0xff]  ;;  %2208 = vst [vmem:[%s10283_s30 + $0xf78] sm:$0xff] %v2207_v47 }
 0x10e   : > { %2210 = vst [vmem:[%s10283_s30 + $0xf80] sm:$0xff] %v2209_v48  ;;  %2212 = vst [vmem:[%s10283_s30 + $0xf88] sm:$0xff] %v2211_v49  ;;  %v2213_v50 = vld [vmem:[%s10278_s29 + $0x1f20] sm:$0xff]  ;;  %v2215_v51 = vld [vmem:[%s10278_s29 + $0x1f30] sm:$0xff] }
 0x10f   : > { %v2217_v52 = vld [vmem:[%s10278_s29 + $0x1f40] sm:$0xff]  ;;  %2214 = vst [vmem:[%s10283_s30 + $0xf90] sm:$0xff] %v2213_v50  ;;  %2216 = vst [vmem:[%s10283_s30 + $0xf98] sm:$0xff] %v2215_v51  ;;  %v2219_v53 = vld [vmem:[%s10278_s29 + $0x1f50] sm:$0xff] }
 0x110   : > { %2218 = vst [vmem:[%s10283_s30 + $0xfa0] sm:$0xff] %v2217_v52  ;;  %v2221_v54 = vld [vmem:[%s10278_s29 + $0x1f60] sm:$0xff]  ;;  %v2223_v55 = vld [vmem:[%s10278_s29 + $0x1f70] sm:$0xff]  ;;  %2220 = vst [vmem:[%s10283_s30 + $0xfa8] sm:$0xff] %v2219_v53 }
 0x111   : > { %2222 = vst [vmem:[%s10283_s30 + $0xfb0] sm:$0xff] %v2221_v54  ;;  %2224 = vst [vmem:[%s10283_s30 + $0xfb8] sm:$0xff] %v2223_v55  ;;  %v2225_v56 = vld [vmem:[%s10278_s29 + $0x1f80] sm:$0xff]  ;;  %v2227_v57 = vld [vmem:[%s10278_s29 + $0x1f90] sm:$0xff] }
 0x112   : > { %v2229_v58 = vld [vmem:[%s10278_s29 + $0x1fa0] sm:$0xff]  ;;  %2226 = vst [vmem:[%s10283_s30 + $0xfc0] sm:$0xff] %v2225_v56  ;;  %2228 = vst [vmem:[%s10283_s30 + $0xfc8] sm:$0xff] %v2227_v57  ;;  %v2231_v59 = vld [vmem:[%s10278_s29 + $0x1fb0] sm:$0xff] }
 0x113   : > { %2230 = vst [vmem:[%s10283_s30 + $0xfd0] sm:$0xff] %v2229_v58  ;;  %v2233_v60 = vld [vmem:[%s10278_s29 + $0x1fc0] sm:$0xff]  ;;  %v2235_v61 = vld [vmem:[%s10278_s29 + $0x1fd0] sm:$0xff]  ;;  %2232 = vst [vmem:[%s10283_s30 + $0xfd8] sm:$0xff] %v2231_v59 }
 0x114   : > { %2234 = vst [vmem:[%s10283_s30 + $0xfe0] sm:$0xff] %v2233_v60  ;;  %2236 = vst [vmem:[%s10283_s30 + $0xfe8] sm:$0xff] %v2235_v61  ;;  %v2237_v62 = vld [vmem:[%s10278_s29 + $0x1fe0] sm:$0xff]  ;;  %v2239_v63 = vld [vmem:[%s10278_s29 + $0x1ff0] sm:$0xff] }
 0x115   : > { %2238 = vst [vmem:[%s10283_s30 + $0xff0] sm:$0xff] %v2237_v62  ;;  %2240 = vst [vmem:[%s10283_s30 + $0xff8] sm:$0xff] %v2239_v63 }
 0x116 PF: > { %p8521_p7 = scmp.ge.s32.totalorder %s10198_s18, 1  ;;  %p4338_p8 = scmp.lt.s32.totalorder %s10198_s18, 5 }
 0x118   : > { %p4339_p9 = pnand %p8521_p7, %p4338_p8 }
 0x119   : > { %s4345_s4 = sand.u32 (!%p4339_p9), 1, %s10174_s12   ;;  %p4381_p10 = scmp.lt.s32.totalorder (!%p4339_p9), %s10186_s15, 1 }
 0x11a   : > { %4342 = sbr.rel (%p4339_p9) target bundleno = 1060 (0x424), region = 80  ;;  %s8522_s5 = sshll.u32 (!%p4339_p9), %s4345_s4, 12 }
 0x11b   : > { %s11309_s6 = scalar_lea.vmem (!%p4339_p9), [#allocation2], %s8522_s5  ;;  %s8525_s11 = sshll.u32 (!%p4339_p9), %s10182_s14, 1 }
 0x11c   : > { %p4388_p11 = scmp.lt.s32.totalorder (!%p4339_p9), %s8525_s11, 3 }
 0x11f   : > { %v9364_v0 = vld [vmem:[%s11309_s6 + $0x74] ss:$8 sps:$4 sm:$0xff]   ;;  %v9368_v2 = vld [vmem:[%s11309_s6 + $0x70] ss:$8 sps:$4 sm:$0xff]   ;;  %v9370_v4 = vld [vmem:[%s11309_s6 + $0x64] ss:$8 sps:$4 sm:$0xff]   ;;  %v4671_v38 = vlaneseq }
 0x120   : > { %v9366_v1 = vld [vmem:[%s11309_s6 + $0x174] ss:$8 sps:$4 sm:$0xff]   ;;  %6031 = vmatprep.subr.bf16.mxu0 %v9364_v0  ;;  %v9369_v3 = vld [vmem:[%s11309_s6 + $0x170] ss:$8 sps:$4 sm:$0xff]   ;;  %v9372_v5 = vld [vmem:[%s11309_s6 + $0x164] ss:$8 sps:$4 sm:$0xff]  }
 0x121   : > { %6072 = vmatprep.subr.bf16.mxu1 %v9366_v1  ;;  %6032 = vmatpush1.bf16.msra.mxu0 %v9368_v2  ;;  %v9374_v6 = vld [vmem:[%s11309_s6 + $0x60] ss:$8 sps:$4 sm:$0xff]   ;;  %v9376_v8 = vld [vmem:[%s11309_s6 + $0x54] ss:$8 sps:$4 sm:$0xff]   ;;  %v9380_v10 = vld [vmem:[%s11309_s6 + $0x50] ss:$8 sps:$4 sm:$0xff]  }
 0x122   : > { %6073 = vmatpush1.bf16.msra.mxu1 %v9369_v3  ;;  %6033 = vmatprep.subr.bf16.mxu0 %v9370_v4  ;;  %v9375_v7 = vld [vmem:[%s11309_s6 + $0x160] ss:$8 sps:$4 sm:$0xff]   ;;  %v9378_v9 = vld [vmem:[%s11309_s6 + $0x154] ss:$8 sps:$4 sm:$0xff]   ;;  %v9381_v11 = vld [vmem:[%s11309_s6 + $0x150] ss:$8 sps:$4 sm:$0xff]  }
 0x123   : > { %6074 = vmatprep.subr.bf16.mxu1 %v9372_v5  ;;  %v9382_v12 = vld [vmem:[%s11309_s6 + $0x44] ss:$8 sps:$4 sm:$0xff]   ;;  %v9386_v14 = vld [vmem:[%s11309_s6 + $0x40] ss:$8 sps:$4 sm:$0xff]   ;;  %v9388_v16 = vld [vmem:[%s11309_s6 + $0x34] ss:$8 sps:$4 sm:$0xff]  }
 0x124   : > { %v9384_v13 = vld [vmem:[%s11309_s6 + $0x144] ss:$8 sps:$4 sm:$0xff]   ;;  %v9387_v15 = vld [vmem:[%s11309_s6 + $0x140] ss:$8 sps:$4 sm:$0xff]   ;;  %v9390_v17 = vld [vmem:[%s11309_s6 + $0x134] ss:$8 sps:$4 sm:$0xff]  }
 0x125   : > { %6034 = vmatpush1.bf16.msra.mxu0 %v9374_v6  ;;  %v9392_v18 = vld [vmem:[%s11309_s6 + $0x30] ss:$8 sps:$4 sm:$0xff]   ;;  %v9394_v20 = vld [vmem:[%s11309_s6 + $0x24] ss:$8 sps:$4 sm:$0xff]   ;;  %v9398_v22 = vld [vmem:[%s11309_s6 + $0x20] ss:$8 sps:$4 sm:$0xff]  }
 0x126   : > { %6075 = vmatpush1.bf16.msra.mxu1 %v9375_v7  ;;  %6035 = vmatprep.subr.bf16.mxu0 %v9376_v8  ;;  %v9393_v19 = vld [vmem:[%s11309_s6 + $0x130] ss:$8 sps:$4 sm:$0xff]   ;;  %v9396_v21 = vld [vmem:[%s11309_s6 + $0x124] ss:$8 sps:$4 sm:$0xff]   ;;  %v9399_v23 = vld [vmem:[%s11309_s6 + $0x120] ss:$8 sps:$4 sm:$0xff]  }
 0x127   : > { %6076 = vmatprep.subr.bf16.mxu1 %v9378_v9  ;;  %v9400_v24 = vld [vmem:[%s11309_s6 + $0x14] ss:$8 sps:$4 sm:$0xff]   ;;  %v9404_v26 = vld [vmem:[%s11309_s6 + $0x10] ss:$8 sps:$4 sm:$0xff]   ;;  %v9406_v28 = vld [vmem:[%s11309_s6 + $0x4] ss:$8 sps:$4 sm:$0xff]  }
 0x128   : > { %v9402_v25 = vld [vmem:[%s11309_s6 + $0x114] ss:$8 sps:$4 sm:$0xff]   ;;  %v9405_v27 = vld [vmem:[%s11309_s6 + $0x110] ss:$8 sps:$4 sm:$0xff]   ;;  %v9408_v29 = vld [vmem:[%s11309_s6 + $0x104] ss:$8 sps:$4 sm:$0xff]  }
 0x129   : > { %6036 = vmatpush1.bf16.msra.mxu0 %v9380_v10  ;;  %v9410_v30 = vld [vmem:[%s11309_s6] ss:$8 sps:$4 sm:$0xff]   ;;  %v9412_v32 = vld [vmem:[%s11309_s6 + $0xf4] ss:$8 sps:$4 sm:$0xff]   ;;  %v9416_v34 = vld [vmem:[%s11309_s6 + $0xf0] ss:$8 sps:$4 sm:$0xff]  }
 0x12a   : > { %6077 = vmatpush1.bf16.msra.mxu1 %v9381_v11  ;;  %6037 = vmatprep.subr.bf16.mxu0 %v9382_v12  ;;  %v9411_v31 = vld [vmem:[%s11309_s6 + $0x100] ss:$8 sps:$4 sm:$0xff]   ;;  %v9414_v33 = vld [vmem:[%s11309_s6 + $0x1f4] ss:$8 sps:$4 sm:$0xff]   ;;  %v9417_v35 = vld [vmem:[%s11309_s6 + $0x1f0] ss:$8 sps:$4 sm:$0xff]  }
 0x12b   : > { %6078 = vmatprep.subr.bf16.mxu1 %v9384_v13  ;;  %v10200_v36 = vmov 1983009808   ;;  %v9418_v39 = vld [vmem:[%s11309_s6 + $0xe4] ss:$8 sps:$4 sm:$0xff]   ;;  %s12012_s15 = smov (!%p4381_p10, %s10186_s15), 1  ;;  %v11354_v43 = vshrl.u32 %v4671_v38, 7 }
 0x12c   : > { %v4669_v37 = vunpack.c.l.s4 %v10200_v36  ;;  %v9420_v40 = vld [vmem:[%s11309_s6 + $0x1e4] ss:$8 sps:$4 sm:$0xff]   ;;  %v9422_v41 = vld [vmem:[%s11309_s6 + $0xe0] ss:$8 sps:$4 sm:$0xff]   ;;  %v9424_v45 = vld [vmem:[%s11309_s6 + $0xd4] ss:$8 sps:$4 sm:$0xff]  }
 0x12d   : > { %6038 = vmatpush1.bf16.msra.mxu0 %v9386_v14  ;;  %v9423_v44 = vld [vmem:[%s11309_s6 + $0x1e0] ss:$8 sps:$4 sm:$0xff]   ;;  %s9306_s7 = sshll.u32 %s12012_s15, 6  ;;  %v9426_v46 = vld [vmem:[%s11309_s6 + $0x1d4] ss:$8 sps:$4 sm:$0xff]   ;;  %s12014_s11 = smov (!%p4388_p11, %s8525_s11), 3 }
 0x12e   : > { %6079 = vmatpush1.bf16.msra.mxu1 %v9387_v15  ;;  %6039 = vmatprep.subr.bf16.mxu0 %v9388_v16  ;;  %v4670_v42 = vunpack.c.0.s8 %v4669_v37  ;;  %v9428_v47 = vld [vmem:[%s11309_s6 + $0xd0] ss:$8 sps:$4 sm:$0xff]   ;;  %s11365_s10 = scalar_lea.vmem %s11995_s0, %s9306_s7  ;;  %v9430_v50 = vld [vmem:[%s11309_s6 + $0xc4] ss:$8 sps:$4 sm:$0xff]   ;;  %v9434_v53 = vld [vmem:[%s11309_s6 + $0xc0] ss:$8 sps:$4 sm:$0xff]   ;;  %s4390_s22 = scalar_lea.vmem %s11997_s2, %s12014_s11 }
 0x12f   : > { %6080 = vmatprep.subr.bf16.mxu1 %v9390_v17  ;;  %v9429_v48 = vld [vmem:[%s11309_s6 + $0x1d0] ss:$8 sps:$4 sm:$0xff]   ;;  %v9432_v51 = vld [vmem:[%s11309_s6 + $0x1c4] ss:$8 sps:$4 sm:$0xff]   ;;  %v9435_v56 = vld [vmem:[%s11309_s6 + $0x1c0] ss:$8 sps:$4 sm:$0xff]  }
 0x130   : > { %v11368_v49 = vsub.s32 %v4670_v42, %v11354_v43  ;;  %v4403_v52 = vld [vmem:[%s11365_s10] sm:$0xff]  ;;  %v9436_v57 = vld [vmem:[%s11309_s6 + $0xb4] ss:$8 sps:$4 sm:$0xff]   ;;  %v9440_v61 = vld [vmem:[%s11309_s6 + $0xb0] ss:$8 sps:$4 sm:$0xff]   ;;  %vm8332_vm0 = vcmask 1043456  }
 0x131   : > { %6040 = vmatpush1.bf16.msra.mxu0 %v9392_v18  ;;  %v4667_v55 = vcombine.high %v4403_v52, %v4403_v52  ;;  %v9438_v58 = vld [vmem:[%s11309_s6 + $0x1b4] ss:$8 sps:$4 sm:$0xff]   ;;  %v9441_v63 = vld [vmem:[%s11309_s6 + $0x1b0] ss:$8 sps:$4 sm:$0xff]   ;;  %v9442_v0 = vld [vmem:[%s11309_s6 + $0xa4] ss:$8 sps:$4 sm:$0xff]  }
 0x132   : > { %6081 = vmatpush1.bf16.msra.mxu1 %v9393_v19  ;;  %6041 = vmatprep.subr.bf16.mxu0 %v9394_v20  ;;  %v4674_v54 = vrot.slane %v4403_v52, %v11368_v49  ;;  %v9444_v1 = vld [vmem:[%s11309_s6 + $0x1a4] ss:$8 sps:$4 sm:$0xff]   ;;  %v9446_v2 = vld [vmem:[%s11309_s6 + $0xa0] ss:$8 sps:$4 sm:$0xff]   ;;  %v9448_v4 = vld [vmem:[%s11309_s6 + $0x94] ss:$8 sps:$4 sm:$0xff]  }
 0x133   : > { %6082 = vmatprep.subr.bf16.mxu1 %v9396_v21  ;;  %v4681_v60 = vrot.slane %v4667_v55, %v11368_v49  ;;  %v9447_v3 = vld [vmem:[%s11309_s6 + $0x1a0] ss:$8 sps:$4 sm:$0xff]   ;;  %v9450_v5 = vld [vmem:[%s11309_s6 + $0x194] ss:$8 sps:$4 sm:$0xff]   ;;  %v9452_v6 = vld [vmem:[%s11309_s6 + $0x90] ss:$8 sps:$4 sm:$0xff]  }
 0x134   : > { %v4682_v59 = vcombine.high %v4674_v54, %v4674_v54  ;;  %v9453_v7 = vld [vmem:[%s11309_s6 + $0x190] ss:$8 sps:$4 sm:$0xff]   ;;  %v9454_v8 = vld [vmem:[%s11309_s6 + $0x84] ss:$8 sps:$4 sm:$0xff]   ;;  %v9458_v10 = vld [vmem:[%s11309_s6 + $0x80] ss:$8 sps:$4 sm:$0xff]  }
 0x135   : > { %6042 = vmatpush1.bf16.msra.mxu0 %v9398_v22  ;;  %v4683_v62 = vcombine.high %v4681_v60, %v4681_v60  ;;  %v9456_v9 = vld [vmem:[%s11309_s6 + $0x184] ss:$8 sps:$4 sm:$0xff]   ;;  %v9459_v11 = vld [vmem:[%s11309_s6 + $0x180] ss:$8 sps:$4 sm:$0xff]   ;;  %v9463_v12 = vld [vmem:[%s11309_s6 + $0x274] ss:$8 sps:$4 sm:$0xff]  }
 0x136   : > { %6083 = vmatpush1.bf16.msra.mxu1 %v9399_v23  ;;  %6043 = vmatprep.subr.bf16.mxu0 %v9400_v24  ;;  %v9466_v13 = vld [vmem:[%s11309_s6 + $0x374] ss:$8 sps:$4 sm:$0xff]   ;;  %v9461_v14 = vld [vmem:[%s11309_s6 + $0x270] ss:$8 sps:$4 sm:$0xff]   ;;  %v9469_v16 = vld [vmem:[%s11309_s6 + $0x264] ss:$8 sps:$4 sm:$0xff]  }
 0x137   : > { %6084 = vmatprep.subr.bf16.mxu1 %v9402_v25  ;;  %6063 = vmatprep.mubr.bf16.mxu0 %v4682_v59  ;;  %v9464_v15 = vld [vmem:[%s11309_s6 + $0x370] ss:$8 sps:$4 sm:$0xff]   ;;  %v9472_v17 = vld [vmem:[%s11309_s6 + $0x364] ss:$8 sps:$4 sm:$0xff]   ;;  %v9467_v18 = vld [vmem:[%s11309_s6 + $0x260] ss:$8 sps:$4 sm:$0xff]  }
 0x138   : > { %6104 = vmatprep.mubr.bf16.mxu1 %v4683_v62  ;;  %v9470_v19 = vld [vmem:[%s11309_s6 + $0x360] ss:$8 sps:$4 sm:$0xff]   ;;  %v9475_v20 = vld [vmem:[%s11309_s6 + $0x254] ss:$8 sps:$4 sm:$0xff]   ;;  %v9473_v22 = vld [vmem:[%s11309_s6 + $0x250] ss:$8 sps:$4 sm:$0xff]  }
 0x139   : > { %6044 = vmatpush1.bf16.msra.mxu0 %v9404_v26  ;;  %v9478_v21 = vld [vmem:[%s11309_s6 + $0x354] ss:$8 sps:$4 sm:$0xff]   ;;  %v9476_v23 = vld [vmem:[%s11309_s6 + $0x350] ss:$8 sps:$4 sm:$0xff]   ;;  %v9481_v24 = vld [vmem:[%s11309_s6 + $0x244] ss:$8 sps:$4 sm:$0xff]  }
 0x13a   : > { %6085 = vmatpush1.bf16.msra.mxu1 %v9405_v27  ;;  %6045 = vmatprep.subr.bf16.mxu0 %v9406_v28  ;;  %v9484_v25 = vld [vmem:[%s11309_s6 + $0x344] ss:$8 sps:$4 sm:$0xff]   ;;  %v9479_v26 = vld [vmem:[%s11309_s6 + $0x240] ss:$8 sps:$4 sm:$0xff]   ;;  %v9487_v28 = vld [vmem:[%s11309_s6 + $0x234] ss:$8 sps:$4 sm:$0xff]  }
 0x13b   : > { %6086 = vmatprep.subr.bf16.mxu1 %v9408_v29  ;;  %v9482_v27 = vld [vmem:[%s11309_s6 + $0x340] ss:$8 sps:$4 sm:$0xff]   ;;  %v9490_v29 = vld [vmem:[%s11309_s6 + $0x334] ss:$8 sps:$4 sm:$0xff]   ;;  %v9500_v42 = vld [vmem:[%s11309_s6 + $0x310] ss:$8 sps:$4 sm:$0xff]  }
 0x13c   : > { %v9499_v36 = vld [vmem:[%s11309_s6 + $0x214] ss:$8 sps:$4 sm:$0xff]   ;;  %v4404_v38 = vld [vmem:[%s11365_s10 + $0x8] sm:$0xff]  ;;  %v9512_v55 = vld [vmem:[%s11309_s6 + $0x3f0] ss:$8 sps:$4 sm:$0xff]   ;;  %s8527_s14 = sshll.u32 %s12012_s15, 2 }
 0x13d   : > { %6046 = vmatpush1.bf16.msra.mxu0 %v9410_v30  ;;  %v9485_v30 = vld [vmem:[%s11309_s6 + $0x230] ss:$8 sps:$4 sm:$0xff]   ;;  %v9502_v37 = vld [vmem:[%s11309_s6 + $0x314] ss:$8 sps:$4 sm:$0xff]   ;;  %v9518_v59 = vld [vmem:[%s11309_s6 + $0x3e0] ss:$8 sps:$4 sm:$0xff]   ;;  %s4398_s24 = sadd.s32 %s8527_s14, %s12014_s11 }
 0x13e   : > { %6087 = vmatpush1.bf16.msra.mxu1 %v9411_v31  ;;  %6047 = vmatprep.subr.bf16.mxu0 %v9412_v32  ;;  %v9488_v31 = vld [vmem:[%s11309_s6 + $0x330] ss:$8 sps:$4 sm:$0xff]   ;;  %v9493_v32 = vld [vmem:[%s11309_s6 + $0x224] ss:$8 sps:$4 sm:$0xff]   ;;  %v9511_v52 = vld [vmem:[%s11309_s6 + $0x2f4] ss:$8 sps:$4 sm:$0xff]  }
 0x13f   : > { %6088 = vmatprep.subr.bf16.mxu1 %v9414_v33  ;;  %v9496_v33 = vld [vmem:[%s11309_s6 + $0x324] ss:$8 sps:$4 sm:$0xff]   ;;  %v9521_v62 = vld [vmem:[%s11309_s6 + $0x2d0] ss:$8 sps:$4 sm:$0xff]   ;;  %s8528_s25 = sshll.u32 %s4398_s24, 1 }
 0x140   : > { %s4400_s28 = scalar_lea.vmem %s11998_s3, %s8528_s25 }
 0x141   : > { %6048 = vmatpush2.bf16.msra.mxu0 %v9416_v34  ;;  %v9491_v34 = vld [vmem:[%s11309_s6 + $0x220] ss:$8 sps:$4 sm:$0xff]  }
 0x142   : > { %6089 = vmatpush2.bf16.msra.mxu1 %v9417_v35  ;;  %6049 = vmatprep.subr.bf16.mxu0 %v9418_v39  ;;  %v9494_v35 = vld [vmem:[%s11309_s6 + $0x320] ss:$8 sps:$4 sm:$0xff]   ;;  %v11421_v39 = vrot.slane %v4404_v38, %v11368_v49 }
 0x143   : > { %6090 = vmatprep.subr.bf16.mxu1 %v9420_v40  ;;  %v4684_v40 = vcombine.high %v4404_v38, %v4404_v38  ;;  %v9578_v38 = vld [vmem:[%s11309_s6 + $0x444] ss:$8 sps:$4 sm:$0xff]  }
 0x145   : > { %6050 = vmatpush2.bf16.msra.mxu0 %v9422_v41  ;;  %v9497_v41 = vld [vmem:[%s11309_s6 + $0x210] ss:$8 sps:$4 sm:$0xff]  }
 0x146   : > { %6091 = vmatpush2.bf16.msra.mxu1 %v9423_v44  ;;  %6051 = vmatprep.subr.bf16.mxu0 %v9424_v45  ;;  %v4699_v44 = vcombine.high %v11421_v39, %v11421_v39  ;;  %v11428_v45 = vrot.slane %v4684_v40, %v11368_v49  ;;  %v9576_v40 = vld [vmem:[%s11309_s6 + $0x440] ss:$8 sps:$4 sm:$0xff]  }
 0x147   : > { %6092 = vmatprep.subr.bf16.mxu1 %v9426_v46  ;;  %v9505_v46 = vld [vmem:[%s11309_s6 + $0x204] ss:$8 sps:$4 sm:$0xff]  }
 0x149   : > { %6052 = vmatpush2.bf16.msra.mxu0 %v9428_v47  ;;  %v9508_v47 = vld [vmem:[%s11309_s6 + $0x304] ss:$8 sps:$4 sm:$0xff]  }
 0x14a   : > { %6093 = vmatpush2.bf16.msra.mxu1 %v9429_v48  ;;  %6053 = vmatprep.subr.bf16.mxu0 %v9430_v50  ;;  %v4700_v48 = vcombine.high %v11428_v45, %v11428_v45  ;;  %v9503_v50 = vld [vmem:[%s11309_s6 + $0x200] ss:$8 sps:$4 sm:$0xff]  }
 0x14b   : > { %6094 = vmatprep.subr.bf16.mxu1 %v9432_v51  ;;  %v9506_v51 = vld [vmem:[%s11309_s6 + $0x300] ss:$8 sps:$4 sm:$0xff]  }
 0x14d   : > { %6054 = vmatpush2.bf16.msra.mxu0 %v9434_v53  ;;  %v9514_v53 = vld [vmem:[%s11309_s6 + $0x3f4] ss:$8 sps:$4 sm:$0xff]  }
 0x14e   : > { %6095 = vmatpush2.bf16.msra.mxu1 %v9435_v56  ;;  %6055 = vmatprep.subr.bf16.mxu0 %v9436_v57  ;;  %v9517_v56 = vld [vmem:[%s11309_s6 + $0x2e4] ss:$8 sps:$4 sm:$0xff]  }
 0x14f   : > { %6096 = vmatprep.subr.bf16.mxu1 %v9438_v58  ;;  %v9520_v57 = vld [vmem:[%s11309_s6 + $0x3e4] ss:$8 sps:$4 sm:$0xff]   ;;  %v9515_v58 = vld [vmem:[%s11309_s6 + $0x2e0] ss:$8 sps:$4 sm:$0xff]  }
 0x151   : > { %6056 = vmatpush2.bf16.msra.mxu0 %v9440_v61  ;;  %v9526_v61 = vld [vmem:[%s11309_s6 + $0x3d4] ss:$8 sps:$4 sm:$0xff]  }
 0x152   : > { %6097 = vmatpush2.bf16.msra.mxu1 %v9441_v63  ;;  %6057 = vmatprep.subr.bf16.mxu0 %v9442_v0  ;;  %v9524_v63 = vld [vmem:[%s11309_s6 + $0x3d0] ss:$8 sps:$4 sm:$0xff]   ;;  %v9529_v0 = vld [vmem:[%s11309_s6 + $0x2c4] ss:$8 sps:$4 sm:$0xff]  }
 0x153   : > { %6098 = vmatprep.subr.bf16.mxu1 %v9444_v1  ;;  %v9532_v1 = vld [vmem:[%s11309_s6 + $0x3c4] ss:$8 sps:$4 sm:$0xff]  }
 0x155   : > { %6058 = vmatpush2.bf16.msra.mxu0 %v9446_v2  ;;  %v9527_v2 = vld [vmem:[%s11309_s6 + $0x2c0] ss:$8 sps:$4 sm:$0xff]  }
 0x156   : > { %6099 = vmatpush2.bf16.msra.mxu1 %v9447_v3  ;;  %6059 = vmatprep.subr.bf16.mxu0 %v9448_v4  ;;  %v9530_v3 = vld [vmem:[%s11309_s6 + $0x3c0] ss:$8 sps:$4 sm:$0xff]   ;;  %v9535_v4 = vld [vmem:[%s11309_s6 + $0x2b4] ss:$8 sps:$4 sm:$0xff]  }
 0x157   : > { %6100 = vmatprep.subr.bf16.mxu1 %v9450_v5  ;;  %v9538_v5 = vld [vmem:[%s11309_s6 + $0x3b4] ss:$8 sps:$4 sm:$0xff]  }
 0x159   : > { %6060 = vmatpush2.bf16.msra.mxu0 %v9452_v6  ;;  %v9533_v6 = vld [vmem:[%s11309_s6 + $0x2b0] ss:$8 sps:$4 sm:$0xff]  }
 0x15a   : > { %6101 = vmatpush2.bf16.msra.mxu1 %v9453_v7  ;;  %6061 = vmatprep.subr.bf16.mxu0 %v9454_v8  ;;  %v9536_v7 = vld [vmem:[%s11309_s6 + $0x3b0] ss:$8 sps:$4 sm:$0xff]   ;;  %v9541_v8 = vld [vmem:[%s11309_s6 + $0x2a4] ss:$8 sps:$4 sm:$0xff]  }
 0x15b   : > { %6102 = vmatprep.subr.bf16.mxu1 %v9456_v9  ;;  %v9544_v9 = vld [vmem:[%s11309_s6 + $0x3a4] ss:$8 sps:$4 sm:$0xff]  }
 0x15d   : > { %6062 = vmatpush2.bf16.msra.mxu0 %v9458_v10  ;;  %v9539_v10 = vld [vmem:[%s11309_s6 + $0x2a0] ss:$8 sps:$4 sm:$0xff]  }
 0x15e   : > { %6103 = vmatpush2.bf16.msra.mxu1 %v9459_v11  ;;  %6113 = vmatprep.subr.bf16.mxu0 %v9463_v12  ;;  %v9542_v11 = vld [vmem:[%s11309_s6 + $0x3a0] ss:$8 sps:$4 sm:$0xff]   ;;  %v9547_v12 = vld [vmem:[%s11309_s6 + $0x294] ss:$8 sps:$4 sm:$0xff]  }
 0x15f   : > { %6154 = vmatprep.subr.bf16.mxu1 %v9466_v13  ;;  %v9550_v13 = vld [vmem:[%s11309_s6 + $0x394] ss:$8 sps:$4 sm:$0xff]  }
 0x160   : > { %6064 = vmatmul.mubr.bf16.vlgmr.msra.gmra.mxu0 %v4674_v54  ;;  %v9509_v54 = vld [vmem:[%s11309_s6 + $0x2f0] ss:$8 sps:$4 sm:$0xff]  }
 0x161   : > { %6105 = vmatmul.mubr.bf16.vlgmr.msra.gmra.mxu1 %v4681_v60  ;;  %6114 = vmatpush1.bf16.msra.mxu0 %v9461_v14  ;;  %v9523_v60 = vld [vmem:[%s11309_s6 + $0x2d4] ss:$8 sps:$4 sm:$0xff]   ;;  %v9545_v14 = vld [vmem:[%s11309_s6 + $0x290] ss:$8 sps:$4 sm:$0xff]  }
 0x162   : > { %6155 = vmatpush1.bf16.msra.mxu1 %v9464_v15  ;;  %6115 = vmatprep.subr.bf16.mxu0 %v9469_v16  ;;  %v9548_v15 = vld [vmem:[%s11309_s6 + $0x390] ss:$8 sps:$4 sm:$0xff]   ;;  %v9553_v16 = vld [vmem:[%s11309_s6 + $0x284] ss:$8 sps:$4 sm:$0xff]  }
 0x163   : > { %6156 = vmatprep.subr.bf16.mxu1 %v9472_v17  ;;  %6145 = vmatprep.mubr.bf16.mxu0 %v4699_v44  ;;  %v9556_v17 = vld [vmem:[%s11309_s6 + $0x384] ss:$8 sps:$4 sm:$0xff]   ;;  %v9587_v44 = vld [vmem:[%s11309_s6 + $0x534] ss:$8 sps:$4 sm:$0xff]  }
 0x164   : > { %6186 = vmatprep.mubr.bf16.mxu1 %v4700_v48  ;;  %v9593_v48 = vld [vmem:[%s11309_s6 + $0x524] ss:$8 sps:$4 sm:$0xff]  }
 0x165   : > { %6116 = vmatpush1.bf16.msra.mxu0 %v9467_v18  ;;  %v9551_v18 = vld [vmem:[%s11309_s6 + $0x280] ss:$8 sps:$4 sm:$0xff]  }
 0x166   : > { %6157 = vmatpush1.bf16.msra.mxu1 %v9470_v19  ;;  %6117 = vmatprep.subr.bf16.mxu0 %v9475_v20  ;;  %v9554_v19 = vld [vmem:[%s11309_s6 + $0x380] ss:$8 sps:$4 sm:$0xff]   ;;  %v9560_v20 = vld [vmem:[%s11309_s6 + $0x474] ss:$8 sps:$4 sm:$0xff]  }
 0x167   : > { %6158 = vmatprep.subr.bf16.mxu1 %v9478_v21  ;;  %v9563_v21 = vld [vmem:[%s11309_s6 + $0x574] ss:$8 sps:$4 sm:$0xff]  }
 0x169   : > { %6118 = vmatpush1.bf16.msra.mxu0 %v9473_v22  ;;  %v9558_v22 = vld [vmem:[%s11309_s6 + $0x470] ss:$8 sps:$4 sm:$0xff]  }
 0x16a   : > { %6159 = vmatpush1.bf16.msra.mxu1 %v9476_v23  ;;  %6119 = vmatprep.subr.bf16.mxu0 %v9481_v24  ;;  %v9561_v23 = vld [vmem:[%s11309_s6 + $0x570] ss:$8 sps:$4 sm:$0xff]   ;;  %v9566_v24 = vld [vmem:[%s11309_s6 + $0x464] ss:$8 sps:$4 sm:$0xff]  }
 0x16b   : > { %6160 = vmatprep.subr.bf16.mxu1 %v9484_v25  ;;  %v4405_v25 = vld [vmem:[%s11365_s10 + $0x10] sm:$0xff] }
 0x16d   : > { %6120 = vmatpush1.bf16.msra.mxu0 %v9479_v26  ;;  %v9569_v26 = vld [vmem:[%s11309_s6 + $0x564] ss:$8 sps:$4 sm:$0xff]  }
 0x16e   : > { %6161 = vmatpush1.bf16.msra.mxu1 %v9482_v27  ;;  %6121 = vmatprep.subr.bf16.mxu0 %v9487_v28  ;;  %v11476_v27 = vrot.slane %v4405_v25, %v11368_v49  ;;  %v4701_v28 = vcombine.high %v4405_v25, %v4405_v25  ;;  %v9650_v25 = vld [vmem:[%s11309_s6 + $0x484] ss:$8 sps:$4 sm:$0xff]  }
 0x16f   : > { %6162 = vmatprep.subr.bf16.mxu1 %v9490_v29  ;;  %v9564_v29 = vld [vmem:[%s11309_s6 + $0x460] ss:$8 sps:$4 sm:$0xff]  }
 0x171   : > { %6122 = vmatpush1.bf16.msra.mxu0 %v9485_v30  ;;  %v4716_v30 = vcombine.high %v11476_v27, %v11476_v27 }
 0x172   : > { %6163 = vmatpush1.bf16.msra.mxu1 %v9488_v31  ;;  %6123 = vmatprep.subr.bf16.mxu0 %v9493_v32  ;;  %v11484_v31 = vrot.slane %v4701_v28, %v11368_v49  ;;  %v9567_v32 = vld [vmem:[%s11309_s6 + $0x560] ss:$8 sps:$4 sm:$0xff]  }
 0x173   : > { %6164 = vmatprep.subr.bf16.mxu1 %v9496_v33  ;;  %v9572_v33 = vld [vmem:[%s11309_s6 + $0x454] ss:$8 sps:$4 sm:$0xff]  }
 0x175   : > { %6124 = vmatpush1.bf16.msra.mxu0 %v9491_v34  ;;  %v9575_v34 = vld [vmem:[%s11309_s6 + $0x554] ss:$8 sps:$4 sm:$0xff]  }
 0x176   : > { %6165 = vmatpush1.bf16.msra.mxu1 %v9494_v35  ;;  %6125 = vmatprep.subr.bf16.mxu0 %v9499_v36  ;;  %v4717_v35 = vcombine.high %v11484_v31, %v11484_v31  ;;  %v9570_v36 = vld [vmem:[%s11309_s6 + $0x450] ss:$8 sps:$4 sm:$0xff]  }
 0x177   : > { %6166 = vmatprep.subr.bf16.mxu1 %v9502_v37  ;;  %v9573_v37 = vld [vmem:[%s11309_s6 + $0x550] ss:$8 sps:$4 sm:$0xff]  }
 0x179   : > { %6126 = vmatpush1.bf16.msra.mxu0 %v9497_v41  ;;  %v9579_v41 = vld [vmem:[%s11309_s6 + $0x540] ss:$8 sps:$4 sm:$0xff]  }
 0x17a   : > { %6167 = vmatpush1.bf16.msra.mxu1 %v9500_v42  ;;  %6127 = vmatprep.subr.bf16.mxu0 %v9505_v46  ;;  %v9584_v42 = vld [vmem:[%s11309_s6 + $0x434] ss:$8 sps:$4 sm:$0xff]   ;;  %v9585_v46 = vld [vmem:[%s11309_s6 + $0x530] ss:$8 sps:$4 sm:$0xff]  }
 0x17b   : > { %6168 = vmatprep.subr.bf16.mxu1 %v9508_v47  ;;  %v9590_v47 = vld [vmem:[%s11309_s6 + $0x424] ss:$8 sps:$4 sm:$0xff]  }
 0x17d   : > { %6128 = vmatpush1.bf16.msra.mxu0 %v9503_v50  ;;  %v9588_v50 = vld [vmem:[%s11309_s6 + $0x420] ss:$8 sps:$4 sm:$0xff]  }
 0x17e   : > { %6169 = vmatpush1.bf16.msra.mxu1 %v9506_v51  ;;  %6129 = vmatprep.subr.bf16.mxu0 %v9511_v52  ;;  %v9591_v51 = vld [vmem:[%s11309_s6 + $0x520] ss:$8 sps:$4 sm:$0xff]   ;;  %v9596_v52 = vld [vmem:[%s11309_s6 + $0x414] ss:$8 sps:$4 sm:$0xff]  }
 0x17f   : > { %6170 = vmatprep.subr.bf16.mxu1 %v9514_v53  ;;  %v9599_v53 = vld [vmem:[%s11309_s6 + $0x514] ss:$8 sps:$4 sm:$0xff]  }
 0x181   : > { %6130 = vmatpush2.bf16.msra.mxu0 %v9509_v54  ;;  %v9594_v54 = vld [vmem:[%s11309_s6 + $0x410] ss:$8 sps:$4 sm:$0xff]  }
 0x182   : > { %6171 = vmatpush2.bf16.msra.mxu1 %v9512_v55  ;;  %6131 = vmatprep.subr.bf16.mxu0 %v9517_v56  ;;  %v9597_v55 = vld [vmem:[%s11309_s6 + $0x510] ss:$8 sps:$4 sm:$0xff]   ;;  %v9602_v56 = vld [vmem:[%s11309_s6 + $0x404] ss:$8 sps:$4 sm:$0xff]  }
 0x183   : > { %6172 = vmatprep.subr.bf16.mxu1 %v9520_v57  ;;  %v9605_v57 = vld [vmem:[%s11309_s6 + $0x504] ss:$8 sps:$4 sm:$0xff]  }
 0x185   : > { %6132 = vmatpush2.bf16.msra.mxu0 %v9515_v58  ;;  %v9600_v58 = vld [vmem:[%s11309_s6 + $0x400] ss:$8 sps:$4 sm:$0xff]  }
 0x186   : > { %6173 = vmatpush2.bf16.msra.mxu1 %v9518_v59  ;;  %6133 = vmatprep.subr.bf16.mxu0 %v9523_v60  ;;  %v9603_v59 = vld [vmem:[%s11309_s6 + $0x500] ss:$8 sps:$4 sm:$0xff]   ;;  %v9608_v60 = vld [vmem:[%s11309_s6 + $0x4f4] ss:$8 sps:$4 sm:$0xff]  }
 0x187   : > { %6174 = vmatprep.subr.bf16.mxu1 %v9526_v61  ;;  %v9611_v61 = vld [vmem:[%s11309_s6 + $0x5f4] ss:$8 sps:$4 sm:$0xff]  }
 0x189   : > { %6134 = vmatpush2.bf16.msra.mxu0 %v9521_v62  ;;  %v9606_v62 = vld [vmem:[%s11309_s6 + $0x4f0] ss:$8 sps:$4 sm:$0xff]  }
 0x18a   : > { %6175 = vmatpush2.bf16.msra.mxu1 %v9524_v63  ;;  %6135 = vmatprep.subr.bf16.mxu0 %v9529_v0  ;;  %v9609_v63 = vld [vmem:[%s11309_s6 + $0x5f0] ss:$8 sps:$4 sm:$0xff]   ;;  %v9614_v0 = vld [vmem:[%s11309_s6 + $0x4e4] ss:$8 sps:$4 sm:$0xff]  }
 0x18b   : > { %6176 = vmatprep.subr.bf16.mxu1 %v9532_v1  ;;  %v9617_v1 = vld [vmem:[%s11309_s6 + $0x5e4] ss:$8 sps:$4 sm:$0xff]  }
 0x18d   : > { %6136 = vmatpush2.bf16.msra.mxu0 %v9527_v2  ;;  %v9612_v2 = vld [vmem:[%s11309_s6 + $0x4e0] ss:$8 sps:$4 sm:$0xff]  }
 0x18e   : > { %6177 = vmatpush2.bf16.msra.mxu1 %v9530_v3  ;;  %6137 = vmatprep.subr.bf16.mxu0 %v9535_v4  ;;  %v9615_v3 = vld [vmem:[%s11309_s6 + $0x5e0] ss:$8 sps:$4 sm:$0xff]   ;;  %v9620_v4 = vld [vmem:[%s11309_s6 + $0x4d4] ss:$8 sps:$4 sm:$0xff]  }
 0x18f   : > { %6178 = vmatprep.subr.bf16.mxu1 %v9538_v5  ;;  %v9623_v5 = vld [vmem:[%s11309_s6 + $0x5d4] ss:$8 sps:$4 sm:$0xff]  }
 0x191   : > { %6138 = vmatpush2.bf16.msra.mxu0 %v9533_v6  ;;  %v9618_v6 = vld [vmem:[%s11309_s6 + $0x4d0] ss:$8 sps:$4 sm:$0xff]  }
 0x192   : > { %6179 = vmatpush2.bf16.msra.mxu1 %v9536_v7  ;;  %6139 = vmatprep.subr.bf16.mxu0 %v9541_v8  ;;  %v9621_v7 = vld [vmem:[%s11309_s6 + $0x5d0] ss:$8 sps:$4 sm:$0xff]   ;;  %v9626_v8 = vld [vmem:[%s11309_s6 + $0x4c4] ss:$8 sps:$4 sm:$0xff]  }
 0x193   : > { %6180 = vmatprep.subr.bf16.mxu1 %v9544_v9  ;;  %v9629_v9 = vld [vmem:[%s11309_s6 + $0x5c4] ss:$8 sps:$4 sm:$0xff]  }
 0x195   : > { %6140 = vmatpush2.bf16.msra.mxu0 %v9539_v10  ;;  %v9624_v10 = vld [vmem:[%s11309_s6 + $0x4c0] ss:$8 sps:$4 sm:$0xff]  }
 0x196   : > { %6181 = vmatpush2.bf16.msra.mxu1 %v9542_v11  ;;  %6141 = vmatprep.subr.bf16.mxu0 %v9547_v12  ;;  %v9627_v11 = vld [vmem:[%s11309_s6 + $0x5c0] ss:$8 sps:$4 sm:$0xff]   ;;  %v9632_v12 = vld [vmem:[%s11309_s6 + $0x4b4] ss:$8 sps:$4 sm:$0xff]  }
 0x197   : > { %6182 = vmatprep.subr.bf16.mxu1 %v9550_v13  ;;  %v9635_v13 = vld [vmem:[%s11309_s6 + $0x5b4] ss:$8 sps:$4 sm:$0xff]  }
 0x199   : > { %6142 = vmatpush2.bf16.msra.mxu0 %v9545_v14  ;;  %v9630_v14 = vld [vmem:[%s11309_s6 + $0x4b0] ss:$8 sps:$4 sm:$0xff]  }
 0x19a   : > { %6183 = vmatpush2.bf16.msra.mxu1 %v9548_v15  ;;  %6143 = vmatprep.subr.bf16.mxu0 %v9553_v16  ;;  %v9633_v15 = vld [vmem:[%s11309_s6 + $0x5b0] ss:$8 sps:$4 sm:$0xff]   ;;  %v9638_v16 = vld [vmem:[%s11309_s6 + $0x4a4] ss:$8 sps:$4 sm:$0xff]  }
 0x19b   : > { %6184 = vmatprep.subr.bf16.mxu1 %v9556_v17  ;;  %v9641_v17 = vld [vmem:[%s11309_s6 + $0x5a4] ss:$8 sps:$4 sm:$0xff]  }
 0x19d   : > { %6144 = vmatpush2.bf16.msra.mxu0 %v9551_v18  ;;  %v9636_v18 = vld [vmem:[%s11309_s6 + $0x4a0] ss:$8 sps:$4 sm:$0xff]  }
 0x19e   : > { %6185 = vmatpush2.bf16.msra.mxu1 %v9554_v19  ;;  %6195 = vmatprep.subr.bf16.mxu0 %v9560_v20  ;;  %v9639_v19 = vld [vmem:[%s11309_s6 + $0x5a0] ss:$8 sps:$4 sm:$0xff]   ;;  %v9644_v20 = vld [vmem:[%s11309_s6 + $0x494] ss:$8 sps:$4 sm:$0xff]  }
 0x19f   : > { %6236 = vmatprep.subr.bf16.mxu1 %v9563_v21  ;;  %v9647_v21 = vld [vmem:[%s11309_s6 + $0x594] ss:$8 sps:$4 sm:$0xff]  }
 0x1a0   : > { %6146 = vmatmul.mubr.bf16.vlgmr.msra.gmra.mxu0 %v11421_v39  ;;  %v9581_v39 = vld [vmem:[%s11309_s6 + $0x544] ss:$8 sps:$4 sm:$0xff]  }
 0x1a1   : > { %6187 = vmatmul.mubr.bf16.vlgmr.msra.gmra.mxu1 %v11428_v45  ;;  %6196 = vmatpush1.bf16.msra.mxu0 %v9558_v22  ;;  %v9582_v45 = vld [vmem:[%s11309_s6 + $0x430] ss:$8 sps:$4 sm:$0xff]  }
 0x1a2   : > { %6237 = vmatpush1.bf16.msra.mxu1 %v9561_v23  ;;  %6197 = vmatprep.subr.bf16.mxu0 %v9566_v24  ;;  %v9642_v22 = vld [vmem:[%s11309_s6 + $0x490] ss:$8 sps:$4 sm:$0xff]  }
 0x1a3   : > { %6238 = vmatprep.subr.bf16.mxu1 %v9569_v26  ;;  %6227 = vmatprep.mubr.bf16.mxu0 %v4716_v30  ;;  %v9645_v23 = vld [vmem:[%s11309_s6 + $0x590] ss:$8 sps:$4 sm:$0xff]   ;;  %v9653_v26 = vld [vmem:[%s11309_s6 + $0x584] ss:$8 sps:$4 sm:$0xff]   ;;  %v9651_v30 = vld [vmem:[%s11309_s6 + $0x580] ss:$8 sps:$4 sm:$0xff]  }
 0x1a4   : > { %6268 = vmatprep.mubr.bf16.mxu1 %v4717_v35  ;;  %v4406_v24 = vld [vmem:[%s11365_s10 + $0x18] sm:$0xff] }
 0x1a5   : > { %6198 = vmatpush1.bf16.msra.mxu0 %v9564_v29  ;;  %v4718_v28 = vcombine.high %v4406_v24, %v4406_v24  ;;  %v9648_v29 = vld [vmem:[%s11309_s6 + $0x480] ss:$8 sps:$4 sm:$0xff]  }
 0x1a6   : > { %6239 = vmatpush1.bf16.msra.mxu1 %v9567_v32  ;;  %6199 = vmatprep.subr.bf16.mxu0 %v9572_v33  ;;  %v9657_v32 = vld [vmem:[%s11309_s6 + $0x674] ss:$8 sps:$4 sm:$0xff]  }
 0x1a7   : > { %6240 = vmatprep.subr.bf16.mxu1 %v9575_v34  ;;  %v9660_v33 = vld [vmem:[%s11309_s6 + $0x774] ss:$8 sps:$4 sm:$0xff]   ;;  %v11549_v34 = vrot.slane %v4406_v24, %v11368_v49  ;;  %v11552_v35 = vrot.slane %v4718_v28, %v11368_v49  ;;  %v9735_v24 = vld [vmem:[%s11309_s6 + $0x6a4] ss:$8 sps:$4 sm:$0xff]   ;;  %v9736_v28 = vld [vmem:[%s11309_s6 + $0x7a0] ss:$8 sps:$4 sm:$0xff]  }
 0x1a9   : > { %6200 = vmatpush1.bf16.msra.mxu0 %v9570_v36  ;;  %v9655_v36 = vld [vmem:[%s11309_s6 + $0x670] ss:$8 sps:$4 sm:$0xff]  }
 0x1aa   : > { %6241 = vmatpush1.bf16.msra.mxu1 %v9573_v37  ;;  %6201 = vmatprep.subr.bf16.mxu0 %v9578_v38  ;;  %v9658_v37 = vld [vmem:[%s11309_s6 + $0x770] ss:$8 sps:$4 sm:$0xff]   ;;  %v9663_v38 = vld [vmem:[%s11309_s6 + $0x664] ss:$8 sps:$4 sm:$0xff]  }
 0x1ab   : > { %6242 = vmatprep.subr.bf16.mxu1 %v9581_v39  ;;  %v9666_v39 = vld [vmem:[%s11309_s6 + $0x764] ss:$8 sps:$4 sm:$0xff]  }
 0x1ad   : > { %6202 = vmatpush1.bf16.msra.mxu0 %v9576_v40  ;;  %v4733_v40 = vcombine.high %v11549_v34, %v11549_v34 }
 0x1ae   : > { %6243 = vmatpush1.bf16.msra.mxu1 %v9579_v41  ;;  %6203 = vmatprep.subr.bf16.mxu0 %v9584_v42  ;;  %v4734_v41 = vcombine.high %v11552_v35, %v11552_v35  ;;  %v9661_v42 = vld [vmem:[%s11309_s6 + $0x660] ss:$8 sps:$4 sm:$0xff]  }
 0x1af   : > { %6244 = vmatprep.subr.bf16.mxu1 %v9587_v44  ;;  %v9664_v44 = vld [vmem:[%s11309_s6 + $0x760] ss:$8 sps:$4 sm:$0xff]  }
 0x1b1   : > { %6204 = vmatpush1.bf16.msra.mxu0 %v9582_v45  ;;  %v9669_v45 = vld [vmem:[%s11309_s6 + $0x654] ss:$8 sps:$4 sm:$0xff]  }
 0x1b2   : > { %6245 = vmatpush1.bf16.msra.mxu1 %v9585_v46  ;;  %6205 = vmatprep.subr.bf16.mxu0 %v9590_v47  ;;  %v9672_v46 = vld [vmem:[%s11309_s6 + $0x754] ss:$8 sps:$4 sm:$0xff]   ;;  %v9667_v47 = vld [vmem:[%s11309_s6 + $0x650] ss:$8 sps:$4 sm:$0xff]  }
 0x1b3   : > { %6246 = vmatprep.subr.bf16.mxu1 %v9593_v48  ;;  %v9678_v48 = vld [vmem:[%s11309_s6 + $0x744] ss:$8 sps:$4 sm:$0xff]  }
 0x1b5   : > { %6206 = vmatpush1.bf16.msra.mxu0 %v9588_v50  ;;  %v9673_v50 = vld [vmem:[%s11309_s6 + $0x640] ss:$8 sps:$4 sm:$0xff]  }
 0x1b6   : > { %6247 = vmatpush1.bf16.msra.mxu1 %v9591_v51  ;;  %6207 = vmatprep.subr.bf16.mxu0 %v9596_v52  ;;  %v9676_v51 = vld [vmem:[%s11309_s6 + $0x740] ss:$8 sps:$4 sm:$0xff]   ;;  %v9681_v52 = vld [vmem:[%s11309_s6 + $0x634] ss:$8 sps:$4 sm:$0xff]  }
 0x1b7   : > { %6248 = vmatprep.subr.bf16.mxu1 %v9599_v53  ;;  %v9684_v53 = vld [vmem:[%s11309_s6 + $0x734] ss:$8 sps:$4 sm:$0xff]  }
 0x1b9   : > { %6208 = vmatpush1.bf16.msra.mxu0 %v9594_v54  ;;  %v9679_v54 = vld [vmem:[%s11309_s6 + $0x630] ss:$8 sps:$4 sm:$0xff]  }
 0x1ba   : > { %6249 = vmatpush1.bf16.msra.mxu1 %v9597_v55  ;;  %6209 = vmatprep.subr.bf16.mxu0 %v9602_v56  ;;  %v9682_v55 = vld [vmem:[%s11309_s6 + $0x730] ss:$8 sps:$4 sm:$0xff]   ;;  %v9687_v56 = vld [vmem:[%s11309_s6 + $0x624] ss:$8 sps:$4 sm:$0xff]  }
 0x1bb   : > { %6250 = vmatprep.subr.bf16.mxu1 %v9605_v57  ;;  %v9690_v57 = vld [vmem:[%s11309_s6 + $0x724] ss:$8 sps:$4 sm:$0xff]  }
 0x1bd   : > { %6210 = vmatpush1.bf16.msra.mxu0 %v9600_v58  ;;  %v9685_v58 = vld [vmem:[%s11309_s6 + $0x620] ss:$8 sps:$4 sm:$0xff]  }
 0x1be   : > { %6251 = vmatpush1.bf16.msra.mxu1 %v9603_v59  ;;  %6211 = vmatprep.subr.bf16.mxu0 %v9608_v60  ;;  %v9688_v59 = vld [vmem:[%s11309_s6 + $0x720] ss:$8 sps:$4 sm:$0xff]   ;;  %v9693_v60 = vld [vmem:[%s11309_s6 + $0x614] ss:$8 sps:$4 sm:$0xff]  }
 0x1bf   : > { %6252 = vmatprep.subr.bf16.mxu1 %v9611_v61  ;;  %v9696_v61 = vld [vmem:[%s11309_s6 + $0x714] ss:$8 sps:$4 sm:$0xff]  }
 0x1c1   : > { %6212 = vmatpush2.bf16.msra.mxu0 %v9606_v62  ;;  %v9691_v62 = vld [vmem:[%s11309_s6 + $0x610] ss:$8 sps:$4 sm:$0xff]  }
 0x1c2   : > { %6253 = vmatpush2.bf16.msra.mxu1 %v9609_v63  ;;  %6213 = vmatprep.subr.bf16.mxu0 %v9614_v0  ;;  %v9694_v63 = vld [vmem:[%s11309_s6 + $0x710] ss:$8 sps:$4 sm:$0xff]   ;;  %v9699_v0 = vld [vmem:[%s11309_s6 + $0x604] ss:$8 sps:$4 sm:$0xff]  }
 0x1c3   : > { %6254 = vmatprep.subr.bf16.mxu1 %v9617_v1  ;;  %v9702_v1 = vld [vmem:[%s11309_s6 + $0x704] ss:$8 sps:$4 sm:$0xff]  }
 0x1c5   : > { %6214 = vmatpush2.bf16.msra.mxu0 %v9612_v2  ;;  %v9697_v2 = vld [vmem:[%s11309_s6 + $0x600] ss:$8 sps:$4 sm:$0xff]  }
 0x1c6   : > { %6255 = vmatpush2.bf16.msra.mxu1 %v9615_v3  ;;  %6215 = vmatprep.subr.bf16.mxu0 %v9620_v4  ;;  %v9700_v3 = vld [vmem:[%s11309_s6 + $0x700] ss:$8 sps:$4 sm:$0xff]   ;;  %v9705_v4 = vld [vmem:[%s11309_s6 + $0x6f4] ss:$8 sps:$4 sm:$0xff]  }
 0x1c7   : > { %6256 = vmatprep.subr.bf16.mxu1 %v9623_v5  ;;  %v9708_v5 = vld [vmem:[%s11309_s6 + $0x7f4] ss:$8 sps:$4 sm:$0xff]  }
 0x1c9   : > { %6216 = vmatpush2.bf16.msra.mxu0 %v9618_v6  ;;  %v9703_v6 = vld [vmem:[%s11309_s6 + $0x6f0] ss:$8 sps:$4 sm:$0xff]  }
 0x1ca   : > { %6257 = vmatpush2.bf16.msra.mxu1 %v9621_v7  ;;  %6217 = vmatprep.subr.bf16.mxu0 %v9626_v8  ;;  %v9706_v7 = vld [vmem:[%s11309_s6 + $0x7f0] ss:$8 sps:$4 sm:$0xff]   ;;  %v9711_v8 = vld [vmem:[%s11309_s6 + $0x6e4] ss:$8 sps:$4 sm:$0xff]  }
 0x1cb   : > { %6258 = vmatprep.subr.bf16.mxu1 %v9629_v9  ;;  %v9714_v9 = vld [vmem:[%s11309_s6 + $0x7e4] ss:$8 sps:$4 sm:$0xff]  }
 0x1cd   : > { %6218 = vmatpush2.bf16.msra.mxu0 %v9624_v10  ;;  %v9709_v10 = vld [vmem:[%s11309_s6 + $0x6e0] ss:$8 sps:$4 sm:$0xff]  }
 0x1ce   : > { %6259 = vmatpush2.bf16.msra.mxu1 %v9627_v11  ;;  %6219 = vmatprep.subr.bf16.mxu0 %v9632_v12  ;;  %v9712_v11 = vld [vmem:[%s11309_s6 + $0x7e0] ss:$8 sps:$4 sm:$0xff]   ;;  %v9717_v12 = vld [vmem:[%s11309_s6 + $0x6d4] ss:$8 sps:$4 sm:$0xff]  }
 0x1cf   : > { %6260 = vmatprep.subr.bf16.mxu1 %v9635_v13  ;;  %v9720_v13 = vld [vmem:[%s11309_s6 + $0x7d4] ss:$8 sps:$4 sm:$0xff]  }
 0x1d1   : > { %6220 = vmatpush2.bf16.msra.mxu0 %v9630_v14  ;;  %v9715_v14 = vld [vmem:[%s11309_s6 + $0x6d0] ss:$8 sps:$4 sm:$0xff]  }
 0x1d2   : > { %6261 = vmatpush2.bf16.msra.mxu1 %v9633_v15  ;;  %6221 = vmatprep.subr.bf16.mxu0 %v9638_v16  ;;  %v9718_v15 = vld [vmem:[%s11309_s6 + $0x7d0] ss:$8 sps:$4 sm:$0xff]   ;;  %v9723_v16 = vld [vmem:[%s11309_s6 + $0x6c4] ss:$8 sps:$4 sm:$0xff]  }
 0x1d3   : > { %6262 = vmatprep.subr.bf16.mxu1 %v9641_v17  ;;  %v9726_v17 = vld [vmem:[%s11309_s6 + $0x7c4] ss:$8 sps:$4 sm:$0xff]  }
 0x1d5   : > { %6222 = vmatpush2.bf16.msra.mxu0 %v9636_v18  ;;  %v9721_v18 = vld [vmem:[%s11309_s6 + $0x6c0] ss:$8 sps:$4 sm:$0xff]  }
 0x1d6   : > { %6263 = vmatpush2.bf16.msra.mxu1 %v9639_v19  ;;  %6223 = vmatprep.subr.bf16.mxu0 %v9644_v20  ;;  %v9724_v19 = vld [vmem:[%s11309_s6 + $0x7c0] ss:$8 sps:$4 sm:$0xff]   ;;  %v9729_v20 = vld [vmem:[%s11309_s6 + $0x6b4] ss:$8 sps:$4 sm:$0xff]  }
 0x1d7   : > { %6264 = vmatprep.subr.bf16.mxu1 %v9647_v21  ;;  %v9732_v21 = vld [vmem:[%s11309_s6 + $0x7b4] ss:$8 sps:$4 sm:$0xff]  }
 0x1d9   : > { %6224 = vmatpush2.bf16.msra.mxu0 %v9642_v22  ;;  %v9727_v22 = vld [vmem:[%s11309_s6 + $0x6b0] ss:$8 sps:$4 sm:$0xff]  }
 0x1da   : > { %6265 = vmatpush2.bf16.msra.mxu1 %v9645_v23  ;;  %6225 = vmatprep.subr.bf16.mxu0 %v9650_v25  ;;  %v9730_v23 = vld [vmem:[%s11309_s6 + $0x7b0] ss:$8 sps:$4 sm:$0xff]   ;;  %v9738_v25 = vld [vmem:[%s11309_s6 + $0x7a4] ss:$8 sps:$4 sm:$0xff]  }
 0x1db   : > { %6266 = vmatprep.subr.bf16.mxu1 %v9653_v26  ;;  %v9733_v26 = vld [vmem:[%s11309_s6 + $0x6a0] ss:$8 sps:$4 sm:$0xff]  }
 0x1dd   : > { %6226 = vmatpush2.bf16.msra.mxu0 %v9648_v29  ;;  %v9741_v29 = vld [vmem:[%s11309_s6 + $0x694] ss:$8 sps:$4 sm:$0xff]  }
 0x1de   : > { %6267 = vmatpush2.bf16.msra.mxu1 %v9651_v30  ;;  %6277 = vmatprep.subr.bf16.mxu0 %v9657_v32  ;;  %v9744_v30 = vld [vmem:[%s11309_s6 + $0x794] ss:$8 sps:$4 sm:$0xff]   ;;  %v9739_v32 = vld [vmem:[%s11309_s6 + $0x690] ss:$8 sps:$4 sm:$0xff]  }
 0x1df   : > { %6318 = vmatprep.subr.bf16.mxu1 %v9660_v33  ;;  %v8785_v33 = vld [vmem:[%s11365_s10 + $0x20] sm:$0xff] }
 0x1e0   : > { %6228 = vmatmul.mubr.bf16.vlgmr.msra.gmra.mxu0 %v11476_v27  ;;  %v9670_v27 = vld [vmem:[%s11309_s6 + $0x750] ss:$8 sps:$4 sm:$0xff]  }
 0x1e1   : > { %6269 = vmatmul.mubr.bf16.vlgmr.msra.gmra.mxu1 %v11484_v31  ;;  %6278 = vmatpush1.bf16.msra.mxu0 %v9655_v36  ;;  %v9675_v31 = vld [vmem:[%s11309_s6 + $0x644] ss:$8 sps:$4 sm:$0xff]   ;;  %v9742_v36 = vld [vmem:[%s11309_s6 + $0x790] ss:$8 sps:$4 sm:$0xff]  }
 0x1e2   : > { %6319 = vmatpush1.bf16.msra.mxu1 %v9658_v37  ;;  %6279 = vmatprep.subr.bf16.mxu0 %v9663_v38  ;;  %v9747_v37 = vld [vmem:[%s11309_s6 + $0x684] ss:$8 sps:$4 sm:$0xff]  }
 0x1e3   : > { %6320 = vmatprep.subr.bf16.mxu1 %v9666_v39  ;;  %6309 = vmatprep.mubr.bf16.mxu0 %v4733_v40  ;;  %v9750_v38 = vld [vmem:[%s11309_s6 + $0x784] ss:$8 sps:$4 sm:$0xff]   ;;  %v6638_v39 = vcombine.high %v8785_v33, %v8785_v33  ;;  %v9745_v40 = vld [vmem:[%s11309_s6 + $0x680] ss:$8 sps:$4 sm:$0xff]  }
 0x1e4   : > { %6350 = vmatprep.mubr.bf16.mxu1 %v4734_v41  ;;  %v9748_v41 = vld [vmem:[%s11309_s6 + $0x780] ss:$8 sps:$4 sm:$0xff]  }
 0x1e5   : > { %6280 = vmatpush1.bf16.msra.mxu0 %v9661_v42  ;;  %v9754_v42 = vld [vmem:[%s11309_s6 + $0x874] ss:$8 sps:$4 sm:$0xff]  }
 0x1e6   : > { %6321 = vmatpush1.bf16.msra.mxu1 %v9664_v44  ;;  %6281 = vmatprep.subr.bf16.mxu0 %v9669_v45  ;;  %v9757_v44 = vld [vmem:[%s11309_s6 + $0x974] ss:$8 sps:$4 sm:$0xff]   ;;  %v11626_v45 = vrot.slane %v8785_v33, %v11368_v49 }
 0x1e7   : > { %6322 = vmatprep.subr.bf16.mxu1 %v9672_v46  ;;  %v11629_v46 = vrot.slane %v6638_v39, %v11368_v49  ;;  %v9817_v33 = vld [vmem:[%s11309_s6 + $0x9d4] ss:$8 sps:$4 sm:$0xff]   ;;  %v9823_v39 = vld [vmem:[%s11309_s6 + $0x9c4] ss:$8 sps:$4 sm:$0xff]  }
 0x1e9   : > { %6282 = vmatpush1.bf16.msra.mxu0 %v9667_v47  ;;  %v9752_v47 = vld [vmem:[%s11309_s6 + $0x870] ss:$8 sps:$4 sm:$0xff]  }
 0x1ea   : > { %6323 = vmatpush1.bf16.msra.mxu1 %v9670_v27  ;;  %6283 = vmatprep.subr.bf16.mxu0 %v9675_v31  ;;  %v9755_v27 = vld [vmem:[%s11309_s6 + $0x970] ss:$8 sps:$4 sm:$0xff]   ;;  %v9760_v31 = vld [vmem:[%s11309_s6 + $0x864] ss:$8 sps:$4 sm:$0xff]  }
 0x1eb   : > { %6324 = vmatprep.subr.bf16.mxu1 %v9678_v48  ;;  %v9763_v48 = vld [vmem:[%s11309_s6 + $0x964] ss:$8 sps:$4 sm:$0xff]  }
 0x1ed   : > { %6284 = vmatpush1.bf16.msra.mxu0 %v9673_v50  ;;  %v6653_v50 = vcombine.high %v11626_v45, %v11626_v45 }
 0x1ee   : > { %6325 = vmatpush1.bf16.msra.mxu1 %v9676_v51  ;;  %6285 = vmatprep.subr.bf16.mxu0 %v9681_v52  ;;  %v6654_v51 = vcombine.high %v11629_v46, %v11629_v46 }
 0x1ef   : > { %6326 = vmatprep.subr.bf16.mxu1 %v9684_v53 }
 0x1f1   : > { %6286 = vmatpush1.bf16.msra.mxu0 %v9679_v54  ;;  %v9758_v54 = vld [vmem:[%s11309_s6 + $0x860] ss:$8 sps:$4 sm:$0xff]  }
 0x1f2   : > { %6327 = vmatpush1.bf16.msra.mxu1 %v9682_v55  ;;  %6287 = vmatprep.subr.bf16.mxu0 %v9687_v56  ;;  %v9761_v56 = vld [vmem:[%s11309_s6 + $0x960] ss:$8 sps:$4 sm:$0xff]  }
 0x1f3   : > { %6328 = vmatprep.subr.bf16.mxu1 %v9690_v57  ;;  %v9766_v57 = vld [vmem:[%s11309_s6 + $0x854] ss:$8 sps:$4 sm:$0xff]  }
 0x1f5   : > { %6288 = vmatpush1.bf16.msra.mxu0 %v9685_v58 }
 0x1f6   : > { %6329 = vmatpush1.bf16.msra.mxu1 %v9688_v59  ;;  %6289 = vmatprep.subr.bf16.mxu0 %v9693_v60  ;;  %v9769_v60 = vld [vmem:[%s11309_s6 + $0x954] ss:$8 sps:$4 sm:$0xff]  }
 0x1f7   : > { %6330 = vmatprep.subr.bf16.mxu1 %v9696_v61 }
 0x1f9   : > { %6290 = vmatpush1.bf16.msra.mxu0 %v9691_v62 }
 0x1fa   : > { %6331 = vmatpush1.bf16.msra.mxu1 %v9694_v63  ;;  %6291 = vmatprep.subr.bf16.mxu0 %v9699_v0  ;;  %v9767_v63 = vld [vmem:[%s11309_s6 + $0x950] ss:$8 sps:$4 sm:$0xff]  }
 0x1fb   : > { %6332 = vmatprep.subr.bf16.mxu1 %v9702_v1 }
 0x1fd   : > { %6292 = vmatpush1.bf16.msra.mxu0 %v9697_v2  ;;  %v9772_v2 = vld [vmem:[%s11309_s6 + $0x844] ss:$8 sps:$4 sm:$0xff]  }
 0x1fe   : > { %6333 = vmatpush1.bf16.msra.mxu1 %v9700_v3  ;;  %6293 = vmatprep.subr.bf16.mxu0 %v9705_v4  ;;  %v9775_v3 = vld [vmem:[%s11309_s6 + $0x944] ss:$8 sps:$4 sm:$0xff]   ;;  %v9770_v4 = vld [vmem:[%s11309_s6 + $0x840] ss:$8 sps:$4 sm:$0xff]  }
 0x1ff   : > { %6334 = vmatprep.subr.bf16.mxu1 %v9708_v5  ;;  %v9773_v5 = vld [vmem:[%s11309_s6 + $0x940] ss:$8 sps:$4 sm:$0xff]  }
 0x201   : > { %6294 = vmatpush2.bf16.msra.mxu0 %v9703_v6  ;;  %v9778_v6 = vld [vmem:[%s11309_s6 + $0x834] ss:$8 sps:$4 sm:$0xff]  }
 0x202   : > { %6335 = vmatpush2.bf16.msra.mxu1 %v9706_v7  ;;  %6295 = vmatprep.subr.bf16.mxu0 %v9711_v8  ;;  %v9781_v7 = vld [vmem:[%s11309_s6 + $0x934] ss:$8 sps:$4 sm:$0xff]   ;;  %v9776_v8 = vld [vmem:[%s11309_s6 + $0x830] ss:$8 sps:$4 sm:$0xff]  }
 0x203   : > { %6336 = vmatprep.subr.bf16.mxu1 %v9714_v9  ;;  %v9779_v9 = vld [vmem:[%s11309_s6 + $0x930] ss:$8 sps:$4 sm:$0xff]  }
 0x205   : > { %6296 = vmatpush2.bf16.msra.mxu0 %v9709_v10  ;;  %v9784_v10 = vld [vmem:[%s11309_s6 + $0x824] ss:$8 sps:$4 sm:$0xff]  }
 0x206   : > { %6337 = vmatpush2.bf16.msra.mxu1 %v9712_v11  ;;  %6297 = vmatprep.subr.bf16.mxu0 %v9717_v12  ;;  %v9787_v11 = vld [vmem:[%s11309_s6 + $0x924] ss:$8 sps:$4 sm:$0xff]   ;;  %v9782_v12 = vld [vmem:[%s11309_s6 + $0x820] ss:$8 sps:$4 sm:$0xff]  }
 0x207   : > { %6338 = vmatprep.subr.bf16.mxu1 %v9720_v13  ;;  %v9785_v13 = vld [vmem:[%s11309_s6 + $0x920] ss:$8 sps:$4 sm:$0xff]  }
 0x209   : > { %6298 = vmatpush2.bf16.msra.mxu0 %v9715_v14  ;;  %v9790_v14 = vld [vmem:[%s11309_s6 + $0x814] ss:$8 sps:$4 sm:$0xff]  }
 0x20a   : > { %6339 = vmatpush2.bf16.msra.mxu1 %v9718_v15  ;;  %6299 = vmatprep.subr.bf16.mxu0 %v9723_v16  ;;  %v9793_v15 = vld [vmem:[%s11309_s6 + $0x914] ss:$8 sps:$4 sm:$0xff]   ;;  %v9788_v16 = vld [vmem:[%s11309_s6 + $0x810] ss:$8 sps:$4 sm:$0xff]  }
 0x20b   : > { %6340 = vmatprep.subr.bf16.mxu1 %v9726_v17  ;;  %v9791_v17 = vld [vmem:[%s11309_s6 + $0x910] ss:$8 sps:$4 sm:$0xff]  }
 0x20d   : > { %6300 = vmatpush2.bf16.msra.mxu0 %v9721_v18  ;;  %v9796_v18 = vld [vmem:[%s11309_s6 + $0x804] ss:$8 sps:$4 sm:$0xff]  }
 0x20e   : > { %6341 = vmatpush2.bf16.msra.mxu1 %v9724_v19  ;;  %6301 = vmatprep.subr.bf16.mxu0 %v9729_v20  ;;  %v9799_v19 = vld [vmem:[%s11309_s6 + $0x904] ss:$8 sps:$4 sm:$0xff]   ;;  %v9794_v20 = vld [vmem:[%s11309_s6 + $0x800] ss:$8 sps:$4 sm:$0xff]  }
 0x20f   : > { %6342 = vmatprep.subr.bf16.mxu1 %v9732_v21  ;;  %v9797_v21 = vld [vmem:[%s11309_s6 + $0x900] ss:$8 sps:$4 sm:$0xff]  }
 0x211   : > { %6302 = vmatpush2.bf16.msra.mxu0 %v9727_v22  ;;  %v9802_v22 = vld [vmem:[%s11309_s6 + $0x8f4] ss:$8 sps:$4 sm:$0xff]  }
 0x212   : > { %6343 = vmatpush2.bf16.msra.mxu1 %v9730_v23  ;;  %6303 = vmatprep.subr.bf16.mxu0 %v9735_v24  ;;  %v9805_v23 = vld [vmem:[%s11309_s6 + $0x9f4] ss:$8 sps:$4 sm:$0xff]   ;;  %v9800_v24 = vld [vmem:[%s11309_s6 + $0x8f0] ss:$8 sps:$4 sm:$0xff]  }
 0x213   : > { %6344 = vmatprep.subr.bf16.mxu1 %v9738_v25  ;;  %v9803_v25 = vld [vmem:[%s11309_s6 + $0x9f0] ss:$8 sps:$4 sm:$0xff]  }
 0x215   : > { %6304 = vmatpush2.bf16.msra.mxu0 %v9733_v26  ;;  %v9808_v26 = vld [vmem:[%s11309_s6 + $0x8e4] ss:$8 sps:$4 sm:$0xff]  }
 0x216   : > { %6345 = vmatpush2.bf16.msra.mxu1 %v9736_v28  ;;  %6305 = vmatprep.subr.bf16.mxu0 %v9741_v29  ;;  %v9811_v28 = vld [vmem:[%s11309_s6 + $0x9e4] ss:$8 sps:$4 sm:$0xff]   ;;  %v9806_v29 = vld [vmem:[%s11309_s6 + $0x8e0] ss:$8 sps:$4 sm:$0xff]  }
 0x217   : > { %6346 = vmatprep.subr.bf16.mxu1 %v9744_v30  ;;  %v9809_v30 = vld [vmem:[%s11309_s6 + $0x9e0] ss:$8 sps:$4 sm:$0xff]  }
 0x219   : > { %6306 = vmatpush2.bf16.msra.mxu0 %v9739_v32  ;;  %v9814_v32 = vld [vmem:[%s11309_s6 + $0x8d4] ss:$8 sps:$4 sm:$0xff]  }
 0x21a   : > { %6347 = vmatpush2.bf16.msra.mxu1 %v9742_v36  ;;  %6307 = vmatprep.subr.bf16.mxu0 %v9747_v37  ;;  %v9812_v36 = vld [vmem:[%s11309_s6 + $0x8d0] ss:$8 sps:$4 sm:$0xff]  }
 0x21b   : > { %6348 = vmatprep.subr.bf16.mxu1 %v9750_v38  ;;  %v9815_v37 = vld [vmem:[%s11309_s6 + $0x9d0] ss:$8 sps:$4 sm:$0xff]   ;;  %v9820_v38 = vld [vmem:[%s11309_s6 + $0x8c4] ss:$8 sps:$4 sm:$0xff]  }
 0x21d   : > { %6308 = vmatpush2.bf16.msra.mxu0 %v9745_v40  ;;  %v9818_v40 = vld [vmem:[%s11309_s6 + $0x8c0] ss:$8 sps:$4 sm:$0xff]  }
 0x21e   : > { %6349 = vmatpush2.bf16.msra.mxu1 %v9748_v41  ;;  %8002 = vmatprep.subr.bf16.mxu0 %v9754_v42  ;;  %v9821_v41 = vld [vmem:[%s11309_s6 + $0x9c0] ss:$8 sps:$4 sm:$0xff]   ;;  %v9826_v42 = vld [vmem:[%s11309_s6 + $0x8b4] ss:$8 sps:$4 sm:$0xff]  }
 0x21f   : > { %8043 = vmatprep.subr.bf16.mxu1 %v9757_v44  ;;  %v9829_v44 = vld [vmem:[%s11309_s6 + $0x9b4] ss:$8 sps:$4 sm:$0xff]  }
 0x220   : > { %v6065_v52 = vpop.f32.mrf.mxu0  ;;  %6310 = vmatmul.mubr.bf16.vlgmr.msra.gmra.mxu0 %v11549_v34  ;;  %v9764_v34 = vld [vmem:[%s11309_s6 + $0x850] ss:$8 sps:$4 sm:$0xff]  }
 0x221   : > { %v6106_v53 = vpop.f32.mrf.mxu1  ;;  %6351 = vmatmul.mubr.bf16.vlgmr.msra.gmra.mxu1 %v11552_v35  ;;  %8003 = vmatpush1.bf16.msra.mxu0 %v9752_v47  ;;  %v9824_v47 = vld [vmem:[%s11309_s6 + $0x8b0] ss:$8 sps:$4 sm:$0xff]  }
 0x222   : > { %v11642_v55 = vadd.f32 %v6106_v53, %v6065_v52  ;;  %8044 = vmatpush1.bf16.msra.mxu1 %v9755_v27  ;;  %v6067_v58 = vpop.f32.mrf.mxu0  ;;  %8004 = vmatprep.subr.bf16.mxu0 %v9760_v31  ;;  %v9827_v27 = vld [vmem:[%s11309_s6 + $0x9b0] ss:$8 sps:$4 sm:$0xff]   ;;  %v9832_v31 = vld [vmem:[%s11309_s6 + $0x8a4] ss:$8 sps:$4 sm:$0xff]   ;;  %v9838_v52 = vld [vmem:[%s11309_s6 + $0x894] ss:$8 sps:$4 sm:$0xff]  }
 0x223   : > { %v6108_v59 = vpop.f32.mrf.mxu1  ;;  %8045 = vmatprep.subr.bf16.mxu1 %v9763_v48  ;;  %8034 = vmatprep.mubr.bf16.mxu0 %v6653_v50  ;;  %v9835_v48 = vld [vmem:[%s11309_s6 + $0x9a4] ss:$8 sps:$4 sm:$0xff]   ;;  %v9830_v50 = vld [vmem:[%s11309_s6 + $0x8a0] ss:$8 sps:$4 sm:$0xff]   ;;  %v9841_v53 = vld [vmem:[%s11309_s6 + $0x994] ss:$8 sps:$4 sm:$0xff]  }
 0x224   : > { %v11647_v61 = vadd.f32 %v6108_v59, %v6067_v58  ;;  %8075 = vmatprep.mubr.bf16.mxu1 %v6654_v51  ;;  %v6069_v35 = vpop.f32.mrf.mxu0  ;;  %v9833_v51 = vld [vmem:[%s11309_s6 + $0x9a0] ss:$8 sps:$4 sm:$0xff]   ;;  %v9844_v58 = vld [vmem:[%s11309_s6 + $0x884] ss:$8 sps:$4 sm:$0xff]  }
 0x225   : > { %v6110_v62 = vpop.f32.mrf.mxu1  ;;  %8005 = vmatpush1.bf16.msra.mxu0 %v9758_v54  ;;  %v8786_v54 = vld [vmem:[%s11365_s10 + $0x28] sm:$0xff] }
 0x226   : > { %8046 = vmatpush1.bf16.msra.mxu1 %v9761_v56  ;;  %v6070_v0 = vpop.f32.mrf.mxu0  ;;  %8006 = vmatprep.subr.bf16.mxu0 %v9766_v57  ;;  %v9836_v56 = vld [vmem:[%s11309_s6 + $0x890] ss:$8 sps:$4 sm:$0xff]   ;;  %v9847_v59 = vld [vmem:[%s11309_s6 + $0x984] ss:$8 sps:$4 sm:$0xff]   ;;  %v9845_v35 = vld [vmem:[%s11309_s6 + $0x980] ss:$8 sps:$4 sm:$0xff]  }
 0x227   : > { %v6111_v1 = vpop.f32.mrf.mxu1  ;;  %8047 = vmatprep.subr.bf16.mxu1 %v9769_v60  ;;  %v9839_v57 = vld [vmem:[%s11309_s6 + $0x990] ss:$8 sps:$4 sm:$0xff]   ;;  %v6655_v60 = vcombine.high %v8786_v54, %v8786_v54  ;;  %v9851_v62 = vld [vmem:[%s11309_s6 + $0xa74] ss:$8 sps:$4 sm:$0xff]  }
 0x228   : > { %v9849_v0 = vld [vmem:[%s11309_s6 + $0xa70] ss:$8 sps:$4 sm:$0xff]  }
 0x229   : > { %8007 = vmatpush1.bf16.msra.mxu0 %v9764_v34  ;;  %v9842_v34 = vld [vmem:[%s11309_s6 + $0x880] ss:$8 sps:$4 sm:$0xff]   ;;  %v9852_v1 = vld [vmem:[%s11309_s6 + $0xb70] ss:$8 sps:$4 sm:$0xff]  }
 0x22a   : > { %8048 = vmatpush1.bf16.msra.mxu1 %v9767_v63  ;;  %8008 = vmatprep.subr.bf16.mxu0 %v9772_v2  ;;  %v9854_v63 = vld [vmem:[%s11309_s6 + $0xb74] ss:$8 sps:$4 sm:$0xff]   ;;  %v11709_v2 = vrot.slane %v8786_v54, %v11368_v49  ;;  %v9903_v54 = vld [vmem:[%s11309_s6 + $0xae0] ss:$8 sps:$4 sm:$0xff]  }
 0x22b   : > { %8049 = vmatprep.subr.bf16.mxu1 %v9775_v3  ;;  %v11712_v3 = vrot.slane %v6655_v60, %v11368_v49  ;;  %v9912_v60 = vld [vmem:[%s11309_s6 + $0xbd0] ss:$8 sps:$4 sm:$0xff]  }
 0x22d   : > { %8009 = vmatpush1.bf16.msra.mxu0 %v9770_v4  ;;  %v9857_v4 = vld [vmem:[%s11309_s6 + $0xa64] ss:$8 sps:$4 sm:$0xff]  }
 0x22e   : > { %8050 = vmatpush1.bf16.msra.mxu1 %v9773_v5  ;;  %8010 = vmatprep.subr.bf16.mxu0 %v9778_v6  ;;  %v9860_v5 = vld [vmem:[%s11309_s6 + $0xb64] ss:$8 sps:$4 sm:$0xff]   ;;  %v6670_v6 = vcombine.high %v11709_v2, %v11709_v2 }
 0x22f   : > { %8051 = vmatprep.subr.bf16.mxu1 %v9781_v7  ;;  %v6671_v7 = vcombine.high %v11712_v3, %v11712_v3 }
 0x231   : > { %8011 = vmatpush1.bf16.msra.mxu0 %v9776_v8 }
 0x232   : > { %8052 = vmatpush1.bf16.msra.mxu1 %v9779_v9  ;;  %8012 = vmatprep.subr.bf16.mxu0 %v9784_v10 }
 0x233   : > { %8053 = vmatprep.subr.bf16.mxu1 %v9787_v11  ;;  %v9855_v11 = vld [vmem:[%s11309_s6 + $0xa60] ss:$8 sps:$4 sm:$0xff]  }
 0x235   : > { %8013 = vmatpush1.bf16.msra.mxu0 %v9782_v12  ;;  %v9858_v12 = vld [vmem:[%s11309_s6 + $0xb60] ss:$8 sps:$4 sm:$0xff]  }
 0x236   : > { %8054 = vmatpush1.bf16.msra.mxu1 %v9785_v13  ;;  %8014 = vmatprep.subr.bf16.mxu0 %v9790_v14 }
 0x237   : > { %8055 = vmatprep.subr.bf16.mxu1 %v9793_v15  ;;  %v9863_v15 = vld [vmem:[%s11309_s6 + $0xa54] ss:$8 sps:$4 sm:$0xff]  }
 0x239   : > { %8015 = vmatpush1.bf16.msra.mxu0 %v9788_v16  ;;  %v9866_v16 = vld [vmem:[%s11309_s6 + $0xb54] ss:$8 sps:$4 sm:$0xff]  }
 0x23a   : > { %8056 = vmatpush1.bf16.msra.mxu1 %v9791_v17  ;;  %8016 = vmatprep.subr.bf16.mxu0 %v9796_v18 }
 0x23b   : > { %8057 = vmatprep.subr.bf16.mxu1 %v9799_v19  ;;  %v9861_v19 = vld [vmem:[%s11309_s6 + $0xa50] ss:$8 sps:$4 sm:$0xff]  }
 0x23d   : > { %8017 = vmatpush1.bf16.msra.mxu0 %v9794_v20  ;;  %v9864_v20 = vld [vmem:[%s11309_s6 + $0xb50] ss:$8 sps:$4 sm:$0xff]  }
 0x23e   : > { %8058 = vmatpush1.bf16.msra.mxu1 %v9797_v21  ;;  %8018 = vmatprep.subr.bf16.mxu0 %v9802_v22 }
 0x23f   : > { %8059 = vmatprep.subr.bf16.mxu1 %v9805_v23  ;;  %v9872_v23 = vld [vmem:[%s11309_s6 + $0xb44] ss:$8 sps:$4 sm:$0xff]  }
 0x241   : > { %8019 = vmatpush2.bf16.msra.mxu0 %v9800_v24  ;;  %v9867_v24 = vld [vmem:[%s11309_s6 + $0xa40] ss:$8 sps:$4 sm:$0xff]  }
 0x242   : > { %8060 = vmatpush2.bf16.msra.mxu1 %v9803_v25  ;;  %8020 = vmatprep.subr.bf16.mxu0 %v9808_v26  ;;  %v9870_v25 = vld [vmem:[%s11309_s6 + $0xb40] ss:$8 sps:$4 sm:$0xff]   ;;  %v9875_v26 = vld [vmem:[%s11309_s6 + $0xa34] ss:$8 sps:$4 sm:$0xff]  }
 0x243   : > { %8061 = vmatprep.subr.bf16.mxu1 %v9811_v28  ;;  %v9878_v28 = vld [vmem:[%s11309_s6 + $0xb34] ss:$8 sps:$4 sm:$0xff]  }
 0x245   : > { %8021 = vmatpush2.bf16.msra.mxu0 %v9806_v29  ;;  %v9873_v29 = vld [vmem:[%s11309_s6 + $0xa30] ss:$8 sps:$4 sm:$0xff]  }
 0x246   : > { %8062 = vmatpush2.bf16.msra.mxu1 %v9809_v30  ;;  %8022 = vmatprep.subr.bf16.mxu0 %v9814_v32  ;;  %v9876_v30 = vld [vmem:[%s11309_s6 + $0xb30] ss:$8 sps:$4 sm:$0xff]   ;;  %v9881_v32 = vld [vmem:[%s11309_s6 + $0xa24] ss:$8 sps:$4 sm:$0xff]  }
 0x247   : > { %8063 = vmatprep.subr.bf16.mxu1 %v9817_v33  ;;  %v9884_v33 = vld [vmem:[%s11309_s6 + $0xb24] ss:$8 sps:$4 sm:$0xff]  }
 0x249   : > { %8023 = vmatpush2.bf16.msra.mxu0 %v9812_v36  ;;  %v9879_v36 = vld [vmem:[%s11309_s6 + $0xa20] ss:$8 sps:$4 sm:$0xff]  }
 0x24a   : > { %8064 = vmatpush2.bf16.msra.mxu1 %v9815_v37  ;;  %8024 = vmatprep.subr.bf16.mxu0 %v9820_v38  ;;  %v9882_v37 = vld [vmem:[%s11309_s6 + $0xb20] ss:$8 sps:$4 sm:$0xff]   ;;  %v9887_v38 = vld [vmem:[%s11309_s6 + $0xa14] ss:$8 sps:$4 sm:$0xff]  }
 0x24b   : > { %8065 = vmatprep.subr.bf16.mxu1 %v9823_v39  ;;  %v9890_v39 = vld [vmem:[%s11309_s6 + $0xb14] ss:$8 sps:$4 sm:$0xff]  }
 0x24d   : > { %8025 = vmatpush2.bf16.msra.mxu0 %v9818_v40  ;;  %v9885_v40 = vld [vmem:[%s11309_s6 + $0xa10] ss:$8 sps:$4 sm:$0xff]  }
 0x24e   : > { %8066 = vmatpush2.bf16.msra.mxu1 %v9821_v41  ;;  %8026 = vmatprep.subr.bf16.mxu0 %v9826_v42  ;;  %v9888_v41 = vld [vmem:[%s11309_s6 + $0xb10] ss:$8 sps:$4 sm:$0xff]   ;;  %v9893_v42 = vld [vmem:[%s11309_s6 + $0xa04] ss:$8 sps:$4 sm:$0xff]  }
 0x24f   : > { %8067 = vmatprep.subr.bf16.mxu1 %v9829_v44  ;;  %v9896_v44 = vld [vmem:[%s11309_s6 + $0xb04] ss:$8 sps:$4 sm:$0xff]  }
 0x251   : > { %8027 = vmatpush2.bf16.msra.mxu0 %v9824_v47  ;;  %v9891_v47 = vld [vmem:[%s11309_s6 + $0xa00] ss:$8 sps:$4 sm:$0xff]  }
 0x252   : > { %8068 = vmatpush2.bf16.msra.mxu1 %v9827_v27  ;;  %8028 = vmatprep.subr.bf16.mxu0 %v9832_v31  ;;  %v9894_v27 = vld [vmem:[%s11309_s6 + $0xb00] ss:$8 sps:$4 sm:$0xff]   ;;  %v9899_v31 = vld [vmem:[%s11309_s6 + $0xaf4] ss:$8 sps:$4 sm:$0xff]  }
 0x253   : > { %8069 = vmatprep.subr.bf16.mxu1 %v9835_v48  ;;  %v9902_v48 = vld [vmem:[%s11309_s6 + $0xbf4] ss:$8 sps:$4 sm:$0xff]  }
 0x255   : > { %8029 = vmatpush2.bf16.msra.mxu0 %v9830_v50  ;;  %v9897_v50 = vld [vmem:[%s11309_s6 + $0xaf0] ss:$8 sps:$4 sm:$0xff]  }
 0x256   : > { %8070 = vmatpush2.bf16.msra.mxu1 %v9833_v51  ;;  %8030 = vmatprep.subr.bf16.mxu0 %v9838_v52  ;;  %v9900_v51 = vld [vmem:[%s11309_s6 + $0xbf0] ss:$8 sps:$4 sm:$0xff]   ;;  %v9905_v52 = vld [vmem:[%s11309_s6 + $0xae4] ss:$8 sps:$4 sm:$0xff]  }
 0x257   : > { %8071 = vmatprep.subr.bf16.mxu1 %v9841_v53  ;;  %v9908_v53 = vld [vmem:[%s11309_s6 + $0xbe4] ss:$8 sps:$4 sm:$0xff]  }
 0x259   : > { %8031 = vmatpush2.bf16.msra.mxu0 %v9836_v56  ;;  %v9906_v56 = vld [vmem:[%s11309_s6 + $0xbe0] ss:$8 sps:$4 sm:$0xff]  }
 0x25a   : > { %8072 = vmatpush2.bf16.msra.mxu1 %v9839_v57  ;;  %8032 = vmatprep.subr.bf16.mxu0 %v9844_v58  ;;  %v9911_v57 = vld [vmem:[%s11309_s6 + $0xad4] ss:$8 sps:$4 sm:$0xff]  }
 0x25b   : > { %8073 = vmatprep.subr.bf16.mxu1 %v9847_v59  ;;  %v9914_v58 = vld [vmem:[%s11309_s6 + $0xbd4] ss:$8 sps:$4 sm:$0xff]   ;;  %v9909_v59 = vld [vmem:[%s11309_s6 + $0xad0] ss:$8 sps:$4 sm:$0xff]  }
 0x25d   : > { %8033 = vmatpush2.bf16.msra.mxu0 %v9842_v34  ;;  %v9917_v34 = vld [vmem:[%s11309_s6 + $0xac4] ss:$8 sps:$4 sm:$0xff]  }
 0x25e   : > { %8074 = vmatpush2.bf16.msra.mxu1 %v9845_v35  ;;  %8084 = vmatprep.subr.bf16.mxu0 %v9851_v62  ;;  %v9920_v35 = vld [vmem:[%s11309_s6 + $0xbc4] ss:$8 sps:$4 sm:$0xff]   ;;  %v9915_v62 = vld [vmem:[%s11309_s6 + $0xac0] ss:$8 sps:$4 sm:$0xff]  }
 0x25f   : > { %8125 = vmatprep.subr.bf16.mxu1 %v9854_v63  ;;  %v9918_v63 = vld [vmem:[%s11309_s6 + $0xbc0] ss:$8 sps:$4 sm:$0xff]  }
 0x260   : > { %v6147_v8 = vpop.f32.mrf.mxu0  ;;  %8035 = vmatmul.mubr.bf16.vlgmr.msra.gmra.mxu0 %v11626_v45 }
 0x261   : > { %v6188_v9 = vpop.f32.mrf.mxu1  ;;  %8076 = vmatmul.mubr.bf16.vlgmr.msra.gmra.mxu1 %v11629_v46  ;;  %v6148_v10 = vadd.f32 %v6147_v8, %v11642_v55  ;;  %8085 = vmatpush1.bf16.msra.mxu0 %v9849_v0  ;;  %v9923_v0 = vld [vmem:[%s11309_s6 + $0xab4] ss:$8 sps:$4 sm:$0xff]   ;;  %v9927_v8 = vld [vmem:[%s11309_s6 + $0xaa0] ss:$8 sps:$4 sm:$0xff]  }
 0x262   : > { %8126 = vmatpush1.bf16.msra.mxu1 %v9852_v1  ;;  %v6149_v13 = vpop.f32.mrf.mxu0  ;;  %8086 = vmatprep.subr.bf16.mxu0 %v9857_v4  ;;  %v9926_v1 = vld [vmem:[%s11309_s6 + $0xbb4] ss:$8 sps:$4 sm:$0xff]   ;;  %v9921_v4 = vld [vmem:[%s11309_s6 + $0xab0] ss:$8 sps:$4 sm:$0xff]  }
 0x263   : > { %v6190_v14 = vpop.f32.mrf.mxu1  ;;  %8127 = vmatprep.subr.bf16.mxu1 %v9860_v5  ;;  %v11727_v17 = vadd.f32 %v6188_v9, %v6148_v10  ;;  %v6150_v45 = vadd.f32 %v6149_v13, %v11647_v61  ;;  %8116 = vmatprep.mubr.bf16.mxu0 %v6670_v6  ;;  %v9869_v61 = vld [vmem:[%s11309_s6 + $0xa44] ss:$8 sps:$4 sm:$0xff]   ;;  %v9924_v5 = vld [vmem:[%s11309_s6 + $0xbb0] ss:$8 sps:$4 sm:$0xff]   ;;  %v9930_v9 = vld [vmem:[%s11309_s6 + $0xba0] ss:$8 sps:$4 sm:$0xff]  }
 0x264   : > { %8157 = vmatprep.mubr.bf16.mxu1 %v6671_v7  ;;  %v6151_v46 = vpop.f32.mrf.mxu0  ;;  %v9929_v6 = vld [vmem:[%s11309_s6 + $0xaa4] ss:$8 sps:$4 sm:$0xff]   ;;  %v9935_v10 = vld [vmem:[%s11309_s6 + $0xa94] ss:$8 sps:$4 sm:$0xff]   ;;  %v9933_v13 = vld [vmem:[%s11309_s6 + $0xa90] ss:$8 sps:$4 sm:$0xff]  }
 0x265   : > { %v6192_v55 = vpop.f32.mrf.mxu1  ;;  %v11730_v18 = vadd.f32 %v6190_v14, %v6150_v45  ;;  %8087 = vmatpush1.bf16.msra.mxu0 %v9855_v11  ;;  %v9932_v7 = vld [vmem:[%s11309_s6 + $0xba4] ss:$8 sps:$4 sm:$0xff]   ;;  %v9938_v11 = vld [vmem:[%s11309_s6 + $0xb94] ss:$8 sps:$4 sm:$0xff]   ;;  %v9936_v14 = vld [vmem:[%s11309_s6 + $0xb90] ss:$8 sps:$4 sm:$0xff]  }
 0x266   : > { %8128 = vmatpush1.bf16.msra.mxu1 %v9858_v12  ;;  %v6152_v21 = vpop.f32.mrf.mxu0  ;;  %8088 = vmatprep.subr.bf16.mxu0 %v9863_v15  ;;  %v8787_v12 = vld [vmem:[%s11365_s10 + $0x30] sm:$0xff]  ;;  %v9941_v15 = vld [vmem:[%s11309_s6 + $0xa84] ss:$8 sps:$4 sm:$0xff]   ;;  %v9939_v46 = vld [vmem:[%s11309_s6 + $0xa80] ss:$8 sps:$4 sm:$0xff]  }
 0x267   : > { %v6193_v22 = vpop.f32.mrf.mxu1  ;;  %8129 = vmatprep.subr.bf16.mxu1 %v9866_v16  ;;  %v9944_v16 = vld [vmem:[%s11309_s6 + $0xb84] ss:$8 sps:$4 sm:$0xff]   ;;  %v6672_v45 = vcombine.high %v8787_v12, %v8787_v12  ;;  %v9942_v55 = vld [vmem:[%s11309_s6 + $0xb80] ss:$8 sps:$4 sm:$0xff]   ;;  %v11790_v21 = vrot.slane %v8787_v12, %v11368_v49 }
 0x268   : > { %v10000_v12 = vld [vmem:[%s11309_s6 + $0xce0] ss:$8 sps:$4 sm:$0xff]  }
 0x269   : > { %8089 = vmatpush1.bf16.msra.mxu0 %v9861_v19  ;;  %v9948_v19 = vld [vmem:[%s11309_s6 + $0xc74] ss:$8 sps:$4 sm:$0xff]   ;;  %v11793_v22 = vrot.slane %v6672_v45, %v11368_v49  ;;  %v10009_v45 = vld [vmem:[%s11309_s6 + $0xdd0] ss:$8 sps:$4 sm:$0xff]  }
 0x26a   : > { %8130 = vmatpush1.bf16.msra.mxu1 %v9864_v20  ;;  %8090 = vmatprep.subr.bf16.mxu0 %v9869_v61  ;;  %v9951_v20 = vld [vmem:[%s11309_s6 + $0xd74] ss:$8 sps:$4 sm:$0xff]   ;;  %v9946_v61 = vld [vmem:[%s11309_s6 + $0xc70] ss:$8 sps:$4 sm:$0xff]  }
 0x26b   : > { %8131 = vmatprep.subr.bf16.mxu1 %v9872_v23  ;;  %v9949_v23 = vld [vmem:[%s11309_s6 + $0xd70] ss:$8 sps:$4 sm:$0xff]  }
 0x26d   : > { %8091 = vmatpush1.bf16.msra.mxu0 %v9867_v24  ;;  %v9954_v24 = vld [vmem:[%s11309_s6 + $0xc64] ss:$8 sps:$4 sm:$0xff]  }
 0x26e   : > { %8132 = vmatpush1.bf16.msra.mxu1 %v9870_v25  ;;  %8092 = vmatprep.subr.bf16.mxu0 %v9875_v26  ;;  %v9957_v25 = vld [vmem:[%s11309_s6 + $0xd64] ss:$8 sps:$4 sm:$0xff]   ;;  %v6687_v26 = vcombine.high %v11790_v21, %v11790_v21 }
 0x26f   : > { %8133 = vmatprep.subr.bf16.mxu1 %v9878_v28  ;;  %v6688_v28 = vcombine.high %v11793_v22, %v11793_v22 }
 0x271   : > { %8093 = vmatpush1.bf16.msra.mxu0 %v9873_v29 }
 0x272   : > { %8134 = vmatpush1.bf16.msra.mxu1 %v9876_v30  ;;  %8094 = vmatprep.subr.bf16.mxu0 %v9881_v32 }
 0x273   : > { %8135 = vmatprep.subr.bf16.mxu1 %v9884_v33  ;;  %v9952_v33 = vld [vmem:[%s11309_s6 + $0xc60] ss:$8 sps:$4 sm:$0xff]  }
 0x275   : > { %8095 = vmatpush1.bf16.msra.mxu0 %v9879_v36  ;;  %v9955_v36 = vld [vmem:[%s11309_s6 + $0xd60] ss:$8 sps:$4 sm:$0xff]  }
 0x276   : > { %8136 = vmatpush1.bf16.msra.mxu1 %v9882_v37  ;;  %8096 = vmatprep.subr.bf16.mxu0 %v9887_v38 }
 0x277   : > { %8137 = vmatprep.subr.bf16.mxu1 %v9890_v39  ;;  %v9960_v39 = vld [vmem:[%s11309_s6 + $0xc54] ss:$8 sps:$4 sm:$0xff]  }
 0x279   : > { %8097 = vmatpush1.bf16.msra.mxu0 %v9885_v40  ;;  %v9963_v40 = vld [vmem:[%s11309_s6 + $0xd54] ss:$8 sps:$4 sm:$0xff]  }
 0x27a   : > { %8138 = vmatpush1.bf16.msra.mxu1 %v9888_v41  ;;  %8098 = vmatprep.subr.bf16.mxu0 %v9893_v42 }
 0x27b   : > { %8139 = vmatprep.subr.bf16.mxu1 %v9896_v44  ;;  %v9958_v44 = vld [vmem:[%s11309_s6 + $0xc50] ss:$8 sps:$4 sm:$0xff]  }
 0x27d   : > { %8099 = vmatpush1.bf16.msra.mxu0 %v9891_v47  ;;  %v9961_v47 = vld [vmem:[%s11309_s6 + $0xd50] ss:$8 sps:$4 sm:$0xff]  }
 0x27e   : > { %8140 = vmatpush1.bf16.msra.mxu1 %v9894_v27  ;;  %8100 = vmatprep.subr.bf16.mxu0 %v9899_v31 }
 0x27f   : > { %8141 = vmatprep.subr.bf16.mxu1 %v9902_v48  ;;  %v9969_v48 = vld [vmem:[%s11309_s6 + $0xd44] ss:$8 sps:$4 sm:$0xff]  }
 0x281   : > { %8101 = vmatpush2.bf16.msra.mxu0 %v9897_v50  ;;  %v9964_v50 = vld [vmem:[%s11309_s6 + $0xc40] ss:$8 sps:$4 sm:$0xff]  }
 0x282   : > { %8142 = vmatpush2.bf16.msra.mxu1 %v9900_v51  ;;  %8102 = vmatprep.subr.bf16.mxu0 %v9905_v52  ;;  %v9967_v51 = vld [vmem:[%s11309_s6 + $0xd40] ss:$8 sps:$4 sm:$0xff]   ;;  %v9972_v52 = vld [vmem:[%s11309_s6 + $0xc34] ss:$8 sps:$4 sm:$0xff]  }
 0x283   : > { %8143 = vmatprep.subr.bf16.mxu1 %v9908_v53  ;;  %v9975_v53 = vld [vmem:[%s11309_s6 + $0xd34] ss:$8 sps:$4 sm:$0xff]  }
 0x285   : > { %8103 = vmatpush2.bf16.msra.mxu0 %v9903_v54  ;;  %v9970_v54 = vld [vmem:[%s11309_s6 + $0xc30] ss:$8 sps:$4 sm:$0xff]  }
 0x286   : > { %8144 = vmatpush2.bf16.msra.mxu1 %v9906_v56  ;;  %8104 = vmatprep.subr.bf16.mxu0 %v9911_v57  ;;  %v9973_v56 = vld [vmem:[%s11309_s6 + $0xd30] ss:$8 sps:$4 sm:$0xff]   ;;  %v9978_v57 = vld [vmem:[%s11309_s6 + $0xc24] ss:$8 sps:$4 sm:$0xff]  }
 0x287   : > { %8145 = vmatprep.subr.bf16.mxu1 %v9914_v58  ;;  %v9981_v58 = vld [vmem:[%s11309_s6 + $0xd24] ss:$8 sps:$4 sm:$0xff]  }
 0x289   : > { %8105 = vmatpush2.bf16.msra.mxu0 %v9909_v59  ;;  %v9976_v59 = vld [vmem:[%s11309_s6 + $0xc20] ss:$8 sps:$4 sm:$0xff]  }
 0x28a   : > { %8146 = vmatpush2.bf16.msra.mxu1 %v9912_v60  ;;  %8106 = vmatprep.subr.bf16.mxu0 %v9917_v34  ;;  %v9979_v60 = vld [vmem:[%s11309_s6 + $0xd20] ss:$8 sps:$4 sm:$0xff]   ;;  %v9984_v34 = vld [vmem:[%s11309_s6 + $0xc14] ss:$8 sps:$4 sm:$0xff]  }
 0x28b   : > { %8147 = vmatprep.subr.bf16.mxu1 %v9920_v35  ;;  %v9987_v35 = vld [vmem:[%s11309_s6 + $0xd14] ss:$8 sps:$4 sm:$0xff]  }
 0x28d   : > { %8107 = vmatpush2.bf16.msra.mxu0 %v9915_v62  ;;  %v9982_v62 = vld [vmem:[%s11309_s6 + $0xc10] ss:$8 sps:$4 sm:$0xff]  }
 0x28e   : > { %8148 = vmatpush2.bf16.msra.mxu1 %v9918_v63  ;;  %8108 = vmatprep.subr.bf16.mxu0 %v9923_v0  ;;  %v9985_v63 = vld [vmem:[%s11309_s6 + $0xd10] ss:$8 sps:$4 sm:$0xff]   ;;  %v9990_v0 = vld [vmem:[%s11309_s6 + $0xc04] ss:$8 sps:$4 sm:$0xff]  }
 0x28f   : > { %8149 = vmatprep.subr.bf16.mxu1 %v9926_v1  ;;  %v9993_v1 = vld [vmem:[%s11309_s6 + $0xd04] ss:$8 sps:$4 sm:$0xff]  }
 0x291   : > { %8109 = vmatpush2.bf16.msra.mxu0 %v9921_v4  ;;  %v9988_v4 = vld [vmem:[%s11309_s6 + $0xc00] ss:$8 sps:$4 sm:$0xff]  }
 0x292   : > { %8150 = vmatpush2.bf16.msra.mxu1 %v9924_v5  ;;  %8110 = vmatprep.subr.bf16.mxu0 %v9929_v6  ;;  %v9991_v5 = vld [vmem:[%s11309_s6 + $0xd00] ss:$8 sps:$4 sm:$0xff]   ;;  %v9996_v6 = vld [vmem:[%s11309_s6 + $0xcf4] ss:$8 sps:$4 sm:$0xff]  }
 0x293   : > { %8151 = vmatprep.subr.bf16.mxu1 %v9932_v7  ;;  %v9999_v7 = vld [vmem:[%s11309_s6 + $0xdf4] ss:$8 sps:$4 sm:$0xff]  }
 0x295   : > { %8111 = vmatpush2.bf16.msra.mxu0 %v9927_v8  ;;  %v9994_v8 = vld [vmem:[%s11309_s6 + $0xcf0] ss:$8 sps:$4 sm:$0xff]  }
 0x296   : > { %8152 = vmatpush2.bf16.msra.mxu1 %v9930_v9  ;;  %8112 = vmatprep.subr.bf16.mxu0 %v9935_v10  ;;  %v9997_v9 = vld [vmem:[%s11309_s6 + $0xdf0] ss:$8 sps:$4 sm:$0xff]   ;;  %v10002_v10 = vld [vmem:[%s11309_s6 + $0xce4] ss:$8 sps:$4 sm:$0xff]  }
 0x297   : > { %8153 = vmatprep.subr.bf16.mxu1 %v9938_v11  ;;  %v10005_v11 = vld [vmem:[%s11309_s6 + $0xde4] ss:$8 sps:$4 sm:$0xff]  }
 0x299   : > { %8113 = vmatpush2.bf16.msra.mxu0 %v9933_v13  ;;  %v10003_v13 = vld [vmem:[%s11309_s6 + $0xde0] ss:$8 sps:$4 sm:$0xff]  }
 0x29a   : > { %8154 = vmatpush2.bf16.msra.mxu1 %v9936_v14  ;;  %8114 = vmatprep.subr.bf16.mxu0 %v9941_v15  ;;  %v10008_v14 = vld [vmem:[%s11309_s6 + $0xcd4] ss:$8 sps:$4 sm:$0xff]  }
 0x29b   : > { %8155 = vmatprep.subr.bf16.mxu1 %v9944_v16  ;;  %v10011_v15 = vld [vmem:[%s11309_s6 + $0xdd4] ss:$8 sps:$4 sm:$0xff]   ;;  %v10006_v16 = vld [vmem:[%s11309_s6 + $0xcd0] ss:$8 sps:$4 sm:$0xff]  }
 0x29d   : > { %8115 = vmatpush2.bf16.msra.mxu0 %v9939_v46  ;;  %v10014_v46 = vld [vmem:[%s11309_s6 + $0xcc4] ss:$8 sps:$4 sm:$0xff]  }
 0x29e   : > { %8156 = vmatpush2.bf16.msra.mxu1 %v9942_v55  ;;  %8166 = vmatprep.subr.bf16.mxu0 %v9948_v19  ;;  %v10017_v55 = vld [vmem:[%s11309_s6 + $0xdc4] ss:$8 sps:$4 sm:$0xff]   ;;  %v10012_v19 = vld [vmem:[%s11309_s6 + $0xcc0] ss:$8 sps:$4 sm:$0xff]  }
 0x29f   : > { %8207 = vmatprep.subr.bf16.mxu1 %v9951_v20  ;;  %v10015_v20 = vld [vmem:[%s11309_s6 + $0xdc0] ss:$8 sps:$4 sm:$0xff]  }
 0x2a0   : > { %v6229_v29 = vpop.f32.mrf.mxu0  ;;  %8117 = vmatmul.mubr.bf16.vlgmr.msra.gmra.mxu0 %v11709_v2 }
 0x2a1   : > { %v6270_v30 = vpop.f32.mrf.mxu1  ;;  %8158 = vmatmul.mubr.bf16.vlgmr.msra.gmra.mxu1 %v11712_v3  ;;  %v6230_v32 = vadd.f32 %v6229_v29, %v11727_v17  ;;  %8167 = vmatpush1.bf16.msra.mxu0 %v9946_v61  ;;  %v10020_v61 = vld [vmem:[%s11309_s6 + $0xcb4] ss:$8 sps:$4 sm:$0xff]   ;;  %v10024_v29 = vld [vmem:[%s11309_s6 + $0xca0] ss:$8 sps:$4 sm:$0xff]  }
 0x2a2   : > { %8208 = vmatpush1.bf16.msra.mxu1 %v9949_v23  ;;  %v6231_v37 = vpop.f32.mrf.mxu0  ;;  %8168 = vmatprep.subr.bf16.mxu0 %v9954_v24  ;;  %v10023_v23 = vld [vmem:[%s11309_s6 + $0xdb4] ss:$8 sps:$4 sm:$0xff]   ;;  %v10018_v24 = vld [vmem:[%s11309_s6 + $0xcb0] ss:$8 sps:$4 sm:$0xff]  }
 0x2a3   : > { %v6272_v38 = vpop.f32.mrf.mxu1  ;;  %8209 = vmatprep.subr.bf16.mxu1 %v9957_v25  ;;  %v11810_v41 = vadd.f32 %v6270_v30, %v6230_v32  ;;  %v6232_v2 = vadd.f32 %v6231_v37, %v11730_v18  ;;  %8198 = vmatprep.mubr.bf16.mxu0 %v6687_v26  ;;  %v9966_v18 = vld [vmem:[%s11309_s6 + $0xc44] ss:$8 sps:$4 sm:$0xff]   ;;  %v10021_v25 = vld [vmem:[%s11309_s6 + $0xdb0] ss:$8 sps:$4 sm:$0xff]   ;;  %v10027_v30 = vld [vmem:[%s11309_s6 + $0xda0] ss:$8 sps:$4 sm:$0xff]  }
 0x2a4   : > { %8239 = vmatprep.mubr.bf16.mxu1 %v6688_v28  ;;  %v6233_v3 = vpop.f32.mrf.mxu0  ;;  %v10026_v26 = vld [vmem:[%s11309_s6 + $0xca4] ss:$8 sps:$4 sm:$0xff]   ;;  %v10032_v32 = vld [vmem:[%s11309_s6 + $0xc94] ss:$8 sps:$4 sm:$0xff]   ;;  %v10030_v37 = vld [vmem:[%s11309_s6 + $0xc90] ss:$8 sps:$4 sm:$0xff]  }
 0x2a5   : > { %v6274_v17 = vpop.f32.mrf.mxu1  ;;  %v11813_v42 = vadd.f32 %v6272_v38, %v6232_v2  ;;  %8169 = vmatpush1.bf16.msra.mxu0 %v9952_v33  ;;  %v10029_v28 = vld [vmem:[%s11309_s6 + $0xda4] ss:$8 sps:$4 sm:$0xff]   ;;  %v10035_v33 = vld [vmem:[%s11309_s6 + $0xd94] ss:$8 sps:$4 sm:$0xff]   ;;  %v10033_v38 = vld [vmem:[%s11309_s6 + $0xd90] ss:$8 sps:$4 sm:$0xff]  }
 0x2a6   : > { %8210 = vmatpush1.bf16.msra.mxu1 %v9955_v36  ;;  %v6234_v27 = vpop.f32.mrf.mxu0  ;;  %8170 = vmatprep.subr.bf16.mxu0 %v9960_v39  ;;  %v8788_v36 = vld [vmem:[%s11365_s10 + $0x38] sm:$0xff]  ;;  %v10038_v39 = vld [vmem:[%s11309_s6 + $0xc84] ss:$8 sps:$4 sm:$0xff]   ;;  %v10036_v3 = vld [vmem:[%s11309_s6 + $0xc80] ss:$8 sps:$4 sm:$0xff]  }
 0x2a7   : > { %v6275_v31 = vpop.f32.mrf.mxu1  ;;  %8211 = vmatprep.subr.bf16.mxu1 %v9963_v40  ;;  %v10041_v40 = vld [vmem:[%s11309_s6 + $0xd84] ss:$8 sps:$4 sm:$0xff]   ;;  %v6689_v2 = vcombine.high %v8788_v36, %v8788_v36  ;;  %v10039_v17 = vld [vmem:[%s11309_s6 + $0xd80] ss:$8 sps:$4 sm:$0xff]   ;;  %v11873_v27 = vrot.slane %v8788_v36, %v11368_v49 }
 0x2a8   : > { %v10100_v36 = vld [vmem:[%s11309_s6 + $0xfe0] ss:$8 sps:$4 sm:$0xff]  }
 0x2a9   : > { %8171 = vmatpush1.bf16.msra.mxu0 %v9958_v44  ;;  %v10045_v44 = vld [vmem:[%s11309_s6 + $0xe74] ss:$8 sps:$4 sm:$0xff]   ;;  %v11876_v31 = vrot.slane %v6689_v2, %v11368_v49  ;;  %v10111_v2 = vld [vmem:[%s11309_s6 + $0xec4] ss:$8 sps:$4 sm:$0xff]  }
 0x2aa   : > { %8212 = vmatpush1.bf16.msra.mxu1 %v9961_v47  ;;  %8172 = vmatprep.subr.bf16.mxu0 %v9966_v18  ;;  %v10048_v47 = vld [vmem:[%s11309_s6 + $0xf74] ss:$8 sps:$4 sm:$0xff]   ;;  %v10043_v18 = vld [vmem:[%s11309_s6 + $0xe70] ss:$8 sps:$4 sm:$0xff]  }
 0x2ab   : > { %8213 = vmatprep.subr.bf16.mxu1 %v9969_v48  ;;  %v10046_v48 = vld [vmem:[%s11309_s6 + $0xf70] ss:$8 sps:$4 sm:$0xff]  }
 0x2ad   : > { %8173 = vmatpush1.bf16.msra.mxu0 %v9964_v50  ;;  %v10051_v50 = vld [vmem:[%s11309_s6 + $0xe64] ss:$8 sps:$4 sm:$0xff]  }
 0x2ae   : > { %8214 = vmatpush1.bf16.msra.mxu1 %v9967_v51  ;;  %8174 = vmatprep.subr.bf16.mxu0 %v9972_v52  ;;  %v10054_v51 = vld [vmem:[%s11309_s6 + $0xf64] ss:$8 sps:$4 sm:$0xff]   ;;  %v6704_v52 = vcombine.high %v11873_v27, %v11873_v27 }
 0x2af   : > { %8215 = vmatprep.subr.bf16.mxu1 %v9975_v53  ;;  %v6705_v53 = vcombine.high %v11876_v31, %v11876_v31 }
 0x2b1   : > { %8175 = vmatpush1.bf16.msra.mxu0 %v9970_v54 }
 0x2b2   : > { %8216 = vmatpush1.bf16.msra.mxu1 %v9973_v56  ;;  %8176 = vmatprep.subr.bf16.mxu0 %v9978_v57  ;;  %v10049_v57 = vld [vmem:[%s11309_s6 + $0xe60] ss:$8 sps:$4 sm:$0xff]  }
 0x2b3   : > { %8217 = vmatprep.subr.bf16.mxu1 %v9981_v58  ;;  %v10052_v58 = vld [vmem:[%s11309_s6 + $0xf60] ss:$8 sps:$4 sm:$0xff]  }
 0x2b5   : > { %8177 = vmatpush1.bf16.msra.mxu0 %v9976_v59 }
 0x2b6   : > { %8218 = vmatpush1.bf16.msra.mxu1 %v9979_v60  ;;  %8178 = vmatprep.subr.bf16.mxu0 %v9984_v34  ;;  %v10057_v34 = vld [vmem:[%s11309_s6 + $0xe54] ss:$8 sps:$4 sm:$0xff]  }
 0x2b7   : > { %8219 = vmatprep.subr.bf16.mxu1 %v9987_v35  ;;  %v10060_v35 = vld [vmem:[%s11309_s6 + $0xf54] ss:$8 sps:$4 sm:$0xff]  }
 0x2b9   : > { %8179 = vmatpush1.bf16.msra.mxu0 %v9982_v62 }
 0x2ba   : > { %8220 = vmatpush1.bf16.msra.mxu1 %v9985_v63  ;;  %8180 = vmatprep.subr.bf16.mxu0 %v9990_v0  ;;  %v10055_v0 = vld [vmem:[%s11309_s6 + $0xe50] ss:$8 sps:$4 sm:$0xff]  }
 0x2bb   : > { %8221 = vmatprep.subr.bf16.mxu1 %v9993_v1  ;;  %v10058_v1 = vld [vmem:[%s11309_s6 + $0xf50] ss:$8 sps:$4 sm:$0xff]  }
 0x2bd   : > { %8181 = vmatpush1.bf16.msra.mxu0 %v9988_v4 }
 0x2be   : > { %8222 = vmatpush1.bf16.msra.mxu1 %v9991_v5  ;;  %8182 = vmatprep.subr.bf16.mxu0 %v9996_v6  ;;  %v10066_v6 = vld [vmem:[%s11309_s6 + $0xf44] ss:$8 sps:$4 sm:$0xff]  }
 0x2bf   : > { %8223 = vmatprep.subr.bf16.mxu1 %v9999_v7  ;;  %v10061_v7 = vld [vmem:[%s11309_s6 + $0xe40] ss:$8 sps:$4 sm:$0xff]  }
 0x2c1   : > { %8183 = vmatpush2.bf16.msra.mxu0 %v9994_v8  ;;  %v10064_v8 = vld [vmem:[%s11309_s6 + $0xf40] ss:$8 sps:$4 sm:$0xff]  }
 0x2c2   : > { %8224 = vmatpush2.bf16.msra.mxu1 %v9997_v9  ;;  %8184 = vmatprep.subr.bf16.mxu0 %v10002_v10  ;;  %v10069_v9 = vld [vmem:[%s11309_s6 + $0xe34] ss:$8 sps:$4 sm:$0xff]  }
 0x2c3   : > { %8225 = vmatprep.subr.bf16.mxu1 %v10005_v11  ;;  %v10072_v10 = vld [vmem:[%s11309_s6 + $0xf34] ss:$8 sps:$4 sm:$0xff]   ;;  %v10067_v11 = vld [vmem:[%s11309_s6 + $0xe30] ss:$8 sps:$4 sm:$0xff]  }
 0x2c5   : > { %8185 = vmatpush2.bf16.msra.mxu0 %v10000_v12  ;;  %v10070_v12 = vld [vmem:[%s11309_s6 + $0xf30] ss:$8 sps:$4 sm:$0xff]  }
 0x2c6   : > { %8226 = vmatpush2.bf16.msra.mxu1 %v10003_v13  ;;  %8186 = vmatprep.subr.bf16.mxu0 %v10008_v14  ;;  %v10075_v13 = vld [vmem:[%s11309_s6 + $0xe24] ss:$8 sps:$4 sm:$0xff]  }
 0x2c7   : > { %8227 = vmatprep.subr.bf16.mxu1 %v10011_v15  ;;  %v10078_v14 = vld [vmem:[%s11309_s6 + $0xf24] ss:$8 sps:$4 sm:$0xff]   ;;  %v10073_v15 = vld [vmem:[%s11309_s6 + $0xe20] ss:$8 sps:$4 sm:$0xff]  }
 0x2c9   : > { %8187 = vmatpush2.bf16.msra.mxu0 %v10006_v16  ;;  %v10076_v16 = vld [vmem:[%s11309_s6 + $0xf20] ss:$8 sps:$4 sm:$0xff]  }
 0x2ca   : > { %8228 = vmatpush2.bf16.msra.mxu1 %v10009_v45  ;;  %8188 = vmatprep.subr.bf16.mxu0 %v10014_v46  ;;  %v10081_v45 = vld [vmem:[%s11309_s6 + $0xe14] ss:$8 sps:$4 sm:$0xff]  }
 0x2cb   : > { %8229 = vmatprep.subr.bf16.mxu1 %v10017_v55  ;;  %v10084_v46 = vld [vmem:[%s11309_s6 + $0xf14] ss:$8 sps:$4 sm:$0xff]   ;;  %v10079_v55 = vld [vmem:[%s11309_s6 + $0xe10] ss:$8 sps:$4 sm:$0xff]  }
 0x2cd   : > { %8189 = vmatpush2.bf16.msra.mxu0 %v10012_v19  ;;  %v10082_v19 = vld [vmem:[%s11309_s6 + $0xf10] ss:$8 sps:$4 sm:$0xff]  }
 0x2ce   : > { %8230 = vmatpush2.bf16.msra.mxu1 %v10015_v20  ;;  %8190 = vmatprep.subr.bf16.mxu0 %v10020_v61  ;;  %v10087_v20 = vld [vmem:[%s11309_s6 + $0xe04] ss:$8 sps:$4 sm:$0xff]  }
 0x2cf   : > { %8231 = vmatprep.subr.bf16.mxu1 %v10023_v23  ;;  %v10090_v61 = vld [vmem:[%s11309_s6 + $0xf04] ss:$8 sps:$4 sm:$0xff]   ;;  %v10085_v23 = vld [vmem:[%s11309_s6 + $0xe00] ss:$8 sps:$4 sm:$0xff]  }
 0x2d1   : > { %8191 = vmatpush2.bf16.msra.mxu0 %v10018_v24  ;;  %v10088_v24 = vld [vmem:[%s11309_s6 + $0xf00] ss:$8 sps:$4 sm:$0xff]  }
 0x2d2   : > { %8232 = vmatpush2.bf16.msra.mxu1 %v10021_v25  ;;  %8192 = vmatprep.subr.bf16.mxu0 %v10026_v26  ;;  %v10093_v25 = vld [vmem:[%s11309_s6 + $0xef4] ss:$8 sps:$4 sm:$0xff]  }
 0x2d3   : > { %8233 = vmatprep.subr.bf16.mxu1 %v10029_v28  ;;  %v10096_v26 = vld [vmem:[%s11309_s6 + $0xff4] ss:$8 sps:$4 sm:$0xff]   ;;  %v10091_v28 = vld [vmem:[%s11309_s6 + $0xef0] ss:$8 sps:$4 sm:$0xff]  }
 0x2d5   : > { %8193 = vmatpush2.bf16.msra.mxu0 %v10024_v29  ;;  %v10094_v29 = vld [vmem:[%s11309_s6 + $0xff0] ss:$8 sps:$4 sm:$0xff]  }
 0x2d6   : > { %8234 = vmatpush2.bf16.msra.mxu1 %v10027_v30  ;;  %8194 = vmatprep.subr.bf16.mxu0 %v10032_v32  ;;  %v10099_v30 = vld [vmem:[%s11309_s6 + $0xee4] ss:$8 sps:$4 sm:$0xff]  }
 0x2d7   : > { %8235 = vmatprep.subr.bf16.mxu1 %v10035_v33  ;;  %v10102_v32 = vld [vmem:[%s11309_s6 + $0xfe4] ss:$8 sps:$4 sm:$0xff]   ;;  %v10097_v33 = vld [vmem:[%s11309_s6 + $0xee0] ss:$8 sps:$4 sm:$0xff]  }
 0x2d9   : > { %8195 = vmatpush2.bf16.msra.mxu0 %v10030_v37  ;;  %v10105_v37 = vld [vmem:[%s11309_s6 + $0xed4] ss:$8 sps:$4 sm:$0xff]  }
 0x2da   : > { %8236 = vmatpush2.bf16.msra.mxu1 %v10033_v38  ;;  %8196 = vmatprep.subr.bf16.mxu0 %v10038_v39  ;;  %v10108_v38 = vld [vmem:[%s11309_s6 + $0xfd4] ss:$8 sps:$4 sm:$0xff]   ;;  %v10103_v39 = vld [vmem:[%s11309_s6 + $0xed0] ss:$8 sps:$4 sm:$0xff]  }
 0x2db   : > { %8237 = vmatprep.subr.bf16.mxu1 %v10041_v40  ;;  %v10106_v40 = vld [vmem:[%s11309_s6 + $0xfd0] ss:$8 sps:$4 sm:$0xff]  }
 0x2dd   : > { %8197 = vmatpush2.bf16.msra.mxu0 %v10036_v3  ;;  %v10114_v3 = vld [vmem:[%s11309_s6 + $0xfc4] ss:$8 sps:$4 sm:$0xff]  }
 0x2de   : > { %8238 = vmatpush2.bf16.msra.mxu1 %v10039_v17  ;;  %8248 = vmatprep.subr.bf16.mxu0 %v10045_v44  ;;  %v10109_v17 = vld [vmem:[%s11309_s6 + $0xec0] ss:$8 sps:$4 sm:$0xff]  }
 0x2df   : > { %8289 = vmatprep.subr.bf16.mxu1 %v10048_v47  ;;  %v10112_v44 = vld [vmem:[%s11309_s6 + $0xfc0] ss:$8 sps:$4 sm:$0xff]   ;;  %v10117_v47 = vld [vmem:[%s11309_s6 + $0xeb4] ss:$8 sps:$4 sm:$0xff]  }
 0x2e0   : > { %v6311_v49 = vpop.f32.mrf.mxu0  ;;  %8199 = vmatmul.mubr.bf16.vlgmr.msra.gmra.mxu0 %v11790_v21 }
 0x2e1   : > { %v6352_v54 = vpop.f32.mrf.mxu1  ;;  %8240 = vmatmul.mubr.bf16.vlgmr.msra.gmra.mxu1 %v11793_v22  ;;  %v6312_v56 = vadd.f32 %v6311_v49, %v11810_v41  ;;  %8249 = vmatpush1.bf16.msra.mxu0 %v10043_v18  ;;  %v10120_v18 = vld [vmem:[%s11309_s6 + $0xfb4] ss:$8 sps:$4 sm:$0xff]   ;;  %v10124_v49 = vld [vmem:[%s11309_s6 + $0xfa0] ss:$8 sps:$4 sm:$0xff]  }
 0x2e2   : > { %8290 = vmatpush1.bf16.msra.mxu1 %v10046_v48  ;;  %v6313_v59 = vpop.f32.mrf.mxu0  ;;  %8250 = vmatprep.subr.bf16.mxu0 %v10051_v50  ;;  %v10115_v48 = vld [vmem:[%s11309_s6 + $0xeb0] ss:$8 sps:$4 sm:$0xff]  }
 0x2e3   : > { %v6354_v60 = vpop.f32.mrf.mxu1  ;;  %8291 = vmatprep.subr.bf16.mxu1 %v10054_v51  ;;  %v11893_v62 = vadd.f32 %v6352_v54, %v6312_v56  ;;  %v6314_v21 = vadd.f32 %v6313_v59, %v11813_v42  ;;  %8280 = vmatprep.mubr.bf16.mxu0 %v6704_v52  ;;  %v10063_v42 = vld [vmem:[%s11309_s6 + $0xe44] ss:$8 sps:$4 sm:$0xff]   ;;  %v10118_v50 = vld [vmem:[%s11309_s6 + $0xfb0] ss:$8 sps:$4 sm:$0xff]   ;;  %v10129_v54 = vld [vmem:[%s11309_s6 + $0xe94] ss:$8 sps:$4 sm:$0xff]  }
 0x2e4   : > { %8321 = vmatprep.mubr.bf16.mxu1 %v6705_v53  ;;  %v6315_v22 = vpop.f32.mrf.mxu0  ;;  %v10123_v51 = vld [vmem:[%s11309_s6 + $0xea4] ss:$8 sps:$4 sm:$0xff]   ;;  %v10121_v53 = vld [vmem:[%s11309_s6 + $0xea0] ss:$8 sps:$4 sm:$0xff]   ;;  %v10132_v56 = vld [vmem:[%s11309_s6 + $0xf94] ss:$8 sps:$4 sm:$0xff]  }
 0x2e5   : > { %v6356_v41 = vpop.f32.mrf.mxu1  ;;  %v11896_v63 = vadd.f32 %v6354_v60, %v6314_v21  ;;  %8251 = vmatpush1.bf16.msra.mxu0 %v10049_v57  ;;  %v10126_v52 = vld [vmem:[%s11309_s6 + $0xfa4] ss:$8 sps:$4 sm:$0xff]   ;;  %v10127_v57 = vld [vmem:[%s11309_s6 + $0xe90] ss:$8 sps:$4 sm:$0xff]  }
 0x2e6   : > { %8292 = vmatpush1.bf16.msra.mxu1 %v10052_v58  ;;  %v6316_v4 = vpop.f32.mrf.mxu0  ;;  %8252 = vmatprep.subr.bf16.mxu0 %v10057_v34  ;;  %v10130_v58 = vld [vmem:[%s11309_s6 + $0xf90] ss:$8 sps:$4 sm:$0xff]   ;;  %v10135_v59 = vld [vmem:[%s11309_s6 + $0xe84] ss:$8 sps:$4 sm:$0xff]   ;;  %v10133_v34 = vld [vmem:[%s11309_s6 + $0xe80] ss:$8 sps:$4 sm:$0xff]  }
 0x2e7   : > { %v6357_v5 = vpop.f32.mrf.mxu1  ;;  %8293 = vmatprep.subr.bf16.mxu1 %v10060_v35  ;;  %v10138_v60 = vld [vmem:[%s11309_s6 + $0xf84] ss:$8 sps:$4 sm:$0xff]   ;;  %v10136_v35 = vld [vmem:[%s11309_s6 + $0xf80] ss:$8 sps:$4 sm:$0xff]  }
 0x2e9   : > { %8253 = vmatpush1.bf16.msra.mxu0 %v10055_v0 }
 0x2ea   : > { %8294 = vmatpush1.bf16.msra.mxu1 %v10058_v1  ;;  %8254 = vmatprep.subr.bf16.mxu0 %v10063_v42 }
 0x2eb   : > { %8295 = vmatprep.subr.bf16.mxu1 %v10066_v6 }
 0x2ed   : > { %8255 = vmatpush1.bf16.msra.mxu0 %v10061_v7 }
 0x2ee   : > { %8296 = vmatpush1.bf16.msra.mxu1 %v10064_v8  ;;  %8256 = vmatprep.subr.bf16.mxu0 %v10069_v9 }
 0x2ef   : > { %8297 = vmatprep.subr.bf16.mxu1 %v10072_v10 }
 0x2f1   : > { %8257 = vmatpush1.bf16.msra.mxu0 %v10067_v11 }
 0x2f2   : > { %8298 = vmatpush1.bf16.msra.mxu1 %v10070_v12  ;;  %8258 = vmatprep.subr.bf16.mxu0 %v10075_v13 }
 0x2f3   : > { %8299 = vmatprep.subr.bf16.mxu1 %v10078_v14 }
 0x2f5   : > { %8259 = vmatpush1.bf16.msra.mxu0 %v10073_v15 }
 0x2f6   : > { %8300 = vmatpush1.bf16.msra.mxu1 %v10076_v16  ;;  %8260 = vmatprep.subr.bf16.mxu0 %v10081_v45 }
 0x2f7   : > { %8301 = vmatprep.subr.bf16.mxu1 %v10084_v46 }
 0x2f9   : > { %8261 = vmatpush1.bf16.msra.mxu0 %v10079_v55 }
 0x2fa   : > { %8302 = vmatpush1.bf16.msra.mxu1 %v10082_v19  ;;  %8262 = vmatprep.subr.bf16.mxu0 %v10087_v20 }
 0x2fb   : > { %8303 = vmatprep.subr.bf16.mxu1 %v10090_v61 }
 0x2fd   : > { %8263 = vmatpush1.bf16.msra.mxu0 %v10085_v23 }
 0x2fe   : > { %8304 = vmatpush1.bf16.msra.mxu1 %v10088_v24  ;;  %8264 = vmatprep.subr.bf16.mxu0 %v10093_v25 }
 0x2ff   : > { %8305 = vmatprep.subr.bf16.mxu1 %v10096_v26 }
 0x301   : > { %8265 = vmatpush2.bf16.msra.mxu0 %v10091_v28 }
 0x302   : > { %8306 = vmatpush2.bf16.msra.mxu1 %v10094_v29  ;;  %8266 = vmatprep.subr.bf16.mxu0 %v10099_v30  ;;  %v6362_v29 = vsub.s32 0, %v11354_v43  ;;  %v4402_v30 = vld [vmem:[%s4390_s22] sm:$0x3] }
 0x303   : > { %8307 = vmatprep.subr.bf16.mxu1 %v10102_v32  ;;  %v6366_v32 = vsub.s32 1, %v11354_v43 }
 0x305   : > { %8267 = vmatpush2.bf16.msra.mxu0 %v10097_v33 }
 0x306   : > { %8308 = vmatpush2.bf16.msra.mxu1 %v10100_v36  ;;  %8268 = vmatprep.subr.bf16.mxu0 %v10105_v37  ;;  %v6363_v36 = vrot.slane %v4402_v30, %v6362_v29 }
 0x307   : > { %8309 = vmatprep.subr.bf16.mxu1 %v10108_v38 }
 0x309   : > { %8269 = vmatpush2.bf16.msra.mxu0 %v10103_v39  ;;  %v6367_v39 = vrot.slane %v4402_v30, %v6366_v32 }
 0x30a   : > { %8310 = vmatpush2.bf16.msra.mxu1 %v10106_v40  ;;  %8270 = vmatprep.subr.bf16.mxu0 %v10111_v2 }
 0x30b   : > { %8311 = vmatprep.subr.bf16.mxu1 %v10114_v3 }
 0x30d   : > { %8271 = vmatpush2.bf16.msra.mxu0 %v10109_v17 }
 0x30e   : > { %8312 = vmatpush2.bf16.msra.mxu1 %v10112_v44  ;;  %8272 = vmatprep.subr.bf16.mxu0 %v10117_v47  ;;  %v6370_v44 = vadd.f32 %v6363_v36, %v11893_v62 }
 0x30f   : > { %8313 = vmatprep.subr.bf16.mxu1 %v10120_v18 }
 0x311   : > { %8273 = vmatpush2.bf16.msra.mxu0 %v10115_v48 }
 0x312   : > { %8314 = vmatpush2.bf16.msra.mxu1 %v10118_v50  ;;  %8274 = vmatprep.subr.bf16.mxu0 %v10123_v51  ;;  %v6371_v51 = vadd.f32 %v6367_v39, %v11896_v63 }
 0x313   : > { %8315 = vmatprep.subr.bf16.mxu1 %v10126_v52 }
 0x315   : > { %8275 = vmatpush2.bf16.msra.mxu0 %v10121_v53 }
 0x316   : > { %8316 = vmatpush2.bf16.msra.mxu1 %v10124_v49  ;;  %8276 = vmatprep.subr.bf16.mxu0 %v10129_v54 }
 0x317   : > { %8317 = vmatprep.subr.bf16.mxu1 %v10132_v56 }
 0x319   : > { %8277 = vmatpush2.bf16.msra.mxu0 %v10127_v57 }
 0x31a   : > { %8318 = vmatpush2.bf16.msra.mxu1 %v10130_v58  ;;  %8278 = vmatprep.subr.bf16.mxu0 %v10135_v59 }
 0x31b   : > { %8319 = vmatprep.subr.bf16.mxu1 %v10138_v60 }
 0x31d   : > { %8279 = vmatpush2.bf16.msra.mxu0 %v10133_v34 }
 0x31e   : > { %8320 = vmatpush2.bf16.msra.mxu1 %v10136_v35 }
 0x320   : > { %v8036_v21 = vpop.f32.mrf.mxu0  ;;  %8281 = vmatmul.mubr.bf16.vlgmr.msra.gmra.mxu0 %v11873_v27 }
 0x321   : > { %v8077_v22 = vpop.f32.mrf.mxu1  ;;  %8322 = vmatmul.mubr.bf16.vlgmr.msra.gmra.mxu1 %v11876_v31 }
 0x322   : > { %v8078_v41 = vadd.f32 %v8077_v22, %v8036_v21  ;;  %v8038_v0 = vpop.f32.mrf.mxu0 }
 0x323   : > { %v8079_v1 = vpop.f32.mrf.mxu1 }
 0x324   : > { %v8080_v4 = vadd.f32 %v8079_v1, %v8038_v0  ;;  %v8040_v5 = vpop.f32.mrf.mxu0 }
 0x325   : > { %v8081_v42 = vpop.f32.mrf.mxu1 }
 0x326   : > { %v8041_v6 = vpop.f32.mrf.mxu0 }
 0x327   : > { %v8082_v7 = vpop.f32.mrf.mxu1 }
 0x360   : > { %v8118_v8 = vpop.f32.mrf.mxu0 }
 0x361   : > { %v8159_v9 = vpop.f32.mrf.mxu1  ;;  %v8119_v10 = vadd.f32 %v8118_v8, %v8078_v41 }
 0x362   : > { %v8120_v11 = vpop.f32.mrf.mxu0 }
 0x363   : > { %v8161_v12 = vpop.f32.mrf.mxu1  ;;  %v8160_v13 = vadd.f32 %v8159_v9, %v8119_v10  ;;  %v8121_v14 = vadd.f32 %v8120_v11, %v8080_v4 }
 0x364   : > { %v8122_v15 = vpop.f32.mrf.mxu0 }
 0x365   : > { %v8163_v27 = vpop.f32.mrf.mxu1  ;;  %v8162_v16 = vadd.f32 %v8161_v12, %v8121_v14 }
 0x366   : > { %v8123_v31 = vpop.f32.mrf.mxu0 }
 0x367   : > { %v8164_v45 = vpop.f32.mrf.mxu1 }
 0x3a0   : > { %v8200_v46 = vpop.f32.mrf.mxu0 }
 0x3a1   : > { %v8241_v55 = vpop.f32.mrf.mxu1  ;;  %v8201_v19 = vadd.f32 %v8200_v46, %v8160_v13 }
 0x3a2   : > { %v8202_v20 = vpop.f32.mrf.mxu0 }
 0x3a3   : > { %v8243_v61 = vpop.f32.mrf.mxu1  ;;  %v8242_v23 = vadd.f32 %v8241_v55, %v8201_v19  ;;  %v8203_v33 = vadd.f32 %v8202_v20, %v8162_v16 }
 0x3a4   : > { %v8204_v24 = vpop.f32.mrf.mxu0 }
 0x3a5   : > { %v8245_v25 = vpop.f32.mrf.mxu1  ;;  %v8244_v40 = vadd.f32 %v8243_v61, %v8203_v33 }
 0x3a6   : > { %v8205_v26 = vpop.f32.mrf.mxu0 }
 0x3a7   : > { %v8246_v28 = vpop.f32.mrf.mxu1 }
 0x3e0   : > { %v8282_v37 = vpop.f32.mrf.mxu0 }
 0x3e1   : > { %v8323_v38 = vpop.f32.mrf.mxu1  ;;  %v8283_v2 = vadd.f32 %v8282_v37, %v8242_v23 }
 0x3e2   : > { %v8284_v3 = vpop.f32.mrf.mxu0 }
 0x3e3   : > { %v8325_v17 = vpop.f32.mrf.mxu1  ;;  %v8324_v47 = vadd.f32 %v8323_v38, %v8283_v2  ;;  %v8285_v18 = vadd.f32 %v8284_v3, %v8244_v40 }
 0x3e4   : > { %v8286_v48 = vpop.f32.mrf.mxu0 }
 0x3e5   : > { %v8327_v50 = vpop.f32.mrf.mxu1  ;;  %v8330_v52 = vadd.f32 %v8324_v47, %v6370_v44  ;;  %v8326_v43 = vadd.f32 %v8325_v17, %v8285_v18 }
 0x3e6   : > { %v8287_v53 = vpop.f32.mrf.mxu0 }
 0x3e7   : > { %v8328_v49 = vpop.f32.mrf.mxu1  ;;  %v8333_v54 = vsel %vm8332_vm0, %v8330_v52, 0.0  ;;  %v8331_v56 = vadd.f32 %v8326_v43, %v6371_v51 }
 0x3e8   : > { %v8334_v57 = vrot.slane %v8333_v54, 4 }
 0x3e9   : > { %v8340_v58 = vsel %vm8332_vm0, %v8331_v56, 0.0 }
 0x3ea   : > { %v8335_v59 = vadd.f32 %v8334_v57, %v8333_v54  ;;  %v8341_v60 = vrot.slane %v8340_v58, 4 }
 0x3ec   : > { %v8336_v62 = vrot.slane %v8335_v59, 2  ;;  %v8342_v34 = vadd.f32 %v8341_v60, %v8340_v58 }
 0x3ee   : > { %v8337_v35 = vadd.f32 %v8336_v62, %v8335_v59  ;;  %v8343_v21 = vrot.slane %v8342_v34, 2 }
 0x3f0   : > { %v8338_v22 = vrot.slane %v8337_v35, 1  ;;  %v8344_v41 = vadd.f32 %v8343_v21, %v8342_v34 }
 0x3f2   : > { %v8339_v0 = vadd.f32 %v8338_v22, %v8337_v35  ;;  %v8345_v63 = vrot.slane %v8344_v41, 1 }
 0x3f4   : > { %v8348_v1 = vmul.f32 0.25, %v8339_v0  ;;  %v8346_v4 = vadd.f32 %v8345_v63, %v8344_v41 }
 0x3f6   : > { %v8350_v5 = vsub.f32 %v8330_v52, %v8348_v1  ;;  %v8349_v42 = vmul.f32 0.25, %v8346_v4 }
 0x3f8   : > { %v8352_v6 = vmul.f32 %v8350_v5, %v8350_v5  ;;  %v8351_v7 = vsub.f32 %v8331_v56, %v8349_v42 }
 0x3fa   : > { %v8354_v8 = vsel %vm8332_vm0, %v8352_v6, 0.0  ;;  %v8353_v9 = vmul.f32 %v8351_v7, %v8351_v7 }
 0x3fb   : > { %v8355_v10 = vrot.slane %v8354_v8, 4 }
 0x3fc   : > { %v8361_v11 = vsel %vm8332_vm0, %v8353_v9, 0.0 }
 0x3fd   : > { %v8356_v12 = vadd.f32 %v8355_v10, %v8354_v8  ;;  %v8362_v13 = vrot.slane %v8361_v11, 4 }
 0x3ff   : > { %v8357_v14 = vrot.slane %v8356_v12, 2  ;;  %v8363_v15 = vadd.f32 %v8362_v13, %v8361_v11 }
 0x401   : > { %v8358_v27 = vadd.f32 %v8357_v14, %v8356_v12  ;;  %v8364_v16 = vrot.slane %v8363_v15, 2 }
 0x403   : > { %v8359_v31 = vrot.slane %v8358_v27, 1  ;;  %v8365_v45 = vadd.f32 %v8364_v16, %v8363_v15 }
 0x405   : > { %v8360_v46 = vadd.f32 %v8359_v31, %v8358_v27  ;;  %v8366_v55 = vrot.slane %v8365_v45, 1 }
 0x407   : > { %v8368_v19 = vmul.f32 0.25, %v8360_v46  ;;  %v8367_v20 = vadd.f32 %v8366_v55, %v8365_v45 }
 0x409   : > { %v8370_v61 = vadd.f32 1e-05, %v8368_v19  ;;  %v8369_v23 = vmul.f32 0.25, %v8367_v20 }
 0x40b   : > { %10140 = vrsqrt.f32 %v8370_v61  ;;  %v8371_v24 = vadd.f32 1e-05, %v8369_v23 }
 0x40d   : > { %10142 = vrsqrt.f32 %v8371_v24 }
 0x418   : > { %v10141_v25 = vpop.eup %10140 }
 0x419   : > { %v8374_v26 = vmul.f32 %v10141_v25, %v8350_v5 }
 0x41a   : > { %v10143_v28 = vpop.eup %10142 }
 0x41b   : > { %v8376_v29 = vmul.f32 0.2, %v8374_v26  ;;  %v8375_v30 = vmul.f32 %v10143_v28, %v8351_v7 }
 0x41d   : > { %v8377_v32 = vmul.f32 0.2, %v8375_v30  ;;  %v8378_v33 = vmax.f32 %v8374_v26, %v8376_v29 }
 0x41f   : > { %v8379_v36 = vmax.f32 %v8375_v30, %v8377_v32 }
 0x421   : > { %v9301_v37 = vpack.c.bf16 %v8379_v36, %v8378_v33 }
 0x423   : > { %9302 = vst.sshfl [vmem:[%s4400_s28] sm:$0x33 pattern:$0x76325410] %v9301_v37 }
 0x424 PF: > { %s13_s18 = sadd.s32 1, %s10198_s18   ;;  %s11999_s12 = smov %s10178_s13 }
 0x425   : > { %p10_p12 = scmp.ge.s32.totalorder %s13_s18, 6   ;;  %s12000_s13 = smov %s10270_s23 }
 0x426   : > { %s12001_s14 = smov %s10190_s16  ;;  %s12002_s15 = smov %s10194_s17 }
 0x427   : > { %s12003_s16 = smov %s12006_s19  ;;  %s12004_s17 = smov %s12010_s20 }
 0x428   :  { %12 = sbr.rel (!%p10_p12) target bundleno = 4 (0x4), region = 133 }

// kernel: discriminator_forward.9
= control target key start
LH: loop header
LB: loop body
LE: loop exit
PB: predicated region body
PF: predicated region fallthrough
CT: control target
= control target key end

     0   :  { %s7951_s12 = smov 0   ;;  %s7953_s13 = smov 0   ;;  %s9607_s0 = inlined_call_operand.vmem [shape: bf16[2,4,8192], index: 0, kind: input, shape index: {}]   ;;  %s9608_s1 = inlined_call_operand.vmem [shape: bf16[8192,128], index: 1, kind: input, shape index: {}]   ;;  %s9609_s2 = inlined_call_operand.vmem [shape: f32[1,128], index: 2, kind: input, shape index: {}]   ;;  %s9610_s3 = inlined_call_operand.vmem [shape: f32[2,4,128], index: 3, kind: output, shape index: {}]  }
   0x1   :  { %s7955_s14 = smov 0  }
   0x2 LB: > { %s32_s15 = sadd.s32 1, %s7924_s13  ;;  %p6129_p0 = scmp.ge.s32.totalorder %s7928_s14, 1  ;;  %s7928_s14 = sphi %s7955_s14, %s13_s14   ;;  %s7924_s13 = sphi %s7953_s13, %s9612_s13   ;;  %s7920_s12 = sphi %s7951_s12, %s9611_s12  }
   0x3   : > { %p34_p1 = scmp.ge.s32.totalorder %s32_s15, 2  ;;  %p183_p2 = scmp.lt.s32.totalorder %s7928_s14, 3 }
   0x5   : > { %s9614_s15 = smov (%p34_p1, %s32_s15), 0  ;;  %p184_p3 = pnand %p6129_p0, %p183_p2 }
   0x6   : > { %p223_p4 = scmp.lt.s32.totalorder (!%p184_p3), %s7920_s12, 1 }
   0x7   : > { %187 = sbr.rel (%p184_p3) target bundleno = 728 (0x2d8), region = 32 }
   0xc   : > { %v7378_v0 = vld [vmem:[%s9608_s1 + $0x78] sm:$0xff]   ;;  %v7382_v4 = vld [vmem:[%s9608_s1 + $0x70] sm:$0xff]   ;;  %v7386_v8 = vld [vmem:[%s9608_s1 + $0x68] sm:$0xff]   ;;  %s9616_s12 = smov (!%p223_p4, %s7920_s12), 1  ;;  %v1317_v28 = vlaneseq  ;;  %v7930_v36 = vmov 1983009808  }
   0xd   : > { %v7379_v1 = vld [vmem:[%s9608_s1 + $0xf8] sm:$0xff]   ;;  %6649 = vmatprep.subr.bf16.mxu0 %v7378_v0  ;;  %v7383_v5 = vld [vmem:[%s9608_s1 + $0xf0] sm:$0xff]   ;;  %v7387_v9 = vld [vmem:[%s9608_s1 + $0xe8] sm:$0xff]   ;;  %s6648_s24 = sshll.u32 %s9616_s12, 7  ;;  %v1315_v37 = vunpack.c.l.s4 %v7930_v36 }
   0xe   : > { %v7380_v2 = vld [vmem:[%s9608_s1 + $0x38] sm:$0xff]   ;;  %6671 = vmatprep.subr.bf16.mxu1 %v7379_v1  ;;  %v7384_v6 = vld [vmem:[%s9608_s1 + $0x30] sm:$0xff]   ;;  %v7388_v10 = vld [vmem:[%s9608_s1 + $0x28] sm:$0xff]   ;;  %s8069_s6 = scalar_lea.vmem %s9607_s0, %s6648_s24  ;;  %v1318_v33 = vshrl.u32 %v1317_v28, 7 }
   0xf   : > { %v7381_v3 = vld [vmem:[%s9608_s1 + $0xb8] sm:$0xff]   ;;  %6650 = vmatpush3.bf16.msra.mxu0 %v7380_v2  ;;  %v7385_v7 = vld [vmem:[%s9608_s1 + $0xb0] sm:$0xff]   ;;  %v7389_v11 = vld [vmem:[%s9608_s1 + $0xa8] sm:$0xff]   ;;  %v1316_v39 = vunpack.c.0.s8 %v1315_v37 }
  0x10   : > { %6672 = vmatpush3.bf16.msra.mxu1 %v7381_v3  ;;  %6651 = vmatprep.subr.bf16.mxu0 %v7382_v4  ;;  %v7390_v12 = vld [vmem:[%s9608_s1 + $0x60] sm:$0xff]   ;;  %v7394_v16 = vld [vmem:[%s9608_s1 + $0x58] sm:$0xff]   ;;  %v7398_v20 = vld [vmem:[%s9608_s1 + $0x50] sm:$0xff]  }
  0x11   : > { %6673 = vmatprep.subr.bf16.mxu1 %v7383_v5  ;;  %v7391_v13 = vld [vmem:[%s9608_s1 + $0xe0] sm:$0xff]   ;;  %v7395_v17 = vld [vmem:[%s9608_s1 + $0xd8] sm:$0xff]   ;;  %v7399_v21 = vld [vmem:[%s9608_s1 + $0xd0] sm:$0xff]   ;;  %v8084_v41 = vsub.s32 %v1316_v39, %v1318_v33 }
  0x12   : > { %v7392_v14 = vld [vmem:[%s9608_s1 + $0x20] sm:$0xff]   ;;  %v7396_v18 = vld [vmem:[%s9608_s1 + $0x18] sm:$0xff]   ;;  %v7400_v22 = vld [vmem:[%s9608_s1 + $0x10] sm:$0xff]  }
  0x13   : > { %6652 = vmatpush3.bf16.msra.mxu0 %v7384_v6  ;;  %v7393_v15 = vld [vmem:[%s9608_s1 + $0xa0] sm:$0xff]   ;;  %v7397_v19 = vld [vmem:[%s9608_s1 + $0x98] sm:$0xff]   ;;  %v7401_v23 = vld [vmem:[%s9608_s1 + $0x90] sm:$0xff]  }
  0x14   : > { %6674 = vmatpush3.bf16.msra.mxu1 %v7385_v7  ;;  %6653 = vmatprep.subr.bf16.mxu0 %v7386_v8  ;;  %v7402_v24 = vld [vmem:[%s9608_s1 + $0x48] sm:$0xff]   ;;  %v7406_v29 = vld [vmem:[%s9608_s1 + $0x40] sm:$0xff]   ;;  %v7411_v35 = vld [vmem:[%s9608_s1 + $0x178] sm:$0xff]  }
  0x15   : > { %6675 = vmatprep.subr.bf16.mxu1 %v7387_v9  ;;  %v7403_v25 = vld [vmem:[%s9608_s1 + $0xc8] sm:$0xff]   ;;  %v7407_v30 = vld [vmem:[%s9608_s1 + $0xc0] sm:$0xff]   ;;  %v7412_v38 = vld [vmem:[%s9608_s1 + $0x1f8] sm:$0xff]  }
  0x16   : > { %v7404_v26 = vld [vmem:[%s9608_s1 + $0x8] sm:$0xff]   ;;  %v7408_v31 = vld [vmem:[%s9608_s1] sm:$0xff]   ;;  %v7413_v44 = vld [vmem:[%s9608_s1 + $0x138] sm:$0xff]  }
  0x17   : > { %6654 = vmatpush3.bf16.msra.mxu0 %v7388_v10  ;;  %v7405_v27 = vld [vmem:[%s9608_s1 + $0x88] sm:$0xff]   ;;  %v7409_v32 = vld [vmem:[%s9608_s1 + $0x80] sm:$0xff]   ;;  %v7414_v45 = vld [vmem:[%s9608_s1 + $0x1b8] sm:$0xff]  }
  0x18   : > { %6676 = vmatpush3.bf16.msra.mxu1 %v7389_v11  ;;  %6655 = vmatprep.subr.bf16.mxu0 %v7390_v12  ;;  %v250_v34 = vld [vmem:[%s8069_s6] sm:$0xff]  ;;  %v7415_v48 = vld [vmem:[%s9608_s1 + $0x170] sm:$0xff]   ;;  %v7419_v52 = vld [vmem:[%s9608_s1 + $0x168] sm:$0xff]  }
  0x19   : > { %6677 = vmatprep.subr.bf16.mxu1 %v7391_v13  ;;  %v1313_v40 = vcombine.high %v250_v34, %v250_v34  ;;  %v1320_v42 = vrot.slane %v250_v34, %v8084_v41  ;;  %v7416_v49 = vld [vmem:[%s9608_s1 + $0x1f0] sm:$0xff]   ;;  %v7420_v53 = vld [vmem:[%s9608_s1 + $0x1e8] sm:$0xff]   ;;  %v7423_v56 = vld [vmem:[%s9608_s1 + $0x160] sm:$0xff]  }
  0x1a   : > { %v7417_v50 = vld [vmem:[%s9608_s1 + $0x130] sm:$0xff]   ;;  %v7421_v54 = vld [vmem:[%s9608_s1 + $0x128] sm:$0xff]   ;;  %v7424_v57 = vld [vmem:[%s9608_s1 + $0x1e0] sm:$0xff]  }
  0x1b   : > { %6656 = vmatpush3.bf16.msra.mxu0 %v7392_v14  ;;  %v1327_v43 = vrot.slane %v1313_v40, %v8084_v41  ;;  %v1328_v46 = vcombine.high %v1320_v42, %v1320_v42  ;;  %v7418_v51 = vld [vmem:[%s9608_s1 + $0x1b0] sm:$0xff]   ;;  %v7422_v55 = vld [vmem:[%s9608_s1 + $0x1a8] sm:$0xff]   ;;  %v7425_v58 = vld [vmem:[%s9608_s1 + $0x120] sm:$0xff]  }
  0x1c   : > { %6678 = vmatpush3.bf16.msra.mxu1 %v7393_v15  ;;  %6657 = vmatprep.subr.bf16.mxu0 %v7394_v16  ;;  %v7426_v59 = vld [vmem:[%s9608_s1 + $0x1a0] sm:$0xff]   ;;  %v7427_v60 = vld [vmem:[%s9608_s1 + $0x158] sm:$0xff]   ;;  %v7431_v0 = vld [vmem:[%s9608_s1 + $0x150] sm:$0xff]  }
  0x1d   : > { %6679 = vmatprep.subr.bf16.mxu1 %v7395_v17  ;;  %v1329_v47 = vcombine.high %v1327_v43, %v1327_v43  ;;  %4753 = vmatprep.mubr.bf16.mxu0 %v1328_v46  ;;  %v7428_v61 = vld [vmem:[%s9608_s1 + $0x1d8] sm:$0xff]   ;;  %v7432_v1 = vld [vmem:[%s9608_s1 + $0x1d0] sm:$0xff]   ;;  %v7435_v4 = vld [vmem:[%s9608_s1 + $0x148] sm:$0xff]  }
  0x1e   : > { %v7429_v62 = vld [vmem:[%s9608_s1 + $0x118] sm:$0xff]   ;;  %v7433_v2 = vld [vmem:[%s9608_s1 + $0x110] sm:$0xff]   ;;  %v7436_v5 = vld [vmem:[%s9608_s1 + $0x1c8] sm:$0xff]  }
  0x1f   : > { %6658 = vmatpush3.bf16.msra.mxu0 %v7396_v18  ;;  %4793 = vmatprep.mubr.bf16.mxu1 %v1329_v47  ;;  %v7430_v63 = vld [vmem:[%s9608_s1 + $0x198] sm:$0xff]   ;;  %v7434_v3 = vld [vmem:[%s9608_s1 + $0x190] sm:$0xff]   ;;  %v7437_v6 = vld [vmem:[%s9608_s1 + $0x108] sm:$0xff]  }
  0x20   : > { %6680 = vmatpush3.bf16.msra.mxu1 %v7397_v19  ;;  %6659 = vmatprep.subr.bf16.mxu0 %v7398_v20  ;;  %v7438_v7 = vld [vmem:[%s9608_s1 + $0x188] sm:$0xff]   ;;  %v7439_v9 = vld [vmem:[%s9608_s1 + $0x140] sm:$0xff]   ;;  %v7444_v18 = vld [vmem:[%s9608_s1 + $0x278] sm:$0xff]  }
  0x21   : > { %6681 = vmatprep.subr.bf16.mxu1 %v7399_v21  ;;  %v251_v8 = vld [vmem:[%s8069_s6 + $0x8] sm:$0xff]  ;;  %v7440_v12 = vld [vmem:[%s9608_s1 + $0x1c0] sm:$0xff]   ;;  %v7445_v19 = vld [vmem:[%s9608_s1 + $0x2f8] sm:$0xff]  }
  0x22   : > { %v1337_v10 = vrot.slane %v251_v8, %v8084_v41  ;;  %v1330_v11 = vcombine.high %v251_v8, %v251_v8  ;;  %v7441_v13 = vld [vmem:[%s9608_s1 + $0x100] sm:$0xff]   ;;  %v7446_v20 = vld [vmem:[%s9608_s1 + $0x238] sm:$0xff]   ;;  %v7454_v28 = vld [vmem:[%s9608_s1 + $0x228] sm:$0xff]  }
  0x23   : > { %6660 = vmatpush3.bf16.msra.mxu0 %v7400_v22  ;;  %v7442_v16 = vld [vmem:[%s9608_s1 + $0x180] sm:$0xff]   ;;  %v7447_v21 = vld [vmem:[%s9608_s1 + $0x2b8] sm:$0xff]   ;;  %v7448_v22 = vld [vmem:[%s9608_s1 + $0x270] sm:$0xff]  }
  0x24   : > { %6682 = vmatpush3.bf16.msra.mxu1 %v7401_v23  ;;  %6661 = vmatprep.subr.bf16.mxu0 %v7402_v24  ;;  %v1345_v14 = vcombine.high %v1337_v10, %v1337_v10  ;;  %v1344_v15 = vrot.slane %v1330_v11, %v8084_v41  ;;  %v7449_v23 = vld [vmem:[%s9608_s1 + $0x2f0] sm:$0xff]   ;;  %v7459_v33 = vld [vmem:[%s9608_s1 + $0x2a0] sm:$0xff]   ;;  %v7460_v34 = vld [vmem:[%s9608_s1 + $0x258] sm:$0xff]  }
  0x25   : > { %6683 = vmatprep.subr.bf16.mxu1 %v7403_v25  ;;  %v7450_v24 = vld [vmem:[%s9608_s1 + $0x230] sm:$0xff]   ;;  %v7462_v36 = vld [vmem:[%s9608_s1 + $0x218] sm:$0xff]   ;;  %v7471_v46 = vld [vmem:[%s9608_s1 + $0x288] sm:$0xff]  }
  0x26   : > { %v1346_v17 = vcombine.high %v1344_v15, %v1344_v15  ;;  %v7451_v25 = vld [vmem:[%s9608_s1 + $0x2b0] sm:$0xff]   ;;  %v7463_v37 = vld [vmem:[%s9608_s1 + $0x298] sm:$0xff]   ;;  %v7492_v8 = vld [vmem:[%s9608_s1 + $0x3a0] sm:$0xff]  }
  0x27   : > { %6662 = vmatpush3.bf16.msra.mxu0 %v7404_v26  ;;  %v7452_v26 = vld [vmem:[%s9608_s1 + $0x268] sm:$0xff]   ;;  %v7465_v39 = vld [vmem:[%s9608_s1 + $0x2d0] sm:$0xff]   ;;  %v7495_v11 = vld [vmem:[%s9608_s1 + $0x318] sm:$0xff]  }
  0x28   : > { %6684 = vmatpush3.bf16.msra.mxu1 %v7405_v27  ;;  %6663 = vmatprep.subr.bf16.mxu0 %v7406_v29  ;;  %v7453_v27 = vld [vmem:[%s9608_s1 + $0x2e8] sm:$0xff]   ;;  %v7466_v40 = vld [vmem:[%s9608_s1 + $0x210] sm:$0xff]  }
  0x29   : > { %6685 = vmatprep.subr.bf16.mxu1 %v7407_v30  ;;  %v7455_v29 = vld [vmem:[%s9608_s1 + $0x2a8] sm:$0xff]   ;;  %v7456_v30 = vld [vmem:[%s9608_s1 + $0x260] sm:$0xff]   ;;  %v252_v47 = vld [vmem:[%s8069_s6 + $0x10] sm:$0xff] }
  0x2b   : > { %6664 = vmatpush3.bf16.msra.mxu0 %v7408_v31  ;;  %v7457_v31 = vld [vmem:[%s9608_s1 + $0x2e0] sm:$0xff]  }
  0x2c   : > { %6686 = vmatpush3.bf16.msra.mxu1 %v7409_v32  ;;  %6693 = vmatprep.subr.bf16.mxu0 %v7411_v35  ;;  %v7458_v32 = vld [vmem:[%s9608_s1 + $0x220] sm:$0xff]   ;;  %v7461_v35 = vld [vmem:[%s9608_s1 + $0x2d8] sm:$0xff]  }
  0x2d   : > { %6715 = vmatprep.subr.bf16.mxu1 %v7412_v38  ;;  %v7464_v38 = vld [vmem:[%s9608_s1 + $0x250] sm:$0xff]  }
  0x2e   : > { %4754 = vmatmul.mubr.bf16.vlgmr.msra.gmra.mxu0 %v1320_v42  ;;  %v7467_v42 = vld [vmem:[%s9608_s1 + $0x290] sm:$0xff]  }
  0x2f   : > { %4794 = vmatmul.mubr.bf16.vlgmr.msra.gmra.mxu1 %v1327_v43  ;;  %6694 = vmatpush3.bf16.msra.mxu0 %v7413_v44  ;;  %v7468_v43 = vld [vmem:[%s9608_s1 + $0x248] sm:$0xff]  }
  0x30   : > { %6716 = vmatpush3.bf16.msra.mxu1 %v7414_v45  ;;  %6695 = vmatprep.subr.bf16.mxu0 %v7415_v48  ;;  %v7469_v44 = vld [vmem:[%s9608_s1 + $0x2c8] sm:$0xff]   ;;  %v7472_v48 = vld [vmem:[%s9608_s1 + $0x240] sm:$0xff]  }
  0x31   : > { %6717 = vmatprep.subr.bf16.mxu1 %v7416_v49  ;;  %4833 = vmatprep.mubr.bf16.mxu0 %v1345_v14  ;;  %v7470_v45 = vld [vmem:[%s9608_s1 + $0x208] sm:$0xff]   ;;  %v1354_v49 = vrot.slane %v252_v47, %v8084_v41  ;;  %v7498_v14 = vld [vmem:[%s9608_s1 + $0x3d0] sm:$0xff]  }
  0x32   : > { %4873 = vmatprep.mubr.bf16.mxu1 %v1346_v17  ;;  %v7501_v17 = vld [vmem:[%s9608_s1 + $0x348] sm:$0xff]  }
  0x33   : > { %6696 = vmatpush3.bf16.msra.mxu0 %v7417_v50  ;;  %v1347_v50 = vcombine.high %v252_v47, %v252_v47  ;;  %v7525_v47 = vld [vmem:[%s9608_s1 + $0x4a0] sm:$0xff]  }
  0x34   : > { %6718 = vmatpush3.bf16.msra.mxu1 %v7418_v51  ;;  %6697 = vmatprep.subr.bf16.mxu0 %v7419_v52  ;;  %v7473_v51 = vld [vmem:[%s9608_s1 + $0x2c0] sm:$0xff]  }
  0x35   : > { %6719 = vmatprep.subr.bf16.mxu1 %v7420_v53  ;;  %v7474_v52 = vld [vmem:[%s9608_s1 + $0x200] sm:$0xff]   ;;  %v1362_v53 = vcombine.high %v1354_v49, %v1354_v49 }
  0x37   : > { %6698 = vmatpush3.bf16.msra.mxu0 %v7421_v54  ;;  %v1361_v54 = vrot.slane %v1347_v50, %v8084_v41  ;;  %v7528_v50 = vld [vmem:[%s9608_s1 + $0x418] sm:$0xff]  }
  0x38   : > { %6720 = vmatpush3.bf16.msra.mxu1 %v7422_v55  ;;  %6699 = vmatprep.subr.bf16.mxu0 %v7423_v56  ;;  %v7475_v55 = vld [vmem:[%s9608_s1 + $0x280] sm:$0xff]  }
  0x39   : > { %6721 = vmatprep.subr.bf16.mxu1 %v7424_v57  ;;  %v1363_v56 = vcombine.high %v1361_v54, %v1361_v54  ;;  %v7477_v57 = vld [vmem:[%s9608_s1 + $0x378] sm:$0xff]  }
  0x3b   : > { %6700 = vmatpush3.bf16.msra.mxu0 %v7425_v58  ;;  %v7478_v58 = vld [vmem:[%s9608_s1 + $0x3f8] sm:$0xff]  }
  0x3c   : > { %6722 = vmatpush3.bf16.msra.mxu1 %v7426_v59  ;;  %6701 = vmatprep.subr.bf16.mxu0 %v7427_v60  ;;  %v7479_v59 = vld [vmem:[%s9608_s1 + $0x338] sm:$0xff]  }
  0x3d   : > { %6723 = vmatprep.subr.bf16.mxu1 %v7428_v61  ;;  %v7480_v60 = vld [vmem:[%s9608_s1 + $0x3b8] sm:$0xff]   ;;  %v7481_v61 = vld [vmem:[%s9608_s1 + $0x370] sm:$0xff]  }
  0x3f   : > { %6702 = vmatpush3.bf16.msra.mxu0 %v7429_v62  ;;  %v7482_v62 = vld [vmem:[%s9608_s1 + $0x3f0] sm:$0xff]  }
  0x40   : > { %6724 = vmatpush3.bf16.msra.mxu1 %v7430_v63  ;;  %6703 = vmatprep.subr.bf16.mxu0 %v7431_v0  ;;  %v7483_v63 = vld [vmem:[%s9608_s1 + $0x330] sm:$0xff]  }
  0x41   : > { %6725 = vmatprep.subr.bf16.mxu1 %v7432_v1  ;;  %v7484_v0 = vld [vmem:[%s9608_s1 + $0x3b0] sm:$0xff]   ;;  %v7485_v1 = vld [vmem:[%s9608_s1 + $0x368] sm:$0xff]  }
  0x43   : > { %6704 = vmatpush3.bf16.msra.mxu0 %v7433_v2  ;;  %v7486_v2 = vld [vmem:[%s9608_s1 + $0x3e8] sm:$0xff]  }
  0x44   : > { %6726 = vmatpush3.bf16.msra.mxu1 %v7434_v3  ;;  %6705 = vmatprep.subr.bf16.mxu0 %v7435_v4  ;;  %v7487_v3 = vld [vmem:[%s9608_s1 + $0x328] sm:$0xff]  }
  0x45   : > { %6727 = vmatprep.subr.bf16.mxu1 %v7436_v5  ;;  %v7488_v4 = vld [vmem:[%s9608_s1 + $0x3a8] sm:$0xff]   ;;  %v7489_v5 = vld [vmem:[%s9608_s1 + $0x360] sm:$0xff]  }
  0x47   : > { %6706 = vmatpush3.bf16.msra.mxu0 %v7437_v6  ;;  %v7490_v6 = vld [vmem:[%s9608_s1 + $0x3e0] sm:$0xff]  }
  0x48   : > { %6728 = vmatpush3.bf16.msra.mxu1 %v7438_v7  ;;  %6707 = vmatprep.subr.bf16.mxu0 %v7439_v9  ;;  %v7491_v7 = vld [vmem:[%s9608_s1 + $0x320] sm:$0xff]   ;;  %v7493_v9 = vld [vmem:[%s9608_s1 + $0x358] sm:$0xff]  }
  0x49   : > { %6729 = vmatprep.subr.bf16.mxu1 %v7440_v12  ;;  %v7496_v12 = vld [vmem:[%s9608_s1 + $0x398] sm:$0xff]  }
  0x4b   : > { %6708 = vmatpush3.bf16.msra.mxu0 %v7441_v13  ;;  %v7497_v13 = vld [vmem:[%s9608_s1 + $0x350] sm:$0xff]  }
  0x4c   : > { %6730 = vmatpush3.bf16.msra.mxu1 %v7442_v16  ;;  %6737 = vmatprep.subr.bf16.mxu0 %v7444_v18  ;;  %v7500_v16 = vld [vmem:[%s9608_s1 + $0x390] sm:$0xff]   ;;  %v7502_v18 = vld [vmem:[%s9608_s1 + $0x3c8] sm:$0xff]  }
  0x4d   : > { %6759 = vmatprep.subr.bf16.mxu1 %v7445_v19  ;;  %v7503_v19 = vld [vmem:[%s9608_s1 + $0x308] sm:$0xff]  }
  0x4e   : > { %4834 = vmatmul.mubr.bf16.vlgmr.msra.gmra.mxu0 %v1337_v10  ;;  %v7494_v10 = vld [vmem:[%s9608_s1 + $0x3d8] sm:$0xff]  }
  0x4f   : > { %4874 = vmatmul.mubr.bf16.vlgmr.msra.gmra.mxu1 %v1344_v15  ;;  %6738 = vmatpush3.bf16.msra.mxu0 %v7446_v20  ;;  %v7499_v15 = vld [vmem:[%s9608_s1 + $0x310] sm:$0xff]   ;;  %v7504_v20 = vld [vmem:[%s9608_s1 + $0x388] sm:$0xff]  }
  0x50   : > { %6760 = vmatpush3.bf16.msra.mxu1 %v7447_v21  ;;  %6739 = vmatprep.subr.bf16.mxu0 %v7448_v22  ;;  %v7505_v21 = vld [vmem:[%s9608_s1 + $0x340] sm:$0xff]   ;;  %v253_v22 = vld [vmem:[%s8069_s6 + $0x18] sm:$0xff] }
  0x51   : > { %6761 = vmatprep.subr.bf16.mxu1 %v7449_v23  ;;  %4913 = vmatprep.mubr.bf16.mxu0 %v1362_v53  ;;  %v7506_v23 = vld [vmem:[%s9608_s1 + $0x3c0] sm:$0xff]   ;;  %v7531_v53 = vld [vmem:[%s9608_s1 + $0x4d0] sm:$0xff]  }
  0x52   : > { %4953 = vmatprep.mubr.bf16.mxu1 %v1363_v56  ;;  %v7534_v56 = vld [vmem:[%s9608_s1 + $0x448] sm:$0xff]  }
  0x53   : > { %6740 = vmatpush3.bf16.msra.mxu0 %v7450_v24  ;;  %v1371_v24 = vrot.slane %v253_v22, %v8084_v41 }
  0x54   : > { %6762 = vmatpush3.bf16.msra.mxu1 %v7451_v25  ;;  %6741 = vmatprep.subr.bf16.mxu0 %v7452_v26  ;;  %v1364_v25 = vcombine.high %v253_v22, %v253_v22  ;;  %v7507_v26 = vld [vmem:[%s9608_s1 + $0x300] sm:$0xff]   ;;  %v7559_v22 = vld [vmem:[%s9608_s1 + $0x558] sm:$0xff]  }
  0x55   : > { %6763 = vmatprep.subr.bf16.mxu1 %v7453_v27  ;;  %v7508_v27 = vld [vmem:[%s9608_s1 + $0x380] sm:$0xff]  }
  0x57   : > { %6742 = vmatpush3.bf16.msra.mxu0 %v7454_v28  ;;  %v1379_v28 = vcombine.high %v1371_v24, %v1371_v24 }
  0x58   : > { %6764 = vmatpush3.bf16.msra.mxu1 %v7455_v29  ;;  %6743 = vmatprep.subr.bf16.mxu0 %v7456_v30  ;;  %v1378_v29 = vrot.slane %v1364_v25, %v8084_v41  ;;  %v7510_v30 = vld [vmem:[%s9608_s1 + $0x478] sm:$0xff]  }
  0x59   : > { %6765 = vmatprep.subr.bf16.mxu1 %v7457_v31  ;;  %v7562_v25 = vld [vmem:[%s9608_s1 + $0x598] sm:$0xff]  }
  0x5a   : > { %v1380_v31 = vcombine.high %v1378_v29, %v1378_v29 }
  0x5b   : > { %6744 = vmatpush3.bf16.msra.mxu0 %v7458_v32  ;;  %v7511_v32 = vld [vmem:[%s9608_s1 + $0x4f8] sm:$0xff]  }
  0x5c   : > { %6766 = vmatpush3.bf16.msra.mxu1 %v7459_v33  ;;  %6745 = vmatprep.subr.bf16.mxu0 %v7460_v34  ;;  %v7512_v33 = vld [vmem:[%s9608_s1 + $0x438] sm:$0xff]  }
  0x5d   : > { %6767 = vmatprep.subr.bf16.mxu1 %v7461_v35  ;;  %v7513_v34 = vld [vmem:[%s9608_s1 + $0x4b8] sm:$0xff]   ;;  %v7514_v35 = vld [vmem:[%s9608_s1 + $0x470] sm:$0xff]  }
  0x5f   : > { %6746 = vmatpush3.bf16.msra.mxu0 %v7462_v36  ;;  %v7515_v36 = vld [vmem:[%s9608_s1 + $0x4f0] sm:$0xff]  }
  0x60   : > { %6768 = vmatpush3.bf16.msra.mxu1 %v7463_v37  ;;  %6747 = vmatprep.subr.bf16.mxu0 %v7464_v38  ;;  %v7516_v37 = vld [vmem:[%s9608_s1 + $0x430] sm:$0xff]  }
  0x61   : > { %6769 = vmatprep.subr.bf16.mxu1 %v7465_v39  ;;  %v7517_v38 = vld [vmem:[%s9608_s1 + $0x4b0] sm:$0xff]   ;;  %v7518_v39 = vld [vmem:[%s9608_s1 + $0x468] sm:$0xff]  }
  0x63   : > { %6748 = vmatpush3.bf16.msra.mxu0 %v7466_v40  ;;  %v7519_v40 = vld [vmem:[%s9608_s1 + $0x4e8] sm:$0xff]  }
  0x64   : > { %6770 = vmatpush3.bf16.msra.mxu1 %v7467_v42  ;;  %6749 = vmatprep.subr.bf16.mxu0 %v7468_v43  ;;  %v7520_v42 = vld [vmem:[%s9608_s1 + $0x428] sm:$0xff]  }
  0x65   : > { %6771 = vmatprep.subr.bf16.mxu1 %v7469_v44  ;;  %v7521_v43 = vld [vmem:[%s9608_s1 + $0x4a8] sm:$0xff]   ;;  %v7522_v44 = vld [vmem:[%s9608_s1 + $0x460] sm:$0xff]  }
  0x67   : > { %6750 = vmatpush3.bf16.msra.mxu0 %v7470_v45  ;;  %v7523_v45 = vld [vmem:[%s9608_s1 + $0x4e0] sm:$0xff]  }
  0x68   : > { %6772 = vmatpush3.bf16.msra.mxu1 %v7471_v46  ;;  %6751 = vmatprep.subr.bf16.mxu0 %v7472_v48  ;;  %v7524_v46 = vld [vmem:[%s9608_s1 + $0x420] sm:$0xff]   ;;  %v7526_v48 = vld [vmem:[%s9608_s1 + $0x458] sm:$0xff]  }
  0x69   : > { %6773 = vmatprep.subr.bf16.mxu1 %v7473_v51  ;;  %v7529_v51 = vld [vmem:[%s9608_s1 + $0x498] sm:$0xff]  }
  0x6b   : > { %6752 = vmatpush3.bf16.msra.mxu0 %v7474_v52  ;;  %v7530_v52 = vld [vmem:[%s9608_s1 + $0x450] sm:$0xff]  }
  0x6c   : > { %6774 = vmatpush3.bf16.msra.mxu1 %v7475_v55  ;;  %6781 = vmatprep.subr.bf16.mxu0 %v7477_v57  ;;  %v7533_v55 = vld [vmem:[%s9608_s1 + $0x490] sm:$0xff]   ;;  %v7535_v57 = vld [vmem:[%s9608_s1 + $0x4c8] sm:$0xff]  }
  0x6d   : > { %6803 = vmatprep.subr.bf16.mxu1 %v7478_v58  ;;  %v7536_v58 = vld [vmem:[%s9608_s1 + $0x408] sm:$0xff]  }
  0x6e   : > { %4914 = vmatmul.mubr.bf16.vlgmr.msra.gmra.mxu0 %v1354_v49  ;;  %v7527_v49 = vld [vmem:[%s9608_s1 + $0x4d8] sm:$0xff]  }
  0x6f   : > { %4954 = vmatmul.mubr.bf16.vlgmr.msra.gmra.mxu1 %v1361_v54  ;;  %6782 = vmatpush3.bf16.msra.mxu0 %v7479_v59  ;;  %v7532_v54 = vld [vmem:[%s9608_s1 + $0x410] sm:$0xff]   ;;  %v7537_v59 = vld [vmem:[%s9608_s1 + $0x488] sm:$0xff]  }
  0x70   : > { %6804 = vmatpush3.bf16.msra.mxu1 %v7480_v60  ;;  %6783 = vmatprep.subr.bf16.mxu0 %v7481_v61  ;;  %v7538_v60 = vld [vmem:[%s9608_s1 + $0x440] sm:$0xff]  }
  0x71   : > { %6805 = vmatprep.subr.bf16.mxu1 %v7482_v62  ;;  %4993 = vmatprep.mubr.bf16.mxu0 %v1379_v28  ;;  %v254_v61 = vld [vmem:[%s8069_s6 + $0x20] sm:$0xff]  ;;  %v7565_v28 = vld [vmem:[%s9608_s1 + $0x510] sm:$0xff]  }
  0x72   : > { %5033 = vmatprep.mubr.bf16.mxu1 %v1380_v31  ;;  %v7539_v62 = vld [vmem:[%s9608_s1 + $0x4c0] sm:$0xff]   ;;  %v7568_v31 = vld [vmem:[%s9608_s1 + $0x5c8] sm:$0xff]  }
  0x73   : > { %6784 = vmatpush3.bf16.msra.mxu0 %v7483_v63  ;;  %v1388_v63 = vrot.slane %v254_v61, %v8084_v41 }
  0x74   : > { %6806 = vmatpush3.bf16.msra.mxu1 %v7484_v0  ;;  %6785 = vmatprep.subr.bf16.mxu0 %v7485_v1  ;;  %v1381_v0 = vcombine.high %v254_v61, %v254_v61  ;;  %v7540_v1 = vld [vmem:[%s9608_s1 + $0x400] sm:$0xff]   ;;  %v7592_v61 = vld [vmem:[%s9608_s1 + $0x658] sm:$0xff]  }
  0x75   : > { %6807 = vmatprep.subr.bf16.mxu1 %v7486_v2  ;;  %v7541_v2 = vld [vmem:[%s9608_s1 + $0x480] sm:$0xff]  }
  0x77   : > { %6786 = vmatpush3.bf16.msra.mxu0 %v7487_v3  ;;  %v1396_v3 = vcombine.high %v1388_v63, %v1388_v63 }
  0x78   : > { %6808 = vmatpush3.bf16.msra.mxu1 %v7488_v4  ;;  %6787 = vmatprep.subr.bf16.mxu0 %v7489_v5  ;;  %v1395_v4 = vrot.slane %v1381_v0, %v8084_v41  ;;  %v7543_v5 = vld [vmem:[%s9608_s1 + $0x578] sm:$0xff]  }
  0x79   : > { %6809 = vmatprep.subr.bf16.mxu1 %v7490_v6  ;;  %v7595_v0 = vld [vmem:[%s9608_s1 + $0x698] sm:$0xff]  }
  0x7a   : > { %v1397_v6 = vcombine.high %v1395_v4, %v1395_v4 }
  0x7b   : > { %6788 = vmatpush3.bf16.msra.mxu0 %v7491_v7  ;;  %v7544_v7 = vld [vmem:[%s9608_s1 + $0x5f8] sm:$0xff]  }
  0x7c   : > { %6810 = vmatpush3.bf16.msra.mxu1 %v7492_v8  ;;  %6789 = vmatprep.subr.bf16.mxu0 %v7493_v9  ;;  %v7545_v8 = vld [vmem:[%s9608_s1 + $0x538] sm:$0xff]  }
  0x7d   : > { %6811 = vmatprep.subr.bf16.mxu1 %v7494_v10  ;;  %v7546_v9 = vld [vmem:[%s9608_s1 + $0x5b8] sm:$0xff]   ;;  %v7547_v10 = vld [vmem:[%s9608_s1 + $0x570] sm:$0xff]  }
  0x7f   : > { %6790 = vmatpush3.bf16.msra.mxu0 %v7495_v11  ;;  %v7548_v11 = vld [vmem:[%s9608_s1 + $0x5f0] sm:$0xff]  }
  0x80   : > { %6812 = vmatpush3.bf16.msra.mxu1 %v7496_v12  ;;  %6791 = vmatprep.subr.bf16.mxu0 %v7497_v13  ;;  %v7549_v12 = vld [vmem:[%s9608_s1 + $0x530] sm:$0xff]  }
  0x81   : > { %6813 = vmatprep.subr.bf16.mxu1 %v7498_v14  ;;  %v7550_v13 = vld [vmem:[%s9608_s1 + $0x5b0] sm:$0xff]   ;;  %v7551_v14 = vld [vmem:[%s9608_s1 + $0x568] sm:$0xff]  }
  0x83   : > { %6792 = vmatpush3.bf16.msra.mxu0 %v7499_v15  ;;  %v7552_v15 = vld [vmem:[%s9608_s1 + $0x5e8] sm:$0xff]  }
  0x84   : > { %6814 = vmatpush3.bf16.msra.mxu1 %v7500_v16  ;;  %6793 = vmatprep.subr.bf16.mxu0 %v7501_v17  ;;  %v7553_v16 = vld [vmem:[%s9608_s1 + $0x528] sm:$0xff]  }
  0x85   : > { %6815 = vmatprep.subr.bf16.mxu1 %v7502_v18  ;;  %v7554_v17 = vld [vmem:[%s9608_s1 + $0x5a8] sm:$0xff]   ;;  %v7555_v18 = vld [vmem:[%s9608_s1 + $0x560] sm:$0xff]  }
  0x87   : > { %6794 = vmatpush3.bf16.msra.mxu0 %v7503_v19  ;;  %v7556_v19 = vld [vmem:[%s9608_s1 + $0x5e0] sm:$0xff]  }
  0x88   : > { %6816 = vmatpush3.bf16.msra.mxu1 %v7504_v20  ;;  %6795 = vmatprep.subr.bf16.mxu0 %v7505_v21  ;;  %v7557_v20 = vld [vmem:[%s9608_s1 + $0x520] sm:$0xff]  }
  0x89   : > { %6817 = vmatprep.subr.bf16.mxu1 %v7506_v23  ;;  %v7558_v21 = vld [vmem:[%s9608_s1 + $0x5a0] sm:$0xff]   ;;  %v7560_v23 = vld [vmem:[%s9608_s1 + $0x5d8] sm:$0xff]  }
  0x8b   : > { %6796 = vmatpush3.bf16.msra.mxu0 %v7507_v26  ;;  %v7563_v26 = vld [vmem:[%s9608_s1 + $0x550] sm:$0xff]  }
  0x8c   : > { %6818 = vmatpush3.bf16.msra.mxu1 %v7508_v27  ;;  %6825 = vmatprep.subr.bf16.mxu0 %v7510_v30  ;;  %v7564_v27 = vld [vmem:[%s9608_s1 + $0x5d0] sm:$0xff]   ;;  %v7567_v30 = vld [vmem:[%s9608_s1 + $0x548] sm:$0xff]  }
  0x8d   : > { %6847 = vmatprep.subr.bf16.mxu1 %v7511_v32  ;;  %v7569_v32 = vld [vmem:[%s9608_s1 + $0x508] sm:$0xff]  }
  0x8e   : > { %4994 = vmatmul.mubr.bf16.vlgmr.msra.gmra.mxu0 %v1371_v24  ;;  %v7561_v24 = vld [vmem:[%s9608_s1 + $0x518] sm:$0xff]  }
  0x8f   : > { %5034 = vmatmul.mubr.bf16.vlgmr.msra.gmra.mxu1 %v1378_v29  ;;  %6826 = vmatpush3.bf16.msra.mxu0 %v7512_v33  ;;  %v7566_v29 = vld [vmem:[%s9608_s1 + $0x590] sm:$0xff]   ;;  %v7570_v33 = vld [vmem:[%s9608_s1 + $0x588] sm:$0xff]  }
  0x90   : > { %6848 = vmatpush3.bf16.msra.mxu1 %v7513_v34  ;;  %6827 = vmatprep.subr.bf16.mxu0 %v7514_v35  ;;  %v7571_v34 = vld [vmem:[%s9608_s1 + $0x540] sm:$0xff]   ;;  %v255_v35 = vld [vmem:[%s8069_s6 + $0x28] sm:$0xff] }
  0x91   : > { %6849 = vmatprep.subr.bf16.mxu1 %v7515_v36  ;;  %5073 = vmatprep.mubr.bf16.mxu0 %v1396_v3  ;;  %v7572_v36 = vld [vmem:[%s9608_s1 + $0x5c0] sm:$0xff]   ;;  %v7598_v3 = vld [vmem:[%s9608_s1 + $0x610] sm:$0xff]  }
  0x92   : > { %5113 = vmatprep.mubr.bf16.mxu1 %v1397_v6  ;;  %v7601_v6 = vld [vmem:[%s9608_s1 + $0x6c8] sm:$0xff]  }
  0x93   : > { %6828 = vmatpush3.bf16.msra.mxu0 %v7516_v37  ;;  %v1405_v37 = vrot.slane %v255_v35, %v8084_v41 }
  0x94   : > { %6850 = vmatpush3.bf16.msra.mxu1 %v7517_v38  ;;  %6829 = vmatprep.subr.bf16.mxu0 %v7518_v39  ;;  %v1398_v38 = vcombine.high %v255_v35, %v255_v35  ;;  %v7573_v39 = vld [vmem:[%s9608_s1 + $0x500] sm:$0xff]  }
  0x95   : > { %6851 = vmatprep.subr.bf16.mxu1 %v7519_v40  ;;  %v7574_v40 = vld [vmem:[%s9608_s1 + $0x580] sm:$0xff]  }
  0x97   : > { %6830 = vmatpush3.bf16.msra.mxu0 %v7520_v42  ;;  %v1413_v42 = vcombine.high %v1405_v37, %v1405_v37 }
  0x98   : > { %6852 = vmatpush3.bf16.msra.mxu1 %v7521_v43  ;;  %6831 = vmatprep.subr.bf16.mxu0 %v7522_v44  ;;  %v1412_v43 = vrot.slane %v1398_v38, %v8084_v41  ;;  %v7576_v44 = vld [vmem:[%s9608_s1 + $0x678] sm:$0xff]  }
  0x99   : > { %6853 = vmatprep.subr.bf16.mxu1 %v7523_v45 }
  0x9a   : > { %v1414_v45 = vcombine.high %v1412_v43, %v1412_v43 }
  0x9b   : > { %6832 = vmatpush3.bf16.msra.mxu0 %v7524_v46  ;;  %v7577_v46 = vld [vmem:[%s9608_s1 + $0x6f8] sm:$0xff]  }
  0x9c   : > { %6854 = vmatpush3.bf16.msra.mxu1 %v7525_v47  ;;  %6833 = vmatprep.subr.bf16.mxu0 %v7526_v48  ;;  %v7578_v47 = vld [vmem:[%s9608_s1 + $0x638] sm:$0xff]  }
  0x9d   : > { %6855 = vmatprep.subr.bf16.mxu1 %v7527_v49  ;;  %v7579_v48 = vld [vmem:[%s9608_s1 + $0x6b8] sm:$0xff]   ;;  %v7580_v49 = vld [vmem:[%s9608_s1 + $0x670] sm:$0xff]  }
  0x9f   : > { %6834 = vmatpush3.bf16.msra.mxu0 %v7528_v50  ;;  %v7581_v50 = vld [vmem:[%s9608_s1 + $0x6f0] sm:$0xff]  }
  0xa0   : > { %6856 = vmatpush3.bf16.msra.mxu1 %v7529_v51  ;;  %6835 = vmatprep.subr.bf16.mxu0 %v7530_v52  ;;  %v7582_v51 = vld [vmem:[%s9608_s1 + $0x630] sm:$0xff]  }
  0xa1   : > { %6857 = vmatprep.subr.bf16.mxu1 %v7531_v53  ;;  %v7583_v52 = vld [vmem:[%s9608_s1 + $0x6b0] sm:$0xff]   ;;  %v7584_v53 = vld [vmem:[%s9608_s1 + $0x668] sm:$0xff]  }
  0xa3   : > { %6836 = vmatpush3.bf16.msra.mxu0 %v7532_v54  ;;  %v7585_v54 = vld [vmem:[%s9608_s1 + $0x6e8] sm:$0xff]  }
  0xa4   : > { %6858 = vmatpush3.bf16.msra.mxu1 %v7533_v55  ;;  %6837 = vmatprep.subr.bf16.mxu0 %v7534_v56  ;;  %v7586_v55 = vld [vmem:[%s9608_s1 + $0x628] sm:$0xff]  }
  0xa5   : > { %6859 = vmatprep.subr.bf16.mxu1 %v7535_v57  ;;  %v7587_v56 = vld [vmem:[%s9608_s1 + $0x6a8] sm:$0xff]   ;;  %v7588_v57 = vld [vmem:[%s9608_s1 + $0x660] sm:$0xff]  }
  0xa7   : > { %6838 = vmatpush3.bf16.msra.mxu0 %v7536_v58  ;;  %v7589_v58 = vld [vmem:[%s9608_s1 + $0x6e0] sm:$0xff]  }
  0xa8   : > { %6860 = vmatpush3.bf16.msra.mxu1 %v7537_v59  ;;  %6839 = vmatprep.subr.bf16.mxu0 %v7538_v60  ;;  %v7590_v59 = vld [vmem:[%s9608_s1 + $0x620] sm:$0xff]  }
  0xa9   : > { %6861 = vmatprep.subr.bf16.mxu1 %v7539_v62  ;;  %v7591_v60 = vld [vmem:[%s9608_s1 + $0x6a0] sm:$0xff]   ;;  %v7593_v62 = vld [vmem:[%s9608_s1 + $0x6d8] sm:$0xff]  }
  0xab   : > { %6840 = vmatpush3.bf16.msra.mxu0 %v7540_v1  ;;  %v7596_v1 = vld [vmem:[%s9608_s1 + $0x650] sm:$0xff]  }
  0xac   : > { %6862 = vmatpush3.bf16.msra.mxu1 %v7541_v2  ;;  %6869 = vmatprep.subr.bf16.mxu0 %v7543_v5  ;;  %v7597_v2 = vld [vmem:[%s9608_s1 + $0x6d0] sm:$0xff]   ;;  %v7600_v5 = vld [vmem:[%s9608_s1 + $0x648] sm:$0xff]  }
  0xad   : > { %6891 = vmatprep.subr.bf16.mxu1 %v7544_v7  ;;  %v7602_v7 = vld [vmem:[%s9608_s1 + $0x608] sm:$0xff]  }
  0xae   : > { %5074 = vmatmul.mubr.bf16.vlgmr.msra.gmra.mxu0 %v1388_v63  ;;  %v7594_v63 = vld [vmem:[%s9608_s1 + $0x618] sm:$0xff]  }
  0xaf   : > { %5114 = vmatmul.mubr.bf16.vlgmr.msra.gmra.mxu1 %v1395_v4  ;;  %6870 = vmatpush3.bf16.msra.mxu0 %v7545_v8  ;;  %v7599_v4 = vld [vmem:[%s9608_s1 + $0x690] sm:$0xff]   ;;  %v7603_v8 = vld [vmem:[%s9608_s1 + $0x688] sm:$0xff]  }
  0xb0   : > { %6892 = vmatpush3.bf16.msra.mxu1 %v7546_v9  ;;  %6871 = vmatprep.subr.bf16.mxu0 %v7547_v10  ;;  %v7604_v9 = vld [vmem:[%s9608_s1 + $0x640] sm:$0xff]  }
  0xb1   : > { %6893 = vmatprep.subr.bf16.mxu1 %v7548_v11  ;;  %5153 = vmatprep.mubr.bf16.mxu0 %v1413_v42  ;;  %v7605_v10 = vld [vmem:[%s9608_s1 + $0x6c0] sm:$0xff]   ;;  %v256_v11 = vld [vmem:[%s8069_s6 + $0x30] sm:$0xff] }
  0xb2   : > { %5193 = vmatprep.mubr.bf16.mxu1 %v1414_v45  ;;  %v7621_v42 = vld [vmem:[%s9608_s1 + $0x760] sm:$0xff]  }
  0xb3   : > { %6872 = vmatpush3.bf16.msra.mxu0 %v7549_v12  ;;  %v1422_v12 = vrot.slane %v256_v11, %v8084_v41  ;;  %v7622_v45 = vld [vmem:[%s9608_s1 + $0x7e0] sm:$0xff]  }
  0xb4   : > { %6894 = vmatpush3.bf16.msra.mxu1 %v7550_v13  ;;  %6873 = vmatprep.subr.bf16.mxu0 %v7551_v14  ;;  %v1415_v13 = vcombine.high %v256_v11, %v256_v11  ;;  %v7606_v14 = vld [vmem:[%s9608_s1 + $0x600] sm:$0xff]   ;;  %v7646_v11 = vld [vmem:[%s9608_s1 + $0x870] sm:$0xff]  }
  0xb5   : > { %6895 = vmatprep.subr.bf16.mxu1 %v7552_v15  ;;  %v7607_v15 = vld [vmem:[%s9608_s1 + $0x680] sm:$0xff]  }
  0xb7   : > { %6874 = vmatpush3.bf16.msra.mxu0 %v7553_v16  ;;  %v1430_v16 = vcombine.high %v1422_v12, %v1422_v12 }
  0xb8   : > { %6896 = vmatpush3.bf16.msra.mxu1 %v7554_v17  ;;  %6875 = vmatprep.subr.bf16.mxu0 %v7555_v18  ;;  %v1429_v17 = vrot.slane %v1415_v13, %v8084_v41  ;;  %v7609_v18 = vld [vmem:[%s9608_s1 + $0x778] sm:$0xff]   ;;  %v7648_v13 = vld [vmem:[%s9608_s1 + $0x830] sm:$0xff]  }
  0xb9   : > { %6897 = vmatprep.subr.bf16.mxu1 %v7556_v19  ;;  %v7610_v19 = vld [vmem:[%s9608_s1 + $0x7f8] sm:$0xff]  }
  0xbb   : > { %6876 = vmatpush3.bf16.msra.mxu0 %v7557_v20  ;;  %v1431_v20 = vcombine.high %v1429_v17, %v1429_v17 }
  0xbc   : > { %6898 = vmatpush3.bf16.msra.mxu1 %v7558_v21  ;;  %6877 = vmatprep.subr.bf16.mxu0 %v7559_v22  ;;  %v7611_v21 = vld [vmem:[%s9608_s1 + $0x738] sm:$0xff]  }
  0xbd   : > { %6899 = vmatprep.subr.bf16.mxu1 %v7560_v23  ;;  %v7612_v22 = vld [vmem:[%s9608_s1 + $0x7b8] sm:$0xff]   ;;  %v7613_v23 = vld [vmem:[%s9608_s1 + $0x770] sm:$0xff]  }
  0xbf   : > { %6878 = vmatpush3.bf16.msra.mxu0 %v7561_v24  ;;  %v7614_v24 = vld [vmem:[%s9608_s1 + $0x7f0] sm:$0xff]  }
  0xc0   : > { %6900 = vmatpush3.bf16.msra.mxu1 %v7562_v25  ;;  %6879 = vmatprep.subr.bf16.mxu0 %v7563_v26  ;;  %v7615_v25 = vld [vmem:[%s9608_s1 + $0x730] sm:$0xff]  }
  0xc1   : > { %6901 = vmatprep.subr.bf16.mxu1 %v7564_v27 }
  0xc3   : > { %6880 = vmatpush3.bf16.msra.mxu0 %v7565_v28  ;;  %v6133_v28 = vld [vmem:[%s9609_s2] ss:$0 sm:$0xff] }
  0xc4   : > { %6902 = vmatpush3.bf16.msra.mxu1 %v7566_v29  ;;  %6881 = vmatprep.subr.bf16.mxu0 %v7567_v30  ;;  %v7616_v29 = vld [vmem:[%s9608_s1 + $0x7b0] sm:$0xff]   ;;  %v7617_v30 = vld [vmem:[%s9608_s1 + $0x768] sm:$0xff]  }
  0xc5   : > { %6903 = vmatprep.subr.bf16.mxu1 %v7568_v31 }
  0xc7   : > { %6882 = vmatpush3.bf16.msra.mxu0 %v7569_v32 }
  0xc8   : > { %6904 = vmatpush3.bf16.msra.mxu1 %v7570_v33  ;;  %6883 = vmatprep.subr.bf16.mxu0 %v7571_v34  ;;  %v7618_v33 = vld [vmem:[%s9608_s1 + $0x7e8] sm:$0xff]  }
  0xc9   : > { %6905 = vmatprep.subr.bf16.mxu1 %v7572_v36  ;;  %v7619_v36 = vld [vmem:[%s9608_s1 + $0x728] sm:$0xff]  }
  0xcb   : > { %6884 = vmatpush3.bf16.msra.mxu0 %v7573_v39  ;;  %v7620_v39 = vld [vmem:[%s9608_s1 + $0x7a8] sm:$0xff]  }
  0xcc   : > { %6906 = vmatpush3.bf16.msra.mxu1 %v7574_v40  ;;  %6913 = vmatprep.subr.bf16.mxu0 %v7576_v44 }
  0xcd   : > { %6935 = vmatprep.subr.bf16.mxu1 %v7577_v46 }
  0xce   : > { %5154 = vmatmul.mubr.bf16.vlgmr.msra.gmra.mxu0 %v1405_v37 }
  0xcf   : > { %5194 = vmatmul.mubr.bf16.vlgmr.msra.gmra.mxu1 %v1412_v43  ;;  %6914 = vmatpush3.bf16.msra.mxu0 %v7578_v47  ;;  %v7623_v47 = vld [vmem:[%s9608_s1 + $0x720] sm:$0xff]  }
  0xd0   : > { %6936 = vmatpush3.bf16.msra.mxu1 %v7579_v48  ;;  %6915 = vmatprep.subr.bf16.mxu0 %v7580_v49  ;;  %v7624_v48 = vld [vmem:[%s9608_s1 + $0x7a0] sm:$0xff]   ;;  %v7625_v49 = vld [vmem:[%s9608_s1 + $0x758] sm:$0xff]  }
  0xd1   : > { %6937 = vmatprep.subr.bf16.mxu1 %v7581_v50  ;;  %5233 = vmatprep.mubr.bf16.mxu0 %v1430_v16  ;;  %v7626_v50 = vld [vmem:[%s9608_s1 + $0x7d8] sm:$0xff]   ;;  %v7649_v16 = vld [vmem:[%s9608_s1 + $0x8b0] sm:$0xff]  }
  0xd2   : > { %5273 = vmatprep.mubr.bf16.mxu1 %v1431_v20  ;;  %v7651_v20 = vld [vmem:[%s9608_s1 + $0x8e8] sm:$0xff]  }
  0xd3   : > { %6916 = vmatpush3.bf16.msra.mxu0 %v7582_v51  ;;  %v7627_v51 = vld [vmem:[%s9608_s1 + $0x718] sm:$0xff]  }
  0xd4   : > { %6938 = vmatpush3.bf16.msra.mxu1 %v7583_v52  ;;  %6917 = vmatprep.subr.bf16.mxu0 %v7584_v53  ;;  %v7628_v52 = vld [vmem:[%s9608_s1 + $0x798] sm:$0xff]   ;;  %v7629_v53 = vld [vmem:[%s9608_s1 + $0x750] sm:$0xff]  }
  0xd5   : > { %6939 = vmatprep.subr.bf16.mxu1 %v7585_v54  ;;  %v7630_v54 = vld [vmem:[%s9608_s1 + $0x7d0] sm:$0xff]  }
  0xd7   : > { %6918 = vmatpush3.bf16.msra.mxu0 %v7586_v55  ;;  %v7631_v55 = vld [vmem:[%s9608_s1 + $0x710] sm:$0xff]  }
  0xd8   : > { %6940 = vmatpush3.bf16.msra.mxu1 %v7587_v56  ;;  %6919 = vmatprep.subr.bf16.mxu0 %v7588_v57  ;;  %v7632_v56 = vld [vmem:[%s9608_s1 + $0x790] sm:$0xff]   ;;  %v7633_v57 = vld [vmem:[%s9608_s1 + $0x748] sm:$0xff]  }
  0xd9   : > { %6941 = vmatprep.subr.bf16.mxu1 %v7589_v58  ;;  %v7634_v58 = vld [vmem:[%s9608_s1 + $0x7c8] sm:$0xff]  }
  0xdb   : > { %6920 = vmatpush3.bf16.msra.mxu0 %v7590_v59  ;;  %v7635_v59 = vld [vmem:[%s9608_s1 + $0x708] sm:$0xff]  }
  0xdc   : > { %6942 = vmatpush3.bf16.msra.mxu1 %v7591_v60  ;;  %6921 = vmatprep.subr.bf16.mxu0 %v7592_v61  ;;  %v7636_v60 = vld [vmem:[%s9608_s1 + $0x788] sm:$0xff]   ;;  %v7637_v61 = vld [vmem:[%s9608_s1 + $0x740] sm:$0xff]  }
  0xdd   : > { %6943 = vmatprep.subr.bf16.mxu1 %v7593_v62  ;;  %v7638_v62 = vld [vmem:[%s9608_s1 + $0x7c0] sm:$0xff]  }
  0xdf   : > { %6922 = vmatpush3.bf16.msra.mxu0 %v7594_v63  ;;  %v257_v63 = vld [vmem:[%s8069_s6 + $0x38] sm:$0xff] }
  0xe0   : > { %6944 = vmatpush3.bf16.msra.mxu1 %v7595_v0  ;;  %6923 = vmatprep.subr.bf16.mxu0 %v7596_v1  ;;  %v7639_v0 = vld [vmem:[%s9608_s1 + $0x700] sm:$0xff]   ;;  %v1439_v1 = vrot.slane %v257_v63, %v8084_v41 }
  0xe1   : > { %6945 = vmatprep.subr.bf16.mxu1 %v7597_v2  ;;  %v1432_v2 = vcombine.high %v257_v63, %v257_v63  ;;  %v7680_v63 = vld [vmem:[%s9608_s1 + $0x9f0] sm:$0xff]  }
  0xe3   : > { %6924 = vmatpush3.bf16.msra.mxu0 %v7598_v3  ;;  %v7640_v3 = vld [vmem:[%s9608_s1 + $0x780] sm:$0xff]  }
  0xe4   : > { %6946 = vmatpush3.bf16.msra.mxu1 %v7599_v4  ;;  %6925 = vmatprep.subr.bf16.mxu0 %v7600_v5  ;;  %v1447_v4 = vcombine.high %v1439_v1, %v1439_v1  ;;  %v1446_v5 = vrot.slane %v1432_v2, %v8084_v41 }
  0xe5   : > { %6947 = vmatprep.subr.bf16.mxu1 %v7601_v6  ;;  %v7642_v6 = vld [vmem:[%s9608_s1 + $0x878] sm:$0xff]  }
  0xe7   : > { %6926 = vmatpush3.bf16.msra.mxu0 %v7602_v7  ;;  %v7643_v7 = vld [vmem:[%s9608_s1 + $0x8f8] sm:$0xff]  }
  0xe8   : > { %6948 = vmatpush3.bf16.msra.mxu1 %v7603_v8  ;;  %6927 = vmatprep.subr.bf16.mxu0 %v7604_v9  ;;  %v1448_v8 = vcombine.high %v1446_v5, %v1446_v5  ;;  %v7644_v9 = vld [vmem:[%s9608_s1 + $0x838] sm:$0xff]  }
  0xe9   : > { %6949 = vmatprep.subr.bf16.mxu1 %v7605_v10  ;;  %v7645_v10 = vld [vmem:[%s9608_s1 + $0x8b8] sm:$0xff]  }
  0xeb   : > { %6928 = vmatpush3.bf16.msra.mxu0 %v7606_v14 }
  0xec   : > { %6950 = vmatpush3.bf16.msra.mxu1 %v7607_v15  ;;  %6957 = vmatprep.subr.bf16.mxu0 %v7609_v18 }
  0xed   : > { %6979 = vmatprep.subr.bf16.mxu1 %v7610_v19 }
  0xee   : > { %v6665_v26 = vpop.f32.mrf.mxu0  ;;  %5234 = vmatmul.mubr.bf16.vlgmr.msra.gmra.mxu0 %v1422_v12  ;;  %v7647_v12 = vld [vmem:[%s9608_s1 + $0x8f0] sm:$0xff]  }
  0xef   : > { %v6687_v27 = vpop.f32.mrf.mxu1  ;;  %5274 = vmatmul.mubr.bf16.vlgmr.msra.gmra.mxu1 %v1429_v17  ;;  %6958 = vmatpush3.bf16.msra.mxu0 %v7611_v21  ;;  %v7650_v17 = vld [vmem:[%s9608_s1 + $0x868] sm:$0xff]  }
  0xf0   : > { %6980 = vmatpush3.bf16.msra.mxu1 %v7612_v22  ;;  %v6666_v31 = vpop.f32.mrf.mxu0  ;;  %6959 = vmatprep.subr.bf16.mxu0 %v7613_v23  ;;  %v7652_v23 = vld [vmem:[%s9608_s1 + $0x828] sm:$0xff]  }
  0xf1   : > { %v6688_v32 = vpop.f32.mrf.mxu1  ;;  %6981 = vmatprep.subr.bf16.mxu1 %v7614_v24  ;;  %v6667_v34 = vadd.f32 %v6666_v31, %v6665_v26  ;;  %5313 = vmatprep.mubr.bf16.mxu0 %v1447_v4  ;;  %v7653_v26 = vld [vmem:[%s9608_s1 + $0x8a8] sm:$0xff]   ;;  %v7655_v31 = vld [vmem:[%s9608_s1 + $0x8e0] sm:$0xff]  }
  0xf2   : > { %v6689_v35 = vadd.f32 %v6688_v32, %v6687_v27  ;;  %v6668_v37 = vpop.f32.mrf.mxu0  ;;  %5353 = vmatprep.mubr.bf16.mxu1 %v1448_v8  ;;  %v7683_v4 = vld [vmem:[%s9608_s1 + $0x968] sm:$0xff]  }
  0xf3   : > { %v6690_v38 = vpop.f32.mrf.mxu1  ;;  %v4756_v40 = vadd.f32 %v6667_v34, %v6133_v28  ;;  %6960 = vmatpush3.bf16.msra.mxu0 %v7615_v25  ;;  %v7654_v28 = vld [vmem:[%s9608_s1 + $0x860] sm:$0xff]   ;;  %v7660_v37 = vld [vmem:[%s9608_s1 + $0x818] sm:$0xff]  }
  0xf4   : > { %6982 = vmatpush3.bf16.msra.mxu1 %v7616_v29  ;;  %v6669_v43 = vpop.f32.mrf.mxu0  ;;  %6961 = vmatprep.subr.bf16.mxu0 %v7617_v30  ;;  %v7657_v34 = vld [vmem:[%s9608_s1 + $0x8a0] sm:$0xff]   ;;  %v7661_v38 = vld [vmem:[%s9608_s1 + $0x898] sm:$0xff]  }
  0xf5   : > { %v6691_v44 = vpop.f32.mrf.mxu1  ;;  %6983 = vmatprep.subr.bf16.mxu1 %v7618_v33  ;;  %v8721_v46 = vadd.f32 %v6689_v35, %v4756_v40  ;;  %v7656_v33 = vld [vmem:[%s9608_s1 + $0x820] sm:$0xff]   ;;  %v7658_v35 = vld [vmem:[%s9608_s1 + $0x858] sm:$0xff]   ;;  %v7663_v40 = vld [vmem:[%s9608_s1 + $0x8d0] sm:$0xff]  }
  0xf6   : > { %v7665_v43 = vld [vmem:[%s9608_s1 + $0x890] sm:$0xff]   ;;  %v7666_v44 = vld [vmem:[%s9608_s1 + $0x848] sm:$0xff]  }
  0xf7   : > { %6962 = vmatpush3.bf16.msra.mxu0 %v7619_v36  ;;  %v7659_v36 = vld [vmem:[%s9608_s1 + $0x8d8] sm:$0xff]  }
  0xf8   : > { %6984 = vmatpush3.bf16.msra.mxu1 %v7620_v39  ;;  %6963 = vmatprep.subr.bf16.mxu0 %v7621_v42  ;;  %v7662_v39 = vld [vmem:[%s9608_s1 + $0x850] sm:$0xff]  }
  0xf9   : > { %6985 = vmatprep.subr.bf16.mxu1 %v7622_v45  ;;  %v7664_v42 = vld [vmem:[%s9608_s1 + $0x810] sm:$0xff]   ;;  %v7667_v45 = vld [vmem:[%s9608_s1 + $0x8c8] sm:$0xff]  }
  0xfb   : > { %6964 = vmatpush3.bf16.msra.mxu0 %v7623_v47  ;;  %v7669_v47 = vld [vmem:[%s9608_s1 + $0x888] sm:$0xff]  }
  0xfc   : > { %6986 = vmatpush3.bf16.msra.mxu1 %v7624_v48  ;;  %6965 = vmatprep.subr.bf16.mxu0 %v7625_v49  ;;  %v7670_v48 = vld [vmem:[%s9608_s1 + $0x840] sm:$0xff]  }
  0xfd   : > { %6987 = vmatprep.subr.bf16.mxu1 %v7626_v50  ;;  %v7671_v49 = vld [vmem:[%s9608_s1 + $0x8c0] sm:$0xff]  }
  0xfe   : > { %v7672_v50 = vld [vmem:[%s9608_s1 + $0x800] sm:$0xff]  }
  0xff   : > { %6966 = vmatpush3.bf16.msra.mxu0 %v7627_v51  ;;  %v258_v51 = vld [vmem:[%s8069_s6 + $0x40] sm:$0xff] }
 0x100   : > { %6988 = vmatpush3.bf16.msra.mxu1 %v7628_v52  ;;  %6967 = vmatprep.subr.bf16.mxu0 %v7629_v53  ;;  %v7673_v52 = vld [vmem:[%s9608_s1 + $0x880] sm:$0xff]   ;;  %v1456_v53 = vrot.slane %v258_v51, %v8084_v41 }
 0x101   : > { %6989 = vmatprep.subr.bf16.mxu1 %v7630_v54  ;;  %v1449_v54 = vcombine.high %v258_v51, %v258_v51  ;;  %v7714_v51 = vld [vmem:[%s9608_s1 + $0xa30] sm:$0xff]  }
 0x103   : > { %6968 = vmatpush3.bf16.msra.mxu0 %v7631_v55  ;;  %v7675_v55 = vld [vmem:[%s9608_s1 + $0x978] sm:$0xff]  }
 0x104   : > { %6990 = vmatpush3.bf16.msra.mxu1 %v7632_v56  ;;  %6969 = vmatprep.subr.bf16.mxu0 %v7633_v57  ;;  %v1464_v56 = vcombine.high %v1456_v53, %v1456_v53  ;;  %v1463_v57 = vrot.slane %v1449_v54, %v8084_v41  ;;  %v7715_v54 = vld [vmem:[%s9608_s1 + $0xab0] sm:$0xff]  }
 0x105   : > { %6991 = vmatprep.subr.bf16.mxu1 %v7634_v58  ;;  %v7676_v58 = vld [vmem:[%s9608_s1 + $0x9f8] sm:$0xff]  }
 0x107   : > { %6970 = vmatpush3.bf16.msra.mxu0 %v7635_v59  ;;  %v7677_v59 = vld [vmem:[%s9608_s1 + $0x938] sm:$0xff]  }
 0x108   : > { %6992 = vmatpush3.bf16.msra.mxu1 %v7636_v60  ;;  %6971 = vmatprep.subr.bf16.mxu0 %v7637_v61  ;;  %v1465_v60 = vcombine.high %v1463_v57, %v1463_v57  ;;  %v7678_v61 = vld [vmem:[%s9608_s1 + $0x9b8] sm:$0xff]  }
 0x109   : > { %6993 = vmatprep.subr.bf16.mxu1 %v7638_v62  ;;  %v7679_v62 = vld [vmem:[%s9608_s1 + $0x970] sm:$0xff]  }
 0x10b   : > { %6972 = vmatpush3.bf16.msra.mxu0 %v7639_v0  ;;  %v7681_v0 = vld [vmem:[%s9608_s1 + $0x930] sm:$0xff]  }
 0x10c   : > { %6994 = vmatpush3.bf16.msra.mxu1 %v7640_v3  ;;  %7001 = vmatprep.subr.bf16.mxu0 %v7642_v6  ;;  %v7682_v3 = vld [vmem:[%s9608_s1 + $0x9b0] sm:$0xff]  }
 0x10d   : > { %7023 = vmatprep.subr.bf16.mxu1 %v7643_v7  ;;  %v7684_v7 = vld [vmem:[%s9608_s1 + $0x9e8] sm:$0xff]  }
 0x10e   : > { %v6709_v14 = vpop.f32.mrf.mxu0  ;;  %5314 = vmatmul.mubr.bf16.vlgmr.msra.gmra.mxu0 %v1439_v1 }
 0x10f   : > { %v6731_v15 = vpop.f32.mrf.mxu1  ;;  %5354 = vmatmul.mubr.bf16.vlgmr.msra.gmra.mxu1 %v1446_v5  ;;  %7002 = vmatpush3.bf16.msra.mxu0 %v7644_v9 }
 0x110   : > { %7024 = vmatpush3.bf16.msra.mxu1 %v7645_v10  ;;  %v6710_v18 = vpop.f32.mrf.mxu0  ;;  %7003 = vmatprep.subr.bf16.mxu0 %v7646_v11  ;;  %v7685_v10 = vld [vmem:[%s9608_s1 + $0x928] sm:$0xff]  }
 0x111   : > { %v6732_v19 = vpop.f32.mrf.mxu1  ;;  %7025 = vmatprep.subr.bf16.mxu1 %v7647_v12  ;;  %v6711_v21 = vadd.f32 %v6710_v18, %v6709_v14  ;;  %5393 = vmatprep.mubr.bf16.mxu0 %v1464_v56  ;;  %v7688_v18 = vld [vmem:[%s9608_s1 + $0x9e0] sm:$0xff]  }
 0x112   : > { %v6733_v22 = vadd.f32 %v6732_v19, %v6731_v15  ;;  %v6712_v24 = vpop.f32.mrf.mxu0  ;;  %5433 = vmatprep.mubr.bf16.mxu1 %v1465_v60  ;;  %v7687_v15 = vld [vmem:[%s9608_s1 + $0x960] sm:$0xff]  }
 0x113   : > { %v6734_v25 = vpop.f32.mrf.mxu1  ;;  %v4836_v27 = vadd.f32 %v6711_v21, %v8721_v46  ;;  %7004 = vmatpush3.bf16.msra.mxu0 %v7648_v13  ;;  %v7668_v46 = vld [vmem:[%s9608_s1 + $0x808] sm:$0xff]   ;;  %v7690_v21 = vld [vmem:[%s9608_s1 + $0x9a0] sm:$0xff]   ;;  %v7693_v24 = vld [vmem:[%s9608_s1 + $0x918] sm:$0xff]  }
 0x114   : > { %7026 = vmatpush3.bf16.msra.mxu1 %v7649_v16  ;;  %v6713_v29 = vpop.f32.mrf.mxu0  ;;  %7005 = vmatprep.subr.bf16.mxu0 %v7650_v17  ;;  %v7686_v13 = vld [vmem:[%s9608_s1 + $0x9a8] sm:$0xff]   ;;  %v7694_v25 = vld [vmem:[%s9608_s1 + $0x998] sm:$0xff]  }
 0x115   : > { %v6735_v30 = vpop.f32.mrf.mxu1  ;;  %7027 = vmatprep.subr.bf16.mxu1 %v7651_v20  ;;  %v8823_v32 = vadd.f32 %v6733_v22, %v4836_v27  ;;  %v7689_v20 = vld [vmem:[%s9608_s1 + $0x920] sm:$0xff]   ;;  %v7691_v22 = vld [vmem:[%s9608_s1 + $0x958] sm:$0xff]   ;;  %v7696_v27 = vld [vmem:[%s9608_s1 + $0x9d0] sm:$0xff]  }
 0x116   : > { %v7698_v29 = vld [vmem:[%s9608_s1 + $0x990] sm:$0xff]   ;;  %v7699_v30 = vld [vmem:[%s9608_s1 + $0x948] sm:$0xff]  }
 0x117   : > { %7006 = vmatpush3.bf16.msra.mxu0 %v7652_v23  ;;  %v7692_v23 = vld [vmem:[%s9608_s1 + $0x9d8] sm:$0xff]  }
 0x118   : > { %7028 = vmatpush3.bf16.msra.mxu1 %v7653_v26  ;;  %7007 = vmatprep.subr.bf16.mxu0 %v7654_v28  ;;  %v7695_v26 = vld [vmem:[%s9608_s1 + $0x950] sm:$0xff]  }
 0x119   : > { %7029 = vmatprep.subr.bf16.mxu1 %v7655_v31  ;;  %v7697_v28 = vld [vmem:[%s9608_s1 + $0x910] sm:$0xff]   ;;  %v7700_v31 = vld [vmem:[%s9608_s1 + $0x9c8] sm:$0xff]  }
 0x11b   : > { %7008 = vmatpush3.bf16.msra.mxu0 %v7656_v33  ;;  %v7702_v33 = vld [vmem:[%s9608_s1 + $0x988] sm:$0xff]  }
 0x11c   : > { %7030 = vmatpush3.bf16.msra.mxu1 %v7657_v34  ;;  %7009 = vmatprep.subr.bf16.mxu0 %v7658_v35  ;;  %v7703_v34 = vld [vmem:[%s9608_s1 + $0x940] sm:$0xff]  }
 0x11d   : > { %7031 = vmatprep.subr.bf16.mxu1 %v7659_v36  ;;  %v7704_v35 = vld [vmem:[%s9608_s1 + $0x9c0] sm:$0xff]  }
 0x11e   : > { %v7705_v36 = vld [vmem:[%s9608_s1 + $0x900] sm:$0xff]  }
 0x11f   : > { %7010 = vmatpush3.bf16.msra.mxu0 %v7660_v37  ;;  %v259_v37 = vld [vmem:[%s8069_s6 + $0x48] sm:$0xff] }
 0x120   : > { %7032 = vmatpush3.bf16.msra.mxu1 %v7661_v38  ;;  %7011 = vmatprep.subr.bf16.mxu0 %v7662_v39  ;;  %v7706_v38 = vld [vmem:[%s9608_s1 + $0x980] sm:$0xff]   ;;  %v1473_v39 = vrot.slane %v259_v37, %v8084_v41 }
 0x121   : > { %7033 = vmatprep.subr.bf16.mxu1 %v7663_v40  ;;  %v1466_v40 = vcombine.high %v259_v37, %v259_v37  ;;  %v7747_v37 = vld [vmem:[%s9608_s1 + $0xb30] sm:$0xff]  }
 0x123   : > { %7012 = vmatpush3.bf16.msra.mxu0 %v7664_v42  ;;  %v7708_v42 = vld [vmem:[%s9608_s1 + $0xa78] sm:$0xff]  }
 0x124   : > { %7034 = vmatpush3.bf16.msra.mxu1 %v7665_v43  ;;  %7013 = vmatprep.subr.bf16.mxu0 %v7666_v44  ;;  %v1481_v43 = vcombine.high %v1473_v39, %v1473_v39  ;;  %v1480_v44 = vrot.slane %v1466_v40, %v8084_v41  ;;  %v7748_v40 = vld [vmem:[%s9608_s1 + $0xbb0] sm:$0xff]  }
 0x125   : > { %7035 = vmatprep.subr.bf16.mxu1 %v7667_v45  ;;  %v7709_v45 = vld [vmem:[%s9608_s1 + $0xaf8] sm:$0xff]  }
 0x127   : > { %7014 = vmatpush3.bf16.msra.mxu0 %v7668_v46  ;;  %v7710_v46 = vld [vmem:[%s9608_s1 + $0xa38] sm:$0xff]  }
 0x128   : > { %7036 = vmatpush3.bf16.msra.mxu1 %v7669_v47  ;;  %7015 = vmatprep.subr.bf16.mxu0 %v7670_v48  ;;  %v1482_v47 = vcombine.high %v1480_v44, %v1480_v44  ;;  %v7711_v48 = vld [vmem:[%s9608_s1 + $0xab8] sm:$0xff]  }
 0x129   : > { %7037 = vmatprep.subr.bf16.mxu1 %v7671_v49  ;;  %v7712_v49 = vld [vmem:[%s9608_s1 + $0xa70] sm:$0xff]  }
 0x12b   : > { %7016 = vmatpush3.bf16.msra.mxu0 %v7672_v50  ;;  %v7713_v50 = vld [vmem:[%s9608_s1 + $0xaf0] sm:$0xff]  }
 0x12c   : > { %7038 = vmatpush3.bf16.msra.mxu1 %v7673_v52  ;;  %7045 = vmatprep.subr.bf16.mxu0 %v7675_v55  ;;  %v7716_v55 = vld [vmem:[%s9608_s1 + $0xa68] sm:$0xff]  }
 0x12d   : > { %7067 = vmatprep.subr.bf16.mxu1 %v7676_v58  ;;  %v7717_v58 = vld [vmem:[%s9608_s1 + $0xae8] sm:$0xff]  }
 0x12e   : > { %v6753_v1 = vpop.f32.mrf.mxu0  ;;  %5394 = vmatmul.mubr.bf16.vlgmr.msra.gmra.mxu0 %v1456_v53 }
 0x12f   : > { %v6775_v2 = vpop.f32.mrf.mxu1  ;;  %5434 = vmatmul.mubr.bf16.vlgmr.msra.gmra.mxu1 %v1463_v57  ;;  %7046 = vmatpush3.bf16.msra.mxu0 %v7677_v59 }
 0x130   : > { %7068 = vmatpush3.bf16.msra.mxu1 %v7678_v61  ;;  %v6754_v5 = vpop.f32.mrf.mxu0  ;;  %7047 = vmatprep.subr.bf16.mxu0 %v7679_v62  ;;  %v7718_v61 = vld [vmem:[%s9608_s1 + $0xa28] sm:$0xff]  }
 0x131   : > { %v6776_v6 = vpop.f32.mrf.mxu1  ;;  %7069 = vmatprep.subr.bf16.mxu1 %v7680_v63  ;;  %v6755_v8 = vadd.f32 %v6754_v5, %v6753_v1  ;;  %5473 = vmatprep.mubr.bf16.mxu0 %v1481_v43  ;;  %v7721_v5 = vld [vmem:[%s9608_s1 + $0xae0] sm:$0xff]  }
 0x132   : > { %v6777_v9 = vadd.f32 %v6776_v6, %v6775_v2  ;;  %v6756_v11 = vpop.f32.mrf.mxu0  ;;  %5513 = vmatprep.mubr.bf16.mxu1 %v1482_v47  ;;  %v7720_v2 = vld [vmem:[%s9608_s1 + $0xa60] sm:$0xff]  }
 0x133   : > { %v6778_v12 = vpop.f32.mrf.mxu1  ;;  %v4916_v14 = vadd.f32 %v6755_v8, %v8823_v32  ;;  %7048 = vmatpush3.bf16.msra.mxu0 %v7681_v0  ;;  %v7701_v32 = vld [vmem:[%s9608_s1 + $0x908] sm:$0xff]   ;;  %v7723_v8 = vld [vmem:[%s9608_s1 + $0xaa0] sm:$0xff]   ;;  %v7726_v11 = vld [vmem:[%s9608_s1 + $0xa18] sm:$0xff]  }
 0x134   : > { %7070 = vmatpush3.bf16.msra.mxu1 %v7682_v3  ;;  %v6757_v16 = vpop.f32.mrf.mxu0  ;;  %7049 = vmatprep.subr.bf16.mxu0 %v7683_v4  ;;  %v7719_v0 = vld [vmem:[%s9608_s1 + $0xaa8] sm:$0xff]   ;;  %v7727_v12 = vld [vmem:[%s9608_s1 + $0xa98] sm:$0xff]  }
 0x135   : > { %v6779_v17 = vpop.f32.mrf.mxu1  ;;  %7071 = vmatprep.subr.bf16.mxu1 %v7684_v7  ;;  %v8925_v19 = vadd.f32 %v6777_v9, %v4916_v14  ;;  %v7722_v7 = vld [vmem:[%s9608_s1 + $0xa20] sm:$0xff]   ;;  %v7724_v9 = vld [vmem:[%s9608_s1 + $0xa58] sm:$0xff]   ;;  %v7729_v14 = vld [vmem:[%s9608_s1 + $0xad0] sm:$0xff]  }
 0x136   : > { %v7731_v16 = vld [vmem:[%s9608_s1 + $0xa90] sm:$0xff]   ;;  %v7732_v17 = vld [vmem:[%s9608_s1 + $0xa48] sm:$0xff]  }
 0x137   : > { %7050 = vmatpush3.bf16.msra.mxu0 %v7685_v10  ;;  %v7725_v10 = vld [vmem:[%s9608_s1 + $0xad8] sm:$0xff]  }
 0x138   : > { %7072 = vmatpush3.bf16.msra.mxu1 %v7686_v13  ;;  %7051 = vmatprep.subr.bf16.mxu0 %v7687_v15  ;;  %v7728_v13 = vld [vmem:[%s9608_s1 + $0xa50] sm:$0xff]  }
 0x139   : > { %7073 = vmatprep.subr.bf16.mxu1 %v7688_v18  ;;  %v7730_v15 = vld [vmem:[%s9608_s1 + $0xa10] sm:$0xff]   ;;  %v7733_v18 = vld [vmem:[%s9608_s1 + $0xac8] sm:$0xff]  }
 0x13b   : > { %7052 = vmatpush3.bf16.msra.mxu0 %v7689_v20  ;;  %v7735_v20 = vld [vmem:[%s9608_s1 + $0xa88] sm:$0xff]  }
 0x13c   : > { %7074 = vmatpush3.bf16.msra.mxu1 %v7690_v21  ;;  %7053 = vmatprep.subr.bf16.mxu0 %v7691_v22  ;;  %v7736_v21 = vld [vmem:[%s9608_s1 + $0xa40] sm:$0xff]  }
 0x13d   : > { %7075 = vmatprep.subr.bf16.mxu1 %v7692_v23  ;;  %v7737_v22 = vld [vmem:[%s9608_s1 + $0xac0] sm:$0xff]  }
 0x13e   : > { %v7738_v23 = vld [vmem:[%s9608_s1 + $0xa00] sm:$0xff]  }
 0x13f   : > { %7054 = vmatpush3.bf16.msra.mxu0 %v7693_v24  ;;  %v260_v24 = vld [vmem:[%s8069_s6 + $0x50] sm:$0xff] }
 0x140   : > { %7076 = vmatpush3.bf16.msra.mxu1 %v7694_v25  ;;  %7055 = vmatprep.subr.bf16.mxu0 %v7695_v26  ;;  %v7739_v25 = vld [vmem:[%s9608_s1 + $0xa80] sm:$0xff]   ;;  %v1490_v26 = vrot.slane %v260_v24, %v8084_v41 }
 0x141   : > { %7077 = vmatprep.subr.bf16.mxu1 %v7696_v27  ;;  %v1483_v27 = vcombine.high %v260_v24, %v260_v24  ;;  %v7780_v24 = vld [vmem:[%s9608_s1 + $0xc30] sm:$0xff]  }
 0x143   : > { %7056 = vmatpush3.bf16.msra.mxu0 %v7697_v28  ;;  %v7741_v28 = vld [vmem:[%s9608_s1 + $0xb78] sm:$0xff]  }
 0x144   : > { %7078 = vmatpush3.bf16.msra.mxu1 %v7698_v29  ;;  %7057 = vmatprep.subr.bf16.mxu0 %v7699_v30  ;;  %v1498_v29 = vcombine.high %v1490_v26, %v1490_v26  ;;  %v1497_v30 = vrot.slane %v1483_v27, %v8084_v41  ;;  %v7781_v27 = vld [vmem:[%s9608_s1 + $0xcb0] sm:$0xff]  }
 0x145   : > { %7079 = vmatprep.subr.bf16.mxu1 %v7700_v31  ;;  %v7742_v31 = vld [vmem:[%s9608_s1 + $0xbf8] sm:$0xff]  }
 0x147   : > { %7058 = vmatpush3.bf16.msra.mxu0 %v7701_v32  ;;  %v7743_v32 = vld [vmem:[%s9608_s1 + $0xb38] sm:$0xff]  }
 0x148   : > { %7080 = vmatpush3.bf16.msra.mxu1 %v7702_v33  ;;  %7059 = vmatprep.subr.bf16.mxu0 %v7703_v34  ;;  %v1499_v33 = vcombine.high %v1497_v30, %v1497_v30  ;;  %v7744_v34 = vld [vmem:[%s9608_s1 + $0xbb8] sm:$0xff]  }
 0x149   : > { %7081 = vmatprep.subr.bf16.mxu1 %v7704_v35  ;;  %v7745_v35 = vld [vmem:[%s9608_s1 + $0xb70] sm:$0xff]  }
 0x14b   : > { %7060 = vmatpush3.bf16.msra.mxu0 %v7705_v36  ;;  %v7746_v36 = vld [vmem:[%s9608_s1 + $0xbf0] sm:$0xff]  }
 0x14c   : > { %7082 = vmatpush3.bf16.msra.mxu1 %v7706_v38  ;;  %7089 = vmatprep.subr.bf16.mxu0 %v7708_v42  ;;  %v7749_v42 = vld [vmem:[%s9608_s1 + $0xb68] sm:$0xff]  }
 0x14d   : > { %7111 = vmatprep.subr.bf16.mxu1 %v7709_v45  ;;  %v7750_v45 = vld [vmem:[%s9608_s1 + $0xbe8] sm:$0xff]  }
 0x14e   : > { %v6797_v52 = vpop.f32.mrf.mxu0  ;;  %5474 = vmatmul.mubr.bf16.vlgmr.msra.gmra.mxu0 %v1473_v39 }
 0x14f   : > { %v6819_v53 = vpop.f32.mrf.mxu1  ;;  %5514 = vmatmul.mubr.bf16.vlgmr.msra.gmra.mxu1 %v1480_v44  ;;  %7090 = vmatpush3.bf16.msra.mxu0 %v7710_v46 }
 0x150   : > { %7112 = vmatpush3.bf16.msra.mxu1 %v7711_v48  ;;  %v6798_v56 = vpop.f32.mrf.mxu0  ;;  %7091 = vmatprep.subr.bf16.mxu0 %v7712_v49  ;;  %v7751_v48 = vld [vmem:[%s9608_s1 + $0xb28] sm:$0xff]  }
 0x151   : > { %v6820_v57 = vpop.f32.mrf.mxu1  ;;  %7113 = vmatprep.subr.bf16.mxu1 %v7713_v50  ;;  %v6799_v59 = vadd.f32 %v6798_v56, %v6797_v52  ;;  %5553 = vmatprep.mubr.bf16.mxu0 %v1498_v29  ;;  %v7754_v56 = vld [vmem:[%s9608_s1 + $0xbe0] sm:$0xff]  }
 0x152   : > { %v6821_v60 = vadd.f32 %v6820_v57, %v6819_v53  ;;  %v6800_v62 = vpop.f32.mrf.mxu0  ;;  %5593 = vmatprep.mubr.bf16.mxu1 %v1499_v33  ;;  %v7753_v53 = vld [vmem:[%s9608_s1 + $0xb60] sm:$0xff]  }
 0x153   : > { %v6822_v63 = vpop.f32.mrf.mxu1  ;;  %v4996_v1 = vadd.f32 %v6799_v59, %v8925_v19  ;;  %7092 = vmatpush3.bf16.msra.mxu0 %v7714_v51  ;;  %v7734_v19 = vld [vmem:[%s9608_s1 + $0xa08] sm:$0xff]   ;;  %v7756_v59 = vld [vmem:[%s9608_s1 + $0xba0] sm:$0xff]   ;;  %v7759_v62 = vld [vmem:[%s9608_s1 + $0xb18] sm:$0xff]  }
 0x154   : > { %7114 = vmatpush3.bf16.msra.mxu1 %v7715_v54  ;;  %v6801_v3 = vpop.f32.mrf.mxu0  ;;  %7093 = vmatprep.subr.bf16.mxu0 %v7716_v55  ;;  %v7752_v51 = vld [vmem:[%s9608_s1 + $0xba8] sm:$0xff]   ;;  %v7760_v63 = vld [vmem:[%s9608_s1 + $0xb98] sm:$0xff]  }
 0x155   : > { %v6823_v4 = vpop.f32.mrf.mxu1  ;;  %7115 = vmatprep.subr.bf16.mxu1 %v7717_v58  ;;  %v9027_v6 = vadd.f32 %v6821_v60, %v4996_v1  ;;  %v7755_v58 = vld [vmem:[%s9608_s1 + $0xb20] sm:$0xff]   ;;  %v7757_v60 = vld [vmem:[%s9608_s1 + $0xb58] sm:$0xff]   ;;  %v7762_v1 = vld [vmem:[%s9608_s1 + $0xbd0] sm:$0xff]  }
 0x156   : > { %v7764_v3 = vld [vmem:[%s9608_s1 + $0xb90] sm:$0xff]   ;;  %v7765_v4 = vld [vmem:[%s9608_s1 + $0xb48] sm:$0xff]  }
 0x157   : > { %7094 = vmatpush3.bf16.msra.mxu0 %v7718_v61  ;;  %v7758_v61 = vld [vmem:[%s9608_s1 + $0xbd8] sm:$0xff]  }
 0x158   : > { %7116 = vmatpush3.bf16.msra.mxu1 %v7719_v0  ;;  %7095 = vmatprep.subr.bf16.mxu0 %v7720_v2  ;;  %v7761_v0 = vld [vmem:[%s9608_s1 + $0xb50] sm:$0xff]  }
 0x159   : > { %7117 = vmatprep.subr.bf16.mxu1 %v7721_v5  ;;  %v7763_v2 = vld [vmem:[%s9608_s1 + $0xb10] sm:$0xff]   ;;  %v7766_v5 = vld [vmem:[%s9608_s1 + $0xbc8] sm:$0xff]  }
 0x15b   : > { %7096 = vmatpush3.bf16.msra.mxu0 %v7722_v7  ;;  %v7768_v7 = vld [vmem:[%s9608_s1 + $0xb88] sm:$0xff]  }
 0x15c   : > { %7118 = vmatpush3.bf16.msra.mxu1 %v7723_v8  ;;  %7097 = vmatprep.subr.bf16.mxu0 %v7724_v9  ;;  %v7769_v8 = vld [vmem:[%s9608_s1 + $0xb40] sm:$0xff]  }
 0x15d   : > { %7119 = vmatprep.subr.bf16.mxu1 %v7725_v10  ;;  %v7770_v9 = vld [vmem:[%s9608_s1 + $0xbc0] sm:$0xff]  }
 0x15e   : > { %v7771_v10 = vld [vmem:[%s9608_s1 + $0xb00] sm:$0xff]  }
 0x15f   : > { %7098 = vmatpush3.bf16.msra.mxu0 %v7726_v11  ;;  %v7772_v11 = vld [vmem:[%s9608_s1 + $0xb80] sm:$0xff]  }
 0x160   : > { %7120 = vmatpush3.bf16.msra.mxu1 %v7727_v12  ;;  %7099 = vmatprep.subr.bf16.mxu0 %v7728_v13  ;;  %v261_v12 = vld [vmem:[%s8069_s6 + $0x58] sm:$0xff] }
 0x161   : > { %7121 = vmatprep.subr.bf16.mxu1 %v7729_v14  ;;  %v1507_v13 = vrot.slane %v261_v12, %v8084_v41  ;;  %v1500_v14 = vcombine.high %v261_v12, %v261_v12 }
 0x163   : > { %7100 = vmatpush3.bf16.msra.mxu0 %v7730_v15  ;;  %v7774_v15 = vld [vmem:[%s9608_s1 + $0xc78] sm:$0xff]  }
 0x164   : > { %7122 = vmatpush3.bf16.msra.mxu1 %v7731_v16  ;;  %7101 = vmatprep.subr.bf16.mxu0 %v7732_v17  ;;  %v7775_v16 = vld [vmem:[%s9608_s1 + $0xcf8] sm:$0xff]   ;;  %v1515_v17 = vcombine.high %v1507_v13, %v1507_v13 }
 0x165   : > { %7123 = vmatprep.subr.bf16.mxu1 %v7733_v18  ;;  %v1514_v18 = vrot.slane %v1500_v14, %v8084_v41  ;;  %v7814_v14 = vld [vmem:[%s9608_s1 + $0xdb0] sm:$0xff]  }
 0x167   : > { %7102 = vmatpush3.bf16.msra.mxu0 %v7734_v19  ;;  %v7776_v19 = vld [vmem:[%s9608_s1 + $0xc38] sm:$0xff]  }
 0x168   : > { %7124 = vmatpush3.bf16.msra.mxu1 %v7735_v20  ;;  %7103 = vmatprep.subr.bf16.mxu0 %v7736_v21  ;;  %v7777_v20 = vld [vmem:[%s9608_s1 + $0xcb8] sm:$0xff]   ;;  %v1516_v21 = vcombine.high %v1514_v18, %v1514_v18 }
 0x169   : > { %7125 = vmatprep.subr.bf16.mxu1 %v7737_v22  ;;  %v7778_v22 = vld [vmem:[%s9608_s1 + $0xc70] sm:$0xff]  }
 0x16b   : > { %7104 = vmatpush3.bf16.msra.mxu0 %v7738_v23  ;;  %v7779_v23 = vld [vmem:[%s9608_s1 + $0xcf0] sm:$0xff]  }
 0x16c   : > { %7126 = vmatpush3.bf16.msra.mxu1 %v7739_v25  ;;  %7133 = vmatprep.subr.bf16.mxu0 %v7741_v28  ;;  %v7782_v28 = vld [vmem:[%s9608_s1 + $0xc68] sm:$0xff]  }
 0x16d   : > { %7155 = vmatprep.subr.bf16.mxu1 %v7742_v31  ;;  %v7783_v31 = vld [vmem:[%s9608_s1 + $0xce8] sm:$0xff]  }
 0x16e   : > { %v6841_v38 = vpop.f32.mrf.mxu0  ;;  %5554 = vmatmul.mubr.bf16.vlgmr.msra.gmra.mxu0 %v1490_v26 }
 0x16f   : > { %v6863_v39 = vpop.f32.mrf.mxu1  ;;  %5594 = vmatmul.mubr.bf16.vlgmr.msra.gmra.mxu1 %v1497_v30  ;;  %7134 = vmatpush3.bf16.msra.mxu0 %v7743_v32 }
 0x170   : > { %7156 = vmatpush3.bf16.msra.mxu1 %v7744_v34  ;;  %v6842_v43 = vpop.f32.mrf.mxu0  ;;  %7135 = vmatprep.subr.bf16.mxu0 %v7745_v35  ;;  %v7784_v34 = vld [vmem:[%s9608_s1 + $0xc28] sm:$0xff]  }
 0x171   : > { %v6864_v44 = vpop.f32.mrf.mxu1  ;;  %7157 = vmatprep.subr.bf16.mxu1 %v7746_v36  ;;  %v6843_v46 = vadd.f32 %v6842_v43, %v6841_v38  ;;  %5633 = vmatprep.mubr.bf16.mxu0 %v1515_v17  ;;  %v7787_v43 = vld [vmem:[%s9608_s1 + $0xce0] sm:$0xff]  }
 0x172   : > { %v6865_v47 = vadd.f32 %v6864_v44, %v6863_v39  ;;  %v6844_v49 = vpop.f32.mrf.mxu0  ;;  %5673 = vmatprep.mubr.bf16.mxu1 %v1516_v21  ;;  %v7786_v39 = vld [vmem:[%s9608_s1 + $0xc60] sm:$0xff]   ;;  %v7817_v21 = vld [vmem:[%s9608_s1 + $0xd28] sm:$0xff]  }
 0x173   : > { %v6866_v50 = vpop.f32.mrf.mxu1  ;;  %v5076_v52 = vadd.f32 %v6843_v46, %v9027_v6  ;;  %7136 = vmatpush3.bf16.msra.mxu0 %v7747_v37  ;;  %v7767_v6 = vld [vmem:[%s9608_s1 + $0xb08] sm:$0xff]   ;;  %v7789_v46 = vld [vmem:[%s9608_s1 + $0xca0] sm:$0xff]   ;;  %v7792_v49 = vld [vmem:[%s9608_s1 + $0xc18] sm:$0xff]  }
 0x174   : > { %7158 = vmatpush3.bf16.msra.mxu1 %v7748_v40  ;;  %v6845_v54 = vpop.f32.mrf.mxu0  ;;  %7137 = vmatprep.subr.bf16.mxu0 %v7749_v42  ;;  %v7785_v37 = vld [vmem:[%s9608_s1 + $0xca8] sm:$0xff]   ;;  %v7793_v50 = vld [vmem:[%s9608_s1 + $0xc98] sm:$0xff]  }
 0x175   : > { %v6867_v55 = vpop.f32.mrf.mxu1  ;;  %7159 = vmatprep.subr.bf16.mxu1 %v7750_v45  ;;  %v9129_v57 = vadd.f32 %v6865_v47, %v5076_v52  ;;  %v7788_v45 = vld [vmem:[%s9608_s1 + $0xc20] sm:$0xff]   ;;  %v7790_v47 = vld [vmem:[%s9608_s1 + $0xc58] sm:$0xff]   ;;  %v7795_v52 = vld [vmem:[%s9608_s1 + $0xcd0] sm:$0xff]  }
 0x176   : > { %v7797_v54 = vld [vmem:[%s9608_s1 + $0xc90] sm:$0xff]   ;;  %v7798_v55 = vld [vmem:[%s9608_s1 + $0xc48] sm:$0xff]  }
 0x177   : > { %7138 = vmatpush3.bf16.msra.mxu0 %v7751_v48  ;;  %v7791_v48 = vld [vmem:[%s9608_s1 + $0xcd8] sm:$0xff]  }
 0x178   : > { %7160 = vmatpush3.bf16.msra.mxu1 %v7752_v51  ;;  %7139 = vmatprep.subr.bf16.mxu0 %v7753_v53  ;;  %v7794_v51 = vld [vmem:[%s9608_s1 + $0xc50] sm:$0xff]  }
 0x179   : > { %7161 = vmatprep.subr.bf16.mxu1 %v7754_v56  ;;  %v7796_v53 = vld [vmem:[%s9608_s1 + $0xc10] sm:$0xff]   ;;  %v7799_v56 = vld [vmem:[%s9608_s1 + $0xcc8] sm:$0xff]  }
 0x17b   : > { %7140 = vmatpush3.bf16.msra.mxu0 %v7755_v58  ;;  %v7801_v58 = vld [vmem:[%s9608_s1 + $0xc88] sm:$0xff]  }
 0x17c   : > { %7162 = vmatpush3.bf16.msra.mxu1 %v7756_v59  ;;  %7141 = vmatprep.subr.bf16.mxu0 %v7757_v60  ;;  %v7802_v59 = vld [vmem:[%s9608_s1 + $0xc40] sm:$0xff]  }
 0x17d   : > { %7163 = vmatprep.subr.bf16.mxu1 %v7758_v61  ;;  %v7803_v60 = vld [vmem:[%s9608_s1 + $0xcc0] sm:$0xff]  }
 0x17e   : > { %v7804_v61 = vld [vmem:[%s9608_s1 + $0xc00] sm:$0xff]  }
 0x17f   : > { %7142 = vmatpush3.bf16.msra.mxu0 %v7759_v62  ;;  %v7805_v62 = vld [vmem:[%s9608_s1 + $0xc80] sm:$0xff]  }
 0x180   : > { %7164 = vmatpush3.bf16.msra.mxu1 %v7760_v63  ;;  %7143 = vmatprep.subr.bf16.mxu0 %v7761_v0  ;;  %v262_v63 = vld [vmem:[%s8069_s6 + $0x60] sm:$0xff] }
 0x181   : > { %7165 = vmatprep.subr.bf16.mxu1 %v7762_v1  ;;  %v1524_v0 = vrot.slane %v262_v63, %v8084_v41  ;;  %v1517_v1 = vcombine.high %v262_v63, %v262_v63 }
 0x183   : > { %7144 = vmatpush3.bf16.msra.mxu0 %v7763_v2  ;;  %v7807_v2 = vld [vmem:[%s9608_s1 + $0xd78] sm:$0xff]  }
 0x184   : > { %7166 = vmatpush3.bf16.msra.mxu1 %v7764_v3  ;;  %7145 = vmatprep.subr.bf16.mxu0 %v7765_v4  ;;  %v7808_v3 = vld [vmem:[%s9608_s1 + $0xdf8] sm:$0xff]   ;;  %v1532_v4 = vcombine.high %v1524_v0, %v1524_v0 }
 0x185   : > { %7167 = vmatprep.subr.bf16.mxu1 %v7766_v5  ;;  %v1531_v5 = vrot.slane %v1517_v1, %v8084_v41  ;;  %v7847_v1 = vld [vmem:[%s9608_s1 + $0xeb0] sm:$0xff]  }
 0x187   : > { %7146 = vmatpush3.bf16.msra.mxu0 %v7767_v6  ;;  %v7809_v6 = vld [vmem:[%s9608_s1 + $0xd38] sm:$0xff]  }
 0x188   : > { %7168 = vmatpush3.bf16.msra.mxu1 %v7768_v7  ;;  %7147 = vmatprep.subr.bf16.mxu0 %v7769_v8  ;;  %v7810_v7 = vld [vmem:[%s9608_s1 + $0xdb8] sm:$0xff]   ;;  %v1533_v8 = vcombine.high %v1531_v5, %v1531_v5 }
 0x189   : > { %7169 = vmatprep.subr.bf16.mxu1 %v7770_v9  ;;  %v7811_v9 = vld [vmem:[%s9608_s1 + $0xd70] sm:$0xff]  }
 0x18b   : > { %7148 = vmatpush3.bf16.msra.mxu0 %v7771_v10  ;;  %v7812_v10 = vld [vmem:[%s9608_s1 + $0xdf0] sm:$0xff]  }
 0x18c   : > { %7170 = vmatpush3.bf16.msra.mxu1 %v7772_v11  ;;  %7177 = vmatprep.subr.bf16.mxu0 %v7774_v15  ;;  %v7813_v11 = vld [vmem:[%s9608_s1 + $0xd30] sm:$0xff]   ;;  %v7815_v15 = vld [vmem:[%s9608_s1 + $0xd68] sm:$0xff]  }
 0x18d   : > { %7199 = vmatprep.subr.bf16.mxu1 %v7775_v16 }
 0x18e   : > { %v6885_v25 = vpop.f32.mrf.mxu0  ;;  %5634 = vmatmul.mubr.bf16.vlgmr.msra.gmra.mxu0 %v1507_v13 }
 0x18f   : > { %v6907_v26 = vpop.f32.mrf.mxu1  ;;  %5674 = vmatmul.mubr.bf16.vlgmr.msra.gmra.mxu1 %v1514_v18  ;;  %7178 = vmatpush3.bf16.msra.mxu0 %v7776_v19  ;;  %v7816_v18 = vld [vmem:[%s9608_s1 + $0xde8] sm:$0xff]  }
 0x190   : > { %7200 = vmatpush3.bf16.msra.mxu1 %v7777_v20  ;;  %v6886_v29 = vpop.f32.mrf.mxu0  ;;  %7179 = vmatprep.subr.bf16.mxu0 %v7778_v22 }
 0x191   : > { %v6908_v30 = vpop.f32.mrf.mxu1  ;;  %7201 = vmatprep.subr.bf16.mxu1 %v7779_v23  ;;  %v6887_v32 = vadd.f32 %v6886_v29, %v6885_v25  ;;  %5713 = vmatprep.mubr.bf16.mxu0 %v1532_v4  ;;  %v7820_v29 = vld [vmem:[%s9608_s1 + $0xde0] sm:$0xff]  }
 0x192   : > { %v6909_v33 = vadd.f32 %v6908_v30, %v6907_v26  ;;  %v6888_v35 = vpop.f32.mrf.mxu0  ;;  %5753 = vmatprep.mubr.bf16.mxu1 %v1533_v8  ;;  %v7819_v26 = vld [vmem:[%s9608_s1 + $0xd60] sm:$0xff]   ;;  %v7850_v8 = vld [vmem:[%s9608_s1 + $0xe28] sm:$0xff]  }
 0x193   : > { %v6910_v36 = vpop.f32.mrf.mxu1  ;;  %v5156_v38 = vadd.f32 %v6887_v32, %v9129_v57  ;;  %7180 = vmatpush3.bf16.msra.mxu0 %v7780_v24  ;;  %v7800_v57 = vld [vmem:[%s9608_s1 + $0xc08] sm:$0xff]   ;;  %v7822_v32 = vld [vmem:[%s9608_s1 + $0xda0] sm:$0xff]   ;;  %v7825_v35 = vld [vmem:[%s9608_s1 + $0xd18] sm:$0xff]  }
 0x194   : > { %7202 = vmatpush3.bf16.msra.mxu1 %v7781_v27  ;;  %v6889_v40 = vpop.f32.mrf.mxu0  ;;  %7181 = vmatprep.subr.bf16.mxu0 %v7782_v28  ;;  %v7818_v24 = vld [vmem:[%s9608_s1 + $0xda8] sm:$0xff]   ;;  %v7826_v36 = vld [vmem:[%s9608_s1 + $0xd98] sm:$0xff]  }
 0x195   : > { %v6911_v42 = vpop.f32.mrf.mxu1  ;;  %7203 = vmatprep.subr.bf16.mxu1 %v7783_v31  ;;  %v9231_v44 = vadd.f32 %v6909_v33, %v5156_v38  ;;  %v7821_v31 = vld [vmem:[%s9608_s1 + $0xd20] sm:$0xff]   ;;  %v7823_v33 = vld [vmem:[%s9608_s1 + $0xd58] sm:$0xff]   ;;  %v7828_v38 = vld [vmem:[%s9608_s1 + $0xdd0] sm:$0xff]  }
 0x196   : > { %v7830_v40 = vld [vmem:[%s9608_s1 + $0xd90] sm:$0xff]   ;;  %v7831_v42 = vld [vmem:[%s9608_s1 + $0xd48] sm:$0xff]  }
 0x197   : > { %7182 = vmatpush3.bf16.msra.mxu0 %v7784_v34  ;;  %v7824_v34 = vld [vmem:[%s9608_s1 + $0xdd8] sm:$0xff]  }
 0x198   : > { %7204 = vmatpush3.bf16.msra.mxu1 %v7785_v37  ;;  %7183 = vmatprep.subr.bf16.mxu0 %v7786_v39  ;;  %v7827_v37 = vld [vmem:[%s9608_s1 + $0xd50] sm:$0xff]  }
 0x199   : > { %7205 = vmatprep.subr.bf16.mxu1 %v7787_v43  ;;  %v7829_v39 = vld [vmem:[%s9608_s1 + $0xd10] sm:$0xff]   ;;  %v7832_v43 = vld [vmem:[%s9608_s1 + $0xdc8] sm:$0xff]  }
 0x19b   : > { %7184 = vmatpush3.bf16.msra.mxu0 %v7788_v45  ;;  %v7834_v45 = vld [vmem:[%s9608_s1 + $0xd88] sm:$0xff]  }
 0x19c   : > { %7206 = vmatpush3.bf16.msra.mxu1 %v7789_v46  ;;  %7185 = vmatprep.subr.bf16.mxu0 %v7790_v47  ;;  %v7835_v46 = vld [vmem:[%s9608_s1 + $0xd40] sm:$0xff]  }
 0x19d   : > { %7207 = vmatprep.subr.bf16.mxu1 %v7791_v48  ;;  %v7836_v47 = vld [vmem:[%s9608_s1 + $0xdc0] sm:$0xff]  }
 0x19e   : > { %v7837_v48 = vld [vmem:[%s9608_s1 + $0xd00] sm:$0xff]  }
 0x19f   : > { %7186 = vmatpush3.bf16.msra.mxu0 %v7792_v49  ;;  %v7838_v49 = vld [vmem:[%s9608_s1 + $0xd80] sm:$0xff]  }
 0x1a0   : > { %7208 = vmatpush3.bf16.msra.mxu1 %v7793_v50  ;;  %7187 = vmatprep.subr.bf16.mxu0 %v7794_v51  ;;  %v263_v50 = vld [vmem:[%s8069_s6 + $0x68] sm:$0xff] }
 0x1a1   : > { %7209 = vmatprep.subr.bf16.mxu1 %v7795_v52  ;;  %v1541_v51 = vrot.slane %v263_v50, %v8084_v41  ;;  %v1534_v52 = vcombine.high %v263_v50, %v263_v50 }
 0x1a3   : > { %7188 = vmatpush3.bf16.msra.mxu0 %v7796_v53  ;;  %v7840_v53 = vld [vmem:[%s9608_s1 + $0xe78] sm:$0xff]  }
 0x1a4   : > { %7210 = vmatpush3.bf16.msra.mxu1 %v7797_v54  ;;  %7189 = vmatprep.subr.bf16.mxu0 %v7798_v55  ;;  %v7841_v54 = vld [vmem:[%s9608_s1 + $0xef8] sm:$0xff]   ;;  %v1549_v55 = vcombine.high %v1541_v51, %v1541_v51 }
 0x1a5   : > { %7211 = vmatprep.subr.bf16.mxu1 %v7799_v56  ;;  %v1548_v56 = vrot.slane %v1534_v52, %v8084_v41  ;;  %v7880_v52 = vld [vmem:[%s9608_s1 + $0xfb0] sm:$0xff]  }
 0x1a7   : > { %7190 = vmatpush3.bf16.msra.mxu0 %v7800_v57  ;;  %v7842_v57 = vld [vmem:[%s9608_s1 + $0xe38] sm:$0xff]  }
 0x1a8   : > { %7212 = vmatpush3.bf16.msra.mxu1 %v7801_v58  ;;  %7191 = vmatprep.subr.bf16.mxu0 %v7802_v59  ;;  %v7843_v58 = vld [vmem:[%s9608_s1 + $0xeb8] sm:$0xff]   ;;  %v1550_v59 = vcombine.high %v1548_v56, %v1548_v56 }
 0x1a9   : > { %7213 = vmatprep.subr.bf16.mxu1 %v7803_v60  ;;  %v7844_v60 = vld [vmem:[%s9608_s1 + $0xe70] sm:$0xff]  }
 0x1ab   : > { %7192 = vmatpush3.bf16.msra.mxu0 %v7804_v61  ;;  %v7845_v61 = vld [vmem:[%s9608_s1 + $0xef0] sm:$0xff]  }
 0x1ac   : > { %7214 = vmatpush3.bf16.msra.mxu1 %v7805_v62  ;;  %7221 = vmatprep.subr.bf16.mxu0 %v7807_v2  ;;  %v7846_v62 = vld [vmem:[%s9608_s1 + $0xe30] sm:$0xff]   ;;  %v7848_v2 = vld [vmem:[%s9608_s1 + $0xe68] sm:$0xff]  }
 0x1ad   : > { %7243 = vmatprep.subr.bf16.mxu1 %v7808_v3 }
 0x1ae   : > { %v6929_v12 = vpop.f32.mrf.mxu0  ;;  %5714 = vmatmul.mubr.bf16.vlgmr.msra.gmra.mxu0 %v1524_v0 }
 0x1af   : > { %v6951_v13 = vpop.f32.mrf.mxu1  ;;  %5754 = vmatmul.mubr.bf16.vlgmr.msra.gmra.mxu1 %v1531_v5  ;;  %7222 = vmatpush3.bf16.msra.mxu0 %v7809_v6  ;;  %v7849_v5 = vld [vmem:[%s9608_s1 + $0xee8] sm:$0xff]  }
 0x1b0   : > { %7244 = vmatpush3.bf16.msra.mxu1 %v7810_v7  ;;  %v6930_v16 = vpop.f32.mrf.mxu0  ;;  %7223 = vmatprep.subr.bf16.mxu0 %v7811_v9 }
 0x1b1   : > { %v6952_v17 = vpop.f32.mrf.mxu1  ;;  %7245 = vmatprep.subr.bf16.mxu1 %v7812_v10  ;;  %v6931_v19 = vadd.f32 %v6930_v16, %v6929_v12  ;;  %5793 = vmatprep.mubr.bf16.mxu0 %v1549_v55  ;;  %v7853_v16 = vld [vmem:[%s9608_s1 + $0xee0] sm:$0xff]   ;;  %v7881_v55 = vld [vmem:[%s9608_s1 + $0xf68] sm:$0xff]  }
 0x1b2   : > { %v6953_v20 = vadd.f32 %v6952_v17, %v6951_v13  ;;  %v6932_v22 = vpop.f32.mrf.mxu0  ;;  %5833 = vmatprep.mubr.bf16.mxu1 %v1550_v59  ;;  %v7852_v13 = vld [vmem:[%s9608_s1 + $0xe60] sm:$0xff]  }
 0x1b3   : > { %v6954_v23 = vpop.f32.mrf.mxu1  ;;  %v5236_v25 = vadd.f32 %v6931_v19, %v9231_v44  ;;  %7224 = vmatpush3.bf16.msra.mxu0 %v7813_v11  ;;  %v7833_v44 = vld [vmem:[%s9608_s1 + $0xd08] sm:$0xff]   ;;  %v7855_v19 = vld [vmem:[%s9608_s1 + $0xea0] sm:$0xff]   ;;  %v7858_v22 = vld [vmem:[%s9608_s1 + $0xe18] sm:$0xff]  }
 0x1b4   : > { %7246 = vmatpush3.bf16.msra.mxu1 %v7814_v14  ;;  %v6933_v27 = vpop.f32.mrf.mxu0  ;;  %7225 = vmatprep.subr.bf16.mxu0 %v7815_v15  ;;  %v7851_v11 = vld [vmem:[%s9608_s1 + $0xea8] sm:$0xff]   ;;  %v7859_v23 = vld [vmem:[%s9608_s1 + $0xe98] sm:$0xff]  }
 0x1b5   : > { %v6955_v28 = vpop.f32.mrf.mxu1  ;;  %7247 = vmatprep.subr.bf16.mxu1 %v7816_v18  ;;  %v9333_v30 = vadd.f32 %v6953_v20, %v5236_v25  ;;  %v7854_v18 = vld [vmem:[%s9608_s1 + $0xe20] sm:$0xff]   ;;  %v7856_v20 = vld [vmem:[%s9608_s1 + $0xe58] sm:$0xff]   ;;  %v7861_v25 = vld [vmem:[%s9608_s1 + $0xed0] sm:$0xff]  }
 0x1b6   : > { %v7863_v27 = vld [vmem:[%s9608_s1 + $0xe90] sm:$0xff]   ;;  %v7864_v28 = vld [vmem:[%s9608_s1 + $0xe48] sm:$0xff]  }
 0x1b7   : > { %7226 = vmatpush3.bf16.msra.mxu0 %v7817_v21  ;;  %v7857_v21 = vld [vmem:[%s9608_s1 + $0xed8] sm:$0xff]  }
 0x1b8   : > { %7248 = vmatpush3.bf16.msra.mxu1 %v7818_v24  ;;  %7227 = vmatprep.subr.bf16.mxu0 %v7819_v26  ;;  %v7860_v24 = vld [vmem:[%s9608_s1 + $0xe50] sm:$0xff]  }
 0x1b9   : > { %7249 = vmatprep.subr.bf16.mxu1 %v7820_v29  ;;  %v7862_v26 = vld [vmem:[%s9608_s1 + $0xe10] sm:$0xff]   ;;  %v7865_v29 = vld [vmem:[%s9608_s1 + $0xec8] sm:$0xff]  }
 0x1bb   : > { %7228 = vmatpush3.bf16.msra.mxu0 %v7821_v31  ;;  %v7867_v31 = vld [vmem:[%s9608_s1 + $0xe88] sm:$0xff]  }
 0x1bc   : > { %7250 = vmatpush3.bf16.msra.mxu1 %v7822_v32  ;;  %7229 = vmatprep.subr.bf16.mxu0 %v7823_v33  ;;  %v7868_v32 = vld [vmem:[%s9608_s1 + $0xe40] sm:$0xff]  }
 0x1bd   : > { %7251 = vmatprep.subr.bf16.mxu1 %v7824_v34  ;;  %v7869_v33 = vld [vmem:[%s9608_s1 + $0xec0] sm:$0xff]  }
 0x1be   : > { %v7870_v34 = vld [vmem:[%s9608_s1 + $0xe00] sm:$0xff]  }
 0x1bf   : > { %7230 = vmatpush3.bf16.msra.mxu0 %v7825_v35  ;;  %v7871_v35 = vld [vmem:[%s9608_s1 + $0xe80] sm:$0xff]  }
 0x1c0   : > { %7252 = vmatpush3.bf16.msra.mxu1 %v7826_v36  ;;  %7231 = vmatprep.subr.bf16.mxu0 %v7827_v37  ;;  %v264_v36 = vld [vmem:[%s8069_s6 + $0x70] sm:$0xff] }
 0x1c1   : > { %7253 = vmatprep.subr.bf16.mxu1 %v7828_v38  ;;  %v1558_v37 = vrot.slane %v264_v36, %v8084_v41  ;;  %v1551_v38 = vcombine.high %v264_v36, %v264_v36 }
 0x1c3   : > { %7232 = vmatpush3.bf16.msra.mxu0 %v7829_v39  ;;  %v7873_v39 = vld [vmem:[%s9608_s1 + $0xf78] sm:$0xff]  }
 0x1c4   : > { %7254 = vmatpush3.bf16.msra.mxu1 %v7830_v40  ;;  %7233 = vmatprep.subr.bf16.mxu0 %v7831_v42  ;;  %v7874_v40 = vld [vmem:[%s9608_s1 + $0xff8] sm:$0xff]   ;;  %v1566_v42 = vcombine.high %v1558_v37, %v1558_v37 }
 0x1c5   : > { %7255 = vmatprep.subr.bf16.mxu1 %v7832_v43  ;;  %v1565_v43 = vrot.slane %v1551_v38, %v8084_v41 }
 0x1c7   : > { %7234 = vmatpush3.bf16.msra.mxu0 %v7833_v44  ;;  %v7875_v44 = vld [vmem:[%s9608_s1 + $0xf38] sm:$0xff]  }
 0x1c8   : > { %7256 = vmatpush3.bf16.msra.mxu1 %v7834_v45  ;;  %7235 = vmatprep.subr.bf16.mxu0 %v7835_v46  ;;  %v7876_v45 = vld [vmem:[%s9608_s1 + $0xfb8] sm:$0xff]   ;;  %v1567_v46 = vcombine.high %v1565_v43, %v1565_v43 }
 0x1c9   : > { %7257 = vmatprep.subr.bf16.mxu1 %v7836_v47  ;;  %v7877_v47 = vld [vmem:[%s9608_s1 + $0xf70] sm:$0xff]  }
 0x1cb   : > { %7236 = vmatpush3.bf16.msra.mxu0 %v7837_v48  ;;  %v7878_v48 = vld [vmem:[%s9608_s1 + $0xff0] sm:$0xff]  }
 0x1cc   : > { %7258 = vmatpush3.bf16.msra.mxu1 %v7838_v49  ;;  %7265 = vmatprep.subr.bf16.mxu0 %v7840_v53 }
 0x1cd   : > { %7287 = vmatprep.subr.bf16.mxu1 %v7841_v54 }
 0x1ce   : > { %v6973_v63 = vpop.f32.mrf.mxu0  ;;  %5794 = vmatmul.mubr.bf16.vlgmr.msra.gmra.mxu0 %v1541_v51  ;;  %v7879_v51 = vld [vmem:[%s9608_s1 + $0xf30] sm:$0xff]  }
 0x1cf   : > { %v6995_v0 = vpop.f32.mrf.mxu1  ;;  %5834 = vmatmul.mubr.bf16.vlgmr.msra.gmra.mxu1 %v1548_v56  ;;  %7266 = vmatpush3.bf16.msra.mxu0 %v7842_v57 }
 0x1d0   : > { %7288 = vmatpush3.bf16.msra.mxu1 %v7843_v58  ;;  %v6974_v3 = vpop.f32.mrf.mxu0  ;;  %7267 = vmatprep.subr.bf16.mxu0 %v7844_v60  ;;  %v7882_v58 = vld [vmem:[%s9608_s1 + $0xfe8] sm:$0xff]  }
 0x1d1   : > { %v6996_v4 = vpop.f32.mrf.mxu1  ;;  %7289 = vmatprep.subr.bf16.mxu1 %v7845_v61  ;;  %v6975_v6 = vadd.f32 %v6974_v3, %v6973_v63  ;;  %5873 = vmatprep.mubr.bf16.mxu0 %v1566_v42  ;;  %v7883_v61 = vld [vmem:[%s9608_s1 + $0xf28] sm:$0xff]  }
 0x1d2   : > { %v6997_v7 = vadd.f32 %v6996_v4, %v6995_v0  ;;  %v6976_v9 = vpop.f32.mrf.mxu0  ;;  %5913 = vmatprep.mubr.bf16.mxu1 %v1567_v46  ;;  %v7884_v63 = vld [vmem:[%s9608_s1 + $0xfa8] sm:$0xff]   ;;  %v7886_v4 = vld [vmem:[%s9608_s1 + $0xfe0] sm:$0xff]  }
 0x1d3   : > { %v6998_v10 = vpop.f32.mrf.mxu1  ;;  %v5316_v12 = vadd.f32 %v6975_v6, %v9333_v30  ;;  %7268 = vmatpush3.bf16.msra.mxu0 %v7846_v62  ;;  %v7866_v30 = vld [vmem:[%s9608_s1 + $0xe08] sm:$0xff]   ;;  %v7888_v6 = vld [vmem:[%s9608_s1 + $0xfa0] sm:$0xff]   ;;  %v7891_v9 = vld [vmem:[%s9608_s1 + $0xf18] sm:$0xff]  }
 0x1d4   : > { %7290 = vmatpush3.bf16.msra.mxu1 %v7847_v1  ;;  %v6977_v14 = vpop.f32.mrf.mxu0  ;;  %7269 = vmatprep.subr.bf16.mxu0 %v7848_v2  ;;  %v7885_v2 = vld [vmem:[%s9608_s1 + $0xf60] sm:$0xff]   ;;  %v7892_v10 = vld [vmem:[%s9608_s1 + $0xf98] sm:$0xff]  }
 0x1d5   : > { %v6999_v15 = vpop.f32.mrf.mxu1  ;;  %7291 = vmatprep.subr.bf16.mxu1 %v7849_v5  ;;  %v9435_v17 = vadd.f32 %v6997_v7, %v5316_v12  ;;  %v7887_v5 = vld [vmem:[%s9608_s1 + $0xf20] sm:$0xff]   ;;  %v7889_v7 = vld [vmem:[%s9608_s1 + $0xf58] sm:$0xff]   ;;  %v7894_v12 = vld [vmem:[%s9608_s1 + $0xfd0] sm:$0xff]  }
 0x1d6   : > { %v7896_v14 = vld [vmem:[%s9608_s1 + $0xf90] sm:$0xff]   ;;  %v7897_v15 = vld [vmem:[%s9608_s1 + $0xf48] sm:$0xff]  }
 0x1d7   : > { %7270 = vmatpush3.bf16.msra.mxu0 %v7850_v8  ;;  %v7890_v8 = vld [vmem:[%s9608_s1 + $0xfd8] sm:$0xff]  }
 0x1d8   : > { %7292 = vmatpush3.bf16.msra.mxu1 %v7851_v11  ;;  %7271 = vmatprep.subr.bf16.mxu0 %v7852_v13  ;;  %v7893_v11 = vld [vmem:[%s9608_s1 + $0xf50] sm:$0xff]  }
 0x1d9   : > { %7293 = vmatprep.subr.bf16.mxu1 %v7853_v16  ;;  %v7895_v13 = vld [vmem:[%s9608_s1 + $0xf10] sm:$0xff]   ;;  %v7898_v16 = vld [vmem:[%s9608_s1 + $0xfc8] sm:$0xff]  }
 0x1db   : > { %7272 = vmatpush3.bf16.msra.mxu0 %v7854_v18  ;;  %v7900_v18 = vld [vmem:[%s9608_s1 + $0xf88] sm:$0xff]  }
 0x1dc   : > { %7294 = vmatpush3.bf16.msra.mxu1 %v7855_v19  ;;  %7273 = vmatprep.subr.bf16.mxu0 %v7856_v20  ;;  %v7901_v19 = vld [vmem:[%s9608_s1 + $0xf40] sm:$0xff]  }
 0x1dd   : > { %7295 = vmatprep.subr.bf16.mxu1 %v7857_v21  ;;  %v7902_v20 = vld [vmem:[%s9608_s1 + $0xfc0] sm:$0xff]  }
 0x1de   : > { %v7903_v21 = vld [vmem:[%s9608_s1 + $0xf00] sm:$0xff]  }
 0x1df   : > { %7274 = vmatpush3.bf16.msra.mxu0 %v7858_v22  ;;  %v265_v22 = vld [vmem:[%s8069_s6 + $0x78] sm:$0xff]  ;;  %s6132_s6 = sshll.u32 %s9616_s12, 2 }
 0x1e0   : > { %7296 = vmatpush3.bf16.msra.mxu1 %v7859_v23  ;;  %7275 = vmatprep.subr.bf16.mxu0 %v7860_v24  ;;  %v7904_v23 = vld [vmem:[%s9608_s1 + $0xf80] sm:$0xff]   ;;  %v1575_v24 = vrot.slane %v265_v22, %v8084_v41  ;;  %s248_s7 = scalar_lea.vmem %s9610_s3, %s6132_s6 }
 0x1e1   : > { %7297 = vmatprep.subr.bf16.mxu1 %v7861_v25  ;;  %v1568_v25 = vcombine.high %v265_v22, %v265_v22 }
 0x1e3   : > { %7276 = vmatpush3.bf16.msra.mxu0 %v7862_v26  ;;  %v1583_v26 = vcombine.high %v1575_v24, %v1575_v24 }
 0x1e4   : > { %7298 = vmatpush3.bf16.msra.mxu1 %v7863_v27  ;;  %7277 = vmatprep.subr.bf16.mxu0 %v7864_v28  ;;  %v1582_v27 = vrot.slane %v1568_v25, %v8084_v41 }
 0x1e5   : > { %7299 = vmatprep.subr.bf16.mxu1 %v7865_v29 }
 0x1e6   : > { %v1584_v28 = vcombine.high %v1582_v27, %v1582_v27 }
 0x1e7   : > { %7278 = vmatpush3.bf16.msra.mxu0 %v7866_v30 }
 0x1e8   : > { %7300 = vmatpush3.bf16.msra.mxu1 %v7867_v31  ;;  %7279 = vmatprep.subr.bf16.mxu0 %v7868_v32 }
 0x1e9   : > { %7301 = vmatprep.subr.bf16.mxu1 %v7869_v33 }
 0x1eb   : > { %7280 = vmatpush3.bf16.msra.mxu0 %v7870_v34 }
 0x1ec   : > { %7302 = vmatpush3.bf16.msra.mxu1 %v7871_v35  ;;  %7309 = vmatprep.subr.bf16.mxu0 %v7873_v39 }
 0x1ed   : > { %7331 = vmatprep.subr.bf16.mxu1 %v7874_v40 }
 0x1ee   : > { %v7017_v49 = vpop.f32.mrf.mxu0  ;;  %5874 = vmatmul.mubr.bf16.vlgmr.msra.gmra.mxu0 %v1558_v37 }
 0x1ef   : > { %v7039_v50 = vpop.f32.mrf.mxu1  ;;  %5914 = vmatmul.mubr.bf16.vlgmr.msra.gmra.mxu1 %v1565_v43  ;;  %7310 = vmatpush3.bf16.msra.mxu0 %v7875_v44 }
 0x1f0   : > { %7332 = vmatpush3.bf16.msra.mxu1 %v7876_v45  ;;  %v7018_v53 = vpop.f32.mrf.mxu0  ;;  %7311 = vmatprep.subr.bf16.mxu0 %v7877_v47 }
 0x1f1   : > { %v7040_v54 = vpop.f32.mrf.mxu1  ;;  %v7019_v56 = vadd.f32 %v7018_v53, %v7017_v49  ;;  %7333 = vmatprep.subr.bf16.mxu1 %v7878_v48  ;;  %5953 = vmatprep.mubr.bf16.mxu0 %v1583_v26 }
 0x1f2   : > { %v7041_v57 = vadd.f32 %v7040_v54, %v7039_v50  ;;  %v7020_v59 = vpop.f32.mrf.mxu0  ;;  %5993 = vmatprep.mubr.bf16.mxu1 %v1584_v28 }
 0x1f3   : > { %v7042_v60 = vpop.f32.mrf.mxu1  ;;  %v5396_v62 = vadd.f32 %v7019_v56, %v9435_v17  ;;  %7312 = vmatpush3.bf16.msra.mxu0 %v7879_v51  ;;  %v7899_v17 = vld [vmem:[%s9608_s1 + $0xf08] sm:$0xff]  }
 0x1f4   : > { %7334 = vmatpush3.bf16.msra.mxu1 %v7880_v52  ;;  %v7021_v0 = vpop.f32.mrf.mxu0  ;;  %7313 = vmatprep.subr.bf16.mxu0 %v7881_v55 }
 0x1f5   : > { %v7043_v1 = vpop.f32.mrf.mxu1  ;;  %v5436_v3 = vadd.f32 %v7041_v57, %v5396_v62  ;;  %7335 = vmatprep.subr.bf16.mxu1 %v7882_v58 }
 0x1f7   : > { %7314 = vmatpush3.bf16.msra.mxu0 %v7883_v61 }
 0x1f8   : > { %7336 = vmatpush3.bf16.msra.mxu1 %v7884_v63  ;;  %7315 = vmatprep.subr.bf16.mxu0 %v7885_v2 }
 0x1f9   : > { %7337 = vmatprep.subr.bf16.mxu1 %v7886_v4 }
 0x1fb   : > { %7316 = vmatpush3.bf16.msra.mxu0 %v7887_v5 }
 0x1fc   : > { %7338 = vmatpush3.bf16.msra.mxu1 %v7888_v6  ;;  %7317 = vmatprep.subr.bf16.mxu0 %v7889_v7 }
 0x1fd   : > { %7339 = vmatprep.subr.bf16.mxu1 %v7890_v8 }
 0x1ff   : > { %7318 = vmatpush3.bf16.msra.mxu0 %v7891_v9 }
 0x200   : > { %7340 = vmatpush3.bf16.msra.mxu1 %v7892_v10  ;;  %7319 = vmatprep.subr.bf16.mxu0 %v7893_v11 }
 0x201   : > { %7341 = vmatprep.subr.bf16.mxu1 %v7894_v12 }
 0x203   : > { %7320 = vmatpush3.bf16.msra.mxu0 %v7895_v13 }
 0x204   : > { %7342 = vmatpush3.bf16.msra.mxu1 %v7896_v14  ;;  %7321 = vmatprep.subr.bf16.mxu0 %v7897_v15 }
 0x205   : > { %7343 = vmatprep.subr.bf16.mxu1 %v7898_v16 }
 0x207   : > { %7322 = vmatpush3.bf16.msra.mxu0 %v7899_v17 }
 0x208   : > { %7344 = vmatpush3.bf16.msra.mxu1 %v7900_v18  ;;  %7323 = vmatprep.subr.bf16.mxu0 %v7901_v19 }
 0x209   : > { %7345 = vmatprep.subr.bf16.mxu1 %v7902_v20 }
 0x20b   : > { %7324 = vmatpush3.bf16.msra.mxu0 %v7903_v21 }
 0x20c   : > { %7346 = vmatpush3.bf16.msra.mxu1 %v7904_v23 }
 0x20e   : > { %v7061_v29 = vpop.f32.mrf.mxu0  ;;  %5954 = vmatmul.mubr.bf16.vlgmr.msra.gmra.mxu0 %v1575_v24 }
 0x20f   : > { %v7083_v30 = vpop.f32.mrf.mxu1  ;;  %5994 = vmatmul.mubr.bf16.vlgmr.msra.gmra.mxu1 %v1582_v27 }
 0x210   : > { %v7062_v31 = vpop.f32.mrf.mxu0 }
 0x211   : > { %v7084_v32 = vpop.f32.mrf.mxu1  ;;  %v7063_v33 = vadd.f32 %v7062_v31, %v7061_v29 }
 0x212   : > { %v7085_v34 = vadd.f32 %v7084_v32, %v7083_v30  ;;  %v7064_v35 = vpop.f32.mrf.mxu0 }
 0x213   : > { %v7086_v36 = vpop.f32.mrf.mxu1  ;;  %v5476_v37 = vadd.f32 %v7063_v33, %v5436_v3 }
 0x214   : > { %v7065_v38 = vpop.f32.mrf.mxu0 }
 0x215   : > { %v7087_v39 = vpop.f32.mrf.mxu1  ;;  %v5516_v40 = vadd.f32 %v7085_v34, %v5476_v37 }
 0x22e   : > { %v7105_v41 = vpop.f32.mrf.mxu0 }
 0x22f   : > { %v7127_v42 = vpop.f32.mrf.mxu1 }
 0x230   : > { %v7106_v43 = vpop.f32.mrf.mxu0 }
 0x231   : > { %v7128_v44 = vpop.f32.mrf.mxu1  ;;  %v7107_v45 = vadd.f32 %v7106_v43, %v7105_v41 }
 0x232   : > { %v7129_v46 = vadd.f32 %v7128_v44, %v7127_v42  ;;  %v7108_v47 = vpop.f32.mrf.mxu0 }
 0x233   : > { %v7130_v48 = vpop.f32.mrf.mxu1  ;;  %v5556_v49 = vadd.f32 %v7107_v45, %v5516_v40 }
 0x234   : > { %v7109_v50 = vpop.f32.mrf.mxu0 }
 0x235   : > { %v7131_v51 = vpop.f32.mrf.mxu1  ;;  %v5596_v52 = vadd.f32 %v7129_v46, %v5556_v49 }
 0x24e   : > { %v7149_v53 = vpop.f32.mrf.mxu0 }
 0x24f   : > { %v7171_v54 = vpop.f32.mrf.mxu1 }
 0x250   : > { %v7150_v55 = vpop.f32.mrf.mxu0 }
 0x251   : > { %v7172_v56 = vpop.f32.mrf.mxu1  ;;  %v7151_v57 = vadd.f32 %v7150_v55, %v7149_v53 }
 0x252   : > { %v7173_v58 = vadd.f32 %v7172_v56, %v7171_v54  ;;  %v7152_v59 = vpop.f32.mrf.mxu0 }
 0x253   : > { %v7174_v60 = vpop.f32.mrf.mxu1  ;;  %v5636_v61 = vadd.f32 %v7151_v57, %v5596_v52 }
 0x254   : > { %v7153_v62 = vpop.f32.mrf.mxu0 }
 0x255   : > { %v7175_v63 = vpop.f32.mrf.mxu1  ;;  %v5676_v0 = vadd.f32 %v7173_v58, %v5636_v61 }
 0x26e   : > { %v7193_v1 = vpop.f32.mrf.mxu0 }
 0x26f   : > { %v7215_v2 = vpop.f32.mrf.mxu1 }
 0x270   : > { %v7194_v3 = vpop.f32.mrf.mxu0 }
 0x271   : > { %v7216_v4 = vpop.f32.mrf.mxu1  ;;  %v7195_v5 = vadd.f32 %v7194_v3, %v7193_v1 }
 0x272   : > { %v7217_v6 = vadd.f32 %v7216_v4, %v7215_v2  ;;  %v7196_v7 = vpop.f32.mrf.mxu0 }
 0x273   : > { %v7218_v8 = vpop.f32.mrf.mxu1  ;;  %v5716_v9 = vadd.f32 %v7195_v5, %v5676_v0 }
 0x274   : > { %v7197_v10 = vpop.f32.mrf.mxu0 }
 0x275   : > { %v7219_v11 = vpop.f32.mrf.mxu1  ;;  %v5756_v12 = vadd.f32 %v7217_v6, %v5716_v9 }
 0x28e   : > { %v7237_v13 = vpop.f32.mrf.mxu0 }
 0x28f   : > { %v7259_v14 = vpop.f32.mrf.mxu1 }
 0x290   : > { %v7238_v15 = vpop.f32.mrf.mxu0 }
 0x291   : > { %v7260_v16 = vpop.f32.mrf.mxu1  ;;  %v7239_v29 = vadd.f32 %v7238_v15, %v7237_v13 }
 0x292   : > { %v7240_v17 = vpop.f32.mrf.mxu0  ;;  %v7261_v31 = vadd.f32 %v7260_v16, %v7259_v14 }
 0x293   : > { %v7262_v18 = vpop.f32.mrf.mxu1  ;;  %v5796_v30 = vadd.f32 %v7239_v29, %v5756_v12 }
 0x294   : > { %v7241_v19 = vpop.f32.mrf.mxu0 }
 0x295   : > { %v7263_v20 = vpop.f32.mrf.mxu1  ;;  %v5836_v33 = vadd.f32 %v7261_v31, %v5796_v30 }
 0x2ae   : > { %v7281_v21 = vpop.f32.mrf.mxu0 }
 0x2af   : > { %v7303_v22 = vpop.f32.mrf.mxu1 }
 0x2b0   : > { %v7282_v23 = vpop.f32.mrf.mxu0 }
 0x2b1   : > { %v7304_v24 = vpop.f32.mrf.mxu1  ;;  %v7283_v32 = vadd.f32 %v7282_v23, %v7281_v21 }
 0x2b2   : > { %v7284_v25 = vpop.f32.mrf.mxu0  ;;  %v7305_v35 = vadd.f32 %v7304_v24, %v7303_v22 }
 0x2b3   : > { %v7306_v26 = vpop.f32.mrf.mxu1  ;;  %v5876_v34 = vadd.f32 %v7283_v32, %v5836_v33 }
 0x2b4   : > { %v7285_v27 = vpop.f32.mrf.mxu0 }
 0x2b5   : > { %v7307_v28 = vpop.f32.mrf.mxu1  ;;  %v5916_v39 = vadd.f32 %v7305_v35, %v5876_v34 }
 0x2ce   : > { %v7325_v36 = vpop.f32.mrf.mxu0 }
 0x2cf   : > { %v7347_v37 = vpop.f32.mrf.mxu1 }
 0x2d0   : > { %v7326_v38 = vpop.f32.mrf.mxu0 }
 0x2d1   : > { %v7327_v40 = vadd.f32 %v7326_v38, %v7325_v36  ;;  %v7348_v41 = vpop.f32.mrf.mxu1 }
 0x2d2   : > { %v7328_v42 = vpop.f32.mrf.mxu0  ;;  %v7349_v44 = vadd.f32 %v7348_v41, %v7347_v37 }
 0x2d3   : > { %v5956_v43 = vadd.f32 %v7327_v40, %v5916_v39  ;;  %v7350_v45 = vpop.f32.mrf.mxu1 }
 0x2d4   : > { %v7329_v46 = vpop.f32.mrf.mxu0 }
 0x2d5   : > { %v5996_v47 = vadd.f32 %v7349_v44, %v5956_v43  ;;  %v7351_v48 = vpop.f32.mrf.mxu1 }
 0x2d7   : > { %6001 = vst [vmem:[%s248_s7] sm:$0xf] %v5996_v47 }
 0x2d8 PF: > { %s13_s14 = sadd.s32 1, %s7928_s14   ;;  %s9611_s12 = smov %s7924_s13 }
 0x2d9   : > { %p10_p5 = scmp.ge.s32.totalorder %s13_s14, 4   ;;  %s9612_s13 = smov %s9614_s15 }
 0x2db   :  { %12 = sbr.rel (!%p10_p5) target bundleno = 2 (0x2), region = 68 }

</bundles_post_ra>
